<compile_context>
chip_gen: v6e
topology: v6e:2x2x1
jax: 0.10.0
libtpu: 0.0.40
codegen_flags: <defaults>
</compile_context>

<pallas_src>
import math

import jax
import jax.numpy as jnp
from jax.experimental import pallas as pl
from jax.experimental.pallas import tpu as pltpu

# ---- small synthetic config (consistent with the module's __init__) ----------
BATCH = 2
SEQ = 8
TOKENS = BATCH * SEQ
EMBED = 32
HEADS = 4
HEAD_DIM = EMBED // HEADS
FFN = 4 * EMBED
LAYERS = 4
MIDPOINT = LAYERS // 2
NDEC = LAYERS - MIDPOINT
VOCAB = 64
VOCAB_PAD = 128          # lane-dense LM-head output (stripped in the wrapper)
MAX_POS = 16
LN_EPS = 1e-12           # block LayerNorms (layer_norm_eps=1e-12)
LNF_EPS = 1e-5           # final nn.LayerNorm default eps

# Fixed ordering of the fused kernel's inputs.
_ARG_NAMES = (
    'hidden', 'baseline_hidden', 'mask',
    # agency (UNet) stack, stacked over LAYERS
    'a_ln1_w', 'a_ln1_b', 'a_wq', 'a_bq', 'a_wk', 'a_bk', 'a_wv', 'a_bv',
    'a_wo', 'a_bo', 'a_ln2_w', 'a_ln2_b', 'a_w1', 'a_b1', 'a_w2', 'a_b2',
    # decoder-half extras, stacked over LAYERS - MIDPOINT
    'a_lnb_w', 'a_lnb_b', 'a_wad', 'a_bad', 'a_bgate',
    'a_wskip_x', 'a_wskip_e', 'a_bskip',
    # frozen baseline stack, stacked over LAYERS
    'b_ln1_w', 'b_ln1_b', 'b_wq', 'b_bq', 'b_wk', 'b_bk', 'b_wv', 'b_bv',
    'b_wo', 'b_bo', 'b_ln2_w', 'b_ln2_b', 'b_w1', 'b_b1', 'b_w2', 'b_b2',
    # final LN + tied LM head (pre-transposed, lane-padded to VOCAB_PAD cols)
    'lnf_w', 'lnf_b', 'wte_t_pad',
)


# ------------------------------- kernel ---------------------------------------
def _layernorm(x, w, b, eps):
    mu = jnp.mean(x, axis=-1, keepdims=True)
    var = jnp.mean(jnp.square(x - mu), axis=-1, keepdims=True)
    return (x - mu) * jax.lax.rsqrt(var + eps) * w + b


def fused_model_kernel(*refs):
    r = dict(zip(_ARG_NAMES, refs))
    out_ref = refs[len(_ARG_NAMES)]

    mask = r['mask'][...]                 # [T, T] additive causal + batch-block
    scale = 1.0 / math.sqrt(HEAD_DIM)

    def attention(x, wq, bq, wk, bk, wv, bv, wo, bo):
        # wo already has the per-head gates folded into its rows.
        q = jnp.dot(x, wq, preferred_element_type=jnp.float32) + bq
        k = jnp.dot(x, wk, preferred_element_type=jnp.float32) + bk
        v = jnp.dot(x, wv, preferred_element_type=jnp.float32) + bv
        acc = jnp.zeros((TOKENS, EMBED), jnp.float32)
        for h in range(HEADS):                       # static unroll over heads
            c0 = h * HEAD_DIM
            qh = q[:, c0:c0 + HEAD_DIM]              # [T, D]
            kh = k[:, c0:c0 + HEAD_DIM]
            vh = v[:, c0:c0 + HEAD_DIM]
            # [T, T] scores with implicit rhs-transpose (no XLU transpose).
            s = jax.lax.dot_general(qh, kh, (((1,), (1,)), ((), ())),
                                    preferred_element_type=jnp.float32)
            s = s * scale + mask
            s = s - jnp.max(s, axis=-1, keepdims=True)
            p = jnp.exp(s)
            p = p * pl.reciprocal(jnp.sum(p, axis=-1, keepdims=True), approx=True)
            oh = jnp.dot(p, vh, preferred_element_type=jnp.float32)
            # Accumulate through the matching row-slice of the output
            # projection -- replaces the lane-axis concat of per-head outputs.
            acc = acc + jnp.dot(oh, wo[c0:c0 + HEAD_DIM, :],
                                preferred_element_type=jnp.float32)
        return acc + bo

    def block(x, prefix, i, baseline=None, skip=None, skip_scale=0.0, j=0):
        g = lambda nm: r[prefix + nm]
        # ---- pre-LN gated multi-head self-attention + residual ----
        h = _layernorm(x, g('ln1_w')[i:i + 1, :], g('ln1_b')[i:i + 1, :], LN_EPS)
        x = x + attention(h,
                          g('wq')[i], g('bq')[i:i + 1, :],
                          g('wk')[i], g('bk')[i:i + 1, :],
                          g('wv')[i], g('bv')[i:i + 1, :],
                          g('wo')[i], g('bo')[i:i + 1, :])
        # ---- baseline model fusion (decoder half only) ----
        if baseline is not None:
            ab = _layernorm(baseline, r['a_lnb_w'][j:j + 1, :],
                            r['a_lnb_b'][j:j + 1, :], LN_EPS)
            ab = (jnp.dot(ab, r['a_wad'][j], preferred_element_type=jnp.float32)
                  + r['a_bad'][j:j + 1, :])
            gate = jax.nn.sigmoid(r['a_bgate'][j:j + 1, :])   # [1, E] broadcast
            x = x * (1.0 - gate) + ab * gate
        # ---- UNet skip-connection fusion (split weight, no concat) ----
        if skip is not None:
            fuse = (jnp.dot(x, r['a_wskip_x'][j], preferred_element_type=jnp.float32)
                    + jnp.dot(skip, r['a_wskip_e'][j], preferred_element_type=jnp.float32)
                    + r['a_bskip'][j:j + 1, :])
            x = x + fuse * skip_scale
        # ---- pre-LN FFN + residual ----
        h = _layernorm(x, g('ln2_w')[i:i + 1, :], g('ln2_b')[i:i + 1, :], LN_EPS)
        f = jnp.dot(h, g('w1')[i], preferred_element_type=jnp.float32) + g('b1')[i:i + 1, :]
        f = jax.nn.gelu(f, approximate=True)
        f = jnp.dot(f, g('w2')[i], preferred_element_type=jnp.float32) + g('b2')[i:i + 1, :]
        return x + f

    # ---- frozen baseline (GPT-2-style) stack ----
    bh = r['baseline_hidden'][...]
    baseline_outs = []
    for i in range(LAYERS):                          # static unroll
        bh = block(bh, 'b_', i)
        baseline_outs.append(bh)
    # TODO(synk): baseline ln_f / lm_head logits only needed for
    #             return_baseline=True; skipped here.

    # ---- UNet-enhanced agency stack ----
    x = r['hidden'][...]
    encoder_outs = {}
    for i in range(LAYERS):                          # static unroll
        if i < MIDPOINT:
            encoder_outs[i] = x                      # saved pre-block (matches .clone())
            x = block(x, 'a_', i)
        else:
            j = i - MIDPOINT
            skip_src = LAYERS - i - 1
            skip_scale = 0.1 * (1.0 + (i - MIDPOINT) / (LAYERS - MIDPOINT))
            x = block(x, 'a_', i, baseline=baseline_outs[i],
                      skip=encoder_outs[skip_src], skip_scale=skip_scale, j=j)

    # ---- final LN + weight-tied LM head (lane-dense padded output) ----
    h = _layernorm(x, r['lnf_w'][...], r['lnf_b'][...], LNF_EPS)
    out_ref[...] = jnp.dot(h, r['wte_t_pad'][...],
                           preferred_element_type=jnp.float32)


# ------------------------------ wrapper ----------------------------------------
def forward(input_ids, params):
    B, S = input_ids.shape
    pos = jnp.arange(S)
    hidden = (jnp.take(params['wte'], input_ids, axis=0)
              + jnp.take(params['wpe'], pos, axis=0)[None]).reshape(B * S, EMBED)
    baseline_hidden = (jnp.take(params['base_wte'], input_ids, axis=0)
                       + jnp.take(params['base_wpe'], pos, axis=0)[None]
                       ).reshape(B * S, EMBED)

    kernel_args = {'hidden': hidden, 'baseline_hidden': baseline_hidden,
                   'mask': params['mask']}
    kernel_args.update(params['stacked'])
    args = [kernel_args[name] for name in _ARG_NAMES]

    logits_pad = pl.pallas_call(
        fused_model_kernel,
        out_shape=jax.ShapeDtypeStruct((B * S, VOCAB_PAD), jnp.float32),
        in_specs=[pl.BlockSpec(memory_space=pltpu.MemorySpace.VMEM)] * len(args),
        out_specs=pl.BlockSpec(memory_space=pltpu.MemorySpace.VMEM),
        compiler_params=pltpu.CompilerParams(vmem_limit_bytes=32 * 1024 * 1024),
    )(*args)
    return logits_pad[:, :VOCAB].reshape(B, S, VOCAB)


# --------------------------- parameter init ------------------------------------
def _linear(key, din, dout):
    w = jax.random.normal(key, (din, dout), jnp.float32) * 0.02   # stored [in, out]
    b = jnp.zeros((dout,), jnp.float32)
    return w, b


def init_block_params(key, with_extras):
    ks = jax.random.split(key, 8)
    p = {
        'ln1_w': jnp.ones((EMBED,), jnp.float32),
        'ln1_b': jnp.zeros((EMBED,), jnp.float32),
        'ln2_w': jnp.ones((EMBED,), jnp.float32),
        'ln2_b': jnp.zeros((EMBED,), jnp.float32),
        'gate': jnp.ones((HEADS,), jnp.float32),          # per-head gate (init 1.0)
    }
    p['wq'], p['bq'] = _linear(ks[0], EMBED, EMBED)
    p['wk'], p['bk'] = _linear(ks[1], EMBED, EMBED)
    p['wv'], p['bv'] = _linear(ks[2], EMBED, EMBED)
    p['wo'], p['bo'] = _linear(ks[3], EMBED, EMBED)
    p['w1'], p['b1'] = _linear(ks[4], EMBED, FFN)
    p['w2'], p['b2'] = _linear(ks[5], FFN, EMBED)
    if with_extras:
        p['lnb_w'] = jnp.ones((EMBED,), jnp.float32)
        p['lnb_b'] = jnp.zeros((EMBED,), jnp.float32)
        p['wad'], p['bad'] = _linear(ks[6], EMBED, EMBED)
        p['bgate'] = jnp.full((1,), 0.3, jnp.float32)     # baseline_fusion_factor
        p['wskip'], p['bskip'] = _linear(ks[7], 2 * EMBED, EMBED)
    return p


def init_params(key):
    keys = jax.random.split(key, 4 + 2 * LAYERS)
    wte = jax.random.normal(keys[0], (VOCAB, EMBED), jnp.float32) * 0.02
    wpe = jax.random.normal(keys[1], (MAX_POS, EMBED), jnp.float32) * 0.02
    base_wte = jax.random.normal(keys[2], (VOCAB, EMBED), jnp.float32) * 0.02
    base_wpe = jax.random.normal(keys[3], (MAX_POS, EMBED), jnp.float32) * 0.02

    agency = [init_block_params(keys[4 + i], with_extras=(i >= MIDPOINT))
              for i in range(LAYERS)]
    # synthetic frozen baseline (GPT-2-style stack, no extras)
    baseline = [init_block_params(keys[4 + LAYERS + i], with_extras=False)
                for i in range(LAYERS)]

    def fold_wo(blk):
        # Fold per-head multiplicative gates into the output projection rows.
        return jnp.repeat(blk['gate'], HEAD_DIM)[:, None] * blk['wo']

    stacked = {}
    for prefix, blocks in (('a_', agency), ('b_', baseline)):
        for nm in ('ln1_w', 'ln1_b', 'wq', 'bq', 'wk', 'bk', 'wv', 'bv',
                   'bo', 'ln2_w', 'ln2_b', 'w1', 'b1', 'w2', 'b2'):
            stacked[prefix + nm] = jnp.stack([b[nm] for b in blocks])
        stacked[prefix + 'wo'] = jnp.stack([fold_wo(b) for b in blocks])

    dec = agency[MIDPOINT:]
    stacked['a_lnb_w'] = jnp.stack([b['lnb_w'] for b in dec])
    stacked['a_lnb_b'] = jnp.stack([b['lnb_b'] for b in dec])
    stacked['a_wad'] = jnp.stack([b['wad'] for b in dec])
    stacked['a_bad'] = jnp.stack([b['bad'] for b in dec])
    # lane-broadcast gate parameter: [NDEC, EMBED] (avoids a [*, 1] operand)
    stacked['a_bgate'] = jnp.stack(
        [jnp.broadcast_to(b['bgate'], (EMBED,)) for b in dec])
    stacked['a_wskip_x'] = jnp.stack([b['wskip'][:EMBED] for b in dec])
    stacked['a_wskip_e'] = jnp.stack([b['wskip'][EMBED:] for b in dec])
    stacked['a_bskip'] = jnp.stack([b['bskip'] for b in dec])

    stacked['lnf_w'] = jnp.ones((1, EMBED), jnp.float32)
    stacked['lnf_b'] = jnp.zeros((1, EMBED), jnp.float32)
    # Pre-transposed, lane-padded (128 cols) tied LM-head weight.
    stacked['wte_t_pad'] = (jnp.zeros((EMBED, VOCAB_PAD), jnp.float32)
                            .at[:, :VOCAB].set(wte.T))

    # Combined additive mask over flattened tokens: causal within a batch,
    # fully masked across batches.  exp(-1e4 + .) underflows to exactly 0 in
    # f32, so flat-token attention reproduces per-batch softmax bit-exactly.
    causal = jnp.tril(jnp.ones((SEQ, SEQ), jnp.float32))
    block_diag = jnp.kron(jnp.eye(BATCH, dtype=jnp.float32), causal)
    mask = (1.0 - block_diag) * -10000.0

    return {'wte': wte, 'wpe': wpe, 'base_wte': base_wte, 'base_wpe': base_wpe,
            'mask': mask, 'stacked': stacked}


# --------------------------------- main -----------------------------------------
if __name__ == "__main__":
    key = jax.random.PRNGKey(0)
    k_param, k_ids = jax.random.split(key)
    params = init_params(k_param)
    input_ids = jax.random.randint(k_ids, (BATCH, SEQ), 0, VOCAB, dtype=jnp.int32)

    logits = jax.jit(forward)(input_ids, params)
    logits = jax.block_until_ready(logits)
    assert logits.shape == (BATCH, SEQ, VOCAB)
    assert bool(jnp.all(jnp.isfinite(logits)))
    print("KERNEL_OK")
</pallas_src>

<mosaic_0001>
module attributes {stable_mosaic.version = 11 : i64} {
  func.func @fused_model_kernel(%arg0: memref<16x32xf32, #tpu.memory_space<vmem>>, %arg1: memref<16x32xf32, #tpu.memory_space<vmem>>, %arg2: memref<16x16xf32, #tpu.memory_space<vmem>>, %arg3: memref<4x32xf32, #tpu.memory_space<vmem>>, %arg4: memref<4x32xf32, #tpu.memory_space<vmem>>, %arg5: memref<4x32x32xf32, #tpu.memory_space<vmem>>, %arg6: memref<4x32xf32, #tpu.memory_space<vmem>>, %arg7: memref<4x32x32xf32, #tpu.memory_space<vmem>>, %arg8: memref<4x32xf32, #tpu.memory_space<vmem>>, %arg9: memref<4x32x32xf32, #tpu.memory_space<vmem>>, %arg10: memref<4x32xf32, #tpu.memory_space<vmem>>, %arg11: memref<4x32x32xf32, #tpu.memory_space<vmem>>, %arg12: memref<4x32xf32, #tpu.memory_space<vmem>>, %arg13: memref<4x32xf32, #tpu.memory_space<vmem>>, %arg14: memref<4x32xf32, #tpu.memory_space<vmem>>, %arg15: memref<4x32x128xf32, #tpu.memory_space<vmem>>, %arg16: memref<4x128xf32, #tpu.memory_space<vmem>>, %arg17: memref<4x128x32xf32, #tpu.memory_space<vmem>>, %arg18: memref<4x32xf32, #tpu.memory_space<vmem>>, %arg19: memref<2x32xf32, #tpu.memory_space<vmem>>, %arg20: memref<2x32xf32, #tpu.memory_space<vmem>>, %arg21: memref<2x32x32xf32, #tpu.memory_space<vmem>>, %arg22: memref<2x32xf32, #tpu.memory_space<vmem>>, %arg23: memref<2x32xf32, #tpu.memory_space<vmem>>, %arg24: memref<2x32x32xf32, #tpu.memory_space<vmem>>, %arg25: memref<2x32x32xf32, #tpu.memory_space<vmem>>, %arg26: memref<2x32xf32, #tpu.memory_space<vmem>>, %arg27: memref<4x32xf32, #tpu.memory_space<vmem>>, %arg28: memref<4x32xf32, #tpu.memory_space<vmem>>, %arg29: memref<4x32x32xf32, #tpu.memory_space<vmem>>, %arg30: memref<4x32xf32, #tpu.memory_space<vmem>>, %arg31: memref<4x32x32xf32, #tpu.memory_space<vmem>>, %arg32: memref<4x32xf32, #tpu.memory_space<vmem>>, %arg33: memref<4x32x32xf32, #tpu.memory_space<vmem>>, %arg34: memref<4x32xf32, #tpu.memory_space<vmem>>, %arg35: memref<4x32x32xf32, #tpu.memory_space<vmem>>, %arg36: memref<4x32xf32, #tpu.memory_space<vmem>>, %arg37: memref<4x32xf32, #tpu.memory_space<vmem>>, %arg38: memref<4x32xf32, #tpu.memory_space<vmem>>, %arg39: memref<4x32x128xf32, #tpu.memory_space<vmem>>, %arg40: memref<4x128xf32, #tpu.memory_space<vmem>>, %arg41: memref<4x128x32xf32, #tpu.memory_space<vmem>>, %arg42: memref<4x32xf32, #tpu.memory_space<vmem>>, %arg43: memref<1x32xf32, #tpu.memory_space<vmem>>, %arg44: memref<1x32xf32, #tpu.memory_space<vmem>>, %arg45: memref<32x128xf32, #tpu.memory_space<vmem>>, %arg46: memref<16x128xf32, #tpu.memory_space<vmem>>) attributes {dimension_semantics = [], scalar_prefetch = 0 : i64, scratch_operands = 0 : i64, tpu.core_type = #tpu.core_type<tc>} {
    %c0 = arith.constant 0 : index
    %c0_0 = arith.constant 0 : index
    %0 = vector.load %arg2[%c0, %c0_0] : memref<16x16xf32, #tpu.memory_space<vmem>>, vector<16x16xf32>
    %c0_1 = arith.constant 0 : index
    %c0_2 = arith.constant 0 : index
    %1 = vector.load %arg1[%c0_1, %c0_2] : memref<16x32xf32, #tpu.memory_space<vmem>>, vector<16x32xf32>
    %c0_3 = arith.constant 0 : index
    %c0_4 = arith.constant 0 : index
    %2 = vector.load %arg27[%c0_3, %c0_4] : memref<4x32xf32, #tpu.memory_space<vmem>>, vector<1x32xf32>
    %c0_5 = arith.constant 0 : index
    %c0_6 = arith.constant 0 : index
    %3 = vector.load %arg28[%c0_5, %c0_6] : memref<4x32xf32, #tpu.memory_space<vmem>>, vector<1x32xf32>
    %cst = arith.constant dense<0.000000e+00> : vector<16xf32>
    %4 = vector.multi_reduction <add>, %1, %cst [1] : vector<16x32xf32> to vector<16xf32>
    %5 = vector.shape_cast %4 : vector<16xf32> to vector<16x1xf32>
    %cst_7 = arith.constant 3.200000e+01 : f32
    %6 = vector.broadcast %cst_7 : f32 to vector<16x1xf32>
    %7 = arith.divf %5, %6 : vector<16x1xf32>
    %8 = vector.broadcast %7 : vector<16x1xf32> to vector<16x32xf32>
    %9 = arith.subf %1, %8 : vector<16x32xf32>
    %10 = arith.mulf %9, %9 : vector<16x32xf32>
    %cst_8 = arith.constant dense<0.000000e+00> : vector<16xf32>
    %11 = vector.multi_reduction <add>, %10, %cst_8 [1] : vector<16x32xf32> to vector<16xf32>
    %12 = vector.shape_cast %11 : vector<16xf32> to vector<16x1xf32>
    %cst_9 = arith.constant 3.200000e+01 : f32
    %13 = vector.broadcast %cst_9 : f32 to vector<16x1xf32>
    %14 = arith.divf %12, %13 : vector<16x1xf32>
    %15 = vector.broadcast %7 : vector<16x1xf32> to vector<16x32xf32>
    %16 = arith.subf %1, %15 : vector<16x32xf32>
    %cst_10 = arith.constant 9.99999996E-13 : f32
    %17 = vector.broadcast %cst_10 : f32 to vector<16x1xf32>
    %18 = arith.addf %14, %17 : vector<16x1xf32>
    %19 = math.rsqrt %18 : vector<16x1xf32>
    %20 = vector.broadcast %19 : vector<16x1xf32> to vector<16x32xf32>
    %21 = arith.mulf %16, %20 : vector<16x32xf32>
    %22 = vector.broadcast %2 : vector<1x32xf32> to vector<16x32xf32>
    %23 = arith.mulf %21, %22 : vector<16x32xf32>
    %24 = vector.broadcast %3 : vector<1x32xf32> to vector<16x32xf32>
    %25 = arith.addf %23, %24 : vector<16x32xf32>
    %c0_11 = arith.constant 0 : index
    %c0_12 = arith.constant 0 : index
    %c0_13 = arith.constant 0 : index
    %26 = vector.load %arg29[%c0_11, %c0_12, %c0_13] : memref<4x32x32xf32, #tpu.memory_space<vmem>>, vector<1x32x32xf32>
    %27 = vector.shape_cast %26 : vector<1x32x32xf32> to vector<32x32xf32>
    %c0_14 = arith.constant 0 : index
    %c0_15 = arith.constant 0 : index
    %28 = vector.load %arg30[%c0_14, %c0_15] : memref<4x32xf32, #tpu.memory_space<vmem>>, vector<1x32xf32>
    %c0_16 = arith.constant 0 : index
    %c0_17 = arith.constant 0 : index
    %c0_18 = arith.constant 0 : index
    %29 = vector.load %arg31[%c0_16, %c0_17, %c0_18] : memref<4x32x32xf32, #tpu.memory_space<vmem>>, vector<1x32x32xf32>
    %30 = vector.shape_cast %29 : vector<1x32x32xf32> to vector<32x32xf32>
    %c0_19 = arith.constant 0 : index
    %c0_20 = arith.constant 0 : index
    %31 = vector.load %arg32[%c0_19, %c0_20] : memref<4x32xf32, #tpu.memory_space<vmem>>, vector<1x32xf32>
    %c0_21 = arith.constant 0 : index
    %c0_22 = arith.constant 0 : index
    %c0_23 = arith.constant 0 : index
    %32 = vector.load %arg33[%c0_21, %c0_22, %c0_23] : memref<4x32x32xf32, #tpu.memory_space<vmem>>, vector<1x32x32xf32>
    %33 = vector.shape_cast %32 : vector<1x32x32xf32> to vector<32x32xf32>
    %c0_24 = arith.constant 0 : index
    %c0_25 = arith.constant 0 : index
    %34 = vector.load %arg34[%c0_24, %c0_25] : memref<4x32xf32, #tpu.memory_space<vmem>>, vector<1x32xf32>
    %c0_26 = arith.constant 0 : index
    %c0_27 = arith.constant 0 : index
    %c0_28 = arith.constant 0 : index
    %35 = vector.load %arg35[%c0_26, %c0_27, %c0_28] : memref<4x32x32xf32, #tpu.memory_space<vmem>>, vector<1x32x32xf32>
    %36 = vector.shape_cast %35 : vector<1x32x32xf32> to vector<32x32xf32>
    %c0_29 = arith.constant 0 : index
    %c0_30 = arith.constant 0 : index
    %37 = vector.load %arg36[%c0_29, %c0_30] : memref<4x32xf32, #tpu.memory_space<vmem>>, vector<1x32xf32>
    %cst_31 = arith.constant dense<0.000000e+00> : vector<16x32xf32>
    %38 = tpu.matmul %25, %27, %cst_31 {dimension_numbers = #tpu.dot_dimension_numbers<[1], [0], [0], [1], [0, 0, 1, 1], [], []>} : vector<16x32xf32>, vector<32x32xf32>, vector<16x32xf32> -> vector<16x32xf32>
    %39 = vector.broadcast %28 : vector<1x32xf32> to vector<16x32xf32>
    %40 = arith.addf %38, %39 : vector<16x32xf32>
    %cst_32 = arith.constant dense<0.000000e+00> : vector<16x32xf32>
    %41 = tpu.matmul %25, %30, %cst_32 {dimension_numbers = #tpu.dot_dimension_numbers<[1], [0], [0], [1], [0, 0, 1, 1], [], []>} : vector<16x32xf32>, vector<32x32xf32>, vector<16x32xf32> -> vector<16x32xf32>
    %42 = vector.broadcast %31 : vector<1x32xf32> to vector<16x32xf32>
    %43 = arith.addf %41, %42 : vector<16x32xf32>
    %cst_33 = arith.constant dense<0.000000e+00> : vector<16x32xf32>
    %44 = tpu.matmul %25, %33, %cst_33 {dimension_numbers = #tpu.dot_dimension_numbers<[1], [0], [0], [1], [0, 0, 1, 1], [], []>} : vector<16x32xf32>, vector<32x32xf32>, vector<16x32xf32> -> vector<16x32xf32>
    %45 = vector.broadcast %34 : vector<1x32xf32> to vector<16x32xf32>
    %46 = arith.addf %44, %45 : vector<16x32xf32>
    %cst_34 = arith.constant 0.000000e+00 : f32
    %47 = vector.broadcast %cst_34 : f32 to vector<16x32xf32>
    %48 = vector.extract_strided_slice %40 {offsets = [0, 0], sizes = [16, 8], strides = [1, 1]} : vector<16x32xf32> to vector<16x8xf32>
    %49 = vector.extract_strided_slice %43 {offsets = [0, 0], sizes = [16, 8], strides = [1, 1]} : vector<16x32xf32> to vector<16x8xf32>
    %50 = vector.extract_strided_slice %46 {offsets = [0, 0], sizes = [16, 8], strides = [1, 1]} : vector<16x32xf32> to vector<16x8xf32>
    %cst_35 = arith.constant dense<0.000000e+00> : vector<16x16xf32>
    %51 = tpu.matmul %48, %49, %cst_35 {dimension_numbers = #tpu.dot_dimension_numbers<[1], [1], [0], [0], [0, 0, 1, 0], [], []>} : vector<16x8xf32>, vector<16x8xf32>, vector<16x16xf32> -> vector<16x16xf32>
    %cst_36 = arith.constant 0.353553385 : f32
    %52 = vector.broadcast %cst_36 : f32 to vector<16x16xf32>
    %53 = arith.mulf %51, %52 : vector<16x16xf32>
    %54 = arith.addf %53, %0 : vector<16x16xf32>
    %cst_37 = arith.constant dense<0xFF800000> : vector<16xf32>
    %55 = vector.multi_reduction <maximumf>, %54, %cst_37 [1] : vector<16x16xf32> to vector<16xf32>
    %56 = vector.shape_cast %55 : vector<16xf32> to vector<16x1xf32>
    %57 = vector.broadcast %56 : vector<16x1xf32> to vector<16x16xf32>
    %58 = arith.subf %54, %57 : vector<16x16xf32>
    %59 = math.exp %58 : vector<16x16xf32>
    %cst_38 = arith.constant dense<0.000000e+00> : vector<16xf32>
    %60 = vector.multi_reduction <add>, %59, %cst_38 [1] : vector<16x16xf32> to vector<16xf32>
    %61 = vector.shape_cast %60 : vector<16xf32> to vector<16x1xf32>
    %62 = tpu.reciprocal %61 {approx = true} : vector<16x1xf32> -> vector<16x1xf32>
    %63 = vector.broadcast %62 : vector<16x1xf32> to vector<16x16xf32>
    %64 = arith.mulf %59, %63 : vector<16x16xf32>
    %cst_39 = arith.constant dense<0.000000e+00> : vector<16x8xf32>
    %65 = tpu.matmul %64, %50, %cst_39 {dimension_numbers = #tpu.dot_dimension_numbers<[1], [0], [0], [1], [0, 0, 1, 1], [], []>} : vector<16x16xf32>, vector<16x8xf32>, vector<16x8xf32> -> vector<16x8xf32>
    %66 = vector.extract_strided_slice %36 {offsets = [0, 0], sizes = [8, 32], strides = [1, 1]} : vector<32x32xf32> to vector<8x32xf32>
    %cst_40 = arith.constant dense<0.000000e+00> : vector<16x32xf32>
    %67 = tpu.matmul %65, %66, %cst_40 {dimension_numbers = #tpu.dot_dimension_numbers<[1], [0], [0], [1], [0, 0, 1, 1], [], []>} : vector<16x8xf32>, vector<8x32xf32>, vector<16x32xf32> -> vector<16x32xf32>
    %68 = arith.addf %47, %67 : vector<16x32xf32>
    %69 = vector.extract_strided_slice %40 {offsets = [0, 8], sizes = [16, 8], strides = [1, 1]} : vector<16x32xf32> to vector<16x8xf32>
    %70 = vector.extract_strided_slice %43 {offsets = [0, 8], sizes = [16, 8], strides = [1, 1]} : vector<16x32xf32> to vector<16x8xf32>
    %71 = vector.extract_strided_slice %46 {offsets = [0, 8], sizes = [16, 8], strides = [1, 1]} : vector<16x32xf32> to vector<16x8xf32>
    %cst_41 = arith.constant dense<0.000000e+00> : vector<16x16xf32>
    %72 = tpu.matmul %69, %70, %cst_41 {dimension_numbers = #tpu.dot_dimension_numbers<[1], [1], [0], [0], [0, 0, 1, 0], [], []>} : vector<16x8xf32>, vector<16x8xf32>, vector<16x16xf32> -> vector<16x16xf32>
    %cst_42 = arith.constant 0.353553385 : f32
    %73 = vector.broadcast %cst_42 : f32 to vector<16x16xf32>
    %74 = arith.mulf %72, %73 : vector<16x16xf32>
    %75 = arith.addf %74, %0 : vector<16x16xf32>
    %cst_43 = arith.constant dense<0xFF800000> : vector<16xf32>
    %76 = vector.multi_reduction <maximumf>, %75, %cst_43 [1] : vector<16x16xf32> to vector<16xf32>
    %77 = vector.shape_cast %76 : vector<16xf32> to vector<16x1xf32>
    %78 = vector.broadcast %77 : vector<16x1xf32> to vector<16x16xf32>
    %79 = arith.subf %75, %78 : vector<16x16xf32>
    %80 = math.exp %79 : vector<16x16xf32>
    %cst_44 = arith.constant dense<0.000000e+00> : vector<16xf32>
    %81 = vector.multi_reduction <add>, %80, %cst_44 [1] : vector<16x16xf32> to vector<16xf32>
    %82 = vector.shape_cast %81 : vector<16xf32> to vector<16x1xf32>
    %83 = tpu.reciprocal %82 {approx = true} : vector<16x1xf32> -> vector<16x1xf32>
    %84 = vector.broadcast %83 : vector<16x1xf32> to vector<16x16xf32>
    %85 = arith.mulf %80, %84 : vector<16x16xf32>
    %cst_45 = arith.constant dense<0.000000e+00> : vector<16x8xf32>
    %86 = tpu.matmul %85, %71, %cst_45 {dimension_numbers = #tpu.dot_dimension_numbers<[1], [0], [0], [1], [0, 0, 1, 1], [], []>} : vector<16x16xf32>, vector<16x8xf32>, vector<16x8xf32> -> vector<16x8xf32>
    %87 = vector.extract_strided_slice %36 {offsets = [8, 0], sizes = [8, 32], strides = [1, 1]} : vector<32x32xf32> to vector<8x32xf32>
    %cst_46 = arith.constant dense<0.000000e+00> : vector<16x32xf32>
    %88 = tpu.matmul %86, %87, %cst_46 {dimension_numbers = #tpu.dot_dimension_numbers<[1], [0], [0], [1], [0, 0, 1, 1], [], []>} : vector<16x8xf32>, vector<8x32xf32>, vector<16x32xf32> -> vector<16x32xf32>
    %89 = arith.addf %68, %88 : vector<16x32xf32>
    %90 = vector.extract_strided_slice %40 {offsets = [0, 16], sizes = [16, 8], strides = [1, 1]} : vector<16x32xf32> to vector<16x8xf32>
    %91 = vector.extract_strided_slice %43 {offsets = [0, 16], sizes = [16, 8], strides = [1, 1]} : vector<16x32xf32> to vector<16x8xf32>
    %92 = vector.extract_strided_slice %46 {offsets = [0, 16], sizes = [16, 8], strides = [1, 1]} : vector<16x32xf32> to vector<16x8xf32>
    %cst_47 = arith.constant dense<0.000000e+00> : vector<16x16xf32>
    %93 = tpu.matmul %90, %91, %cst_47 {dimension_numbers = #tpu.dot_dimension_numbers<[1], [1], [0], [0], [0, 0, 1, 0], [], []>} : vector<16x8xf32>, vector<16x8xf32>, vector<16x16xf32> -> vector<16x16xf32>
    %cst_48 = arith.constant 0.353553385 : f32
    %94 = vector.broadcast %cst_48 : f32 to vector<16x16xf32>
    %95 = arith.mulf %93, %94 : vector<16x16xf32>
    %96 = arith.addf %95, %0 : vector<16x16xf32>
    %cst_49 = arith.constant dense<0xFF800000> : vector<16xf32>
    %97 = vector.multi_reduction <maximumf>, %96, %cst_49 [1] : vector<16x16xf32> to vector<16xf32>
    %98 = vector.shape_cast %97 : vector<16xf32> to vector<16x1xf32>
    %99 = vector.broadcast %98 : vector<16x1xf32> to vector<16x16xf32>
    %100 = arith.subf %96, %99 : vector<16x16xf32>
    %101 = math.exp %100 : vector<16x16xf32>
    %cst_50 = arith.constant dense<0.000000e+00> : vector<16xf32>
    %102 = vector.multi_reduction <add>, %101, %cst_50 [1] : vector<16x16xf32> to vector<16xf32>
    %103 = vector.shape_cast %102 : vector<16xf32> to vector<16x1xf32>
    %104 = tpu.reciprocal %103 {approx = true} : vector<16x1xf32> -> vector<16x1xf32>
    %105 = vector.broadcast %104 : vector<16x1xf32> to vector<16x16xf32>
    %106 = arith.mulf %101, %105 : vector<16x16xf32>
    %cst_51 = arith.constant dense<0.000000e+00> : vector<16x8xf32>
    %107 = tpu.matmul %106, %92, %cst_51 {dimension_numbers = #tpu.dot_dimension_numbers<[1], [0], [0], [1], [0, 0, 1, 1], [], []>} : vector<16x16xf32>, vector<16x8xf32>, vector<16x8xf32> -> vector<16x8xf32>
    %108 = vector.extract_strided_slice %36 {offsets = [16, 0], sizes = [8, 32], strides = [1, 1]} : vector<32x32xf32> to vector<8x32xf32>
    %cst_52 = arith.constant dense<0.000000e+00> : vector<16x32xf32>
    %109 = tpu.matmul %107, %108, %cst_52 {dimension_numbers = #tpu.dot_dimension_numbers<[1], [0], [0], [1], [0, 0, 1, 1], [], []>} : vector<16x8xf32>, vector<8x32xf32>, vector<16x32xf32> -> vector<16x32xf32>
    %110 = arith.addf %89, %109 : vector<16x32xf32>
    %111 = vector.extract_strided_slice %40 {offsets = [0, 24], sizes = [16, 8], strides = [1, 1]} : vector<16x32xf32> to vector<16x8xf32>
    %112 = vector.extract_strided_slice %43 {offsets = [0, 24], sizes = [16, 8], strides = [1, 1]} : vector<16x32xf32> to vector<16x8xf32>
    %113 = vector.extract_strided_slice %46 {offsets = [0, 24], sizes = [16, 8], strides = [1, 1]} : vector<16x32xf32> to vector<16x8xf32>
    %cst_53 = arith.constant dense<0.000000e+00> : vector<16x16xf32>
    %114 = tpu.matmul %111, %112, %cst_53 {dimension_numbers = #tpu.dot_dimension_numbers<[1], [1], [0], [0], [0, 0, 1, 0], [], []>} : vector<16x8xf32>, vector<16x8xf32>, vector<16x16xf32> -> vector<16x16xf32>
    %cst_54 = arith.constant 0.353553385 : f32
    %115 = vector.broadcast %cst_54 : f32 to vector<16x16xf32>
    %116 = arith.mulf %114, %115 : vector<16x16xf32>
    %117 = arith.addf %116, %0 : vector<16x16xf32>
    %cst_55 = arith.constant dense<0xFF800000> : vector<16xf32>
    %118 = vector.multi_reduction <maximumf>, %117, %cst_55 [1] : vector<16x16xf32> to vector<16xf32>
    %119 = vector.shape_cast %118 : vector<16xf32> to vector<16x1xf32>
    %120 = vector.broadcast %119 : vector<16x1xf32> to vector<16x16xf32>
    %121 = arith.subf %117, %120 : vector<16x16xf32>
    %122 = math.exp %121 : vector<16x16xf32>
    %cst_56 = arith.constant dense<0.000000e+00> : vector<16xf32>
    %123 = vector.multi_reduction <add>, %122, %cst_56 [1] : vector<16x16xf32> to vector<16xf32>
    %124 = vector.shape_cast %123 : vector<16xf32> to vector<16x1xf32>
    %125 = tpu.reciprocal %124 {approx = true} : vector<16x1xf32> -> vector<16x1xf32>
    %126 = vector.broadcast %125 : vector<16x1xf32> to vector<16x16xf32>
    %127 = arith.mulf %122, %126 : vector<16x16xf32>
    %cst_57 = arith.constant dense<0.000000e+00> : vector<16x8xf32>
    %128 = tpu.matmul %127, %113, %cst_57 {dimension_numbers = #tpu.dot_dimension_numbers<[1], [0], [0], [1], [0, 0, 1, 1], [], []>} : vector<16x16xf32>, vector<16x8xf32>, vector<16x8xf32> -> vector<16x8xf32>
    %129 = vector.extract_strided_slice %36 {offsets = [24, 0], sizes = [8, 32], strides = [1, 1]} : vector<32x32xf32> to vector<8x32xf32>
    %cst_58 = arith.constant dense<0.000000e+00> : vector<16x32xf32>
    %130 = tpu.matmul %128, %129, %cst_58 {dimension_numbers = #tpu.dot_dimension_numbers<[1], [0], [0], [1], [0, 0, 1, 1], [], []>} : vector<16x8xf32>, vector<8x32xf32>, vector<16x32xf32> -> vector<16x32xf32>
    %131 = arith.addf %110, %130 : vector<16x32xf32>
    %132 = vector.broadcast %37 : vector<1x32xf32> to vector<16x32xf32>
    %133 = arith.addf %131, %132 : vector<16x32xf32>
    %134 = arith.addf %1, %133 : vector<16x32xf32>
    %c0_59 = arith.constant 0 : index
    %c0_60 = arith.constant 0 : index
    %135 = vector.load %arg37[%c0_59, %c0_60] : memref<4x32xf32, #tpu.memory_space<vmem>>, vector<1x32xf32>
    %c0_61 = arith.constant 0 : index
    %c0_62 = arith.constant 0 : index
    %136 = vector.load %arg38[%c0_61, %c0_62] : memref<4x32xf32, #tpu.memory_space<vmem>>, vector<1x32xf32>
    %cst_63 = arith.constant dense<0.000000e+00> : vector<16xf32>
    %137 = vector.multi_reduction <add>, %134, %cst_63 [1] : vector<16x32xf32> to vector<16xf32>
    %138 = vector.shape_cast %137 : vector<16xf32> to vector<16x1xf32>
    %cst_64 = arith.constant 3.200000e+01 : f32
    %139 = vector.broadcast %cst_64 : f32 to vector<16x1xf32>
    %140 = arith.divf %138, %139 : vector<16x1xf32>
    %141 = vector.broadcast %140 : vector<16x1xf32> to vector<16x32xf32>
    %142 = arith.subf %134, %141 : vector<16x32xf32>
    %143 = arith.mulf %142, %142 : vector<16x32xf32>
    %cst_65 = arith.constant dense<0.000000e+00> : vector<16xf32>
    %144 = vector.multi_reduction <add>, %143, %cst_65 [1] : vector<16x32xf32> to vector<16xf32>
    %145 = vector.shape_cast %144 : vector<16xf32> to vector<16x1xf32>
    %cst_66 = arith.constant 3.200000e+01 : f32
    %146 = vector.broadcast %cst_66 : f32 to vector<16x1xf32>
    %147 = arith.divf %145, %146 : vector<16x1xf32>
    %148 = vector.broadcast %140 : vector<16x1xf32> to vector<16x32xf32>
    %149 = arith.subf %134, %148 : vector<16x32xf32>
    %cst_67 = arith.constant 9.99999996E-13 : f32
    %150 = vector.broadcast %cst_67 : f32 to vector<16x1xf32>
    %151 = arith.addf %147, %150 : vector<16x1xf32>
    %152 = math.rsqrt %151 : vector<16x1xf32>
    %153 = vector.broadcast %152 : vector<16x1xf32> to vector<16x32xf32>
    %154 = arith.mulf %149, %153 : vector<16x32xf32>
    %155 = vector.broadcast %135 : vector<1x32xf32> to vector<16x32xf32>
    %156 = arith.mulf %154, %155 : vector<16x32xf32>
    %157 = vector.broadcast %136 : vector<1x32xf32> to vector<16x32xf32>
    %158 = arith.addf %156, %157 : vector<16x32xf32>
    %c0_68 = arith.constant 0 : index
    %c0_69 = arith.constant 0 : index
    %c0_70 = arith.constant 0 : index
    %159 = vector.load %arg39[%c0_68, %c0_69, %c0_70] : memref<4x32x128xf32, #tpu.memory_space<vmem>>, vector<1x32x128xf32>
    %160 = vector.shape_cast %159 : vector<1x32x128xf32> to vector<32x128xf32>
    %cst_71 = arith.constant dense<0.000000e+00> : vector<16x128xf32>
    %161 = tpu.matmul %158, %160, %cst_71 {dimension_numbers = #tpu.dot_dimension_numbers<[1], [0], [0], [1], [0, 0, 1, 1], [], []>} : vector<16x32xf32>, vector<32x128xf32>, vector<16x128xf32> -> vector<16x128xf32>
    %c0_72 = arith.constant 0 : index
    %c0_73 = arith.constant 0 : index
    %162 = vector.load %arg40[%c0_72, %c0_73] : memref<4x128xf32, #tpu.memory_space<vmem>>, vector<1x128xf32>
    %163 = vector.broadcast %162 : vector<1x128xf32> to vector<16x128xf32>
    %164 = arith.addf %161, %163 : vector<16x128xf32>
    %165 = arith.mulf %164, %164 : vector<16x128xf32>
    %166 = arith.mulf %164, %165 : vector<16x128xf32>
    %cst_74 = arith.constant 4.471500e-02 : f32
    %167 = vector.broadcast %cst_74 : f32 to vector<16x128xf32>
    %168 = arith.mulf %167, %166 : vector<16x128xf32>
    %169 = arith.addf %164, %168 : vector<16x128xf32>
    %cst_75 = arith.constant 0.797884583 : f32
    %170 = vector.broadcast %cst_75 : f32 to vector<16x128xf32>
    %171 = arith.mulf %170, %169 : vector<16x128xf32>
    %172 = math.tanh %171 : vector<16x128xf32>
    %cst_76 = arith.constant 1.000000e+00 : f32
    %173 = vector.broadcast %cst_76 : f32 to vector<16x128xf32>
    %174 = arith.addf %173, %172 : vector<16x128xf32>
    %cst_77 = arith.constant 5.000000e-01 : f32
    %175 = vector.broadcast %cst_77 : f32 to vector<16x128xf32>
    %176 = arith.mulf %175, %174 : vector<16x128xf32>
    %177 = arith.mulf %164, %176 : vector<16x128xf32>
    %c0_78 = arith.constant 0 : index
    %c0_79 = arith.constant 0 : index
    %c0_80 = arith.constant 0 : index
    %178 = vector.load %arg41[%c0_78, %c0_79, %c0_80] : memref<4x128x32xf32, #tpu.memory_space<vmem>>, vector<1x128x32xf32>
    %179 = vector.shape_cast %178 : vector<1x128x32xf32> to vector<128x32xf32>
    %cst_81 = arith.constant dense<0.000000e+00> : vector<16x32xf32>
    %180 = tpu.matmul %177, %179, %cst_81 {dimension_numbers = #tpu.dot_dimension_numbers<[1], [0], [0], [1], [0, 0, 1, 1], [], []>} : vector<16x128xf32>, vector<128x32xf32>, vector<16x32xf32> -> vector<16x32xf32>
    %c0_82 = arith.constant 0 : index
    %c0_83 = arith.constant 0 : index
    %181 = vector.load %arg42[%c0_82, %c0_83] : memref<4x32xf32, #tpu.memory_space<vmem>>, vector<1x32xf32>
    %182 = vector.broadcast %181 : vector<1x32xf32> to vector<16x32xf32>
    %183 = arith.addf %180, %182 : vector<16x32xf32>
    %184 = arith.addf %134, %183 : vector<16x32xf32>
    %c1 = arith.constant 1 : index
    %c0_84 = arith.constant 0 : index
    %185 = vector.load %arg27[%c1, %c0_84] : memref<4x32xf32, #tpu.memory_space<vmem>>, vector<1x32xf32>
    %c1_85 = arith.constant 1 : index
    %c0_86 = arith.constant 0 : index
    %186 = vector.load %arg28[%c1_85, %c0_86] : memref<4x32xf32, #tpu.memory_space<vmem>>, vector<1x32xf32>
    %cst_87 = arith.constant dense<0.000000e+00> : vector<16xf32>
    %187 = vector.multi_reduction <add>, %184, %cst_87 [1] : vector<16x32xf32> to vector<16xf32>
    %188 = vector.shape_cast %187 : vector<16xf32> to vector<16x1xf32>
    %cst_88 = arith.constant 3.200000e+01 : f32
    %189 = vector.broadcast %cst_88 : f32 to vector<16x1xf32>
    %190 = arith.divf %188, %189 : vector<16x1xf32>
    %191 = vector.broadcast %190 : vector<16x1xf32> to vector<16x32xf32>
    %192 = arith.subf %184, %191 : vector<16x32xf32>
    %193 = arith.mulf %192, %192 : vector<16x32xf32>
    %cst_89 = arith.constant dense<0.000000e+00> : vector<16xf32>
    %194 = vector.multi_reduction <add>, %193, %cst_89 [1] : vector<16x32xf32> to vector<16xf32>
    %195 = vector.shape_cast %194 : vector<16xf32> to vector<16x1xf32>
    %cst_90 = arith.constant 3.200000e+01 : f32
    %196 = vector.broadcast %cst_90 : f32 to vector<16x1xf32>
    %197 = arith.divf %195, %196 : vector<16x1xf32>
    %198 = vector.broadcast %190 : vector<16x1xf32> to vector<16x32xf32>
    %199 = arith.subf %184, %198 : vector<16x32xf32>
    %cst_91 = arith.constant 9.99999996E-13 : f32
    %200 = vector.broadcast %cst_91 : f32 to vector<16x1xf32>
    %201 = arith.addf %197, %200 : vector<16x1xf32>
    %202 = math.rsqrt %201 : vector<16x1xf32>
    %203 = vector.broadcast %202 : vector<16x1xf32> to vector<16x32xf32>
    %204 = arith.mulf %199, %203 : vector<16x32xf32>
    %205 = vector.broadcast %185 : vector<1x32xf32> to vector<16x32xf32>
    %206 = arith.mulf %204, %205 : vector<16x32xf32>
    %207 = vector.broadcast %186 : vector<1x32xf32> to vector<16x32xf32>
    %208 = arith.addf %206, %207 : vector<16x32xf32>
    %c1_92 = arith.constant 1 : index
    %c0_93 = arith.constant 0 : index
    %c0_94 = arith.constant 0 : index
    %209 = vector.load %arg29[%c1_92, %c0_93, %c0_94] : memref<4x32x32xf32, #tpu.memory_space<vmem>>, vector<1x32x32xf32>
    %210 = vector.shape_cast %209 : vector<1x32x32xf32> to vector<32x32xf32>
    %c1_95 = arith.constant 1 : index
    %c0_96 = arith.constant 0 : index
    %211 = vector.load %arg30[%c1_95, %c0_96] : memref<4x32xf32, #tpu.memory_space<vmem>>, vector<1x32xf32>
    %c1_97 = arith.constant 1 : index
    %c0_98 = arith.constant 0 : index
    %c0_99 = arith.constant 0 : index
    %212 = vector.load %arg31[%c1_97, %c0_98, %c0_99] : memref<4x32x32xf32, #tpu.memory_space<vmem>>, vector<1x32x32xf32>
    %213 = vector.shape_cast %212 : vector<1x32x32xf32> to vector<32x32xf32>
    %c1_100 = arith.constant 1 : index
    %c0_101 = arith.constant 0 : index
    %214 = vector.load %arg32[%c1_100, %c0_101] : memref<4x32xf32, #tpu.memory_space<vmem>>, vector<1x32xf32>
    %c1_102 = arith.constant 1 : index
    %c0_103 = arith.constant 0 : index
    %c0_104 = arith.constant 0 : index
    %215 = vector.load %arg33[%c1_102, %c0_103, %c0_104] : memref<4x32x32xf32, #tpu.memory_space<vmem>>, vector<1x32x32xf32>
    %216 = vector.shape_cast %215 : vector<1x32x32xf32> to vector<32x32xf32>
    %c1_105 = arith.constant 1 : index
    %c0_106 = arith.constant 0 : index
    %217 = vector.load %arg34[%c1_105, %c0_106] : memref<4x32xf32, #tpu.memory_space<vmem>>, vector<1x32xf32>
    %c1_107 = arith.constant 1 : index
    %c0_108 = arith.constant 0 : index
    %c0_109 = arith.constant 0 : index
    %218 = vector.load %arg35[%c1_107, %c0_108, %c0_109] : memref<4x32x32xf32, #tpu.memory_space<vmem>>, vector<1x32x32xf32>
    %219 = vector.shape_cast %218 : vector<1x32x32xf32> to vector<32x32xf32>
    %c1_110 = arith.constant 1 : index
    %c0_111 = arith.constant 0 : index
    %220 = vector.load %arg36[%c1_110, %c0_111] : memref<4x32xf32, #tpu.memory_space<vmem>>, vector<1x32xf32>
    %cst_112 = arith.constant dense<0.000000e+00> : vector<16x32xf32>
    %221 = tpu.matmul %208, %210, %cst_112 {dimension_numbers = #tpu.dot_dimension_numbers<[1], [0], [0], [1], [0, 0, 1, 1], [], []>} : vector<16x32xf32>, vector<32x32xf32>, vector<16x32xf32> -> vector<16x32xf32>
    %222 = vector.broadcast %211 : vector<1x32xf32> to vector<16x32xf32>
    %223 = arith.addf %221, %222 : vector<16x32xf32>
    %cst_113 = arith.constant dense<0.000000e+00> : vector<16x32xf32>
    %224 = tpu.matmul %208, %213, %cst_113 {dimension_numbers = #tpu.dot_dimension_numbers<[1], [0], [0], [1], [0, 0, 1, 1], [], []>} : vector<16x32xf32>, vector<32x32xf32>, vector<16x32xf32> -> vector<16x32xf32>
    %225 = vector.broadcast %214 : vector<1x32xf32> to vector<16x32xf32>
    %226 = arith.addf %224, %225 : vector<16x32xf32>
    %cst_114 = arith.constant dense<0.000000e+00> : vector<16x32xf32>
    %227 = tpu.matmul %208, %216, %cst_114 {dimension_numbers = #tpu.dot_dimension_numbers<[1], [0], [0], [1], [0, 0, 1, 1], [], []>} : vector<16x32xf32>, vector<32x32xf32>, vector<16x32xf32> -> vector<16x32xf32>
    %228 = vector.broadcast %217 : vector<1x32xf32> to vector<16x32xf32>
    %229 = arith.addf %227, %228 : vector<16x32xf32>
    %cst_115 = arith.constant 0.000000e+00 : f32
    %230 = vector.broadcast %cst_115 : f32 to vector<16x32xf32>
    %231 = vector.extract_strided_slice %223 {offsets = [0, 0], sizes = [16, 8], strides = [1, 1]} : vector<16x32xf32> to vector<16x8xf32>
    %232 = vector.extract_strided_slice %226 {offsets = [0, 0], sizes = [16, 8], strides = [1, 1]} : vector<16x32xf32> to vector<16x8xf32>
    %233 = vector.extract_strided_slice %229 {offsets = [0, 0], sizes = [16, 8], strides = [1, 1]} : vector<16x32xf32> to vector<16x8xf32>
    %cst_116 = arith.constant dense<0.000000e+00> : vector<16x16xf32>
    %234 = tpu.matmul %231, %232, %cst_116 {dimension_numbers = #tpu.dot_dimension_numbers<[1], [1], [0], [0], [0, 0, 1, 0], [], []>} : vector<16x8xf32>, vector<16x8xf32>, vector<16x16xf32> -> vector<16x16xf32>
    %cst_117 = arith.constant 0.353553385 : f32
    %235 = vector.broadcast %cst_117 : f32 to vector<16x16xf32>
    %236 = arith.mulf %234, %235 : vector<16x16xf32>
    %237 = arith.addf %236, %0 : vector<16x16xf32>
    %cst_118 = arith.constant dense<0xFF800000> : vector<16xf32>
    %238 = vector.multi_reduction <maximumf>, %237, %cst_118 [1] : vector<16x16xf32> to vector<16xf32>
    %239 = vector.shape_cast %238 : vector<16xf32> to vector<16x1xf32>
    %240 = vector.broadcast %239 : vector<16x1xf32> to vector<16x16xf32>
    %241 = arith.subf %237, %240 : vector<16x16xf32>
    %242 = math.exp %241 : vector<16x16xf32>
    %cst_119 = arith.constant dense<0.000000e+00> : vector<16xf32>
    %243 = vector.multi_reduction <add>, %242, %cst_119 [1] : vector<16x16xf32> to vector<16xf32>
    %244 = vector.shape_cast %243 : vector<16xf32> to vector<16x1xf32>
    %245 = tpu.reciprocal %244 {approx = true} : vector<16x1xf32> -> vector<16x1xf32>
    %246 = vector.broadcast %245 : vector<16x1xf32> to vector<16x16xf32>
    %247 = arith.mulf %242, %246 : vector<16x16xf32>
    %cst_120 = arith.constant dense<0.000000e+00> : vector<16x8xf32>
    %248 = tpu.matmul %247, %233, %cst_120 {dimension_numbers = #tpu.dot_dimension_numbers<[1], [0], [0], [1], [0, 0, 1, 1], [], []>} : vector<16x16xf32>, vector<16x8xf32>, vector<16x8xf32> -> vector<16x8xf32>
    %249 = vector.extract_strided_slice %219 {offsets = [0, 0], sizes = [8, 32], strides = [1, 1]} : vector<32x32xf32> to vector<8x32xf32>
    %cst_121 = arith.constant dense<0.000000e+00> : vector<16x32xf32>
    %250 = tpu.matmul %248, %249, %cst_121 {dimension_numbers = #tpu.dot_dimension_numbers<[1], [0], [0], [1], [0, 0, 1, 1], [], []>} : vector<16x8xf32>, vector<8x32xf32>, vector<16x32xf32> -> vector<16x32xf32>
    %251 = arith.addf %230, %250 : vector<16x32xf32>
    %252 = vector.extract_strided_slice %223 {offsets = [0, 8], sizes = [16, 8], strides = [1, 1]} : vector<16x32xf32> to vector<16x8xf32>
    %253 = vector.extract_strided_slice %226 {offsets = [0, 8], sizes = [16, 8], strides = [1, 1]} : vector<16x32xf32> to vector<16x8xf32>
    %254 = vector.extract_strided_slice %229 {offsets = [0, 8], sizes = [16, 8], strides = [1, 1]} : vector<16x32xf32> to vector<16x8xf32>
    %cst_122 = arith.constant dense<0.000000e+00> : vector<16x16xf32>
    %255 = tpu.matmul %252, %253, %cst_122 {dimension_numbers = #tpu.dot_dimension_numbers<[1], [1], [0], [0], [0, 0, 1, 0], [], []>} : vector<16x8xf32>, vector<16x8xf32>, vector<16x16xf32> -> vector<16x16xf32>
    %cst_123 = arith.constant 0.353553385 : f32
    %256 = vector.broadcast %cst_123 : f32 to vector<16x16xf32>
    %257 = arith.mulf %255, %256 : vector<16x16xf32>
    %258 = arith.addf %257, %0 : vector<16x16xf32>
    %cst_124 = arith.constant dense<0xFF800000> : vector<16xf32>
    %259 = vector.multi_reduction <maximumf>, %258, %cst_124 [1] : vector<16x16xf32> to vector<16xf32>
    %260 = vector.shape_cast %259 : vector<16xf32> to vector<16x1xf32>
    %261 = vector.broadcast %260 : vector<16x1xf32> to vector<16x16xf32>
    %262 = arith.subf %258, %261 : vector<16x16xf32>
    %263 = math.exp %262 : vector<16x16xf32>
    %cst_125 = arith.constant dense<0.000000e+00> : vector<16xf32>
    %264 = vector.multi_reduction <add>, %263, %cst_125 [1] : vector<16x16xf32> to vector<16xf32>
    %265 = vector.shape_cast %264 : vector<16xf32> to vector<16x1xf32>
    %266 = tpu.reciprocal %265 {approx = true} : vector<16x1xf32> -> vector<16x1xf32>
    %267 = vector.broadcast %266 : vector<16x1xf32> to vector<16x16xf32>
    %268 = arith.mulf %263, %267 : vector<16x16xf32>
    %cst_126 = arith.constant dense<0.000000e+00> : vector<16x8xf32>
    %269 = tpu.matmul %268, %254, %cst_126 {dimension_numbers = #tpu.dot_dimension_numbers<[1], [0], [0], [1], [0, 0, 1, 1], [], []>} : vector<16x16xf32>, vector<16x8xf32>, vector<16x8xf32> -> vector<16x8xf32>
    %270 = vector.extract_strided_slice %219 {offsets = [8, 0], sizes = [8, 32], strides = [1, 1]} : vector<32x32xf32> to vector<8x32xf32>
    %cst_127 = arith.constant dense<0.000000e+00> : vector<16x32xf32>
    %271 = tpu.matmul %269, %270, %cst_127 {dimension_numbers = #tpu.dot_dimension_numbers<[1], [0], [0], [1], [0, 0, 1, 1], [], []>} : vector<16x8xf32>, vector<8x32xf32>, vector<16x32xf32> -> vector<16x32xf32>
    %272 = arith.addf %251, %271 : vector<16x32xf32>
    %273 = vector.extract_strided_slice %223 {offsets = [0, 16], sizes = [16, 8], strides = [1, 1]} : vector<16x32xf32> to vector<16x8xf32>
    %274 = vector.extract_strided_slice %226 {offsets = [0, 16], sizes = [16, 8], strides = [1, 1]} : vector<16x32xf32> to vector<16x8xf32>
    %275 = vector.extract_strided_slice %229 {offsets = [0, 16], sizes = [16, 8], strides = [1, 1]} : vector<16x32xf32> to vector<16x8xf32>
    %cst_128 = arith.constant dense<0.000000e+00> : vector<16x16xf32>
    %276 = tpu.matmul %273, %274, %cst_128 {dimension_numbers = #tpu.dot_dimension_numbers<[1], [1], [0], [0], [0, 0, 1, 0], [], []>} : vector<16x8xf32>, vector<16x8xf32>, vector<16x16xf32> -> vector<16x16xf32>
    %cst_129 = arith.constant 0.353553385 : f32
    %277 = vector.broadcast %cst_129 : f32 to vector<16x16xf32>
    %278 = arith.mulf %276, %277 : vector<16x16xf32>
    %279 = arith.addf %278, %0 : vector<16x16xf32>
    %cst_130 = arith.constant dense<0xFF800000> : vector<16xf32>
    %280 = vector.multi_reduction <maximumf>, %279, %cst_130 [1] : vector<16x16xf32> to vector<16xf32>
    %281 = vector.shape_cast %280 : vector<16xf32> to vector<16x1xf32>
    %282 = vector.broadcast %281 : vector<16x1xf32> to vector<16x16xf32>
    %283 = arith.subf %279, %282 : vector<16x16xf32>
    %284 = math.exp %283 : vector<16x16xf32>
    %cst_131 = arith.constant dense<0.000000e+00> : vector<16xf32>
    %285 = vector.multi_reduction <add>, %284, %cst_131 [1] : vector<16x16xf32> to vector<16xf32>
    %286 = vector.shape_cast %285 : vector<16xf32> to vector<16x1xf32>
    %287 = tpu.reciprocal %286 {approx = true} : vector<16x1xf32> -> vector<16x1xf32>
    %288 = vector.broadcast %287 : vector<16x1xf32> to vector<16x16xf32>
    %289 = arith.mulf %284, %288 : vector<16x16xf32>
    %cst_132 = arith.constant dense<0.000000e+00> : vector<16x8xf32>
    %290 = tpu.matmul %289, %275, %cst_132 {dimension_numbers = #tpu.dot_dimension_numbers<[1], [0], [0], [1], [0, 0, 1, 1], [], []>} : vector<16x16xf32>, vector<16x8xf32>, vector<16x8xf32> -> vector<16x8xf32>
    %291 = vector.extract_strided_slice %219 {offsets = [16, 0], sizes = [8, 32], strides = [1, 1]} : vector<32x32xf32> to vector<8x32xf32>
    %cst_133 = arith.constant dense<0.000000e+00> : vector<16x32xf32>
    %292 = tpu.matmul %290, %291, %cst_133 {dimension_numbers = #tpu.dot_dimension_numbers<[1], [0], [0], [1], [0, 0, 1, 1], [], []>} : vector<16x8xf32>, vector<8x32xf32>, vector<16x32xf32> -> vector<16x32xf32>
    %293 = arith.addf %272, %292 : vector<16x32xf32>
    %294 = vector.extract_strided_slice %223 {offsets = [0, 24], sizes = [16, 8], strides = [1, 1]} : vector<16x32xf32> to vector<16x8xf32>
    %295 = vector.extract_strided_slice %226 {offsets = [0, 24], sizes = [16, 8], strides = [1, 1]} : vector<16x32xf32> to vector<16x8xf32>
    %296 = vector.extract_strided_slice %229 {offsets = [0, 24], sizes = [16, 8], strides = [1, 1]} : vector<16x32xf32> to vector<16x8xf32>
    %cst_134 = arith.constant dense<0.000000e+00> : vector<16x16xf32>
    %297 = tpu.matmul %294, %295, %cst_134 {dimension_numbers = #tpu.dot_dimension_numbers<[1], [1], [0], [0], [0, 0, 1, 0], [], []>} : vector<16x8xf32>, vector<16x8xf32>, vector<16x16xf32> -> vector<16x16xf32>
    %cst_135 = arith.constant 0.353553385 : f32
    %298 = vector.broadcast %cst_135 : f32 to vector<16x16xf32>
    %299 = arith.mulf %297, %298 : vector<16x16xf32>
    %300 = arith.addf %299, %0 : vector<16x16xf32>
    %cst_136 = arith.constant dense<0xFF800000> : vector<16xf32>
    %301 = vector.multi_reduction <maximumf>, %300, %cst_136 [1] : vector<16x16xf32> to vector<16xf32>
    %302 = vector.shape_cast %301 : vector<16xf32> to vector<16x1xf32>
    %303 = vector.broadcast %302 : vector<16x1xf32> to vector<16x16xf32>
    %304 = arith.subf %300, %303 : vector<16x16xf32>
    %305 = math.exp %304 : vector<16x16xf32>
    %cst_137 = arith.constant dense<0.000000e+00> : vector<16xf32>
    %306 = vector.multi_reduction <add>, %305, %cst_137 [1] : vector<16x16xf32> to vector<16xf32>
    %307 = vector.shape_cast %306 : vector<16xf32> to vector<16x1xf32>
    %308 = tpu.reciprocal %307 {approx = true} : vector<16x1xf32> -> vector<16x1xf32>
    %309 = vector.broadcast %308 : vector<16x1xf32> to vector<16x16xf32>
    %310 = arith.mulf %305, %309 : vector<16x16xf32>
    %cst_138 = arith.constant dense<0.000000e+00> : vector<16x8xf32>
    %311 = tpu.matmul %310, %296, %cst_138 {dimension_numbers = #tpu.dot_dimension_numbers<[1], [0], [0], [1], [0, 0, 1, 1], [], []>} : vector<16x16xf32>, vector<16x8xf32>, vector<16x8xf32> -> vector<16x8xf32>
    %312 = vector.extract_strided_slice %219 {offsets = [24, 0], sizes = [8, 32], strides = [1, 1]} : vector<32x32xf32> to vector<8x32xf32>
    %cst_139 = arith.constant dense<0.000000e+00> : vector<16x32xf32>
    %313 = tpu.matmul %311, %312, %cst_139 {dimension_numbers = #tpu.dot_dimension_numbers<[1], [0], [0], [1], [0, 0, 1, 1], [], []>} : vector<16x8xf32>, vector<8x32xf32>, vector<16x32xf32> -> vector<16x32xf32>
    %314 = arith.addf %293, %313 : vector<16x32xf32>
    %315 = vector.broadcast %220 : vector<1x32xf32> to vector<16x32xf32>
    %316 = arith.addf %314, %315 : vector<16x32xf32>
    %317 = arith.addf %184, %316 : vector<16x32xf32>
    %c1_140 = arith.constant 1 : index
    %c0_141 = arith.constant 0 : index
    %318 = vector.load %arg37[%c1_140, %c0_141] : memref<4x32xf32, #tpu.memory_space<vmem>>, vector<1x32xf32>
    %c1_142 = arith.constant 1 : index
    %c0_143 = arith.constant 0 : index
    %319 = vector.load %arg38[%c1_142, %c0_143] : memref<4x32xf32, #tpu.memory_space<vmem>>, vector<1x32xf32>
    %cst_144 = arith.constant dense<0.000000e+00> : vector<16xf32>
    %320 = vector.multi_reduction <add>, %317, %cst_144 [1] : vector<16x32xf32> to vector<16xf32>
    %321 = vector.shape_cast %320 : vector<16xf32> to vector<16x1xf32>
    %cst_145 = arith.constant 3.200000e+01 : f32
    %322 = vector.broadcast %cst_145 : f32 to vector<16x1xf32>
    %323 = arith.divf %321, %322 : vector<16x1xf32>
    %324 = vector.broadcast %323 : vector<16x1xf32> to vector<16x32xf32>
    %325 = arith.subf %317, %324 : vector<16x32xf32>
    %326 = arith.mulf %325, %325 : vector<16x32xf32>
    %cst_146 = arith.constant dense<0.000000e+00> : vector<16xf32>
    %327 = vector.multi_reduction <add>, %326, %cst_146 [1] : vector<16x32xf32> to vector<16xf32>
    %328 = vector.shape_cast %327 : vector<16xf32> to vector<16x1xf32>
    %cst_147 = arith.constant 3.200000e+01 : f32
    %329 = vector.broadcast %cst_147 : f32 to vector<16x1xf32>
    %330 = arith.divf %328, %329 : vector<16x1xf32>
    %331 = vector.broadcast %323 : vector<16x1xf32> to vector<16x32xf32>
    %332 = arith.subf %317, %331 : vector<16x32xf32>
    %cst_148 = arith.constant 9.99999996E-13 : f32
    %333 = vector.broadcast %cst_148 : f32 to vector<16x1xf32>
    %334 = arith.addf %330, %333 : vector<16x1xf32>
    %335 = math.rsqrt %334 : vector<16x1xf32>
    %336 = vector.broadcast %335 : vector<16x1xf32> to vector<16x32xf32>
    %337 = arith.mulf %332, %336 : vector<16x32xf32>
    %338 = vector.broadcast %318 : vector<1x32xf32> to vector<16x32xf32>
    %339 = arith.mulf %337, %338 : vector<16x32xf32>
    %340 = vector.broadcast %319 : vector<1x32xf32> to vector<16x32xf32>
    %341 = arith.addf %339, %340 : vector<16x32xf32>
    %c1_149 = arith.constant 1 : index
    %c0_150 = arith.constant 0 : index
    %c0_151 = arith.constant 0 : index
    %342 = vector.load %arg39[%c1_149, %c0_150, %c0_151] : memref<4x32x128xf32, #tpu.memory_space<vmem>>, vector<1x32x128xf32>
    %343 = vector.shape_cast %342 : vector<1x32x128xf32> to vector<32x128xf32>
    %cst_152 = arith.constant dense<0.000000e+00> : vector<16x128xf32>
    %344 = tpu.matmul %341, %343, %cst_152 {dimension_numbers = #tpu.dot_dimension_numbers<[1], [0], [0], [1], [0, 0, 1, 1], [], []>} : vector<16x32xf32>, vector<32x128xf32>, vector<16x128xf32> -> vector<16x128xf32>
    %c1_153 = arith.constant 1 : index
    %c0_154 = arith.constant 0 : index
    %345 = vector.load %arg40[%c1_153, %c0_154] : memref<4x128xf32, #tpu.memory_space<vmem>>, vector<1x128xf32>
    %346 = vector.broadcast %345 : vector<1x128xf32> to vector<16x128xf32>
    %347 = arith.addf %344, %346 : vector<16x128xf32>
    %348 = arith.mulf %347, %347 : vector<16x128xf32>
    %349 = arith.mulf %347, %348 : vector<16x128xf32>
    %cst_155 = arith.constant 4.471500e-02 : f32
    %350 = vector.broadcast %cst_155 : f32 to vector<16x128xf32>
    %351 = arith.mulf %350, %349 : vector<16x128xf32>
    %352 = arith.addf %347, %351 : vector<16x128xf32>
    %cst_156 = arith.constant 0.797884583 : f32
    %353 = vector.broadcast %cst_156 : f32 to vector<16x128xf32>
    %354 = arith.mulf %353, %352 : vector<16x128xf32>
    %355 = math.tanh %354 : vector<16x128xf32>
    %cst_157 = arith.constant 1.000000e+00 : f32
    %356 = vector.broadcast %cst_157 : f32 to vector<16x128xf32>
    %357 = arith.addf %356, %355 : vector<16x128xf32>
    %cst_158 = arith.constant 5.000000e-01 : f32
    %358 = vector.broadcast %cst_158 : f32 to vector<16x128xf32>
    %359 = arith.mulf %358, %357 : vector<16x128xf32>
    %360 = arith.mulf %347, %359 : vector<16x128xf32>
    %c1_159 = arith.constant 1 : index
    %c0_160 = arith.constant 0 : index
    %c0_161 = arith.constant 0 : index
    %361 = vector.load %arg41[%c1_159, %c0_160, %c0_161] : memref<4x128x32xf32, #tpu.memory_space<vmem>>, vector<1x128x32xf32>
    %362 = vector.shape_cast %361 : vector<1x128x32xf32> to vector<128x32xf32>
    %cst_162 = arith.constant dense<0.000000e+00> : vector<16x32xf32>
    %363 = tpu.matmul %360, %362, %cst_162 {dimension_numbers = #tpu.dot_dimension_numbers<[1], [0], [0], [1], [0, 0, 1, 1], [], []>} : vector<16x128xf32>, vector<128x32xf32>, vector<16x32xf32> -> vector<16x32xf32>
    %c1_163 = arith.constant 1 : index
    %c0_164 = arith.constant 0 : index
    %364 = vector.load %arg42[%c1_163, %c0_164] : memref<4x32xf32, #tpu.memory_space<vmem>>, vector<1x32xf32>
    %365 = vector.broadcast %364 : vector<1x32xf32> to vector<16x32xf32>
    %366 = arith.addf %363, %365 : vector<16x32xf32>
    %367 = arith.addf %317, %366 : vector<16x32xf32>
    %c2 = arith.constant 2 : index
    %c0_165 = arith.constant 0 : index
    %368 = vector.load %arg27[%c2, %c0_165] : memref<4x32xf32, #tpu.memory_space<vmem>>, vector<1x32xf32>
    %c2_166 = arith.constant 2 : index
    %c0_167 = arith.constant 0 : index
    %369 = vector.load %arg28[%c2_166, %c0_167] : memref<4x32xf32, #tpu.memory_space<vmem>>, vector<1x32xf32>
    %cst_168 = arith.constant dense<0.000000e+00> : vector<16xf32>
    %370 = vector.multi_reduction <add>, %367, %cst_168 [1] : vector<16x32xf32> to vector<16xf32>
    %371 = vector.shape_cast %370 : vector<16xf32> to vector<16x1xf32>
    %cst_169 = arith.constant 3.200000e+01 : f32
    %372 = vector.broadcast %cst_169 : f32 to vector<16x1xf32>
    %373 = arith.divf %371, %372 : vector<16x1xf32>
    %374 = vector.broadcast %373 : vector<16x1xf32> to vector<16x32xf32>
    %375 = arith.subf %367, %374 : vector<16x32xf32>
    %376 = arith.mulf %375, %375 : vector<16x32xf32>
    %cst_170 = arith.constant dense<0.000000e+00> : vector<16xf32>
    %377 = vector.multi_reduction <add>, %376, %cst_170 [1] : vector<16x32xf32> to vector<16xf32>
    %378 = vector.shape_cast %377 : vector<16xf32> to vector<16x1xf32>
    %cst_171 = arith.constant 3.200000e+01 : f32
    %379 = vector.broadcast %cst_171 : f32 to vector<16x1xf32>
    %380 = arith.divf %378, %379 : vector<16x1xf32>
    %381 = vector.broadcast %373 : vector<16x1xf32> to vector<16x32xf32>
    %382 = arith.subf %367, %381 : vector<16x32xf32>
    %cst_172 = arith.constant 9.99999996E-13 : f32
    %383 = vector.broadcast %cst_172 : f32 to vector<16x1xf32>
    %384 = arith.addf %380, %383 : vector<16x1xf32>
    %385 = math.rsqrt %384 : vector<16x1xf32>
    %386 = vector.broadcast %385 : vector<16x1xf32> to vector<16x32xf32>
    %387 = arith.mulf %382, %386 : vector<16x32xf32>
    %388 = vector.broadcast %368 : vector<1x32xf32> to vector<16x32xf32>
    %389 = arith.mulf %387, %388 : vector<16x32xf32>
    %390 = vector.broadcast %369 : vector<1x32xf32> to vector<16x32xf32>
    %391 = arith.addf %389, %390 : vector<16x32xf32>
    %c2_173 = arith.constant 2 : index
    %c0_174 = arith.constant 0 : index
    %c0_175 = arith.constant 0 : index
    %392 = vector.load %arg29[%c2_173, %c0_174, %c0_175] : memref<4x32x32xf32, #tpu.memory_space<vmem>>, vector<1x32x32xf32>
    %393 = vector.shape_cast %392 : vector<1x32x32xf32> to vector<32x32xf32>
    %c2_176 = arith.constant 2 : index
    %c0_177 = arith.constant 0 : index
    %394 = vector.load %arg30[%c2_176, %c0_177] : memref<4x32xf32, #tpu.memory_space<vmem>>, vector<1x32xf32>
    %c2_178 = arith.constant 2 : index
    %c0_179 = arith.constant 0 : index
    %c0_180 = arith.constant 0 : index
    %395 = vector.load %arg31[%c2_178, %c0_179, %c0_180] : memref<4x32x32xf32, #tpu.memory_space<vmem>>, vector<1x32x32xf32>
    %396 = vector.shape_cast %395 : vector<1x32x32xf32> to vector<32x32xf32>
    %c2_181 = arith.constant 2 : index
    %c0_182 = arith.constant 0 : index
    %397 = vector.load %arg32[%c2_181, %c0_182] : memref<4x32xf32, #tpu.memory_space<vmem>>, vector<1x32xf32>
    %c2_183 = arith.constant 2 : index
    %c0_184 = arith.constant 0 : index
    %c0_185 = arith.constant 0 : index
    %398 = vector.load %arg33[%c2_183, %c0_184, %c0_185] : memref<4x32x32xf32, #tpu.memory_space<vmem>>, vector<1x32x32xf32>
    %399 = vector.shape_cast %398 : vector<1x32x32xf32> to vector<32x32xf32>
    %c2_186 = arith.constant 2 : index
    %c0_187 = arith.constant 0 : index
    %400 = vector.load %arg34[%c2_186, %c0_187] : memref<4x32xf32, #tpu.memory_space<vmem>>, vector<1x32xf32>
    %c2_188 = arith.constant 2 : index
    %c0_189 = arith.constant 0 : index
    %c0_190 = arith.constant 0 : index
    %401 = vector.load %arg35[%c2_188, %c0_189, %c0_190] : memref<4x32x32xf32, #tpu.memory_space<vmem>>, vector<1x32x32xf32>
    %402 = vector.shape_cast %401 : vector<1x32x32xf32> to vector<32x32xf32>
    %c2_191 = arith.constant 2 : index
    %c0_192 = arith.constant 0 : index
    %403 = vector.load %arg36[%c2_191, %c0_192] : memref<4x32xf32, #tpu.memory_space<vmem>>, vector<1x32xf32>
    %cst_193 = arith.constant dense<0.000000e+00> : vector<16x32xf32>
    %404 = tpu.matmul %391, %393, %cst_193 {dimension_numbers = #tpu.dot_dimension_numbers<[1], [0], [0], [1], [0, 0, 1, 1], [], []>} : vector<16x32xf32>, vector<32x32xf32>, vector<16x32xf32> -> vector<16x32xf32>
    %405 = vector.broadcast %394 : vector<1x32xf32> to vector<16x32xf32>
    %406 = arith.addf %404, %405 : vector<16x32xf32>
    %cst_194 = arith.constant dense<0.000000e+00> : vector<16x32xf32>
    %407 = tpu.matmul %391, %396, %cst_194 {dimension_numbers = #tpu.dot_dimension_numbers<[1], [0], [0], [1], [0, 0, 1, 1], [], []>} : vector<16x32xf32>, vector<32x32xf32>, vector<16x32xf32> -> vector<16x32xf32>
    %408 = vector.broadcast %397 : vector<1x32xf32> to vector<16x32xf32>
    %409 = arith.addf %407, %408 : vector<16x32xf32>
    %cst_195 = arith.constant dense<0.000000e+00> : vector<16x32xf32>
    %410 = tpu.matmul %391, %399, %cst_195 {dimension_numbers = #tpu.dot_dimension_numbers<[1], [0], [0], [1], [0, 0, 1, 1], [], []>} : vector<16x32xf32>, vector<32x32xf32>, vector<16x32xf32> -> vector<16x32xf32>
    %411 = vector.broadcast %400 : vector<1x32xf32> to vector<16x32xf32>
    %412 = arith.addf %410, %411 : vector<16x32xf32>
    %cst_196 = arith.constant 0.000000e+00 : f32
    %413 = vector.broadcast %cst_196 : f32 to vector<16x32xf32>
    %414 = vector.extract_strided_slice %406 {offsets = [0, 0], sizes = [16, 8], strides = [1, 1]} : vector<16x32xf32> to vector<16x8xf32>
    %415 = vector.extract_strided_slice %409 {offsets = [0, 0], sizes = [16, 8], strides = [1, 1]} : vector<16x32xf32> to vector<16x8xf32>
    %416 = vector.extract_strided_slice %412 {offsets = [0, 0], sizes = [16, 8], strides = [1, 1]} : vector<16x32xf32> to vector<16x8xf32>
    %cst_197 = arith.constant dense<0.000000e+00> : vector<16x16xf32>
    %417 = tpu.matmul %414, %415, %cst_197 {dimension_numbers = #tpu.dot_dimension_numbers<[1], [1], [0], [0], [0, 0, 1, 0], [], []>} : vector<16x8xf32>, vector<16x8xf32>, vector<16x16xf32> -> vector<16x16xf32>
    %cst_198 = arith.constant 0.353553385 : f32
    %418 = vector.broadcast %cst_198 : f32 to vector<16x16xf32>
    %419 = arith.mulf %417, %418 : vector<16x16xf32>
    %420 = arith.addf %419, %0 : vector<16x16xf32>
    %cst_199 = arith.constant dense<0xFF800000> : vector<16xf32>
    %421 = vector.multi_reduction <maximumf>, %420, %cst_199 [1] : vector<16x16xf32> to vector<16xf32>
    %422 = vector.shape_cast %421 : vector<16xf32> to vector<16x1xf32>
    %423 = vector.broadcast %422 : vector<16x1xf32> to vector<16x16xf32>
    %424 = arith.subf %420, %423 : vector<16x16xf32>
    %425 = math.exp %424 : vector<16x16xf32>
    %cst_200 = arith.constant dense<0.000000e+00> : vector<16xf32>
    %426 = vector.multi_reduction <add>, %425, %cst_200 [1] : vector<16x16xf32> to vector<16xf32>
    %427 = vector.shape_cast %426 : vector<16xf32> to vector<16x1xf32>
    %428 = tpu.reciprocal %427 {approx = true} : vector<16x1xf32> -> vector<16x1xf32>
    %429 = vector.broadcast %428 : vector<16x1xf32> to vector<16x16xf32>
    %430 = arith.mulf %425, %429 : vector<16x16xf32>
    %cst_201 = arith.constant dense<0.000000e+00> : vector<16x8xf32>
    %431 = tpu.matmul %430, %416, %cst_201 {dimension_numbers = #tpu.dot_dimension_numbers<[1], [0], [0], [1], [0, 0, 1, 1], [], []>} : vector<16x16xf32>, vector<16x8xf32>, vector<16x8xf32> -> vector<16x8xf32>
    %432 = vector.extract_strided_slice %402 {offsets = [0, 0], sizes = [8, 32], strides = [1, 1]} : vector<32x32xf32> to vector<8x32xf32>
    %cst_202 = arith.constant dense<0.000000e+00> : vector<16x32xf32>
    %433 = tpu.matmul %431, %432, %cst_202 {dimension_numbers = #tpu.dot_dimension_numbers<[1], [0], [0], [1], [0, 0, 1, 1], [], []>} : vector<16x8xf32>, vector<8x32xf32>, vector<16x32xf32> -> vector<16x32xf32>
    %434 = arith.addf %413, %433 : vector<16x32xf32>
    %435 = vector.extract_strided_slice %406 {offsets = [0, 8], sizes = [16, 8], strides = [1, 1]} : vector<16x32xf32> to vector<16x8xf32>
    %436 = vector.extract_strided_slice %409 {offsets = [0, 8], sizes = [16, 8], strides = [1, 1]} : vector<16x32xf32> to vector<16x8xf32>
    %437 = vector.extract_strided_slice %412 {offsets = [0, 8], sizes = [16, 8], strides = [1, 1]} : vector<16x32xf32> to vector<16x8xf32>
    %cst_203 = arith.constant dense<0.000000e+00> : vector<16x16xf32>
    %438 = tpu.matmul %435, %436, %cst_203 {dimension_numbers = #tpu.dot_dimension_numbers<[1], [1], [0], [0], [0, 0, 1, 0], [], []>} : vector<16x8xf32>, vector<16x8xf32>, vector<16x16xf32> -> vector<16x16xf32>
    %cst_204 = arith.constant 0.353553385 : f32
    %439 = vector.broadcast %cst_204 : f32 to vector<16x16xf32>
    %440 = arith.mulf %438, %439 : vector<16x16xf32>
    %441 = arith.addf %440, %0 : vector<16x16xf32>
    %cst_205 = arith.constant dense<0xFF800000> : vector<16xf32>
    %442 = vector.multi_reduction <maximumf>, %441, %cst_205 [1] : vector<16x16xf32> to vector<16xf32>
    %443 = vector.shape_cast %442 : vector<16xf32> to vector<16x1xf32>
    %444 = vector.broadcast %443 : vector<16x1xf32> to vector<16x16xf32>
    %445 = arith.subf %441, %444 : vector<16x16xf32>
    %446 = math.exp %445 : vector<16x16xf32>
    %cst_206 = arith.constant dense<0.000000e+00> : vector<16xf32>
    %447 = vector.multi_reduction <add>, %446, %cst_206 [1] : vector<16x16xf32> to vector<16xf32>
    %448 = vector.shape_cast %447 : vector<16xf32> to vector<16x1xf32>
    %449 = tpu.reciprocal %448 {approx = true} : vector<16x1xf32> -> vector<16x1xf32>
    %450 = vector.broadcast %449 : vector<16x1xf32> to vector<16x16xf32>
    %451 = arith.mulf %446, %450 : vector<16x16xf32>
    %cst_207 = arith.constant dense<0.000000e+00> : vector<16x8xf32>
    %452 = tpu.matmul %451, %437, %cst_207 {dimension_numbers = #tpu.dot_dimension_numbers<[1], [0], [0], [1], [0, 0, 1, 1], [], []>} : vector<16x16xf32>, vector<16x8xf32>, vector<16x8xf32> -> vector<16x8xf32>
    %453 = vector.extract_strided_slice %402 {offsets = [8, 0], sizes = [8, 32], strides = [1, 1]} : vector<32x32xf32> to vector<8x32xf32>
    %cst_208 = arith.constant dense<0.000000e+00> : vector<16x32xf32>
    %454 = tpu.matmul %452, %453, %cst_208 {dimension_numbers = #tpu.dot_dimension_numbers<[1], [0], [0], [1], [0, 0, 1, 1], [], []>} : vector<16x8xf32>, vector<8x32xf32>, vector<16x32xf32> -> vector<16x32xf32>
    %455 = arith.addf %434, %454 : vector<16x32xf32>
    %456 = vector.extract_strided_slice %406 {offsets = [0, 16], sizes = [16, 8], strides = [1, 1]} : vector<16x32xf32> to vector<16x8xf32>
    %457 = vector.extract_strided_slice %409 {offsets = [0, 16], sizes = [16, 8], strides = [1, 1]} : vector<16x32xf32> to vector<16x8xf32>
    %458 = vector.extract_strided_slice %412 {offsets = [0, 16], sizes = [16, 8], strides = [1, 1]} : vector<16x32xf32> to vector<16x8xf32>
    %cst_209 = arith.constant dense<0.000000e+00> : vector<16x16xf32>
    %459 = tpu.matmul %456, %457, %cst_209 {dimension_numbers = #tpu.dot_dimension_numbers<[1], [1], [0], [0], [0, 0, 1, 0], [], []>} : vector<16x8xf32>, vector<16x8xf32>, vector<16x16xf32> -> vector<16x16xf32>
    %cst_210 = arith.constant 0.353553385 : f32
    %460 = vector.broadcast %cst_210 : f32 to vector<16x16xf32>
    %461 = arith.mulf %459, %460 : vector<16x16xf32>
    %462 = arith.addf %461, %0 : vector<16x16xf32>
    %cst_211 = arith.constant dense<0xFF800000> : vector<16xf32>
    %463 = vector.multi_reduction <maximumf>, %462, %cst_211 [1] : vector<16x16xf32> to vector<16xf32>
    %464 = vector.shape_cast %463 : vector<16xf32> to vector<16x1xf32>
    %465 = vector.broadcast %464 : vector<16x1xf32> to vector<16x16xf32>
    %466 = arith.subf %462, %465 : vector<16x16xf32>
    %467 = math.exp %466 : vector<16x16xf32>
    %cst_212 = arith.constant dense<0.000000e+00> : vector<16xf32>
    %468 = vector.multi_reduction <add>, %467, %cst_212 [1] : vector<16x16xf32> to vector<16xf32>
    %469 = vector.shape_cast %468 : vector<16xf32> to vector<16x1xf32>
    %470 = tpu.reciprocal %469 {approx = true} : vector<16x1xf32> -> vector<16x1xf32>
    %471 = vector.broadcast %470 : vector<16x1xf32> to vector<16x16xf32>
    %472 = arith.mulf %467, %471 : vector<16x16xf32>
    %cst_213 = arith.constant dense<0.000000e+00> : vector<16x8xf32>
    %473 = tpu.matmul %472, %458, %cst_213 {dimension_numbers = #tpu.dot_dimension_numbers<[1], [0], [0], [1], [0, 0, 1, 1], [], []>} : vector<16x16xf32>, vector<16x8xf32>, vector<16x8xf32> -> vector<16x8xf32>
    %474 = vector.extract_strided_slice %402 {offsets = [16, 0], sizes = [8, 32], strides = [1, 1]} : vector<32x32xf32> to vector<8x32xf32>
    %cst_214 = arith.constant dense<0.000000e+00> : vector<16x32xf32>
    %475 = tpu.matmul %473, %474, %cst_214 {dimension_numbers = #tpu.dot_dimension_numbers<[1], [0], [0], [1], [0, 0, 1, 1], [], []>} : vector<16x8xf32>, vector<8x32xf32>, vector<16x32xf32> -> vector<16x32xf32>
    %476 = arith.addf %455, %475 : vector<16x32xf32>
    %477 = vector.extract_strided_slice %406 {offsets = [0, 24], sizes = [16, 8], strides = [1, 1]} : vector<16x32xf32> to vector<16x8xf32>
    %478 = vector.extract_strided_slice %409 {offsets = [0, 24], sizes = [16, 8], strides = [1, 1]} : vector<16x32xf32> to vector<16x8xf32>
    %479 = vector.extract_strided_slice %412 {offsets = [0, 24], sizes = [16, 8], strides = [1, 1]} : vector<16x32xf32> to vector<16x8xf32>
    %cst_215 = arith.constant dense<0.000000e+00> : vector<16x16xf32>
    %480 = tpu.matmul %477, %478, %cst_215 {dimension_numbers = #tpu.dot_dimension_numbers<[1], [1], [0], [0], [0, 0, 1, 0], [], []>} : vector<16x8xf32>, vector<16x8xf32>, vector<16x16xf32> -> vector<16x16xf32>
    %cst_216 = arith.constant 0.353553385 : f32
    %481 = vector.broadcast %cst_216 : f32 to vector<16x16xf32>
    %482 = arith.mulf %480, %481 : vector<16x16xf32>
    %483 = arith.addf %482, %0 : vector<16x16xf32>
    %cst_217 = arith.constant dense<0xFF800000> : vector<16xf32>
    %484 = vector.multi_reduction <maximumf>, %483, %cst_217 [1] : vector<16x16xf32> to vector<16xf32>
    %485 = vector.shape_cast %484 : vector<16xf32> to vector<16x1xf32>
    %486 = vector.broadcast %485 : vector<16x1xf32> to vector<16x16xf32>
    %487 = arith.subf %483, %486 : vector<16x16xf32>
    %488 = math.exp %487 : vector<16x16xf32>
    %cst_218 = arith.constant dense<0.000000e+00> : vector<16xf32>
    %489 = vector.multi_reduction <add>, %488, %cst_218 [1] : vector<16x16xf32> to vector<16xf32>
    %490 = vector.shape_cast %489 : vector<16xf32> to vector<16x1xf32>
    %491 = tpu.reciprocal %490 {approx = true} : vector<16x1xf32> -> vector<16x1xf32>
    %492 = vector.broadcast %491 : vector<16x1xf32> to vector<16x16xf32>
    %493 = arith.mulf %488, %492 : vector<16x16xf32>
    %cst_219 = arith.constant dense<0.000000e+00> : vector<16x8xf32>
    %494 = tpu.matmul %493, %479, %cst_219 {dimension_numbers = #tpu.dot_dimension_numbers<[1], [0], [0], [1], [0, 0, 1, 1], [], []>} : vector<16x16xf32>, vector<16x8xf32>, vector<16x8xf32> -> vector<16x8xf32>
    %495 = vector.extract_strided_slice %402 {offsets = [24, 0], sizes = [8, 32], strides = [1, 1]} : vector<32x32xf32> to vector<8x32xf32>
    %cst_220 = arith.constant dense<0.000000e+00> : vector<16x32xf32>
    %496 = tpu.matmul %494, %495, %cst_220 {dimension_numbers = #tpu.dot_dimension_numbers<[1], [0], [0], [1], [0, 0, 1, 1], [], []>} : vector<16x8xf32>, vector<8x32xf32>, vector<16x32xf32> -> vector<16x32xf32>
    %497 = arith.addf %476, %496 : vector<16x32xf32>
    %498 = vector.broadcast %403 : vector<1x32xf32> to vector<16x32xf32>
    %499 = arith.addf %497, %498 : vector<16x32xf32>
    %500 = arith.addf %367, %499 : vector<16x32xf32>
    %c2_221 = arith.constant 2 : index
    %c0_222 = arith.constant 0 : index
    %501 = vector.load %arg37[%c2_221, %c0_222] : memref<4x32xf32, #tpu.memory_space<vmem>>, vector<1x32xf32>
    %c2_223 = arith.constant 2 : index
    %c0_224 = arith.constant 0 : index
    %502 = vector.load %arg38[%c2_223, %c0_224] : memref<4x32xf32, #tpu.memory_space<vmem>>, vector<1x32xf32>
    %cst_225 = arith.constant dense<0.000000e+00> : vector<16xf32>
    %503 = vector.multi_reduction <add>, %500, %cst_225 [1] : vector<16x32xf32> to vector<16xf32>
    %504 = vector.shape_cast %503 : vector<16xf32> to vector<16x1xf32>
    %cst_226 = arith.constant 3.200000e+01 : f32
    %505 = vector.broadcast %cst_226 : f32 to vector<16x1xf32>
    %506 = arith.divf %504, %505 : vector<16x1xf32>
    %507 = vector.broadcast %506 : vector<16x1xf32> to vector<16x32xf32>
    %508 = arith.subf %500, %507 : vector<16x32xf32>
    %509 = arith.mulf %508, %508 : vector<16x32xf32>
    %cst_227 = arith.constant dense<0.000000e+00> : vector<16xf32>
    %510 = vector.multi_reduction <add>, %509, %cst_227 [1] : vector<16x32xf32> to vector<16xf32>
    %511 = vector.shape_cast %510 : vector<16xf32> to vector<16x1xf32>
    %cst_228 = arith.constant 3.200000e+01 : f32
    %512 = vector.broadcast %cst_228 : f32 to vector<16x1xf32>
    %513 = arith.divf %511, %512 : vector<16x1xf32>
    %514 = vector.broadcast %506 : vector<16x1xf32> to vector<16x32xf32>
    %515 = arith.subf %500, %514 : vector<16x32xf32>
    %cst_229 = arith.constant 9.99999996E-13 : f32
    %516 = vector.broadcast %cst_229 : f32 to vector<16x1xf32>
    %517 = arith.addf %513, %516 : vector<16x1xf32>
    %518 = math.rsqrt %517 : vector<16x1xf32>
    %519 = vector.broadcast %518 : vector<16x1xf32> to vector<16x32xf32>
    %520 = arith.mulf %515, %519 : vector<16x32xf32>
    %521 = vector.broadcast %501 : vector<1x32xf32> to vector<16x32xf32>
    %522 = arith.mulf %520, %521 : vector<16x32xf32>
    %523 = vector.broadcast %502 : vector<1x32xf32> to vector<16x32xf32>
    %524 = arith.addf %522, %523 : vector<16x32xf32>
    %c2_230 = arith.constant 2 : index
    %c0_231 = arith.constant 0 : index
    %c0_232 = arith.constant 0 : index
    %525 = vector.load %arg39[%c2_230, %c0_231, %c0_232] : memref<4x32x128xf32, #tpu.memory_space<vmem>>, vector<1x32x128xf32>
    %526 = vector.shape_cast %525 : vector<1x32x128xf32> to vector<32x128xf32>
    %cst_233 = arith.constant dense<0.000000e+00> : vector<16x128xf32>
    %527 = tpu.matmul %524, %526, %cst_233 {dimension_numbers = #tpu.dot_dimension_numbers<[1], [0], [0], [1], [0, 0, 1, 1], [], []>} : vector<16x32xf32>, vector<32x128xf32>, vector<16x128xf32> -> vector<16x128xf32>
    %c2_234 = arith.constant 2 : index
    %c0_235 = arith.constant 0 : index
    %528 = vector.load %arg40[%c2_234, %c0_235] : memref<4x128xf32, #tpu.memory_space<vmem>>, vector<1x128xf32>
    %529 = vector.broadcast %528 : vector<1x128xf32> to vector<16x128xf32>
    %530 = arith.addf %527, %529 : vector<16x128xf32>
    %531 = arith.mulf %530, %530 : vector<16x128xf32>
    %532 = arith.mulf %530, %531 : vector<16x128xf32>
    %cst_236 = arith.constant 4.471500e-02 : f32
    %533 = vector.broadcast %cst_236 : f32 to vector<16x128xf32>
    %534 = arith.mulf %533, %532 : vector<16x128xf32>
    %535 = arith.addf %530, %534 : vector<16x128xf32>
    %cst_237 = arith.constant 0.797884583 : f32
    %536 = vector.broadcast %cst_237 : f32 to vector<16x128xf32>
    %537 = arith.mulf %536, %535 : vector<16x128xf32>
    %538 = math.tanh %537 : vector<16x128xf32>
    %cst_238 = arith.constant 1.000000e+00 : f32
    %539 = vector.broadcast %cst_238 : f32 to vector<16x128xf32>
    %540 = arith.addf %539, %538 : vector<16x128xf32>
    %cst_239 = arith.constant 5.000000e-01 : f32
    %541 = vector.broadcast %cst_239 : f32 to vector<16x128xf32>
    %542 = arith.mulf %541, %540 : vector<16x128xf32>
    %543 = arith.mulf %530, %542 : vector<16x128xf32>
    %c2_240 = arith.constant 2 : index
    %c0_241 = arith.constant 0 : index
    %c0_242 = arith.constant 0 : index
    %544 = vector.load %arg41[%c2_240, %c0_241, %c0_242] : memref<4x128x32xf32, #tpu.memory_space<vmem>>, vector<1x128x32xf32>
    %545 = vector.shape_cast %544 : vector<1x128x32xf32> to vector<128x32xf32>
    %cst_243 = arith.constant dense<0.000000e+00> : vector<16x32xf32>
    %546 = tpu.matmul %543, %545, %cst_243 {dimension_numbers = #tpu.dot_dimension_numbers<[1], [0], [0], [1], [0, 0, 1, 1], [], []>} : vector<16x128xf32>, vector<128x32xf32>, vector<16x32xf32> -> vector<16x32xf32>
    %c2_244 = arith.constant 2 : index
    %c0_245 = arith.constant 0 : index
    %547 = vector.load %arg42[%c2_244, %c0_245] : memref<4x32xf32, #tpu.memory_space<vmem>>, vector<1x32xf32>
    %548 = vector.broadcast %547 : vector<1x32xf32> to vector<16x32xf32>
    %549 = arith.addf %546, %548 : vector<16x32xf32>
    %550 = arith.addf %500, %549 : vector<16x32xf32>
    %c3 = arith.constant 3 : index
    %c0_246 = arith.constant 0 : index
    %551 = vector.load %arg27[%c3, %c0_246] : memref<4x32xf32, #tpu.memory_space<vmem>>, vector<1x32xf32>
    %c3_247 = arith.constant 3 : index
    %c0_248 = arith.constant 0 : index
    %552 = vector.load %arg28[%c3_247, %c0_248] : memref<4x32xf32, #tpu.memory_space<vmem>>, vector<1x32xf32>
    %cst_249 = arith.constant dense<0.000000e+00> : vector<16xf32>
    %553 = vector.multi_reduction <add>, %550, %cst_249 [1] : vector<16x32xf32> to vector<16xf32>
    %554 = vector.shape_cast %553 : vector<16xf32> to vector<16x1xf32>
    %cst_250 = arith.constant 3.200000e+01 : f32
    %555 = vector.broadcast %cst_250 : f32 to vector<16x1xf32>
    %556 = arith.divf %554, %555 : vector<16x1xf32>
    %557 = vector.broadcast %556 : vector<16x1xf32> to vector<16x32xf32>
    %558 = arith.subf %550, %557 : vector<16x32xf32>
    %559 = arith.mulf %558, %558 : vector<16x32xf32>
    %cst_251 = arith.constant dense<0.000000e+00> : vector<16xf32>
    %560 = vector.multi_reduction <add>, %559, %cst_251 [1] : vector<16x32xf32> to vector<16xf32>
    %561 = vector.shape_cast %560 : vector<16xf32> to vector<16x1xf32>
    %cst_252 = arith.constant 3.200000e+01 : f32
    %562 = vector.broadcast %cst_252 : f32 to vector<16x1xf32>
    %563 = arith.divf %561, %562 : vector<16x1xf32>
    %564 = vector.broadcast %556 : vector<16x1xf32> to vector<16x32xf32>
    %565 = arith.subf %550, %564 : vector<16x32xf32>
    %cst_253 = arith.constant 9.99999996E-13 : f32
    %566 = vector.broadcast %cst_253 : f32 to vector<16x1xf32>
    %567 = arith.addf %563, %566 : vector<16x1xf32>
    %568 = math.rsqrt %567 : vector<16x1xf32>
    %569 = vector.broadcast %568 : vector<16x1xf32> to vector<16x32xf32>
    %570 = arith.mulf %565, %569 : vector<16x32xf32>
    %571 = vector.broadcast %551 : vector<1x32xf32> to vector<16x32xf32>
    %572 = arith.mulf %570, %571 : vector<16x32xf32>
    %573 = vector.broadcast %552 : vector<1x32xf32> to vector<16x32xf32>
    %574 = arith.addf %572, %573 : vector<16x32xf32>
    %c3_254 = arith.constant 3 : index
    %c0_255 = arith.constant 0 : index
    %c0_256 = arith.constant 0 : index
    %575 = vector.load %arg29[%c3_254, %c0_255, %c0_256] : memref<4x32x32xf32, #tpu.memory_space<vmem>>, vector<1x32x32xf32>
    %576 = vector.shape_cast %575 : vector<1x32x32xf32> to vector<32x32xf32>
    %c3_257 = arith.constant 3 : index
    %c0_258 = arith.constant 0 : index
    %577 = vector.load %arg30[%c3_257, %c0_258] : memref<4x32xf32, #tpu.memory_space<vmem>>, vector<1x32xf32>
    %c3_259 = arith.constant 3 : index
    %c0_260 = arith.constant 0 : index
    %c0_261 = arith.constant 0 : index
    %578 = vector.load %arg31[%c3_259, %c0_260, %c0_261] : memref<4x32x32xf32, #tpu.memory_space<vmem>>, vector<1x32x32xf32>
    %579 = vector.shape_cast %578 : vector<1x32x32xf32> to vector<32x32xf32>
    %c3_262 = arith.constant 3 : index
    %c0_263 = arith.constant 0 : index
    %580 = vector.load %arg32[%c3_262, %c0_263] : memref<4x32xf32, #tpu.memory_space<vmem>>, vector<1x32xf32>
    %c3_264 = arith.constant 3 : index
    %c0_265 = arith.constant 0 : index
    %c0_266 = arith.constant 0 : index
    %581 = vector.load %arg33[%c3_264, %c0_265, %c0_266] : memref<4x32x32xf32, #tpu.memory_space<vmem>>, vector<1x32x32xf32>
    %582 = vector.shape_cast %581 : vector<1x32x32xf32> to vector<32x32xf32>
    %c3_267 = arith.constant 3 : index
    %c0_268 = arith.constant 0 : index
    %583 = vector.load %arg34[%c3_267, %c0_268] : memref<4x32xf32, #tpu.memory_space<vmem>>, vector<1x32xf32>
    %c3_269 = arith.constant 3 : index
    %c0_270 = arith.constant 0 : index
    %c0_271 = arith.constant 0 : index
    %584 = vector.load %arg35[%c3_269, %c0_270, %c0_271] : memref<4x32x32xf32, #tpu.memory_space<vmem>>, vector<1x32x32xf32>
    %585 = vector.shape_cast %584 : vector<1x32x32xf32> to vector<32x32xf32>
    %c3_272 = arith.constant 3 : index
    %c0_273 = arith.constant 0 : index
    %586 = vector.load %arg36[%c3_272, %c0_273] : memref<4x32xf32, #tpu.memory_space<vmem>>, vector<1x32xf32>
    %cst_274 = arith.constant dense<0.000000e+00> : vector<16x32xf32>
    %587 = tpu.matmul %574, %576, %cst_274 {dimension_numbers = #tpu.dot_dimension_numbers<[1], [0], [0], [1], [0, 0, 1, 1], [], []>} : vector<16x32xf32>, vector<32x32xf32>, vector<16x32xf32> -> vector<16x32xf32>
    %588 = vector.broadcast %577 : vector<1x32xf32> to vector<16x32xf32>
    %589 = arith.addf %587, %588 : vector<16x32xf32>
    %cst_275 = arith.constant dense<0.000000e+00> : vector<16x32xf32>
    %590 = tpu.matmul %574, %579, %cst_275 {dimension_numbers = #tpu.dot_dimension_numbers<[1], [0], [0], [1], [0, 0, 1, 1], [], []>} : vector<16x32xf32>, vector<32x32xf32>, vector<16x32xf32> -> vector<16x32xf32>
    %591 = vector.broadcast %580 : vector<1x32xf32> to vector<16x32xf32>
    %592 = arith.addf %590, %591 : vector<16x32xf32>
    %cst_276 = arith.constant dense<0.000000e+00> : vector<16x32xf32>
    %593 = tpu.matmul %574, %582, %cst_276 {dimension_numbers = #tpu.dot_dimension_numbers<[1], [0], [0], [1], [0, 0, 1, 1], [], []>} : vector<16x32xf32>, vector<32x32xf32>, vector<16x32xf32> -> vector<16x32xf32>
    %594 = vector.broadcast %583 : vector<1x32xf32> to vector<16x32xf32>
    %595 = arith.addf %593, %594 : vector<16x32xf32>
    %cst_277 = arith.constant 0.000000e+00 : f32
    %596 = vector.broadcast %cst_277 : f32 to vector<16x32xf32>
    %597 = vector.extract_strided_slice %589 {offsets = [0, 0], sizes = [16, 8], strides = [1, 1]} : vector<16x32xf32> to vector<16x8xf32>
    %598 = vector.extract_strided_slice %592 {offsets = [0, 0], sizes = [16, 8], strides = [1, 1]} : vector<16x32xf32> to vector<16x8xf32>
    %599 = vector.extract_strided_slice %595 {offsets = [0, 0], sizes = [16, 8], strides = [1, 1]} : vector<16x32xf32> to vector<16x8xf32>
    %cst_278 = arith.constant dense<0.000000e+00> : vector<16x16xf32>
    %600 = tpu.matmul %597, %598, %cst_278 {dimension_numbers = #tpu.dot_dimension_numbers<[1], [1], [0], [0], [0, 0, 1, 0], [], []>} : vector<16x8xf32>, vector<16x8xf32>, vector<16x16xf32> -> vector<16x16xf32>
    %cst_279 = arith.constant 0.353553385 : f32
    %601 = vector.broadcast %cst_279 : f32 to vector<16x16xf32>
    %602 = arith.mulf %600, %601 : vector<16x16xf32>
    %603 = arith.addf %602, %0 : vector<16x16xf32>
    %cst_280 = arith.constant dense<0xFF800000> : vector<16xf32>
    %604 = vector.multi_reduction <maximumf>, %603, %cst_280 [1] : vector<16x16xf32> to vector<16xf32>
    %605 = vector.shape_cast %604 : vector<16xf32> to vector<16x1xf32>
    %606 = vector.broadcast %605 : vector<16x1xf32> to vector<16x16xf32>
    %607 = arith.subf %603, %606 : vector<16x16xf32>
    %608 = math.exp %607 : vector<16x16xf32>
    %cst_281 = arith.constant dense<0.000000e+00> : vector<16xf32>
    %609 = vector.multi_reduction <add>, %608, %cst_281 [1] : vector<16x16xf32> to vector<16xf32>
    %610 = vector.shape_cast %609 : vector<16xf32> to vector<16x1xf32>
    %611 = tpu.reciprocal %610 {approx = true} : vector<16x1xf32> -> vector<16x1xf32>
    %612 = vector.broadcast %611 : vector<16x1xf32> to vector<16x16xf32>
    %613 = arith.mulf %608, %612 : vector<16x16xf32>
    %cst_282 = arith.constant dense<0.000000e+00> : vector<16x8xf32>
    %614 = tpu.matmul %613, %599, %cst_282 {dimension_numbers = #tpu.dot_dimension_numbers<[1], [0], [0], [1], [0, 0, 1, 1], [], []>} : vector<16x16xf32>, vector<16x8xf32>, vector<16x8xf32> -> vector<16x8xf32>
    %615 = vector.extract_strided_slice %585 {offsets = [0, 0], sizes = [8, 32], strides = [1, 1]} : vector<32x32xf32> to vector<8x32xf32>
    %cst_283 = arith.constant dense<0.000000e+00> : vector<16x32xf32>
    %616 = tpu.matmul %614, %615, %cst_283 {dimension_numbers = #tpu.dot_dimension_numbers<[1], [0], [0], [1], [0, 0, 1, 1], [], []>} : vector<16x8xf32>, vector<8x32xf32>, vector<16x32xf32> -> vector<16x32xf32>
    %617 = arith.addf %596, %616 : vector<16x32xf32>
    %618 = vector.extract_strided_slice %589 {offsets = [0, 8], sizes = [16, 8], strides = [1, 1]} : vector<16x32xf32> to vector<16x8xf32>
    %619 = vector.extract_strided_slice %592 {offsets = [0, 8], sizes = [16, 8], strides = [1, 1]} : vector<16x32xf32> to vector<16x8xf32>
    %620 = vector.extract_strided_slice %595 {offsets = [0, 8], sizes = [16, 8], strides = [1, 1]} : vector<16x32xf32> to vector<16x8xf32>
    %cst_284 = arith.constant dense<0.000000e+00> : vector<16x16xf32>
    %621 = tpu.matmul %618, %619, %cst_284 {dimension_numbers = #tpu.dot_dimension_numbers<[1], [1], [0], [0], [0, 0, 1, 0], [], []>} : vector<16x8xf32>, vector<16x8xf32>, vector<16x16xf32> -> vector<16x16xf32>
    %cst_285 = arith.constant 0.353553385 : f32
    %622 = vector.broadcast %cst_285 : f32 to vector<16x16xf32>
    %623 = arith.mulf %621, %622 : vector<16x16xf32>
    %624 = arith.addf %623, %0 : vector<16x16xf32>
    %cst_286 = arith.constant dense<0xFF800000> : vector<16xf32>
    %625 = vector.multi_reduction <maximumf>, %624, %cst_286 [1] : vector<16x16xf32> to vector<16xf32>
    %626 = vector.shape_cast %625 : vector<16xf32> to vector<16x1xf32>
    %627 = vector.broadcast %626 : vector<16x1xf32> to vector<16x16xf32>
    %628 = arith.subf %624, %627 : vector<16x16xf32>
    %629 = math.exp %628 : vector<16x16xf32>
    %cst_287 = arith.constant dense<0.000000e+00> : vector<16xf32>
    %630 = vector.multi_reduction <add>, %629, %cst_287 [1] : vector<16x16xf32> to vector<16xf32>
    %631 = vector.shape_cast %630 : vector<16xf32> to vector<16x1xf32>
    %632 = tpu.reciprocal %631 {approx = true} : vector<16x1xf32> -> vector<16x1xf32>
    %633 = vector.broadcast %632 : vector<16x1xf32> to vector<16x16xf32>
    %634 = arith.mulf %629, %633 : vector<16x16xf32>
    %cst_288 = arith.constant dense<0.000000e+00> : vector<16x8xf32>
    %635 = tpu.matmul %634, %620, %cst_288 {dimension_numbers = #tpu.dot_dimension_numbers<[1], [0], [0], [1], [0, 0, 1, 1], [], []>} : vector<16x16xf32>, vector<16x8xf32>, vector<16x8xf32> -> vector<16x8xf32>
    %636 = vector.extract_strided_slice %585 {offsets = [8, 0], sizes = [8, 32], strides = [1, 1]} : vector<32x32xf32> to vector<8x32xf32>
    %cst_289 = arith.constant dense<0.000000e+00> : vector<16x32xf32>
    %637 = tpu.matmul %635, %636, %cst_289 {dimension_numbers = #tpu.dot_dimension_numbers<[1], [0], [0], [1], [0, 0, 1, 1], [], []>} : vector<16x8xf32>, vector<8x32xf32>, vector<16x32xf32> -> vector<16x32xf32>
    %638 = arith.addf %617, %637 : vector<16x32xf32>
    %639 = vector.extract_strided_slice %589 {offsets = [0, 16], sizes = [16, 8], strides = [1, 1]} : vector<16x32xf32> to vector<16x8xf32>
    %640 = vector.extract_strided_slice %592 {offsets = [0, 16], sizes = [16, 8], strides = [1, 1]} : vector<16x32xf32> to vector<16x8xf32>
    %641 = vector.extract_strided_slice %595 {offsets = [0, 16], sizes = [16, 8], strides = [1, 1]} : vector<16x32xf32> to vector<16x8xf32>
    %cst_290 = arith.constant dense<0.000000e+00> : vector<16x16xf32>
    %642 = tpu.matmul %639, %640, %cst_290 {dimension_numbers = #tpu.dot_dimension_numbers<[1], [1], [0], [0], [0, 0, 1, 0], [], []>} : vector<16x8xf32>, vector<16x8xf32>, vector<16x16xf32> -> vector<16x16xf32>
    %cst_291 = arith.constant 0.353553385 : f32
    %643 = vector.broadcast %cst_291 : f32 to vector<16x16xf32>
    %644 = arith.mulf %642, %643 : vector<16x16xf32>
    %645 = arith.addf %644, %0 : vector<16x16xf32>
    %cst_292 = arith.constant dense<0xFF800000> : vector<16xf32>
    %646 = vector.multi_reduction <maximumf>, %645, %cst_292 [1] : vector<16x16xf32> to vector<16xf32>
    %647 = vector.shape_cast %646 : vector<16xf32> to vector<16x1xf32>
    %648 = vector.broadcast %647 : vector<16x1xf32> to vector<16x16xf32>
    %649 = arith.subf %645, %648 : vector<16x16xf32>
    %650 = math.exp %649 : vector<16x16xf32>
    %cst_293 = arith.constant dense<0.000000e+00> : vector<16xf32>
    %651 = vector.multi_reduction <add>, %650, %cst_293 [1] : vector<16x16xf32> to vector<16xf32>
    %652 = vector.shape_cast %651 : vector<16xf32> to vector<16x1xf32>
    %653 = tpu.reciprocal %652 {approx = true} : vector<16x1xf32> -> vector<16x1xf32>
    %654 = vector.broadcast %653 : vector<16x1xf32> to vector<16x16xf32>
    %655 = arith.mulf %650, %654 : vector<16x16xf32>
    %cst_294 = arith.constant dense<0.000000e+00> : vector<16x8xf32>
    %656 = tpu.matmul %655, %641, %cst_294 {dimension_numbers = #tpu.dot_dimension_numbers<[1], [0], [0], [1], [0, 0, 1, 1], [], []>} : vector<16x16xf32>, vector<16x8xf32>, vector<16x8xf32> -> vector<16x8xf32>
    %657 = vector.extract_strided_slice %585 {offsets = [16, 0], sizes = [8, 32], strides = [1, 1]} : vector<32x32xf32> to vector<8x32xf32>
    %cst_295 = arith.constant dense<0.000000e+00> : vector<16x32xf32>
    %658 = tpu.matmul %656, %657, %cst_295 {dimension_numbers = #tpu.dot_dimension_numbers<[1], [0], [0], [1], [0, 0, 1, 1], [], []>} : vector<16x8xf32>, vector<8x32xf32>, vector<16x32xf32> -> vector<16x32xf32>
    %659 = arith.addf %638, %658 : vector<16x32xf32>
    %660 = vector.extract_strided_slice %589 {offsets = [0, 24], sizes = [16, 8], strides = [1, 1]} : vector<16x32xf32> to vector<16x8xf32>
    %661 = vector.extract_strided_slice %592 {offsets = [0, 24], sizes = [16, 8], strides = [1, 1]} : vector<16x32xf32> to vector<16x8xf32>
    %662 = vector.extract_strided_slice %595 {offsets = [0, 24], sizes = [16, 8], strides = [1, 1]} : vector<16x32xf32> to vector<16x8xf32>
    %cst_296 = arith.constant dense<0.000000e+00> : vector<16x16xf32>
    %663 = tpu.matmul %660, %661, %cst_296 {dimension_numbers = #tpu.dot_dimension_numbers<[1], [1], [0], [0], [0, 0, 1, 0], [], []>} : vector<16x8xf32>, vector<16x8xf32>, vector<16x16xf32> -> vector<16x16xf32>
    %cst_297 = arith.constant 0.353553385 : f32
    %664 = vector.broadcast %cst_297 : f32 to vector<16x16xf32>
    %665 = arith.mulf %663, %664 : vector<16x16xf32>
    %666 = arith.addf %665, %0 : vector<16x16xf32>
    %cst_298 = arith.constant dense<0xFF800000> : vector<16xf32>
    %667 = vector.multi_reduction <maximumf>, %666, %cst_298 [1] : vector<16x16xf32> to vector<16xf32>
    %668 = vector.shape_cast %667 : vector<16xf32> to vector<16x1xf32>
    %669 = vector.broadcast %668 : vector<16x1xf32> to vector<16x16xf32>
    %670 = arith.subf %666, %669 : vector<16x16xf32>
    %671 = math.exp %670 : vector<16x16xf32>
    %cst_299 = arith.constant dense<0.000000e+00> : vector<16xf32>
    %672 = vector.multi_reduction <add>, %671, %cst_299 [1] : vector<16x16xf32> to vector<16xf32>
    %673 = vector.shape_cast %672 : vector<16xf32> to vector<16x1xf32>
    %674 = tpu.reciprocal %673 {approx = true} : vector<16x1xf32> -> vector<16x1xf32>
    %675 = vector.broadcast %674 : vector<16x1xf32> to vector<16x16xf32>
    %676 = arith.mulf %671, %675 : vector<16x16xf32>
    %cst_300 = arith.constant dense<0.000000e+00> : vector<16x8xf32>
    %677 = tpu.matmul %676, %662, %cst_300 {dimension_numbers = #tpu.dot_dimension_numbers<[1], [0], [0], [1], [0, 0, 1, 1], [], []>} : vector<16x16xf32>, vector<16x8xf32>, vector<16x8xf32> -> vector<16x8xf32>
    %678 = vector.extract_strided_slice %585 {offsets = [24, 0], sizes = [8, 32], strides = [1, 1]} : vector<32x32xf32> to vector<8x32xf32>
    %cst_301 = arith.constant dense<0.000000e+00> : vector<16x32xf32>
    %679 = tpu.matmul %677, %678, %cst_301 {dimension_numbers = #tpu.dot_dimension_numbers<[1], [0], [0], [1], [0, 0, 1, 1], [], []>} : vector<16x8xf32>, vector<8x32xf32>, vector<16x32xf32> -> vector<16x32xf32>
    %680 = arith.addf %659, %679 : vector<16x32xf32>
    %681 = vector.broadcast %586 : vector<1x32xf32> to vector<16x32xf32>
    %682 = arith.addf %680, %681 : vector<16x32xf32>
    %683 = arith.addf %550, %682 : vector<16x32xf32>
    %c3_302 = arith.constant 3 : index
    %c0_303 = arith.constant 0 : index
    %684 = vector.load %arg37[%c3_302, %c0_303] : memref<4x32xf32, #tpu.memory_space<vmem>>, vector<1x32xf32>
    %c3_304 = arith.constant 3 : index
    %c0_305 = arith.constant 0 : index
    %685 = vector.load %arg38[%c3_304, %c0_305] : memref<4x32xf32, #tpu.memory_space<vmem>>, vector<1x32xf32>
    %cst_306 = arith.constant dense<0.000000e+00> : vector<16xf32>
    %686 = vector.multi_reduction <add>, %683, %cst_306 [1] : vector<16x32xf32> to vector<16xf32>
    %687 = vector.shape_cast %686 : vector<16xf32> to vector<16x1xf32>
    %cst_307 = arith.constant 3.200000e+01 : f32
    %688 = vector.broadcast %cst_307 : f32 to vector<16x1xf32>
    %689 = arith.divf %687, %688 : vector<16x1xf32>
    %690 = vector.broadcast %689 : vector<16x1xf32> to vector<16x32xf32>
    %691 = arith.subf %683, %690 : vector<16x32xf32>
    %692 = arith.mulf %691, %691 : vector<16x32xf32>
    %cst_308 = arith.constant dense<0.000000e+00> : vector<16xf32>
    %693 = vector.multi_reduction <add>, %692, %cst_308 [1] : vector<16x32xf32> to vector<16xf32>
    %694 = vector.shape_cast %693 : vector<16xf32> to vector<16x1xf32>
    %cst_309 = arith.constant 3.200000e+01 : f32
    %695 = vector.broadcast %cst_309 : f32 to vector<16x1xf32>
    %696 = arith.divf %694, %695 : vector<16x1xf32>
    %697 = vector.broadcast %689 : vector<16x1xf32> to vector<16x32xf32>
    %698 = arith.subf %683, %697 : vector<16x32xf32>
    %cst_310 = arith.constant 9.99999996E-13 : f32
    %699 = vector.broadcast %cst_310 : f32 to vector<16x1xf32>
    %700 = arith.addf %696, %699 : vector<16x1xf32>
    %701 = math.rsqrt %700 : vector<16x1xf32>
    %702 = vector.broadcast %701 : vector<16x1xf32> to vector<16x32xf32>
    %703 = arith.mulf %698, %702 : vector<16x32xf32>
    %704 = vector.broadcast %684 : vector<1x32xf32> to vector<16x32xf32>
    %705 = arith.mulf %703, %704 : vector<16x32xf32>
    %706 = vector.broadcast %685 : vector<1x32xf32> to vector<16x32xf32>
    %707 = arith.addf %705, %706 : vector<16x32xf32>
    %c3_311 = arith.constant 3 : index
    %c0_312 = arith.constant 0 : index
    %c0_313 = arith.constant 0 : index
    %708 = vector.load %arg39[%c3_311, %c0_312, %c0_313] : memref<4x32x128xf32, #tpu.memory_space<vmem>>, vector<1x32x128xf32>
    %709 = vector.shape_cast %708 : vector<1x32x128xf32> to vector<32x128xf32>
    %cst_314 = arith.constant dense<0.000000e+00> : vector<16x128xf32>
    %710 = tpu.matmul %707, %709, %cst_314 {dimension_numbers = #tpu.dot_dimension_numbers<[1], [0], [0], [1], [0, 0, 1, 1], [], []>} : vector<16x32xf32>, vector<32x128xf32>, vector<16x128xf32> -> vector<16x128xf32>
    %c3_315 = arith.constant 3 : index
    %c0_316 = arith.constant 0 : index
    %711 = vector.load %arg40[%c3_315, %c0_316] : memref<4x128xf32, #tpu.memory_space<vmem>>, vector<1x128xf32>
    %712 = vector.broadcast %711 : vector<1x128xf32> to vector<16x128xf32>
    %713 = arith.addf %710, %712 : vector<16x128xf32>
    %714 = arith.mulf %713, %713 : vector<16x128xf32>
    %715 = arith.mulf %713, %714 : vector<16x128xf32>
    %cst_317 = arith.constant 4.471500e-02 : f32
    %716 = vector.broadcast %cst_317 : f32 to vector<16x128xf32>
    %717 = arith.mulf %716, %715 : vector<16x128xf32>
    %718 = arith.addf %713, %717 : vector<16x128xf32>
    %cst_318 = arith.constant 0.797884583 : f32
    %719 = vector.broadcast %cst_318 : f32 to vector<16x128xf32>
    %720 = arith.mulf %719, %718 : vector<16x128xf32>
    %721 = math.tanh %720 : vector<16x128xf32>
    %cst_319 = arith.constant 1.000000e+00 : f32
    %722 = vector.broadcast %cst_319 : f32 to vector<16x128xf32>
    %723 = arith.addf %722, %721 : vector<16x128xf32>
    %cst_320 = arith.constant 5.000000e-01 : f32
    %724 = vector.broadcast %cst_320 : f32 to vector<16x128xf32>
    %725 = arith.mulf %724, %723 : vector<16x128xf32>
    %726 = arith.mulf %713, %725 : vector<16x128xf32>
    %c3_321 = arith.constant 3 : index
    %c0_322 = arith.constant 0 : index
    %c0_323 = arith.constant 0 : index
    %727 = vector.load %arg41[%c3_321, %c0_322, %c0_323] : memref<4x128x32xf32, #tpu.memory_space<vmem>>, vector<1x128x32xf32>
    %728 = vector.shape_cast %727 : vector<1x128x32xf32> to vector<128x32xf32>
    %cst_324 = arith.constant dense<0.000000e+00> : vector<16x32xf32>
    %729 = tpu.matmul %726, %728, %cst_324 {dimension_numbers = #tpu.dot_dimension_numbers<[1], [0], [0], [1], [0, 0, 1, 1], [], []>} : vector<16x128xf32>, vector<128x32xf32>, vector<16x32xf32> -> vector<16x32xf32>
    %c3_325 = arith.constant 3 : index
    %c0_326 = arith.constant 0 : index
    %730 = vector.load %arg42[%c3_325, %c0_326] : memref<4x32xf32, #tpu.memory_space<vmem>>, vector<1x32xf32>
    %731 = vector.broadcast %730 : vector<1x32xf32> to vector<16x32xf32>
    %732 = arith.addf %729, %731 : vector<16x32xf32>
    %733 = arith.addf %683, %732 : vector<16x32xf32>
    %c0_327 = arith.constant 0 : index
    %c0_328 = arith.constant 0 : index
    %734 = vector.load %arg0[%c0_327, %c0_328] : memref<16x32xf32, #tpu.memory_space<vmem>>, vector<16x32xf32>
    %c0_329 = arith.constant 0 : index
    %c0_330 = arith.constant 0 : index
    %735 = vector.load %arg3[%c0_329, %c0_330] : memref<4x32xf32, #tpu.memory_space<vmem>>, vector<1x32xf32>
    %c0_331 = arith.constant 0 : index
    %c0_332 = arith.constant 0 : index
    %736 = vector.load %arg4[%c0_331, %c0_332] : memref<4x32xf32, #tpu.memory_space<vmem>>, vector<1x32xf32>
    %cst_333 = arith.constant dense<0.000000e+00> : vector<16xf32>
    %737 = vector.multi_reduction <add>, %734, %cst_333 [1] : vector<16x32xf32> to vector<16xf32>
    %738 = vector.shape_cast %737 : vector<16xf32> to vector<16x1xf32>
    %cst_334 = arith.constant 3.200000e+01 : f32
    %739 = vector.broadcast %cst_334 : f32 to vector<16x1xf32>
    %740 = arith.divf %738, %739 : vector<16x1xf32>
    %741 = vector.broadcast %740 : vector<16x1xf32> to vector<16x32xf32>
    %742 = arith.subf %734, %741 : vector<16x32xf32>
    %743 = arith.mulf %742, %742 : vector<16x32xf32>
    %cst_335 = arith.constant dense<0.000000e+00> : vector<16xf32>
    %744 = vector.multi_reduction <add>, %743, %cst_335 [1] : vector<16x32xf32> to vector<16xf32>
    %745 = vector.shape_cast %744 : vector<16xf32> to vector<16x1xf32>
    %cst_336 = arith.constant 3.200000e+01 : f32
    %746 = vector.broadcast %cst_336 : f32 to vector<16x1xf32>
    %747 = arith.divf %745, %746 : vector<16x1xf32>
    %748 = vector.broadcast %740 : vector<16x1xf32> to vector<16x32xf32>
    %749 = arith.subf %734, %748 : vector<16x32xf32>
    %cst_337 = arith.constant 9.99999996E-13 : f32
    %750 = vector.broadcast %cst_337 : f32 to vector<16x1xf32>
    %751 = arith.addf %747, %750 : vector<16x1xf32>
    %752 = math.rsqrt %751 : vector<16x1xf32>
    %753 = vector.broadcast %752 : vector<16x1xf32> to vector<16x32xf32>
    %754 = arith.mulf %749, %753 : vector<16x32xf32>
    %755 = vector.broadcast %735 : vector<1x32xf32> to vector<16x32xf32>
    %756 = arith.mulf %754, %755 : vector<16x32xf32>
    %757 = vector.broadcast %736 : vector<1x32xf32> to vector<16x32xf32>
    %758 = arith.addf %756, %757 : vector<16x32xf32>
    %c0_338 = arith.constant 0 : index
    %c0_339 = arith.constant 0 : index
    %c0_340 = arith.constant 0 : index
    %759 = vector.load %arg5[%c0_338, %c0_339, %c0_340] : memref<4x32x32xf32, #tpu.memory_space<vmem>>, vector<1x32x32xf32>
    %760 = vector.shape_cast %759 : vector<1x32x32xf32> to vector<32x32xf32>
    %c0_341 = arith.constant 0 : index
    %c0_342 = arith.constant 0 : index
    %761 = vector.load %arg6[%c0_341, %c0_342] : memref<4x32xf32, #tpu.memory_space<vmem>>, vector<1x32xf32>
    %c0_343 = arith.constant 0 : index
    %c0_344 = arith.constant 0 : index
    %c0_345 = arith.constant 0 : index
    %762 = vector.load %arg7[%c0_343, %c0_344, %c0_345] : memref<4x32x32xf32, #tpu.memory_space<vmem>>, vector<1x32x32xf32>
    %763 = vector.shape_cast %762 : vector<1x32x32xf32> to vector<32x32xf32>
    %c0_346 = arith.constant 0 : index
    %c0_347 = arith.constant 0 : index
    %764 = vector.load %arg8[%c0_346, %c0_347] : memref<4x32xf32, #tpu.memory_space<vmem>>, vector<1x32xf32>
    %c0_348 = arith.constant 0 : index
    %c0_349 = arith.constant 0 : index
    %c0_350 = arith.constant 0 : index
    %765 = vector.load %arg9[%c0_348, %c0_349, %c0_350] : memref<4x32x32xf32, #tpu.memory_space<vmem>>, vector<1x32x32xf32>
    %766 = vector.shape_cast %765 : vector<1x32x32xf32> to vector<32x32xf32>
    %c0_351 = arith.constant 0 : index
    %c0_352 = arith.constant 0 : index
    %767 = vector.load %arg10[%c0_351, %c0_352] : memref<4x32xf32, #tpu.memory_space<vmem>>, vector<1x32xf32>
    %c0_353 = arith.constant 0 : index
    %c0_354 = arith.constant 0 : index
    %c0_355 = arith.constant 0 : index
    %768 = vector.load %arg11[%c0_353, %c0_354, %c0_355] : memref<4x32x32xf32, #tpu.memory_space<vmem>>, vector<1x32x32xf32>
    %769 = vector.shape_cast %768 : vector<1x32x32xf32> to vector<32x32xf32>
    %c0_356 = arith.constant 0 : index
    %c0_357 = arith.constant 0 : index
    %770 = vector.load %arg12[%c0_356, %c0_357] : memref<4x32xf32, #tpu.memory_space<vmem>>, vector<1x32xf32>
    %cst_358 = arith.constant dense<0.000000e+00> : vector<16x32xf32>
    %771 = tpu.matmul %758, %760, %cst_358 {dimension_numbers = #tpu.dot_dimension_numbers<[1], [0], [0], [1], [0, 0, 1, 1], [], []>} : vector<16x32xf32>, vector<32x32xf32>, vector<16x32xf32> -> vector<16x32xf32>
    %772 = vector.broadcast %761 : vector<1x32xf32> to vector<16x32xf32>
    %773 = arith.addf %771, %772 : vector<16x32xf32>
    %cst_359 = arith.constant dense<0.000000e+00> : vector<16x32xf32>
    %774 = tpu.matmul %758, %763, %cst_359 {dimension_numbers = #tpu.dot_dimension_numbers<[1], [0], [0], [1], [0, 0, 1, 1], [], []>} : vector<16x32xf32>, vector<32x32xf32>, vector<16x32xf32> -> vector<16x32xf32>
    %775 = vector.broadcast %764 : vector<1x32xf32> to vector<16x32xf32>
    %776 = arith.addf %774, %775 : vector<16x32xf32>
    %cst_360 = arith.constant dense<0.000000e+00> : vector<16x32xf32>
    %777 = tpu.matmul %758, %766, %cst_360 {dimension_numbers = #tpu.dot_dimension_numbers<[1], [0], [0], [1], [0, 0, 1, 1], [], []>} : vector<16x32xf32>, vector<32x32xf32>, vector<16x32xf32> -> vector<16x32xf32>
    %778 = vector.broadcast %767 : vector<1x32xf32> to vector<16x32xf32>
    %779 = arith.addf %777, %778 : vector<16x32xf32>
    %cst_361 = arith.constant 0.000000e+00 : f32
    %780 = vector.broadcast %cst_361 : f32 to vector<16x32xf32>
    %781 = vector.extract_strided_slice %773 {offsets = [0, 0], sizes = [16, 8], strides = [1, 1]} : vector<16x32xf32> to vector<16x8xf32>
    %782 = vector.extract_strided_slice %776 {offsets = [0, 0], sizes = [16, 8], strides = [1, 1]} : vector<16x32xf32> to vector<16x8xf32>
    %783 = vector.extract_strided_slice %779 {offsets = [0, 0], sizes = [16, 8], strides = [1, 1]} : vector<16x32xf32> to vector<16x8xf32>
    %cst_362 = arith.constant dense<0.000000e+00> : vector<16x16xf32>
    %784 = tpu.matmul %781, %782, %cst_362 {dimension_numbers = #tpu.dot_dimension_numbers<[1], [1], [0], [0], [0, 0, 1, 0], [], []>} : vector<16x8xf32>, vector<16x8xf32>, vector<16x16xf32> -> vector<16x16xf32>
    %cst_363 = arith.constant 0.353553385 : f32
    %785 = vector.broadcast %cst_363 : f32 to vector<16x16xf32>
    %786 = arith.mulf %784, %785 : vector<16x16xf32>
    %787 = arith.addf %786, %0 : vector<16x16xf32>
    %cst_364 = arith.constant dense<0xFF800000> : vector<16xf32>
    %788 = vector.multi_reduction <maximumf>, %787, %cst_364 [1] : vector<16x16xf32> to vector<16xf32>
    %789 = vector.shape_cast %788 : vector<16xf32> to vector<16x1xf32>
    %790 = vector.broadcast %789 : vector<16x1xf32> to vector<16x16xf32>
    %791 = arith.subf %787, %790 : vector<16x16xf32>
    %792 = math.exp %791 : vector<16x16xf32>
    %cst_365 = arith.constant dense<0.000000e+00> : vector<16xf32>
    %793 = vector.multi_reduction <add>, %792, %cst_365 [1] : vector<16x16xf32> to vector<16xf32>
    %794 = vector.shape_cast %793 : vector<16xf32> to vector<16x1xf32>
    %795 = tpu.reciprocal %794 {approx = true} : vector<16x1xf32> -> vector<16x1xf32>
    %796 = vector.broadcast %795 : vector<16x1xf32> to vector<16x16xf32>
    %797 = arith.mulf %792, %796 : vector<16x16xf32>
    %cst_366 = arith.constant dense<0.000000e+00> : vector<16x8xf32>
    %798 = tpu.matmul %797, %783, %cst_366 {dimension_numbers = #tpu.dot_dimension_numbers<[1], [0], [0], [1], [0, 0, 1, 1], [], []>} : vector<16x16xf32>, vector<16x8xf32>, vector<16x8xf32> -> vector<16x8xf32>
    %799 = vector.extract_strided_slice %769 {offsets = [0, 0], sizes = [8, 32], strides = [1, 1]} : vector<32x32xf32> to vector<8x32xf32>
    %cst_367 = arith.constant dense<0.000000e+00> : vector<16x32xf32>
    %800 = tpu.matmul %798, %799, %cst_367 {dimension_numbers = #tpu.dot_dimension_numbers<[1], [0], [0], [1], [0, 0, 1, 1], [], []>} : vector<16x8xf32>, vector<8x32xf32>, vector<16x32xf32> -> vector<16x32xf32>
    %801 = arith.addf %780, %800 : vector<16x32xf32>
    %802 = vector.extract_strided_slice %773 {offsets = [0, 8], sizes = [16, 8], strides = [1, 1]} : vector<16x32xf32> to vector<16x8xf32>
    %803 = vector.extract_strided_slice %776 {offsets = [0, 8], sizes = [16, 8], strides = [1, 1]} : vector<16x32xf32> to vector<16x8xf32>
    %804 = vector.extract_strided_slice %779 {offsets = [0, 8], sizes = [16, 8], strides = [1, 1]} : vector<16x32xf32> to vector<16x8xf32>
    %cst_368 = arith.constant dense<0.000000e+00> : vector<16x16xf32>
    %805 = tpu.matmul %802, %803, %cst_368 {dimension_numbers = #tpu.dot_dimension_numbers<[1], [1], [0], [0], [0, 0, 1, 0], [], []>} : vector<16x8xf32>, vector<16x8xf32>, vector<16x16xf32> -> vector<16x16xf32>
    %cst_369 = arith.constant 0.353553385 : f32
    %806 = vector.broadcast %cst_369 : f32 to vector<16x16xf32>
    %807 = arith.mulf %805, %806 : vector<16x16xf32>
    %808 = arith.addf %807, %0 : vector<16x16xf32>
    %cst_370 = arith.constant dense<0xFF800000> : vector<16xf32>
    %809 = vector.multi_reduction <maximumf>, %808, %cst_370 [1] : vector<16x16xf32> to vector<16xf32>
    %810 = vector.shape_cast %809 : vector<16xf32> to vector<16x1xf32>
    %811 = vector.broadcast %810 : vector<16x1xf32> to vector<16x16xf32>
    %812 = arith.subf %808, %811 : vector<16x16xf32>
    %813 = math.exp %812 : vector<16x16xf32>
    %cst_371 = arith.constant dense<0.000000e+00> : vector<16xf32>
    %814 = vector.multi_reduction <add>, %813, %cst_371 [1] : vector<16x16xf32> to vector<16xf32>
    %815 = vector.shape_cast %814 : vector<16xf32> to vector<16x1xf32>
    %816 = tpu.reciprocal %815 {approx = true} : vector<16x1xf32> -> vector<16x1xf32>
    %817 = vector.broadcast %816 : vector<16x1xf32> to vector<16x16xf32>
    %818 = arith.mulf %813, %817 : vector<16x16xf32>
    %cst_372 = arith.constant dense<0.000000e+00> : vector<16x8xf32>
    %819 = tpu.matmul %818, %804, %cst_372 {dimension_numbers = #tpu.dot_dimension_numbers<[1], [0], [0], [1], [0, 0, 1, 1], [], []>} : vector<16x16xf32>, vector<16x8xf32>, vector<16x8xf32> -> vector<16x8xf32>
    %820 = vector.extract_strided_slice %769 {offsets = [8, 0], sizes = [8, 32], strides = [1, 1]} : vector<32x32xf32> to vector<8x32xf32>
    %cst_373 = arith.constant dense<0.000000e+00> : vector<16x32xf32>
    %821 = tpu.matmul %819, %820, %cst_373 {dimension_numbers = #tpu.dot_dimension_numbers<[1], [0], [0], [1], [0, 0, 1, 1], [], []>} : vector<16x8xf32>, vector<8x32xf32>, vector<16x32xf32> -> vector<16x32xf32>
    %822 = arith.addf %801, %821 : vector<16x32xf32>
    %823 = vector.extract_strided_slice %773 {offsets = [0, 16], sizes = [16, 8], strides = [1, 1]} : vector<16x32xf32> to vector<16x8xf32>
    %824 = vector.extract_strided_slice %776 {offsets = [0, 16], sizes = [16, 8], strides = [1, 1]} : vector<16x32xf32> to vector<16x8xf32>
    %825 = vector.extract_strided_slice %779 {offsets = [0, 16], sizes = [16, 8], strides = [1, 1]} : vector<16x32xf32> to vector<16x8xf32>
    %cst_374 = arith.constant dense<0.000000e+00> : vector<16x16xf32>
    %826 = tpu.matmul %823, %824, %cst_374 {dimension_numbers = #tpu.dot_dimension_numbers<[1], [1], [0], [0], [0, 0, 1, 0], [], []>} : vector<16x8xf32>, vector<16x8xf32>, vector<16x16xf32> -> vector<16x16xf32>
    %cst_375 = arith.constant 0.353553385 : f32
    %827 = vector.broadcast %cst_375 : f32 to vector<16x16xf32>
    %828 = arith.mulf %826, %827 : vector<16x16xf32>
    %829 = arith.addf %828, %0 : vector<16x16xf32>
    %cst_376 = arith.constant dense<0xFF800000> : vector<16xf32>
    %830 = vector.multi_reduction <maximumf>, %829, %cst_376 [1] : vector<16x16xf32> to vector<16xf32>
    %831 = vector.shape_cast %830 : vector<16xf32> to vector<16x1xf32>
    %832 = vector.broadcast %831 : vector<16x1xf32> to vector<16x16xf32>
    %833 = arith.subf %829, %832 : vector<16x16xf32>
    %834 = math.exp %833 : vector<16x16xf32>
    %cst_377 = arith.constant dense<0.000000e+00> : vector<16xf32>
    %835 = vector.multi_reduction <add>, %834, %cst_377 [1] : vector<16x16xf32> to vector<16xf32>
    %836 = vector.shape_cast %835 : vector<16xf32> to vector<16x1xf32>
    %837 = tpu.reciprocal %836 {approx = true} : vector<16x1xf32> -> vector<16x1xf32>
    %838 = vector.broadcast %837 : vector<16x1xf32> to vector<16x16xf32>
    %839 = arith.mulf %834, %838 : vector<16x16xf32>
    %cst_378 = arith.constant dense<0.000000e+00> : vector<16x8xf32>
    %840 = tpu.matmul %839, %825, %cst_378 {dimension_numbers = #tpu.dot_dimension_numbers<[1], [0], [0], [1], [0, 0, 1, 1], [], []>} : vector<16x16xf32>, vector<16x8xf32>, vector<16x8xf32> -> vector<16x8xf32>
    %841 = vector.extract_strided_slice %769 {offsets = [16, 0], sizes = [8, 32], strides = [1, 1]} : vector<32x32xf32> to vector<8x32xf32>
    %cst_379 = arith.constant dense<0.000000e+00> : vector<16x32xf32>
    %842 = tpu.matmul %840, %841, %cst_379 {dimension_numbers = #tpu.dot_dimension_numbers<[1], [0], [0], [1], [0, 0, 1, 1], [], []>} : vector<16x8xf32>, vector<8x32xf32>, vector<16x32xf32> -> vector<16x32xf32>
    %843 = arith.addf %822, %842 : vector<16x32xf32>
    %844 = vector.extract_strided_slice %773 {offsets = [0, 24], sizes = [16, 8], strides = [1, 1]} : vector<16x32xf32> to vector<16x8xf32>
    %845 = vector.extract_strided_slice %776 {offsets = [0, 24], sizes = [16, 8], strides = [1, 1]} : vector<16x32xf32> to vector<16x8xf32>
    %846 = vector.extract_strided_slice %779 {offsets = [0, 24], sizes = [16, 8], strides = [1, 1]} : vector<16x32xf32> to vector<16x8xf32>
    %cst_380 = arith.constant dense<0.000000e+00> : vector<16x16xf32>
    %847 = tpu.matmul %844, %845, %cst_380 {dimension_numbers = #tpu.dot_dimension_numbers<[1], [1], [0], [0], [0, 0, 1, 0], [], []>} : vector<16x8xf32>, vector<16x8xf32>, vector<16x16xf32> -> vector<16x16xf32>
    %cst_381 = arith.constant 0.353553385 : f32
    %848 = vector.broadcast %cst_381 : f32 to vector<16x16xf32>
    %849 = arith.mulf %847, %848 : vector<16x16xf32>
    %850 = arith.addf %849, %0 : vector<16x16xf32>
    %cst_382 = arith.constant dense<0xFF800000> : vector<16xf32>
    %851 = vector.multi_reduction <maximumf>, %850, %cst_382 [1] : vector<16x16xf32> to vector<16xf32>
    %852 = vector.shape_cast %851 : vector<16xf32> to vector<16x1xf32>
    %853 = vector.broadcast %852 : vector<16x1xf32> to vector<16x16xf32>
    %854 = arith.subf %850, %853 : vector<16x16xf32>
    %855 = math.exp %854 : vector<16x16xf32>
    %cst_383 = arith.constant dense<0.000000e+00> : vector<16xf32>
    %856 = vector.multi_reduction <add>, %855, %cst_383 [1] : vector<16x16xf32> to vector<16xf32>
    %857 = vector.shape_cast %856 : vector<16xf32> to vector<16x1xf32>
    %858 = tpu.reciprocal %857 {approx = true} : vector<16x1xf32> -> vector<16x1xf32>
    %859 = vector.broadcast %858 : vector<16x1xf32> to vector<16x16xf32>
    %860 = arith.mulf %855, %859 : vector<16x16xf32>
    %cst_384 = arith.constant dense<0.000000e+00> : vector<16x8xf32>
    %861 = tpu.matmul %860, %846, %cst_384 {dimension_numbers = #tpu.dot_dimension_numbers<[1], [0], [0], [1], [0, 0, 1, 1], [], []>} : vector<16x16xf32>, vector<16x8xf32>, vector<16x8xf32> -> vector<16x8xf32>
    %862 = vector.extract_strided_slice %769 {offsets = [24, 0], sizes = [8, 32], strides = [1, 1]} : vector<32x32xf32> to vector<8x32xf32>
    %cst_385 = arith.constant dense<0.000000e+00> : vector<16x32xf32>
    %863 = tpu.matmul %861, %862, %cst_385 {dimension_numbers = #tpu.dot_dimension_numbers<[1], [0], [0], [1], [0, 0, 1, 1], [], []>} : vector<16x8xf32>, vector<8x32xf32>, vector<16x32xf32> -> vector<16x32xf32>
    %864 = arith.addf %843, %863 : vector<16x32xf32>
    %865 = vector.broadcast %770 : vector<1x32xf32> to vector<16x32xf32>
    %866 = arith.addf %864, %865 : vector<16x32xf32>
    %867 = arith.addf %734, %866 : vector<16x32xf32>
    %c0_386 = arith.constant 0 : index
    %c0_387 = arith.constant 0 : index
    %868 = vector.load %arg13[%c0_386, %c0_387] : memref<4x32xf32, #tpu.memory_space<vmem>>, vector<1x32xf32>
    %c0_388 = arith.constant 0 : index
    %c0_389 = arith.constant 0 : index
    %869 = vector.load %arg14[%c0_388, %c0_389] : memref<4x32xf32, #tpu.memory_space<vmem>>, vector<1x32xf32>
    %cst_390 = arith.constant dense<0.000000e+00> : vector<16xf32>
    %870 = vector.multi_reduction <add>, %867, %cst_390 [1] : vector<16x32xf32> to vector<16xf32>
    %871 = vector.shape_cast %870 : vector<16xf32> to vector<16x1xf32>
    %cst_391 = arith.constant 3.200000e+01 : f32
    %872 = vector.broadcast %cst_391 : f32 to vector<16x1xf32>
    %873 = arith.divf %871, %872 : vector<16x1xf32>
    %874 = vector.broadcast %873 : vector<16x1xf32> to vector<16x32xf32>
    %875 = arith.subf %867, %874 : vector<16x32xf32>
    %876 = arith.mulf %875, %875 : vector<16x32xf32>
    %cst_392 = arith.constant dense<0.000000e+00> : vector<16xf32>
    %877 = vector.multi_reduction <add>, %876, %cst_392 [1] : vector<16x32xf32> to vector<16xf32>
    %878 = vector.shape_cast %877 : vector<16xf32> to vector<16x1xf32>
    %cst_393 = arith.constant 3.200000e+01 : f32
    %879 = vector.broadcast %cst_393 : f32 to vector<16x1xf32>
    %880 = arith.divf %878, %879 : vector<16x1xf32>
    %881 = vector.broadcast %873 : vector<16x1xf32> to vector<16x32xf32>
    %882 = arith.subf %867, %881 : vector<16x32xf32>
    %cst_394 = arith.constant 9.99999996E-13 : f32
    %883 = vector.broadcast %cst_394 : f32 to vector<16x1xf32>
    %884 = arith.addf %880, %883 : vector<16x1xf32>
    %885 = math.rsqrt %884 : vector<16x1xf32>
    %886 = vector.broadcast %885 : vector<16x1xf32> to vector<16x32xf32>
    %887 = arith.mulf %882, %886 : vector<16x32xf32>
    %888 = vector.broadcast %868 : vector<1x32xf32> to vector<16x32xf32>
    %889 = arith.mulf %887, %888 : vector<16x32xf32>
    %890 = vector.broadcast %869 : vector<1x32xf32> to vector<16x32xf32>
    %891 = arith.addf %889, %890 : vector<16x32xf32>
    %c0_395 = arith.constant 0 : index
    %c0_396 = arith.constant 0 : index
    %c0_397 = arith.constant 0 : index
    %892 = vector.load %arg15[%c0_395, %c0_396, %c0_397] : memref<4x32x128xf32, #tpu.memory_space<vmem>>, vector<1x32x128xf32>
    %893 = vector.shape_cast %892 : vector<1x32x128xf32> to vector<32x128xf32>
    %cst_398 = arith.constant dense<0.000000e+00> : vector<16x128xf32>
    %894 = tpu.matmul %891, %893, %cst_398 {dimension_numbers = #tpu.dot_dimension_numbers<[1], [0], [0], [1], [0, 0, 1, 1], [], []>} : vector<16x32xf32>, vector<32x128xf32>, vector<16x128xf32> -> vector<16x128xf32>
    %c0_399 = arith.constant 0 : index
    %c0_400 = arith.constant 0 : index
    %895 = vector.load %arg16[%c0_399, %c0_400] : memref<4x128xf32, #tpu.memory_space<vmem>>, vector<1x128xf32>
    %896 = vector.broadcast %895 : vector<1x128xf32> to vector<16x128xf32>
    %897 = arith.addf %894, %896 : vector<16x128xf32>
    %898 = arith.mulf %897, %897 : vector<16x128xf32>
    %899 = arith.mulf %897, %898 : vector<16x128xf32>
    %cst_401 = arith.constant 4.471500e-02 : f32
    %900 = vector.broadcast %cst_401 : f32 to vector<16x128xf32>
    %901 = arith.mulf %900, %899 : vector<16x128xf32>
    %902 = arith.addf %897, %901 : vector<16x128xf32>
    %cst_402 = arith.constant 0.797884583 : f32
    %903 = vector.broadcast %cst_402 : f32 to vector<16x128xf32>
    %904 = arith.mulf %903, %902 : vector<16x128xf32>
    %905 = math.tanh %904 : vector<16x128xf32>
    %cst_403 = arith.constant 1.000000e+00 : f32
    %906 = vector.broadcast %cst_403 : f32 to vector<16x128xf32>
    %907 = arith.addf %906, %905 : vector<16x128xf32>
    %cst_404 = arith.constant 5.000000e-01 : f32
    %908 = vector.broadcast %cst_404 : f32 to vector<16x128xf32>
    %909 = arith.mulf %908, %907 : vector<16x128xf32>
    %910 = arith.mulf %897, %909 : vector<16x128xf32>
    %c0_405 = arith.constant 0 : index
    %c0_406 = arith.constant 0 : index
    %c0_407 = arith.constant 0 : index
    %911 = vector.load %arg17[%c0_405, %c0_406, %c0_407] : memref<4x128x32xf32, #tpu.memory_space<vmem>>, vector<1x128x32xf32>
    %912 = vector.shape_cast %911 : vector<1x128x32xf32> to vector<128x32xf32>
    %cst_408 = arith.constant dense<0.000000e+00> : vector<16x32xf32>
    %913 = tpu.matmul %910, %912, %cst_408 {dimension_numbers = #tpu.dot_dimension_numbers<[1], [0], [0], [1], [0, 0, 1, 1], [], []>} : vector<16x128xf32>, vector<128x32xf32>, vector<16x32xf32> -> vector<16x32xf32>
    %c0_409 = arith.constant 0 : index
    %c0_410 = arith.constant 0 : index
    %914 = vector.load %arg18[%c0_409, %c0_410] : memref<4x32xf32, #tpu.memory_space<vmem>>, vector<1x32xf32>
    %915 = vector.broadcast %914 : vector<1x32xf32> to vector<16x32xf32>
    %916 = arith.addf %913, %915 : vector<16x32xf32>
    %917 = arith.addf %867, %916 : vector<16x32xf32>
    %c1_411 = arith.constant 1 : index
    %c0_412 = arith.constant 0 : index
    %918 = vector.load %arg3[%c1_411, %c0_412] : memref<4x32xf32, #tpu.memory_space<vmem>>, vector<1x32xf32>
    %c1_413 = arith.constant 1 : index
    %c0_414 = arith.constant 0 : index
    %919 = vector.load %arg4[%c1_413, %c0_414] : memref<4x32xf32, #tpu.memory_space<vmem>>, vector<1x32xf32>
    %cst_415 = arith.constant dense<0.000000e+00> : vector<16xf32>
    %920 = vector.multi_reduction <add>, %917, %cst_415 [1] : vector<16x32xf32> to vector<16xf32>
    %921 = vector.shape_cast %920 : vector<16xf32> to vector<16x1xf32>
    %cst_416 = arith.constant 3.200000e+01 : f32
    %922 = vector.broadcast %cst_416 : f32 to vector<16x1xf32>
    %923 = arith.divf %921, %922 : vector<16x1xf32>
    %924 = vector.broadcast %923 : vector<16x1xf32> to vector<16x32xf32>
    %925 = arith.subf %917, %924 : vector<16x32xf32>
    %926 = arith.mulf %925, %925 : vector<16x32xf32>
    %cst_417 = arith.constant dense<0.000000e+00> : vector<16xf32>
    %927 = vector.multi_reduction <add>, %926, %cst_417 [1] : vector<16x32xf32> to vector<16xf32>
    %928 = vector.shape_cast %927 : vector<16xf32> to vector<16x1xf32>
    %cst_418 = arith.constant 3.200000e+01 : f32
    %929 = vector.broadcast %cst_418 : f32 to vector<16x1xf32>
    %930 = arith.divf %928, %929 : vector<16x1xf32>
    %931 = vector.broadcast %923 : vector<16x1xf32> to vector<16x32xf32>
    %932 = arith.subf %917, %931 : vector<16x32xf32>
    %cst_419 = arith.constant 9.99999996E-13 : f32
    %933 = vector.broadcast %cst_419 : f32 to vector<16x1xf32>
    %934 = arith.addf %930, %933 : vector<16x1xf32>
    %935 = math.rsqrt %934 : vector<16x1xf32>
    %936 = vector.broadcast %935 : vector<16x1xf32> to vector<16x32xf32>
    %937 = arith.mulf %932, %936 : vector<16x32xf32>
    %938 = vector.broadcast %918 : vector<1x32xf32> to vector<16x32xf32>
    %939 = arith.mulf %937, %938 : vector<16x32xf32>
    %940 = vector.broadcast %919 : vector<1x32xf32> to vector<16x32xf32>
    %941 = arith.addf %939, %940 : vector<16x32xf32>
    %c1_420 = arith.constant 1 : index
    %c0_421 = arith.constant 0 : index
    %c0_422 = arith.constant 0 : index
    %942 = vector.load %arg5[%c1_420, %c0_421, %c0_422] : memref<4x32x32xf32, #tpu.memory_space<vmem>>, vector<1x32x32xf32>
    %943 = vector.shape_cast %942 : vector<1x32x32xf32> to vector<32x32xf32>
    %c1_423 = arith.constant 1 : index
    %c0_424 = arith.constant 0 : index
    %944 = vector.load %arg6[%c1_423, %c0_424] : memref<4x32xf32, #tpu.memory_space<vmem>>, vector<1x32xf32>
    %c1_425 = arith.constant 1 : index
    %c0_426 = arith.constant 0 : index
    %c0_427 = arith.constant 0 : index
    %945 = vector.load %arg7[%c1_425, %c0_426, %c0_427] : memref<4x32x32xf32, #tpu.memory_space<vmem>>, vector<1x32x32xf32>
    %946 = vector.shape_cast %945 : vector<1x32x32xf32> to vector<32x32xf32>
    %c1_428 = arith.constant 1 : index
    %c0_429 = arith.constant 0 : index
    %947 = vector.load %arg8[%c1_428, %c0_429] : memref<4x32xf32, #tpu.memory_space<vmem>>, vector<1x32xf32>
    %c1_430 = arith.constant 1 : index
    %c0_431 = arith.constant 0 : index
    %c0_432 = arith.constant 0 : index
    %948 = vector.load %arg9[%c1_430, %c0_431, %c0_432] : memref<4x32x32xf32, #tpu.memory_space<vmem>>, vector<1x32x32xf32>
    %949 = vector.shape_cast %948 : vector<1x32x32xf32> to vector<32x32xf32>
    %c1_433 = arith.constant 1 : index
    %c0_434 = arith.constant 0 : index
    %950 = vector.load %arg10[%c1_433, %c0_434] : memref<4x32xf32, #tpu.memory_space<vmem>>, vector<1x32xf32>
    %c1_435 = arith.constant 1 : index
    %c0_436 = arith.constant 0 : index
    %c0_437 = arith.constant 0 : index
    %951 = vector.load %arg11[%c1_435, %c0_436, %c0_437] : memref<4x32x32xf32, #tpu.memory_space<vmem>>, vector<1x32x32xf32>
    %952 = vector.shape_cast %951 : vector<1x32x32xf32> to vector<32x32xf32>
    %c1_438 = arith.constant 1 : index
    %c0_439 = arith.constant 0 : index
    %953 = vector.load %arg12[%c1_438, %c0_439] : memref<4x32xf32, #tpu.memory_space<vmem>>, vector<1x32xf32>
    %cst_440 = arith.constant dense<0.000000e+00> : vector<16x32xf32>
    %954 = tpu.matmul %941, %943, %cst_440 {dimension_numbers = #tpu.dot_dimension_numbers<[1], [0], [0], [1], [0, 0, 1, 1], [], []>} : vector<16x32xf32>, vector<32x32xf32>, vector<16x32xf32> -> vector<16x32xf32>
    %955 = vector.broadcast %944 : vector<1x32xf32> to vector<16x32xf32>
    %956 = arith.addf %954, %955 : vector<16x32xf32>
    %cst_441 = arith.constant dense<0.000000e+00> : vector<16x32xf32>
    %957 = tpu.matmul %941, %946, %cst_441 {dimension_numbers = #tpu.dot_dimension_numbers<[1], [0], [0], [1], [0, 0, 1, 1], [], []>} : vector<16x32xf32>, vector<32x32xf32>, vector<16x32xf32> -> vector<16x32xf32>
    %958 = vector.broadcast %947 : vector<1x32xf32> to vector<16x32xf32>
    %959 = arith.addf %957, %958 : vector<16x32xf32>
    %cst_442 = arith.constant dense<0.000000e+00> : vector<16x32xf32>
    %960 = tpu.matmul %941, %949, %cst_442 {dimension_numbers = #tpu.dot_dimension_numbers<[1], [0], [0], [1], [0, 0, 1, 1], [], []>} : vector<16x32xf32>, vector<32x32xf32>, vector<16x32xf32> -> vector<16x32xf32>
    %961 = vector.broadcast %950 : vector<1x32xf32> to vector<16x32xf32>
    %962 = arith.addf %960, %961 : vector<16x32xf32>
    %cst_443 = arith.constant 0.000000e+00 : f32
    %963 = vector.broadcast %cst_443 : f32 to vector<16x32xf32>
    %964 = vector.extract_strided_slice %956 {offsets = [0, 0], sizes = [16, 8], strides = [1, 1]} : vector<16x32xf32> to vector<16x8xf32>
    %965 = vector.extract_strided_slice %959 {offsets = [0, 0], sizes = [16, 8], strides = [1, 1]} : vector<16x32xf32> to vector<16x8xf32>
    %966 = vector.extract_strided_slice %962 {offsets = [0, 0], sizes = [16, 8], strides = [1, 1]} : vector<16x32xf32> to vector<16x8xf32>
    %cst_444 = arith.constant dense<0.000000e+00> : vector<16x16xf32>
    %967 = tpu.matmul %964, %965, %cst_444 {dimension_numbers = #tpu.dot_dimension_numbers<[1], [1], [0], [0], [0, 0, 1, 0], [], []>} : vector<16x8xf32>, vector<16x8xf32>, vector<16x16xf32> -> vector<16x16xf32>
    %cst_445 = arith.constant 0.353553385 : f32
    %968 = vector.broadcast %cst_445 : f32 to vector<16x16xf32>
    %969 = arith.mulf %967, %968 : vector<16x16xf32>
    %970 = arith.addf %969, %0 : vector<16x16xf32>
    %cst_446 = arith.constant dense<0xFF800000> : vector<16xf32>
    %971 = vector.multi_reduction <maximumf>, %970, %cst_446 [1] : vector<16x16xf32> to vector<16xf32>
    %972 = vector.shape_cast %971 : vector<16xf32> to vector<16x1xf32>
    %973 = vector.broadcast %972 : vector<16x1xf32> to vector<16x16xf32>
    %974 = arith.subf %970, %973 : vector<16x16xf32>
    %975 = math.exp %974 : vector<16x16xf32>
    %cst_447 = arith.constant dense<0.000000e+00> : vector<16xf32>
    %976 = vector.multi_reduction <add>, %975, %cst_447 [1] : vector<16x16xf32> to vector<16xf32>
    %977 = vector.shape_cast %976 : vector<16xf32> to vector<16x1xf32>
    %978 = tpu.reciprocal %977 {approx = true} : vector<16x1xf32> -> vector<16x1xf32>
    %979 = vector.broadcast %978 : vector<16x1xf32> to vector<16x16xf32>
    %980 = arith.mulf %975, %979 : vector<16x16xf32>
    %cst_448 = arith.constant dense<0.000000e+00> : vector<16x8xf32>
    %981 = tpu.matmul %980, %966, %cst_448 {dimension_numbers = #tpu.dot_dimension_numbers<[1], [0], [0], [1], [0, 0, 1, 1], [], []>} : vector<16x16xf32>, vector<16x8xf32>, vector<16x8xf32> -> vector<16x8xf32>
    %982 = vector.extract_strided_slice %952 {offsets = [0, 0], sizes = [8, 32], strides = [1, 1]} : vector<32x32xf32> to vector<8x32xf32>
    %cst_449 = arith.constant dense<0.000000e+00> : vector<16x32xf32>
    %983 = tpu.matmul %981, %982, %cst_449 {dimension_numbers = #tpu.dot_dimension_numbers<[1], [0], [0], [1], [0, 0, 1, 1], [], []>} : vector<16x8xf32>, vector<8x32xf32>, vector<16x32xf32> -> vector<16x32xf32>
    %984 = arith.addf %963, %983 : vector<16x32xf32>
    %985 = vector.extract_strided_slice %956 {offsets = [0, 8], sizes = [16, 8], strides = [1, 1]} : vector<16x32xf32> to vector<16x8xf32>
    %986 = vector.extract_strided_slice %959 {offsets = [0, 8], sizes = [16, 8], strides = [1, 1]} : vector<16x32xf32> to vector<16x8xf32>
    %987 = vector.extract_strided_slice %962 {offsets = [0, 8], sizes = [16, 8], strides = [1, 1]} : vector<16x32xf32> to vector<16x8xf32>
    %cst_450 = arith.constant dense<0.000000e+00> : vector<16x16xf32>
    %988 = tpu.matmul %985, %986, %cst_450 {dimension_numbers = #tpu.dot_dimension_numbers<[1], [1], [0], [0], [0, 0, 1, 0], [], []>} : vector<16x8xf32>, vector<16x8xf32>, vector<16x16xf32> -> vector<16x16xf32>
    %cst_451 = arith.constant 0.353553385 : f32
    %989 = vector.broadcast %cst_451 : f32 to vector<16x16xf32>
    %990 = arith.mulf %988, %989 : vector<16x16xf32>
    %991 = arith.addf %990, %0 : vector<16x16xf32>
    %cst_452 = arith.constant dense<0xFF800000> : vector<16xf32>
    %992 = vector.multi_reduction <maximumf>, %991, %cst_452 [1] : vector<16x16xf32> to vector<16xf32>
    %993 = vector.shape_cast %992 : vector<16xf32> to vector<16x1xf32>
    %994 = vector.broadcast %993 : vector<16x1xf32> to vector<16x16xf32>
    %995 = arith.subf %991, %994 : vector<16x16xf32>
    %996 = math.exp %995 : vector<16x16xf32>
    %cst_453 = arith.constant dense<0.000000e+00> : vector<16xf32>
    %997 = vector.multi_reduction <add>, %996, %cst_453 [1] : vector<16x16xf32> to vector<16xf32>
    %998 = vector.shape_cast %997 : vector<16xf32> to vector<16x1xf32>
    %999 = tpu.reciprocal %998 {approx = true} : vector<16x1xf32> -> vector<16x1xf32>
    %1000 = vector.broadcast %999 : vector<16x1xf32> to vector<16x16xf32>
    %1001 = arith.mulf %996, %1000 : vector<16x16xf32>
    %cst_454 = arith.constant dense<0.000000e+00> : vector<16x8xf32>
    %1002 = tpu.matmul %1001, %987, %cst_454 {dimension_numbers = #tpu.dot_dimension_numbers<[1], [0], [0], [1], [0, 0, 1, 1], [], []>} : vector<16x16xf32>, vector<16x8xf32>, vector<16x8xf32> -> vector<16x8xf32>
    %1003 = vector.extract_strided_slice %952 {offsets = [8, 0], sizes = [8, 32], strides = [1, 1]} : vector<32x32xf32> to vector<8x32xf32>
    %cst_455 = arith.constant dense<0.000000e+00> : vector<16x32xf32>
    %1004 = tpu.matmul %1002, %1003, %cst_455 {dimension_numbers = #tpu.dot_dimension_numbers<[1], [0], [0], [1], [0, 0, 1, 1], [], []>} : vector<16x8xf32>, vector<8x32xf32>, vector<16x32xf32> -> vector<16x32xf32>
    %1005 = arith.addf %984, %1004 : vector<16x32xf32>
    %1006 = vector.extract_strided_slice %956 {offsets = [0, 16], sizes = [16, 8], strides = [1, 1]} : vector<16x32xf32> to vector<16x8xf32>
    %1007 = vector.extract_strided_slice %959 {offsets = [0, 16], sizes = [16, 8], strides = [1, 1]} : vector<16x32xf32> to vector<16x8xf32>
    %1008 = vector.extract_strided_slice %962 {offsets = [0, 16], sizes = [16, 8], strides = [1, 1]} : vector<16x32xf32> to vector<16x8xf32>
    %cst_456 = arith.constant dense<0.000000e+00> : vector<16x16xf32>
    %1009 = tpu.matmul %1006, %1007, %cst_456 {dimension_numbers = #tpu.dot_dimension_numbers<[1], [1], [0], [0], [0, 0, 1, 0], [], []>} : vector<16x8xf32>, vector<16x8xf32>, vector<16x16xf32> -> vector<16x16xf32>
    %cst_457 = arith.constant 0.353553385 : f32
    %1010 = vector.broadcast %cst_457 : f32 to vector<16x16xf32>
    %1011 = arith.mulf %1009, %1010 : vector<16x16xf32>
    %1012 = arith.addf %1011, %0 : vector<16x16xf32>
    %cst_458 = arith.constant dense<0xFF800000> : vector<16xf32>
    %1013 = vector.multi_reduction <maximumf>, %1012, %cst_458 [1] : vector<16x16xf32> to vector<16xf32>
    %1014 = vector.shape_cast %1013 : vector<16xf32> to vector<16x1xf32>
    %1015 = vector.broadcast %1014 : vector<16x1xf32> to vector<16x16xf32>
    %1016 = arith.subf %1012, %1015 : vector<16x16xf32>
    %1017 = math.exp %1016 : vector<16x16xf32>
    %cst_459 = arith.constant dense<0.000000e+00> : vector<16xf32>
    %1018 = vector.multi_reduction <add>, %1017, %cst_459 [1] : vector<16x16xf32> to vector<16xf32>
    %1019 = vector.shape_cast %1018 : vector<16xf32> to vector<16x1xf32>
    %1020 = tpu.reciprocal %1019 {approx = true} : vector<16x1xf32> -> vector<16x1xf32>
    %1021 = vector.broadcast %1020 : vector<16x1xf32> to vector<16x16xf32>
    %1022 = arith.mulf %1017, %1021 : vector<16x16xf32>
    %cst_460 = arith.constant dense<0.000000e+00> : vector<16x8xf32>
    %1023 = tpu.matmul %1022, %1008, %cst_460 {dimension_numbers = #tpu.dot_dimension_numbers<[1], [0], [0], [1], [0, 0, 1, 1], [], []>} : vector<16x16xf32>, vector<16x8xf32>, vector<16x8xf32> -> vector<16x8xf32>
    %1024 = vector.extract_strided_slice %952 {offsets = [16, 0], sizes = [8, 32], strides = [1, 1]} : vector<32x32xf32> to vector<8x32xf32>
    %cst_461 = arith.constant dense<0.000000e+00> : vector<16x32xf32>
    %1025 = tpu.matmul %1023, %1024, %cst_461 {dimension_numbers = #tpu.dot_dimension_numbers<[1], [0], [0], [1], [0, 0, 1, 1], [], []>} : vector<16x8xf32>, vector<8x32xf32>, vector<16x32xf32> -> vector<16x32xf32>
    %1026 = arith.addf %1005, %1025 : vector<16x32xf32>
    %1027 = vector.extract_strided_slice %956 {offsets = [0, 24], sizes = [16, 8], strides = [1, 1]} : vector<16x32xf32> to vector<16x8xf32>
    %1028 = vector.extract_strided_slice %959 {offsets = [0, 24], sizes = [16, 8], strides = [1, 1]} : vector<16x32xf32> to vector<16x8xf32>
    %1029 = vector.extract_strided_slice %962 {offsets = [0, 24], sizes = [16, 8], strides = [1, 1]} : vector<16x32xf32> to vector<16x8xf32>
    %cst_462 = arith.constant dense<0.000000e+00> : vector<16x16xf32>
    %1030 = tpu.matmul %1027, %1028, %cst_462 {dimension_numbers = #tpu.dot_dimension_numbers<[1], [1], [0], [0], [0, 0, 1, 0], [], []>} : vector<16x8xf32>, vector<16x8xf32>, vector<16x16xf32> -> vector<16x16xf32>
    %cst_463 = arith.constant 0.353553385 : f32
    %1031 = vector.broadcast %cst_463 : f32 to vector<16x16xf32>
    %1032 = arith.mulf %1030, %1031 : vector<16x16xf32>
    %1033 = arith.addf %1032, %0 : vector<16x16xf32>
    %cst_464 = arith.constant dense<0xFF800000> : vector<16xf32>
    %1034 = vector.multi_reduction <maximumf>, %1033, %cst_464 [1] : vector<16x16xf32> to vector<16xf32>
    %1035 = vector.shape_cast %1034 : vector<16xf32> to vector<16x1xf32>
    %1036 = vector.broadcast %1035 : vector<16x1xf32> to vector<16x16xf32>
    %1037 = arith.subf %1033, %1036 : vector<16x16xf32>
    %1038 = math.exp %1037 : vector<16x16xf32>
    %cst_465 = arith.constant dense<0.000000e+00> : vector<16xf32>
    %1039 = vector.multi_reduction <add>, %1038, %cst_465 [1] : vector<16x16xf32> to vector<16xf32>
    %1040 = vector.shape_cast %1039 : vector<16xf32> to vector<16x1xf32>
    %1041 = tpu.reciprocal %1040 {approx = true} : vector<16x1xf32> -> vector<16x1xf32>
    %1042 = vector.broadcast %1041 : vector<16x1xf32> to vector<16x16xf32>
    %1043 = arith.mulf %1038, %1042 : vector<16x16xf32>
    %cst_466 = arith.constant dense<0.000000e+00> : vector<16x8xf32>
    %1044 = tpu.matmul %1043, %1029, %cst_466 {dimension_numbers = #tpu.dot_dimension_numbers<[1], [0], [0], [1], [0, 0, 1, 1], [], []>} : vector<16x16xf32>, vector<16x8xf32>, vector<16x8xf32> -> vector<16x8xf32>
    %1045 = vector.extract_strided_slice %952 {offsets = [24, 0], sizes = [8, 32], strides = [1, 1]} : vector<32x32xf32> to vector<8x32xf32>
    %cst_467 = arith.constant dense<0.000000e+00> : vector<16x32xf32>
    %1046 = tpu.matmul %1044, %1045, %cst_467 {dimension_numbers = #tpu.dot_dimension_numbers<[1], [0], [0], [1], [0, 0, 1, 1], [], []>} : vector<16x8xf32>, vector<8x32xf32>, vector<16x32xf32> -> vector<16x32xf32>
    %1047 = arith.addf %1026, %1046 : vector<16x32xf32>
    %1048 = vector.broadcast %953 : vector<1x32xf32> to vector<16x32xf32>
    %1049 = arith.addf %1047, %1048 : vector<16x32xf32>
    %1050 = arith.addf %917, %1049 : vector<16x32xf32>
    %c1_468 = arith.constant 1 : index
    %c0_469 = arith.constant 0 : index
    %1051 = vector.load %arg13[%c1_468, %c0_469] : memref<4x32xf32, #tpu.memory_space<vmem>>, vector<1x32xf32>
    %c1_470 = arith.constant 1 : index
    %c0_471 = arith.constant 0 : index
    %1052 = vector.load %arg14[%c1_470, %c0_471] : memref<4x32xf32, #tpu.memory_space<vmem>>, vector<1x32xf32>
    %cst_472 = arith.constant dense<0.000000e+00> : vector<16xf32>
    %1053 = vector.multi_reduction <add>, %1050, %cst_472 [1] : vector<16x32xf32> to vector<16xf32>
    %1054 = vector.shape_cast %1053 : vector<16xf32> to vector<16x1xf32>
    %cst_473 = arith.constant 3.200000e+01 : f32
    %1055 = vector.broadcast %cst_473 : f32 to vector<16x1xf32>
    %1056 = arith.divf %1054, %1055 : vector<16x1xf32>
    %1057 = vector.broadcast %1056 : vector<16x1xf32> to vector<16x32xf32>
    %1058 = arith.subf %1050, %1057 : vector<16x32xf32>
    %1059 = arith.mulf %1058, %1058 : vector<16x32xf32>
    %cst_474 = arith.constant dense<0.000000e+00> : vector<16xf32>
    %1060 = vector.multi_reduction <add>, %1059, %cst_474 [1] : vector<16x32xf32> to vector<16xf32>
    %1061 = vector.shape_cast %1060 : vector<16xf32> to vector<16x1xf32>
    %cst_475 = arith.constant 3.200000e+01 : f32
    %1062 = vector.broadcast %cst_475 : f32 to vector<16x1xf32>
    %1063 = arith.divf %1061, %1062 : vector<16x1xf32>
    %1064 = vector.broadcast %1056 : vector<16x1xf32> to vector<16x32xf32>
    %1065 = arith.subf %1050, %1064 : vector<16x32xf32>
    %cst_476 = arith.constant 9.99999996E-13 : f32
    %1066 = vector.broadcast %cst_476 : f32 to vector<16x1xf32>
    %1067 = arith.addf %1063, %1066 : vector<16x1xf32>
    %1068 = math.rsqrt %1067 : vector<16x1xf32>
    %1069 = vector.broadcast %1068 : vector<16x1xf32> to vector<16x32xf32>
    %1070 = arith.mulf %1065, %1069 : vector<16x32xf32>
    %1071 = vector.broadcast %1051 : vector<1x32xf32> to vector<16x32xf32>
    %1072 = arith.mulf %1070, %1071 : vector<16x32xf32>
    %1073 = vector.broadcast %1052 : vector<1x32xf32> to vector<16x32xf32>
    %1074 = arith.addf %1072, %1073 : vector<16x32xf32>
    %c1_477 = arith.constant 1 : index
    %c0_478 = arith.constant 0 : index
    %c0_479 = arith.constant 0 : index
    %1075 = vector.load %arg15[%c1_477, %c0_478, %c0_479] : memref<4x32x128xf32, #tpu.memory_space<vmem>>, vector<1x32x128xf32>
    %1076 = vector.shape_cast %1075 : vector<1x32x128xf32> to vector<32x128xf32>
    %cst_480 = arith.constant dense<0.000000e+00> : vector<16x128xf32>
    %1077 = tpu.matmul %1074, %1076, %cst_480 {dimension_numbers = #tpu.dot_dimension_numbers<[1], [0], [0], [1], [0, 0, 1, 1], [], []>} : vector<16x32xf32>, vector<32x128xf32>, vector<16x128xf32> -> vector<16x128xf32>
    %c1_481 = arith.constant 1 : index
    %c0_482 = arith.constant 0 : index
    %1078 = vector.load %arg16[%c1_481, %c0_482] : memref<4x128xf32, #tpu.memory_space<vmem>>, vector<1x128xf32>
    %1079 = vector.broadcast %1078 : vector<1x128xf32> to vector<16x128xf32>
    %1080 = arith.addf %1077, %1079 : vector<16x128xf32>
    %1081 = arith.mulf %1080, %1080 : vector<16x128xf32>
    %1082 = arith.mulf %1080, %1081 : vector<16x128xf32>
    %cst_483 = arith.constant 4.471500e-02 : f32
    %1083 = vector.broadcast %cst_483 : f32 to vector<16x128xf32>
    %1084 = arith.mulf %1083, %1082 : vector<16x128xf32>
    %1085 = arith.addf %1080, %1084 : vector<16x128xf32>
    %cst_484 = arith.constant 0.797884583 : f32
    %1086 = vector.broadcast %cst_484 : f32 to vector<16x128xf32>
    %1087 = arith.mulf %1086, %1085 : vector<16x128xf32>
    %1088 = math.tanh %1087 : vector<16x128xf32>
    %cst_485 = arith.constant 1.000000e+00 : f32
    %1089 = vector.broadcast %cst_485 : f32 to vector<16x128xf32>
    %1090 = arith.addf %1089, %1088 : vector<16x128xf32>
    %cst_486 = arith.constant 5.000000e-01 : f32
    %1091 = vector.broadcast %cst_486 : f32 to vector<16x128xf32>
    %1092 = arith.mulf %1091, %1090 : vector<16x128xf32>
    %1093 = arith.mulf %1080, %1092 : vector<16x128xf32>
    %c1_487 = arith.constant 1 : index
    %c0_488 = arith.constant 0 : index
    %c0_489 = arith.constant 0 : index
    %1094 = vector.load %arg17[%c1_487, %c0_488, %c0_489] : memref<4x128x32xf32, #tpu.memory_space<vmem>>, vector<1x128x32xf32>
    %1095 = vector.shape_cast %1094 : vector<1x128x32xf32> to vector<128x32xf32>
    %cst_490 = arith.constant dense<0.000000e+00> : vector<16x32xf32>
    %1096 = tpu.matmul %1093, %1095, %cst_490 {dimension_numbers = #tpu.dot_dimension_numbers<[1], [0], [0], [1], [0, 0, 1, 1], [], []>} : vector<16x128xf32>, vector<128x32xf32>, vector<16x32xf32> -> vector<16x32xf32>
    %c1_491 = arith.constant 1 : index
    %c0_492 = arith.constant 0 : index
    %1097 = vector.load %arg18[%c1_491, %c0_492] : memref<4x32xf32, #tpu.memory_space<vmem>>, vector<1x32xf32>
    %1098 = vector.broadcast %1097 : vector<1x32xf32> to vector<16x32xf32>
    %1099 = arith.addf %1096, %1098 : vector<16x32xf32>
    %1100 = arith.addf %1050, %1099 : vector<16x32xf32>
    %c2_493 = arith.constant 2 : index
    %c0_494 = arith.constant 0 : index
    %1101 = vector.load %arg3[%c2_493, %c0_494] : memref<4x32xf32, #tpu.memory_space<vmem>>, vector<1x32xf32>
    %c2_495 = arith.constant 2 : index
    %c0_496 = arith.constant 0 : index
    %1102 = vector.load %arg4[%c2_495, %c0_496] : memref<4x32xf32, #tpu.memory_space<vmem>>, vector<1x32xf32>
    %cst_497 = arith.constant dense<0.000000e+00> : vector<16xf32>
    %1103 = vector.multi_reduction <add>, %1100, %cst_497 [1] : vector<16x32xf32> to vector<16xf32>
    %1104 = vector.shape_cast %1103 : vector<16xf32> to vector<16x1xf32>
    %cst_498 = arith.constant 3.200000e+01 : f32
    %1105 = vector.broadcast %cst_498 : f32 to vector<16x1xf32>
    %1106 = arith.divf %1104, %1105 : vector<16x1xf32>
    %1107 = vector.broadcast %1106 : vector<16x1xf32> to vector<16x32xf32>
    %1108 = arith.subf %1100, %1107 : vector<16x32xf32>
    %1109 = arith.mulf %1108, %1108 : vector<16x32xf32>
    %cst_499 = arith.constant dense<0.000000e+00> : vector<16xf32>
    %1110 = vector.multi_reduction <add>, %1109, %cst_499 [1] : vector<16x32xf32> to vector<16xf32>
    %1111 = vector.shape_cast %1110 : vector<16xf32> to vector<16x1xf32>
    %cst_500 = arith.constant 3.200000e+01 : f32
    %1112 = vector.broadcast %cst_500 : f32 to vector<16x1xf32>
    %1113 = arith.divf %1111, %1112 : vector<16x1xf32>
    %1114 = vector.broadcast %1106 : vector<16x1xf32> to vector<16x32xf32>
    %1115 = arith.subf %1100, %1114 : vector<16x32xf32>
    %cst_501 = arith.constant 9.99999996E-13 : f32
    %1116 = vector.broadcast %cst_501 : f32 to vector<16x1xf32>
    %1117 = arith.addf %1113, %1116 : vector<16x1xf32>
    %1118 = math.rsqrt %1117 : vector<16x1xf32>
    %1119 = vector.broadcast %1118 : vector<16x1xf32> to vector<16x32xf32>
    %1120 = arith.mulf %1115, %1119 : vector<16x32xf32>
    %1121 = vector.broadcast %1101 : vector<1x32xf32> to vector<16x32xf32>
    %1122 = arith.mulf %1120, %1121 : vector<16x32xf32>
    %1123 = vector.broadcast %1102 : vector<1x32xf32> to vector<16x32xf32>
    %1124 = arith.addf %1122, %1123 : vector<16x32xf32>
    %c2_502 = arith.constant 2 : index
    %c0_503 = arith.constant 0 : index
    %c0_504 = arith.constant 0 : index
    %1125 = vector.load %arg5[%c2_502, %c0_503, %c0_504] : memref<4x32x32xf32, #tpu.memory_space<vmem>>, vector<1x32x32xf32>
    %1126 = vector.shape_cast %1125 : vector<1x32x32xf32> to vector<32x32xf32>
    %c2_505 = arith.constant 2 : index
    %c0_506 = arith.constant 0 : index
    %1127 = vector.load %arg6[%c2_505, %c0_506] : memref<4x32xf32, #tpu.memory_space<vmem>>, vector<1x32xf32>
    %c2_507 = arith.constant 2 : index
    %c0_508 = arith.constant 0 : index
    %c0_509 = arith.constant 0 : index
    %1128 = vector.load %arg7[%c2_507, %c0_508, %c0_509] : memref<4x32x32xf32, #tpu.memory_space<vmem>>, vector<1x32x32xf32>
    %1129 = vector.shape_cast %1128 : vector<1x32x32xf32> to vector<32x32xf32>
    %c2_510 = arith.constant 2 : index
    %c0_511 = arith.constant 0 : index
    %1130 = vector.load %arg8[%c2_510, %c0_511] : memref<4x32xf32, #tpu.memory_space<vmem>>, vector<1x32xf32>
    %c2_512 = arith.constant 2 : index
    %c0_513 = arith.constant 0 : index
    %c0_514 = arith.constant 0 : index
    %1131 = vector.load %arg9[%c2_512, %c0_513, %c0_514] : memref<4x32x32xf32, #tpu.memory_space<vmem>>, vector<1x32x32xf32>
    %1132 = vector.shape_cast %1131 : vector<1x32x32xf32> to vector<32x32xf32>
    %c2_515 = arith.constant 2 : index
    %c0_516 = arith.constant 0 : index
    %1133 = vector.load %arg10[%c2_515, %c0_516] : memref<4x32xf32, #tpu.memory_space<vmem>>, vector<1x32xf32>
    %c2_517 = arith.constant 2 : index
    %c0_518 = arith.constant 0 : index
    %c0_519 = arith.constant 0 : index
    %1134 = vector.load %arg11[%c2_517, %c0_518, %c0_519] : memref<4x32x32xf32, #tpu.memory_space<vmem>>, vector<1x32x32xf32>
    %1135 = vector.shape_cast %1134 : vector<1x32x32xf32> to vector<32x32xf32>
    %c2_520 = arith.constant 2 : index
    %c0_521 = arith.constant 0 : index
    %1136 = vector.load %arg12[%c2_520, %c0_521] : memref<4x32xf32, #tpu.memory_space<vmem>>, vector<1x32xf32>
    %cst_522 = arith.constant dense<0.000000e+00> : vector<16x32xf32>
    %1137 = tpu.matmul %1124, %1126, %cst_522 {dimension_numbers = #tpu.dot_dimension_numbers<[1], [0], [0], [1], [0, 0, 1, 1], [], []>} : vector<16x32xf32>, vector<32x32xf32>, vector<16x32xf32> -> vector<16x32xf32>
    %1138 = vector.broadcast %1127 : vector<1x32xf32> to vector<16x32xf32>
    %1139 = arith.addf %1137, %1138 : vector<16x32xf32>
    %cst_523 = arith.constant dense<0.000000e+00> : vector<16x32xf32>
    %1140 = tpu.matmul %1124, %1129, %cst_523 {dimension_numbers = #tpu.dot_dimension_numbers<[1], [0], [0], [1], [0, 0, 1, 1], [], []>} : vector<16x32xf32>, vector<32x32xf32>, vector<16x32xf32> -> vector<16x32xf32>
    %1141 = vector.broadcast %1130 : vector<1x32xf32> to vector<16x32xf32>
    %1142 = arith.addf %1140, %1141 : vector<16x32xf32>
    %cst_524 = arith.constant dense<0.000000e+00> : vector<16x32xf32>
    %1143 = tpu.matmul %1124, %1132, %cst_524 {dimension_numbers = #tpu.dot_dimension_numbers<[1], [0], [0], [1], [0, 0, 1, 1], [], []>} : vector<16x32xf32>, vector<32x32xf32>, vector<16x32xf32> -> vector<16x32xf32>
    %1144 = vector.broadcast %1133 : vector<1x32xf32> to vector<16x32xf32>
    %1145 = arith.addf %1143, %1144 : vector<16x32xf32>
    %cst_525 = arith.constant 0.000000e+00 : f32
    %1146 = vector.broadcast %cst_525 : f32 to vector<16x32xf32>
    %1147 = vector.extract_strided_slice %1139 {offsets = [0, 0], sizes = [16, 8], strides = [1, 1]} : vector<16x32xf32> to vector<16x8xf32>
    %1148 = vector.extract_strided_slice %1142 {offsets = [0, 0], sizes = [16, 8], strides = [1, 1]} : vector<16x32xf32> to vector<16x8xf32>
    %1149 = vector.extract_strided_slice %1145 {offsets = [0, 0], sizes = [16, 8], strides = [1, 1]} : vector<16x32xf32> to vector<16x8xf32>
    %cst_526 = arith.constant dense<0.000000e+00> : vector<16x16xf32>
    %1150 = tpu.matmul %1147, %1148, %cst_526 {dimension_numbers = #tpu.dot_dimension_numbers<[1], [1], [0], [0], [0, 0, 1, 0], [], []>} : vector<16x8xf32>, vector<16x8xf32>, vector<16x16xf32> -> vector<16x16xf32>
    %cst_527 = arith.constant 0.353553385 : f32
    %1151 = vector.broadcast %cst_527 : f32 to vector<16x16xf32>
    %1152 = arith.mulf %1150, %1151 : vector<16x16xf32>
    %1153 = arith.addf %1152, %0 : vector<16x16xf32>
    %cst_528 = arith.constant dense<0xFF800000> : vector<16xf32>
    %1154 = vector.multi_reduction <maximumf>, %1153, %cst_528 [1] : vector<16x16xf32> to vector<16xf32>
    %1155 = vector.shape_cast %1154 : vector<16xf32> to vector<16x1xf32>
    %1156 = vector.broadcast %1155 : vector<16x1xf32> to vector<16x16xf32>
    %1157 = arith.subf %1153, %1156 : vector<16x16xf32>
    %1158 = math.exp %1157 : vector<16x16xf32>
    %cst_529 = arith.constant dense<0.000000e+00> : vector<16xf32>
    %1159 = vector.multi_reduction <add>, %1158, %cst_529 [1] : vector<16x16xf32> to vector<16xf32>
    %1160 = vector.shape_cast %1159 : vector<16xf32> to vector<16x1xf32>
    %1161 = tpu.reciprocal %1160 {approx = true} : vector<16x1xf32> -> vector<16x1xf32>
    %1162 = vector.broadcast %1161 : vector<16x1xf32> to vector<16x16xf32>
    %1163 = arith.mulf %1158, %1162 : vector<16x16xf32>
    %cst_530 = arith.constant dense<0.000000e+00> : vector<16x8xf32>
    %1164 = tpu.matmul %1163, %1149, %cst_530 {dimension_numbers = #tpu.dot_dimension_numbers<[1], [0], [0], [1], [0, 0, 1, 1], [], []>} : vector<16x16xf32>, vector<16x8xf32>, vector<16x8xf32> -> vector<16x8xf32>
    %1165 = vector.extract_strided_slice %1135 {offsets = [0, 0], sizes = [8, 32], strides = [1, 1]} : vector<32x32xf32> to vector<8x32xf32>
    %cst_531 = arith.constant dense<0.000000e+00> : vector<16x32xf32>
    %1166 = tpu.matmul %1164, %1165, %cst_531 {dimension_numbers = #tpu.dot_dimension_numbers<[1], [0], [0], [1], [0, 0, 1, 1], [], []>} : vector<16x8xf32>, vector<8x32xf32>, vector<16x32xf32> -> vector<16x32xf32>
    %1167 = arith.addf %1146, %1166 : vector<16x32xf32>
    %1168 = vector.extract_strided_slice %1139 {offsets = [0, 8], sizes = [16, 8], strides = [1, 1]} : vector<16x32xf32> to vector<16x8xf32>
    %1169 = vector.extract_strided_slice %1142 {offsets = [0, 8], sizes = [16, 8], strides = [1, 1]} : vector<16x32xf32> to vector<16x8xf32>
    %1170 = vector.extract_strided_slice %1145 {offsets = [0, 8], sizes = [16, 8], strides = [1, 1]} : vector<16x32xf32> to vector<16x8xf32>
    %cst_532 = arith.constant dense<0.000000e+00> : vector<16x16xf32>
    %1171 = tpu.matmul %1168, %1169, %cst_532 {dimension_numbers = #tpu.dot_dimension_numbers<[1], [1], [0], [0], [0, 0, 1, 0], [], []>} : vector<16x8xf32>, vector<16x8xf32>, vector<16x16xf32> -> vector<16x16xf32>
    %cst_533 = arith.constant 0.353553385 : f32
    %1172 = vector.broadcast %cst_533 : f32 to vector<16x16xf32>
    %1173 = arith.mulf %1171, %1172 : vector<16x16xf32>
    %1174 = arith.addf %1173, %0 : vector<16x16xf32>
    %cst_534 = arith.constant dense<0xFF800000> : vector<16xf32>
    %1175 = vector.multi_reduction <maximumf>, %1174, %cst_534 [1] : vector<16x16xf32> to vector<16xf32>
    %1176 = vector.shape_cast %1175 : vector<16xf32> to vector<16x1xf32>
    %1177 = vector.broadcast %1176 : vector<16x1xf32> to vector<16x16xf32>
    %1178 = arith.subf %1174, %1177 : vector<16x16xf32>
    %1179 = math.exp %1178 : vector<16x16xf32>
    %cst_535 = arith.constant dense<0.000000e+00> : vector<16xf32>
    %1180 = vector.multi_reduction <add>, %1179, %cst_535 [1] : vector<16x16xf32> to vector<16xf32>
    %1181 = vector.shape_cast %1180 : vector<16xf32> to vector<16x1xf32>
    %1182 = tpu.reciprocal %1181 {approx = true} : vector<16x1xf32> -> vector<16x1xf32>
    %1183 = vector.broadcast %1182 : vector<16x1xf32> to vector<16x16xf32>
    %1184 = arith.mulf %1179, %1183 : vector<16x16xf32>
    %cst_536 = arith.constant dense<0.000000e+00> : vector<16x8xf32>
    %1185 = tpu.matmul %1184, %1170, %cst_536 {dimension_numbers = #tpu.dot_dimension_numbers<[1], [0], [0], [1], [0, 0, 1, 1], [], []>} : vector<16x16xf32>, vector<16x8xf32>, vector<16x8xf32> -> vector<16x8xf32>
    %1186 = vector.extract_strided_slice %1135 {offsets = [8, 0], sizes = [8, 32], strides = [1, 1]} : vector<32x32xf32> to vector<8x32xf32>
    %cst_537 = arith.constant dense<0.000000e+00> : vector<16x32xf32>
    %1187 = tpu.matmul %1185, %1186, %cst_537 {dimension_numbers = #tpu.dot_dimension_numbers<[1], [0], [0], [1], [0, 0, 1, 1], [], []>} : vector<16x8xf32>, vector<8x32xf32>, vector<16x32xf32> -> vector<16x32xf32>
    %1188 = arith.addf %1167, %1187 : vector<16x32xf32>
    %1189 = vector.extract_strided_slice %1139 {offsets = [0, 16], sizes = [16, 8], strides = [1, 1]} : vector<16x32xf32> to vector<16x8xf32>
    %1190 = vector.extract_strided_slice %1142 {offsets = [0, 16], sizes = [16, 8], strides = [1, 1]} : vector<16x32xf32> to vector<16x8xf32>
    %1191 = vector.extract_strided_slice %1145 {offsets = [0, 16], sizes = [16, 8], strides = [1, 1]} : vector<16x32xf32> to vector<16x8xf32>
    %cst_538 = arith.constant dense<0.000000e+00> : vector<16x16xf32>
    %1192 = tpu.matmul %1189, %1190, %cst_538 {dimension_numbers = #tpu.dot_dimension_numbers<[1], [1], [0], [0], [0, 0, 1, 0], [], []>} : vector<16x8xf32>, vector<16x8xf32>, vector<16x16xf32> -> vector<16x16xf32>
    %cst_539 = arith.constant 0.353553385 : f32
    %1193 = vector.broadcast %cst_539 : f32 to vector<16x16xf32>
    %1194 = arith.mulf %1192, %1193 : vector<16x16xf32>
    %1195 = arith.addf %1194, %0 : vector<16x16xf32>
    %cst_540 = arith.constant dense<0xFF800000> : vector<16xf32>
    %1196 = vector.multi_reduction <maximumf>, %1195, %cst_540 [1] : vector<16x16xf32> to vector<16xf32>
    %1197 = vector.shape_cast %1196 : vector<16xf32> to vector<16x1xf32>
    %1198 = vector.broadcast %1197 : vector<16x1xf32> to vector<16x16xf32>
    %1199 = arith.subf %1195, %1198 : vector<16x16xf32>
    %1200 = math.exp %1199 : vector<16x16xf32>
    %cst_541 = arith.constant dense<0.000000e+00> : vector<16xf32>
    %1201 = vector.multi_reduction <add>, %1200, %cst_541 [1] : vector<16x16xf32> to vector<16xf32>
    %1202 = vector.shape_cast %1201 : vector<16xf32> to vector<16x1xf32>
    %1203 = tpu.reciprocal %1202 {approx = true} : vector<16x1xf32> -> vector<16x1xf32>
    %1204 = vector.broadcast %1203 : vector<16x1xf32> to vector<16x16xf32>
    %1205 = arith.mulf %1200, %1204 : vector<16x16xf32>
    %cst_542 = arith.constant dense<0.000000e+00> : vector<16x8xf32>
    %1206 = tpu.matmul %1205, %1191, %cst_542 {dimension_numbers = #tpu.dot_dimension_numbers<[1], [0], [0], [1], [0, 0, 1, 1], [], []>} : vector<16x16xf32>, vector<16x8xf32>, vector<16x8xf32> -> vector<16x8xf32>
    %1207 = vector.extract_strided_slice %1135 {offsets = [16, 0], sizes = [8, 32], strides = [1, 1]} : vector<32x32xf32> to vector<8x32xf32>
    %cst_543 = arith.constant dense<0.000000e+00> : vector<16x32xf32>
    %1208 = tpu.matmul %1206, %1207, %cst_543 {dimension_numbers = #tpu.dot_dimension_numbers<[1], [0], [0], [1], [0, 0, 1, 1], [], []>} : vector<16x8xf32>, vector<8x32xf32>, vector<16x32xf32> -> vector<16x32xf32>
    %1209 = arith.addf %1188, %1208 : vector<16x32xf32>
    %1210 = vector.extract_strided_slice %1139 {offsets = [0, 24], sizes = [16, 8], strides = [1, 1]} : vector<16x32xf32> to vector<16x8xf32>
    %1211 = vector.extract_strided_slice %1142 {offsets = [0, 24], sizes = [16, 8], strides = [1, 1]} : vector<16x32xf32> to vector<16x8xf32>
    %1212 = vector.extract_strided_slice %1145 {offsets = [0, 24], sizes = [16, 8], strides = [1, 1]} : vector<16x32xf32> to vector<16x8xf32>
    %cst_544 = arith.constant dense<0.000000e+00> : vector<16x16xf32>
    %1213 = tpu.matmul %1210, %1211, %cst_544 {dimension_numbers = #tpu.dot_dimension_numbers<[1], [1], [0], [0], [0, 0, 1, 0], [], []>} : vector<16x8xf32>, vector<16x8xf32>, vector<16x16xf32> -> vector<16x16xf32>
    %cst_545 = arith.constant 0.353553385 : f32
    %1214 = vector.broadcast %cst_545 : f32 to vector<16x16xf32>
    %1215 = arith.mulf %1213, %1214 : vector<16x16xf32>
    %1216 = arith.addf %1215, %0 : vector<16x16xf32>
    %cst_546 = arith.constant dense<0xFF800000> : vector<16xf32>
    %1217 = vector.multi_reduction <maximumf>, %1216, %cst_546 [1] : vector<16x16xf32> to vector<16xf32>
    %1218 = vector.shape_cast %1217 : vector<16xf32> to vector<16x1xf32>
    %1219 = vector.broadcast %1218 : vector<16x1xf32> to vector<16x16xf32>
    %1220 = arith.subf %1216, %1219 : vector<16x16xf32>
    %1221 = math.exp %1220 : vector<16x16xf32>
    %cst_547 = arith.constant dense<0.000000e+00> : vector<16xf32>
    %1222 = vector.multi_reduction <add>, %1221, %cst_547 [1] : vector<16x16xf32> to vector<16xf32>
    %1223 = vector.shape_cast %1222 : vector<16xf32> to vector<16x1xf32>
    %1224 = tpu.reciprocal %1223 {approx = true} : vector<16x1xf32> -> vector<16x1xf32>
    %1225 = vector.broadcast %1224 : vector<16x1xf32> to vector<16x16xf32>
    %1226 = arith.mulf %1221, %1225 : vector<16x16xf32>
    %cst_548 = arith.constant dense<0.000000e+00> : vector<16x8xf32>
    %1227 = tpu.matmul %1226, %1212, %cst_548 {dimension_numbers = #tpu.dot_dimension_numbers<[1], [0], [0], [1], [0, 0, 1, 1], [], []>} : vector<16x16xf32>, vector<16x8xf32>, vector<16x8xf32> -> vector<16x8xf32>
    %1228 = vector.extract_strided_slice %1135 {offsets = [24, 0], sizes = [8, 32], strides = [1, 1]} : vector<32x32xf32> to vector<8x32xf32>
    %cst_549 = arith.constant dense<0.000000e+00> : vector<16x32xf32>
    %1229 = tpu.matmul %1227, %1228, %cst_549 {dimension_numbers = #tpu.dot_dimension_numbers<[1], [0], [0], [1], [0, 0, 1, 1], [], []>} : vector<16x8xf32>, vector<8x32xf32>, vector<16x32xf32> -> vector<16x32xf32>
    %1230 = arith.addf %1209, %1229 : vector<16x32xf32>
    %1231 = vector.broadcast %1136 : vector<1x32xf32> to vector<16x32xf32>
    %1232 = arith.addf %1230, %1231 : vector<16x32xf32>
    %1233 = arith.addf %1100, %1232 : vector<16x32xf32>
    %c0_550 = arith.constant 0 : index
    %c0_551 = arith.constant 0 : index
    %1234 = vector.load %arg19[%c0_550, %c0_551] : memref<2x32xf32, #tpu.memory_space<vmem>>, vector<1x32xf32>
    %c0_552 = arith.constant 0 : index
    %c0_553 = arith.constant 0 : index
    %1235 = vector.load %arg20[%c0_552, %c0_553] : memref<2x32xf32, #tpu.memory_space<vmem>>, vector<1x32xf32>
    %cst_554 = arith.constant dense<0.000000e+00> : vector<16xf32>
    %1236 = vector.multi_reduction <add>, %550, %cst_554 [1] : vector<16x32xf32> to vector<16xf32>
    %1237 = vector.shape_cast %1236 : vector<16xf32> to vector<16x1xf32>
    %cst_555 = arith.constant 3.200000e+01 : f32
    %1238 = vector.broadcast %cst_555 : f32 to vector<16x1xf32>
    %1239 = arith.divf %1237, %1238 : vector<16x1xf32>
    %1240 = vector.broadcast %1239 : vector<16x1xf32> to vector<16x32xf32>
    %1241 = arith.subf %550, %1240 : vector<16x32xf32>
    %1242 = arith.mulf %1241, %1241 : vector<16x32xf32>
    %cst_556 = arith.constant dense<0.000000e+00> : vector<16xf32>
    %1243 = vector.multi_reduction <add>, %1242, %cst_556 [1] : vector<16x32xf32> to vector<16xf32>
    %1244 = vector.shape_cast %1243 : vector<16xf32> to vector<16x1xf32>
    %cst_557 = arith.constant 3.200000e+01 : f32
    %1245 = vector.broadcast %cst_557 : f32 to vector<16x1xf32>
    %1246 = arith.divf %1244, %1245 : vector<16x1xf32>
    %1247 = vector.broadcast %1239 : vector<16x1xf32> to vector<16x32xf32>
    %1248 = arith.subf %550, %1247 : vector<16x32xf32>
    %cst_558 = arith.constant 9.99999996E-13 : f32
    %1249 = vector.broadcast %cst_558 : f32 to vector<16x1xf32>
    %1250 = arith.addf %1246, %1249 : vector<16x1xf32>
    %1251 = math.rsqrt %1250 : vector<16x1xf32>
    %1252 = vector.broadcast %1251 : vector<16x1xf32> to vector<16x32xf32>
    %1253 = arith.mulf %1248, %1252 : vector<16x32xf32>
    %1254 = vector.broadcast %1234 : vector<1x32xf32> to vector<16x32xf32>
    %1255 = arith.mulf %1253, %1254 : vector<16x32xf32>
    %1256 = vector.broadcast %1235 : vector<1x32xf32> to vector<16x32xf32>
    %1257 = arith.addf %1255, %1256 : vector<16x32xf32>
    %c0_559 = arith.constant 0 : index
    %c0_560 = arith.constant 0 : index
    %c0_561 = arith.constant 0 : index
    %1258 = vector.load %arg21[%c0_559, %c0_560, %c0_561] : memref<2x32x32xf32, #tpu.memory_space<vmem>>, vector<1x32x32xf32>
    %1259 = vector.shape_cast %1258 : vector<1x32x32xf32> to vector<32x32xf32>
    %cst_562 = arith.constant dense<0.000000e+00> : vector<16x32xf32>
    %1260 = tpu.matmul %1257, %1259, %cst_562 {dimension_numbers = #tpu.dot_dimension_numbers<[1], [0], [0], [1], [0, 0, 1, 1], [], []>} : vector<16x32xf32>, vector<32x32xf32>, vector<16x32xf32> -> vector<16x32xf32>
    %c0_563 = arith.constant 0 : index
    %c0_564 = arith.constant 0 : index
    %1261 = vector.load %arg22[%c0_563, %c0_564] : memref<2x32xf32, #tpu.memory_space<vmem>>, vector<1x32xf32>
    %1262 = vector.broadcast %1261 : vector<1x32xf32> to vector<16x32xf32>
    %1263 = arith.addf %1260, %1262 : vector<16x32xf32>
    %c0_565 = arith.constant 0 : index
    %c0_566 = arith.constant 0 : index
    %1264 = vector.load %arg23[%c0_565, %c0_566] : memref<2x32xf32, #tpu.memory_space<vmem>>, vector<1x32xf32>
    %1265 = arith.negf %1264 : vector<1x32xf32>
    %1266 = math.exp %1265 : vector<1x32xf32>
    %cst_567 = arith.constant 1.000000e+00 : f32
    %1267 = vector.broadcast %cst_567 : f32 to vector<1x32xf32>
    %1268 = arith.addf %1267, %1266 : vector<1x32xf32>
    %1269 = arith.divf %1267, %1268 : vector<1x32xf32>
    %cst_568 = arith.constant 1.000000e+00 : f32
    %1270 = vector.broadcast %cst_568 : f32 to vector<1x32xf32>
    %1271 = arith.subf %1270, %1269 : vector<1x32xf32>
    %1272 = vector.broadcast %1271 : vector<1x32xf32> to vector<16x32xf32>
    %1273 = arith.mulf %1233, %1272 : vector<16x32xf32>
    %1274 = vector.broadcast %1269 : vector<1x32xf32> to vector<16x32xf32>
    %1275 = arith.mulf %1263, %1274 : vector<16x32xf32>
    %1276 = arith.addf %1273, %1275 : vector<16x32xf32>
    %c0_569 = arith.constant 0 : index
    %c0_570 = arith.constant 0 : index
    %c0_571 = arith.constant 0 : index
    %1277 = vector.load %arg24[%c0_569, %c0_570, %c0_571] : memref<2x32x32xf32, #tpu.memory_space<vmem>>, vector<1x32x32xf32>
    %1278 = vector.shape_cast %1277 : vector<1x32x32xf32> to vector<32x32xf32>
    %cst_572 = arith.constant dense<0.000000e+00> : vector<16x32xf32>
    %1279 = tpu.matmul %1276, %1278, %cst_572 {dimension_numbers = #tpu.dot_dimension_numbers<[1], [0], [0], [1], [0, 0, 1, 1], [], []>} : vector<16x32xf32>, vector<32x32xf32>, vector<16x32xf32> -> vector<16x32xf32>
    %c0_573 = arith.constant 0 : index
    %c0_574 = arith.constant 0 : index
    %c0_575 = arith.constant 0 : index
    %1280 = vector.load %arg25[%c0_573, %c0_574, %c0_575] : memref<2x32x32xf32, #tpu.memory_space<vmem>>, vector<1x32x32xf32>
    %1281 = vector.shape_cast %1280 : vector<1x32x32xf32> to vector<32x32xf32>
    %cst_576 = arith.constant dense<0.000000e+00> : vector<16x32xf32>
    %1282 = tpu.matmul %917, %1281, %cst_576 {dimension_numbers = #tpu.dot_dimension_numbers<[1], [0], [0], [1], [0, 0, 1, 1], [], []>} : vector<16x32xf32>, vector<32x32xf32>, vector<16x32xf32> -> vector<16x32xf32>
    %1283 = arith.addf %1279, %1282 : vector<16x32xf32>
    %c0_577 = arith.constant 0 : index
    %c0_578 = arith.constant 0 : index
    %1284 = vector.load %arg26[%c0_577, %c0_578] : memref<2x32xf32, #tpu.memory_space<vmem>>, vector<1x32xf32>
    %1285 = vector.broadcast %1284 : vector<1x32xf32> to vector<16x32xf32>
    %1286 = arith.addf %1283, %1285 : vector<16x32xf32>
    %cst_579 = arith.constant 1.000000e-01 : f32
    %1287 = vector.broadcast %cst_579 : f32 to vector<16x32xf32>
    %1288 = arith.mulf %1286, %1287 : vector<16x32xf32>
    %1289 = arith.addf %1276, %1288 : vector<16x32xf32>
    %c2_580 = arith.constant 2 : index
    %c0_581 = arith.constant 0 : index
    %1290 = vector.load %arg13[%c2_580, %c0_581] : memref<4x32xf32, #tpu.memory_space<vmem>>, vector<1x32xf32>
    %c2_582 = arith.constant 2 : index
    %c0_583 = arith.constant 0 : index
    %1291 = vector.load %arg14[%c2_582, %c0_583] : memref<4x32xf32, #tpu.memory_space<vmem>>, vector<1x32xf32>
    %cst_584 = arith.constant dense<0.000000e+00> : vector<16xf32>
    %1292 = vector.multi_reduction <add>, %1289, %cst_584 [1] : vector<16x32xf32> to vector<16xf32>
    %1293 = vector.shape_cast %1292 : vector<16xf32> to vector<16x1xf32>
    %cst_585 = arith.constant 3.200000e+01 : f32
    %1294 = vector.broadcast %cst_585 : f32 to vector<16x1xf32>
    %1295 = arith.divf %1293, %1294 : vector<16x1xf32>
    %1296 = vector.broadcast %1295 : vector<16x1xf32> to vector<16x32xf32>
    %1297 = arith.subf %1289, %1296 : vector<16x32xf32>
    %1298 = arith.mulf %1297, %1297 : vector<16x32xf32>
    %cst_586 = arith.constant dense<0.000000e+00> : vector<16xf32>
    %1299 = vector.multi_reduction <add>, %1298, %cst_586 [1] : vector<16x32xf32> to vector<16xf32>
    %1300 = vector.shape_cast %1299 : vector<16xf32> to vector<16x1xf32>
    %cst_587 = arith.constant 3.200000e+01 : f32
    %1301 = vector.broadcast %cst_587 : f32 to vector<16x1xf32>
    %1302 = arith.divf %1300, %1301 : vector<16x1xf32>
    %1303 = vector.broadcast %1295 : vector<16x1xf32> to vector<16x32xf32>
    %1304 = arith.subf %1289, %1303 : vector<16x32xf32>
    %cst_588 = arith.constant 9.99999996E-13 : f32
    %1305 = vector.broadcast %cst_588 : f32 to vector<16x1xf32>
    %1306 = arith.addf %1302, %1305 : vector<16x1xf32>
    %1307 = math.rsqrt %1306 : vector<16x1xf32>
    %1308 = vector.broadcast %1307 : vector<16x1xf32> to vector<16x32xf32>
    %1309 = arith.mulf %1304, %1308 : vector<16x32xf32>
    %1310 = vector.broadcast %1290 : vector<1x32xf32> to vector<16x32xf32>
    %1311 = arith.mulf %1309, %1310 : vector<16x32xf32>
    %1312 = vector.broadcast %1291 : vector<1x32xf32> to vector<16x32xf32>
    %1313 = arith.addf %1311, %1312 : vector<16x32xf32>
    %c2_589 = arith.constant 2 : index
    %c0_590 = arith.constant 0 : index
    %c0_591 = arith.constant 0 : index
    %1314 = vector.load %arg15[%c2_589, %c0_590, %c0_591] : memref<4x32x128xf32, #tpu.memory_space<vmem>>, vector<1x32x128xf32>
    %1315 = vector.shape_cast %1314 : vector<1x32x128xf32> to vector<32x128xf32>
    %cst_592 = arith.constant dense<0.000000e+00> : vector<16x128xf32>
    %1316 = tpu.matmul %1313, %1315, %cst_592 {dimension_numbers = #tpu.dot_dimension_numbers<[1], [0], [0], [1], [0, 0, 1, 1], [], []>} : vector<16x32xf32>, vector<32x128xf32>, vector<16x128xf32> -> vector<16x128xf32>
    %c2_593 = arith.constant 2 : index
    %c0_594 = arith.constant 0 : index
    %1317 = vector.load %arg16[%c2_593, %c0_594] : memref<4x128xf32, #tpu.memory_space<vmem>>, vector<1x128xf32>
    %1318 = vector.broadcast %1317 : vector<1x128xf32> to vector<16x128xf32>
    %1319 = arith.addf %1316, %1318 : vector<16x128xf32>
    %1320 = arith.mulf %1319, %1319 : vector<16x128xf32>
    %1321 = arith.mulf %1319, %1320 : vector<16x128xf32>
    %cst_595 = arith.constant 4.471500e-02 : f32
    %1322 = vector.broadcast %cst_595 : f32 to vector<16x128xf32>
    %1323 = arith.mulf %1322, %1321 : vector<16x128xf32>
    %1324 = arith.addf %1319, %1323 : vector<16x128xf32>
    %cst_596 = arith.constant 0.797884583 : f32
    %1325 = vector.broadcast %cst_596 : f32 to vector<16x128xf32>
    %1326 = arith.mulf %1325, %1324 : vector<16x128xf32>
    %1327 = math.tanh %1326 : vector<16x128xf32>
    %cst_597 = arith.constant 1.000000e+00 : f32
    %1328 = vector.broadcast %cst_597 : f32 to vector<16x128xf32>
    %1329 = arith.addf %1328, %1327 : vector<16x128xf32>
    %cst_598 = arith.constant 5.000000e-01 : f32
    %1330 = vector.broadcast %cst_598 : f32 to vector<16x128xf32>
    %1331 = arith.mulf %1330, %1329 : vector<16x128xf32>
    %1332 = arith.mulf %1319, %1331 : vector<16x128xf32>
    %c2_599 = arith.constant 2 : index
    %c0_600 = arith.constant 0 : index
    %c0_601 = arith.constant 0 : index
    %1333 = vector.load %arg17[%c2_599, %c0_600, %c0_601] : memref<4x128x32xf32, #tpu.memory_space<vmem>>, vector<1x128x32xf32>
    %1334 = vector.shape_cast %1333 : vector<1x128x32xf32> to vector<128x32xf32>
    %cst_602 = arith.constant dense<0.000000e+00> : vector<16x32xf32>
    %1335 = tpu.matmul %1332, %1334, %cst_602 {dimension_numbers = #tpu.dot_dimension_numbers<[1], [0], [0], [1], [0, 0, 1, 1], [], []>} : vector<16x128xf32>, vector<128x32xf32>, vector<16x32xf32> -> vector<16x32xf32>
    %c2_603 = arith.constant 2 : index
    %c0_604 = arith.constant 0 : index
    %1336 = vector.load %arg18[%c2_603, %c0_604] : memref<4x32xf32, #tpu.memory_space<vmem>>, vector<1x32xf32>
    %1337 = vector.broadcast %1336 : vector<1x32xf32> to vector<16x32xf32>
    %1338 = arith.addf %1335, %1337 : vector<16x32xf32>
    %1339 = arith.addf %1289, %1338 : vector<16x32xf32>
    %c3_605 = arith.constant 3 : index
    %c0_606 = arith.constant 0 : index
    %1340 = vector.load %arg3[%c3_605, %c0_606] : memref<4x32xf32, #tpu.memory_space<vmem>>, vector<1x32xf32>
    %c3_607 = arith.constant 3 : index
    %c0_608 = arith.constant 0 : index
    %1341 = vector.load %arg4[%c3_607, %c0_608] : memref<4x32xf32, #tpu.memory_space<vmem>>, vector<1x32xf32>
    %cst_609 = arith.constant dense<0.000000e+00> : vector<16xf32>
    %1342 = vector.multi_reduction <add>, %1339, %cst_609 [1] : vector<16x32xf32> to vector<16xf32>
    %1343 = vector.shape_cast %1342 : vector<16xf32> to vector<16x1xf32>
    %cst_610 = arith.constant 3.200000e+01 : f32
    %1344 = vector.broadcast %cst_610 : f32 to vector<16x1xf32>
    %1345 = arith.divf %1343, %1344 : vector<16x1xf32>
    %1346 = vector.broadcast %1345 : vector<16x1xf32> to vector<16x32xf32>
    %1347 = arith.subf %1339, %1346 : vector<16x32xf32>
    %1348 = arith.mulf %1347, %1347 : vector<16x32xf32>
    %cst_611 = arith.constant dense<0.000000e+00> : vector<16xf32>
    %1349 = vector.multi_reduction <add>, %1348, %cst_611 [1] : vector<16x32xf32> to vector<16xf32>
    %1350 = vector.shape_cast %1349 : vector<16xf32> to vector<16x1xf32>
    %cst_612 = arith.constant 3.200000e+01 : f32
    %1351 = vector.broadcast %cst_612 : f32 to vector<16x1xf32>
    %1352 = arith.divf %1350, %1351 : vector<16x1xf32>
    %1353 = vector.broadcast %1345 : vector<16x1xf32> to vector<16x32xf32>
    %1354 = arith.subf %1339, %1353 : vector<16x32xf32>
    %cst_613 = arith.constant 9.99999996E-13 : f32
    %1355 = vector.broadcast %cst_613 : f32 to vector<16x1xf32>
    %1356 = arith.addf %1352, %1355 : vector<16x1xf32>
    %1357 = math.rsqrt %1356 : vector<16x1xf32>
    %1358 = vector.broadcast %1357 : vector<16x1xf32> to vector<16x32xf32>
    %1359 = arith.mulf %1354, %1358 : vector<16x32xf32>
    %1360 = vector.broadcast %1340 : vector<1x32xf32> to vector<16x32xf32>
    %1361 = arith.mulf %1359, %1360 : vector<16x32xf32>
    %1362 = vector.broadcast %1341 : vector<1x32xf32> to vector<16x32xf32>
    %1363 = arith.addf %1361, %1362 : vector<16x32xf32>
    %c3_614 = arith.constant 3 : index
    %c0_615 = arith.constant 0 : index
    %c0_616 = arith.constant 0 : index
    %1364 = vector.load %arg5[%c3_614, %c0_615, %c0_616] : memref<4x32x32xf32, #tpu.memory_space<vmem>>, vector<1x32x32xf32>
    %1365 = vector.shape_cast %1364 : vector<1x32x32xf32> to vector<32x32xf32>
    %c3_617 = arith.constant 3 : index
    %c0_618 = arith.constant 0 : index
    %1366 = vector.load %arg6[%c3_617, %c0_618] : memref<4x32xf32, #tpu.memory_space<vmem>>, vector<1x32xf32>
    %c3_619 = arith.constant 3 : index
    %c0_620 = arith.constant 0 : index
    %c0_621 = arith.constant 0 : index
    %1367 = vector.load %arg7[%c3_619, %c0_620, %c0_621] : memref<4x32x32xf32, #tpu.memory_space<vmem>>, vector<1x32x32xf32>
    %1368 = vector.shape_cast %1367 : vector<1x32x32xf32> to vector<32x32xf32>
    %c3_622 = arith.constant 3 : index
    %c0_623 = arith.constant 0 : index
    %1369 = vector.load %arg8[%c3_622, %c0_623] : memref<4x32xf32, #tpu.memory_space<vmem>>, vector<1x32xf32>
    %c3_624 = arith.constant 3 : index
    %c0_625 = arith.constant 0 : index
    %c0_626 = arith.constant 0 : index
    %1370 = vector.load %arg9[%c3_624, %c0_625, %c0_626] : memref<4x32x32xf32, #tpu.memory_space<vmem>>, vector<1x32x32xf32>
    %1371 = vector.shape_cast %1370 : vector<1x32x32xf32> to vector<32x32xf32>
    %c3_627 = arith.constant 3 : index
    %c0_628 = arith.constant 0 : index
    %1372 = vector.load %arg10[%c3_627, %c0_628] : memref<4x32xf32, #tpu.memory_space<vmem>>, vector<1x32xf32>
    %c3_629 = arith.constant 3 : index
    %c0_630 = arith.constant 0 : index
    %c0_631 = arith.constant 0 : index
    %1373 = vector.load %arg11[%c3_629, %c0_630, %c0_631] : memref<4x32x32xf32, #tpu.memory_space<vmem>>, vector<1x32x32xf32>
    %1374 = vector.shape_cast %1373 : vector<1x32x32xf32> to vector<32x32xf32>
    %c3_632 = arith.constant 3 : index
    %c0_633 = arith.constant 0 : index
    %1375 = vector.load %arg12[%c3_632, %c0_633] : memref<4x32xf32, #tpu.memory_space<vmem>>, vector<1x32xf32>
    %cst_634 = arith.constant dense<0.000000e+00> : vector<16x32xf32>
    %1376 = tpu.matmul %1363, %1365, %cst_634 {dimension_numbers = #tpu.dot_dimension_numbers<[1], [0], [0], [1], [0, 0, 1, 1], [], []>} : vector<16x32xf32>, vector<32x32xf32>, vector<16x32xf32> -> vector<16x32xf32>
    %1377 = vector.broadcast %1366 : vector<1x32xf32> to vector<16x32xf32>
    %1378 = arith.addf %1376, %1377 : vector<16x32xf32>
    %cst_635 = arith.constant dense<0.000000e+00> : vector<16x32xf32>
    %1379 = tpu.matmul %1363, %1368, %cst_635 {dimension_numbers = #tpu.dot_dimension_numbers<[1], [0], [0], [1], [0, 0, 1, 1], [], []>} : vector<16x32xf32>, vector<32x32xf32>, vector<16x32xf32> -> vector<16x32xf32>
    %1380 = vector.broadcast %1369 : vector<1x32xf32> to vector<16x32xf32>
    %1381 = arith.addf %1379, %1380 : vector<16x32xf32>
    %cst_636 = arith.constant dense<0.000000e+00> : vector<16x32xf32>
    %1382 = tpu.matmul %1363, %1371, %cst_636 {dimension_numbers = #tpu.dot_dimension_numbers<[1], [0], [0], [1], [0, 0, 1, 1], [], []>} : vector<16x32xf32>, vector<32x32xf32>, vector<16x32xf32> -> vector<16x32xf32>
    %1383 = vector.broadcast %1372 : vector<1x32xf32> to vector<16x32xf32>
    %1384 = arith.addf %1382, %1383 : vector<16x32xf32>
    %cst_637 = arith.constant 0.000000e+00 : f32
    %1385 = vector.broadcast %cst_637 : f32 to vector<16x32xf32>
    %1386 = vector.extract_strided_slice %1378 {offsets = [0, 0], sizes = [16, 8], strides = [1, 1]} : vector<16x32xf32> to vector<16x8xf32>
    %1387 = vector.extract_strided_slice %1381 {offsets = [0, 0], sizes = [16, 8], strides = [1, 1]} : vector<16x32xf32> to vector<16x8xf32>
    %1388 = vector.extract_strided_slice %1384 {offsets = [0, 0], sizes = [16, 8], strides = [1, 1]} : vector<16x32xf32> to vector<16x8xf32>
    %cst_638 = arith.constant dense<0.000000e+00> : vector<16x16xf32>
    %1389 = tpu.matmul %1386, %1387, %cst_638 {dimension_numbers = #tpu.dot_dimension_numbers<[1], [1], [0], [0], [0, 0, 1, 0], [], []>} : vector<16x8xf32>, vector<16x8xf32>, vector<16x16xf32> -> vector<16x16xf32>
    %cst_639 = arith.constant 0.353553385 : f32
    %1390 = vector.broadcast %cst_639 : f32 to vector<16x16xf32>
    %1391 = arith.mulf %1389, %1390 : vector<16x16xf32>
    %1392 = arith.addf %1391, %0 : vector<16x16xf32>
    %cst_640 = arith.constant dense<0xFF800000> : vector<16xf32>
    %1393 = vector.multi_reduction <maximumf>, %1392, %cst_640 [1] : vector<16x16xf32> to vector<16xf32>
    %1394 = vector.shape_cast %1393 : vector<16xf32> to vector<16x1xf32>
    %1395 = vector.broadcast %1394 : vector<16x1xf32> to vector<16x16xf32>
    %1396 = arith.subf %1392, %1395 : vector<16x16xf32>
    %1397 = math.exp %1396 : vector<16x16xf32>
    %cst_641 = arith.constant dense<0.000000e+00> : vector<16xf32>
    %1398 = vector.multi_reduction <add>, %1397, %cst_641 [1] : vector<16x16xf32> to vector<16xf32>
    %1399 = vector.shape_cast %1398 : vector<16xf32> to vector<16x1xf32>
    %1400 = tpu.reciprocal %1399 {approx = true} : vector<16x1xf32> -> vector<16x1xf32>
    %1401 = vector.broadcast %1400 : vector<16x1xf32> to vector<16x16xf32>
    %1402 = arith.mulf %1397, %1401 : vector<16x16xf32>
    %cst_642 = arith.constant dense<0.000000e+00> : vector<16x8xf32>
    %1403 = tpu.matmul %1402, %1388, %cst_642 {dimension_numbers = #tpu.dot_dimension_numbers<[1], [0], [0], [1], [0, 0, 1, 1], [], []>} : vector<16x16xf32>, vector<16x8xf32>, vector<16x8xf32> -> vector<16x8xf32>
    %1404 = vector.extract_strided_slice %1374 {offsets = [0, 0], sizes = [8, 32], strides = [1, 1]} : vector<32x32xf32> to vector<8x32xf32>
    %cst_643 = arith.constant dense<0.000000e+00> : vector<16x32xf32>
    %1405 = tpu.matmul %1403, %1404, %cst_643 {dimension_numbers = #tpu.dot_dimension_numbers<[1], [0], [0], [1], [0, 0, 1, 1], [], []>} : vector<16x8xf32>, vector<8x32xf32>, vector<16x32xf32> -> vector<16x32xf32>
    %1406 = arith.addf %1385, %1405 : vector<16x32xf32>
    %1407 = vector.extract_strided_slice %1378 {offsets = [0, 8], sizes = [16, 8], strides = [1, 1]} : vector<16x32xf32> to vector<16x8xf32>
    %1408 = vector.extract_strided_slice %1381 {offsets = [0, 8], sizes = [16, 8], strides = [1, 1]} : vector<16x32xf32> to vector<16x8xf32>
    %1409 = vector.extract_strided_slice %1384 {offsets = [0, 8], sizes = [16, 8], strides = [1, 1]} : vector<16x32xf32> to vector<16x8xf32>
    %cst_644 = arith.constant dense<0.000000e+00> : vector<16x16xf32>
    %1410 = tpu.matmul %1407, %1408, %cst_644 {dimension_numbers = #tpu.dot_dimension_numbers<[1], [1], [0], [0], [0, 0, 1, 0], [], []>} : vector<16x8xf32>, vector<16x8xf32>, vector<16x16xf32> -> vector<16x16xf32>
    %cst_645 = arith.constant 0.353553385 : f32
    %1411 = vector.broadcast %cst_645 : f32 to vector<16x16xf32>
    %1412 = arith.mulf %1410, %1411 : vector<16x16xf32>
    %1413 = arith.addf %1412, %0 : vector<16x16xf32>
    %cst_646 = arith.constant dense<0xFF800000> : vector<16xf32>
    %1414 = vector.multi_reduction <maximumf>, %1413, %cst_646 [1] : vector<16x16xf32> to vector<16xf32>
    %1415 = vector.shape_cast %1414 : vector<16xf32> to vector<16x1xf32>
    %1416 = vector.broadcast %1415 : vector<16x1xf32> to vector<16x16xf32>
    %1417 = arith.subf %1413, %1416 : vector<16x16xf32>
    %1418 = math.exp %1417 : vector<16x16xf32>
    %cst_647 = arith.constant dense<0.000000e+00> : vector<16xf32>
    %1419 = vector.multi_reduction <add>, %1418, %cst_647 [1] : vector<16x16xf32> to vector<16xf32>
    %1420 = vector.shape_cast %1419 : vector<16xf32> to vector<16x1xf32>
    %1421 = tpu.reciprocal %1420 {approx = true} : vector<16x1xf32> -> vector<16x1xf32>
    %1422 = vector.broadcast %1421 : vector<16x1xf32> to vector<16x16xf32>
    %1423 = arith.mulf %1418, %1422 : vector<16x16xf32>
    %cst_648 = arith.constant dense<0.000000e+00> : vector<16x8xf32>
    %1424 = tpu.matmul %1423, %1409, %cst_648 {dimension_numbers = #tpu.dot_dimension_numbers<[1], [0], [0], [1], [0, 0, 1, 1], [], []>} : vector<16x16xf32>, vector<16x8xf32>, vector<16x8xf32> -> vector<16x8xf32>
    %1425 = vector.extract_strided_slice %1374 {offsets = [8, 0], sizes = [8, 32], strides = [1, 1]} : vector<32x32xf32> to vector<8x32xf32>
    %cst_649 = arith.constant dense<0.000000e+00> : vector<16x32xf32>
    %1426 = tpu.matmul %1424, %1425, %cst_649 {dimension_numbers = #tpu.dot_dimension_numbers<[1], [0], [0], [1], [0, 0, 1, 1], [], []>} : vector<16x8xf32>, vector<8x32xf32>, vector<16x32xf32> -> vector<16x32xf32>
    %1427 = arith.addf %1406, %1426 : vector<16x32xf32>
    %1428 = vector.extract_strided_slice %1378 {offsets = [0, 16], sizes = [16, 8], strides = [1, 1]} : vector<16x32xf32> to vector<16x8xf32>
    %1429 = vector.extract_strided_slice %1381 {offsets = [0, 16], sizes = [16, 8], strides = [1, 1]} : vector<16x32xf32> to vector<16x8xf32>
    %1430 = vector.extract_strided_slice %1384 {offsets = [0, 16], sizes = [16, 8], strides = [1, 1]} : vector<16x32xf32> to vector<16x8xf32>
    %cst_650 = arith.constant dense<0.000000e+00> : vector<16x16xf32>
    %1431 = tpu.matmul %1428, %1429, %cst_650 {dimension_numbers = #tpu.dot_dimension_numbers<[1], [1], [0], [0], [0, 0, 1, 0], [], []>} : vector<16x8xf32>, vector<16x8xf32>, vector<16x16xf32> -> vector<16x16xf32>
    %cst_651 = arith.constant 0.353553385 : f32
    %1432 = vector.broadcast %cst_651 : f32 to vector<16x16xf32>
    %1433 = arith.mulf %1431, %1432 : vector<16x16xf32>
    %1434 = arith.addf %1433, %0 : vector<16x16xf32>
    %cst_652 = arith.constant dense<0xFF800000> : vector<16xf32>
    %1435 = vector.multi_reduction <maximumf>, %1434, %cst_652 [1] : vector<16x16xf32> to vector<16xf32>
    %1436 = vector.shape_cast %1435 : vector<16xf32> to vector<16x1xf32>
    %1437 = vector.broadcast %1436 : vector<16x1xf32> to vector<16x16xf32>
    %1438 = arith.subf %1434, %1437 : vector<16x16xf32>
    %1439 = math.exp %1438 : vector<16x16xf32>
    %cst_653 = arith.constant dense<0.000000e+00> : vector<16xf32>
    %1440 = vector.multi_reduction <add>, %1439, %cst_653 [1] : vector<16x16xf32> to vector<16xf32>
    %1441 = vector.shape_cast %1440 : vector<16xf32> to vector<16x1xf32>
    %1442 = tpu.reciprocal %1441 {approx = true} : vector<16x1xf32> -> vector<16x1xf32>
    %1443 = vector.broadcast %1442 : vector<16x1xf32> to vector<16x16xf32>
    %1444 = arith.mulf %1439, %1443 : vector<16x16xf32>
    %cst_654 = arith.constant dense<0.000000e+00> : vector<16x8xf32>
    %1445 = tpu.matmul %1444, %1430, %cst_654 {dimension_numbers = #tpu.dot_dimension_numbers<[1], [0], [0], [1], [0, 0, 1, 1], [], []>} : vector<16x16xf32>, vector<16x8xf32>, vector<16x8xf32> -> vector<16x8xf32>
    %1446 = vector.extract_strided_slice %1374 {offsets = [16, 0], sizes = [8, 32], strides = [1, 1]} : vector<32x32xf32> to vector<8x32xf32>
    %cst_655 = arith.constant dense<0.000000e+00> : vector<16x32xf32>
    %1447 = tpu.matmul %1445, %1446, %cst_655 {dimension_numbers = #tpu.dot_dimension_numbers<[1], [0], [0], [1], [0, 0, 1, 1], [], []>} : vector<16x8xf32>, vector<8x32xf32>, vector<16x32xf32> -> vector<16x32xf32>
    %1448 = arith.addf %1427, %1447 : vector<16x32xf32>
    %1449 = vector.extract_strided_slice %1378 {offsets = [0, 24], sizes = [16, 8], strides = [1, 1]} : vector<16x32xf32> to vector<16x8xf32>
    %1450 = vector.extract_strided_slice %1381 {offsets = [0, 24], sizes = [16, 8], strides = [1, 1]} : vector<16x32xf32> to vector<16x8xf32>
    %1451 = vector.extract_strided_slice %1384 {offsets = [0, 24], sizes = [16, 8], strides = [1, 1]} : vector<16x32xf32> to vector<16x8xf32>
    %cst_656 = arith.constant dense<0.000000e+00> : vector<16x16xf32>
    %1452 = tpu.matmul %1449, %1450, %cst_656 {dimension_numbers = #tpu.dot_dimension_numbers<[1], [1], [0], [0], [0, 0, 1, 0], [], []>} : vector<16x8xf32>, vector<16x8xf32>, vector<16x16xf32> -> vector<16x16xf32>
    %cst_657 = arith.constant 0.353553385 : f32
    %1453 = vector.broadcast %cst_657 : f32 to vector<16x16xf32>
    %1454 = arith.mulf %1452, %1453 : vector<16x16xf32>
    %1455 = arith.addf %1454, %0 : vector<16x16xf32>
    %cst_658 = arith.constant dense<0xFF800000> : vector<16xf32>
    %1456 = vector.multi_reduction <maximumf>, %1455, %cst_658 [1] : vector<16x16xf32> to vector<16xf32>
    %1457 = vector.shape_cast %1456 : vector<16xf32> to vector<16x1xf32>
    %1458 = vector.broadcast %1457 : vector<16x1xf32> to vector<16x16xf32>
    %1459 = arith.subf %1455, %1458 : vector<16x16xf32>
    %1460 = math.exp %1459 : vector<16x16xf32>
    %cst_659 = arith.constant dense<0.000000e+00> : vector<16xf32>
    %1461 = vector.multi_reduction <add>, %1460, %cst_659 [1] : vector<16x16xf32> to vector<16xf32>
    %1462 = vector.shape_cast %1461 : vector<16xf32> to vector<16x1xf32>
    %1463 = tpu.reciprocal %1462 {approx = true} : vector<16x1xf32> -> vector<16x1xf32>
    %1464 = vector.broadcast %1463 : vector<16x1xf32> to vector<16x16xf32>
    %1465 = arith.mulf %1460, %1464 : vector<16x16xf32>
    %cst_660 = arith.constant dense<0.000000e+00> : vector<16x8xf32>
    %1466 = tpu.matmul %1465, %1451, %cst_660 {dimension_numbers = #tpu.dot_dimension_numbers<[1], [0], [0], [1], [0, 0, 1, 1], [], []>} : vector<16x16xf32>, vector<16x8xf32>, vector<16x8xf32> -> vector<16x8xf32>
    %1467 = vector.extract_strided_slice %1374 {offsets = [24, 0], sizes = [8, 32], strides = [1, 1]} : vector<32x32xf32> to vector<8x32xf32>
    %cst_661 = arith.constant dense<0.000000e+00> : vector<16x32xf32>
    %1468 = tpu.matmul %1466, %1467, %cst_661 {dimension_numbers = #tpu.dot_dimension_numbers<[1], [0], [0], [1], [0, 0, 1, 1], [], []>} : vector<16x8xf32>, vector<8x32xf32>, vector<16x32xf32> -> vector<16x32xf32>
    %1469 = arith.addf %1448, %1468 : vector<16x32xf32>
    %1470 = vector.broadcast %1375 : vector<1x32xf32> to vector<16x32xf32>
    %1471 = arith.addf %1469, %1470 : vector<16x32xf32>
    %1472 = arith.addf %1339, %1471 : vector<16x32xf32>
    %c1_662 = arith.constant 1 : index
    %c0_663 = arith.constant 0 : index
    %1473 = vector.load %arg19[%c1_662, %c0_663] : memref<2x32xf32, #tpu.memory_space<vmem>>, vector<1x32xf32>
    %c1_664 = arith.constant 1 : index
    %c0_665 = arith.constant 0 : index
    %1474 = vector.load %arg20[%c1_664, %c0_665] : memref<2x32xf32, #tpu.memory_space<vmem>>, vector<1x32xf32>
    %cst_666 = arith.constant dense<0.000000e+00> : vector<16xf32>
    %1475 = vector.multi_reduction <add>, %733, %cst_666 [1] : vector<16x32xf32> to vector<16xf32>
    %1476 = vector.shape_cast %1475 : vector<16xf32> to vector<16x1xf32>
    %cst_667 = arith.constant 3.200000e+01 : f32
    %1477 = vector.broadcast %cst_667 : f32 to vector<16x1xf32>
    %1478 = arith.divf %1476, %1477 : vector<16x1xf32>
    %1479 = vector.broadcast %1478 : vector<16x1xf32> to vector<16x32xf32>
    %1480 = arith.subf %733, %1479 : vector<16x32xf32>
    %1481 = arith.mulf %1480, %1480 : vector<16x32xf32>
    %cst_668 = arith.constant dense<0.000000e+00> : vector<16xf32>
    %1482 = vector.multi_reduction <add>, %1481, %cst_668 [1] : vector<16x32xf32> to vector<16xf32>
    %1483 = vector.shape_cast %1482 : vector<16xf32> to vector<16x1xf32>
    %cst_669 = arith.constant 3.200000e+01 : f32
    %1484 = vector.broadcast %cst_669 : f32 to vector<16x1xf32>
    %1485 = arith.divf %1483, %1484 : vector<16x1xf32>
    %1486 = vector.broadcast %1478 : vector<16x1xf32> to vector<16x32xf32>
    %1487 = arith.subf %733, %1486 : vector<16x32xf32>
    %cst_670 = arith.constant 9.99999996E-13 : f32
    %1488 = vector.broadcast %cst_670 : f32 to vector<16x1xf32>
    %1489 = arith.addf %1485, %1488 : vector<16x1xf32>
    %1490 = math.rsqrt %1489 : vector<16x1xf32>
    %1491 = vector.broadcast %1490 : vector<16x1xf32> to vector<16x32xf32>
    %1492 = arith.mulf %1487, %1491 : vector<16x32xf32>
    %1493 = vector.broadcast %1473 : vector<1x32xf32> to vector<16x32xf32>
    %1494 = arith.mulf %1492, %1493 : vector<16x32xf32>
    %1495 = vector.broadcast %1474 : vector<1x32xf32> to vector<16x32xf32>
    %1496 = arith.addf %1494, %1495 : vector<16x32xf32>
    %c1_671 = arith.constant 1 : index
    %c0_672 = arith.constant 0 : index
    %c0_673 = arith.constant 0 : index
    %1497 = vector.load %arg21[%c1_671, %c0_672, %c0_673] : memref<2x32x32xf32, #tpu.memory_space<vmem>>, vector<1x32x32xf32>
    %1498 = vector.shape_cast %1497 : vector<1x32x32xf32> to vector<32x32xf32>
    %cst_674 = arith.constant dense<0.000000e+00> : vector<16x32xf32>
    %1499 = tpu.matmul %1496, %1498, %cst_674 {dimension_numbers = #tpu.dot_dimension_numbers<[1], [0], [0], [1], [0, 0, 1, 1], [], []>} : vector<16x32xf32>, vector<32x32xf32>, vector<16x32xf32> -> vector<16x32xf32>
    %c1_675 = arith.constant 1 : index
    %c0_676 = arith.constant 0 : index
    %1500 = vector.load %arg22[%c1_675, %c0_676] : memref<2x32xf32, #tpu.memory_space<vmem>>, vector<1x32xf32>
    %1501 = vector.broadcast %1500 : vector<1x32xf32> to vector<16x32xf32>
    %1502 = arith.addf %1499, %1501 : vector<16x32xf32>
    %c1_677 = arith.constant 1 : index
    %c0_678 = arith.constant 0 : index
    %1503 = vector.load %arg23[%c1_677, %c0_678] : memref<2x32xf32, #tpu.memory_space<vmem>>, vector<1x32xf32>
    %1504 = arith.negf %1503 : vector<1x32xf32>
    %1505 = math.exp %1504 : vector<1x32xf32>
    %cst_679 = arith.constant 1.000000e+00 : f32
    %1506 = vector.broadcast %cst_679 : f32 to vector<1x32xf32>
    %1507 = arith.addf %1506, %1505 : vector<1x32xf32>
    %1508 = arith.divf %1506, %1507 : vector<1x32xf32>
    %cst_680 = arith.constant 1.000000e+00 : f32
    %1509 = vector.broadcast %cst_680 : f32 to vector<1x32xf32>
    %1510 = arith.subf %1509, %1508 : vector<1x32xf32>
    %1511 = vector.broadcast %1510 : vector<1x32xf32> to vector<16x32xf32>
    %1512 = arith.mulf %1472, %1511 : vector<16x32xf32>
    %1513 = vector.broadcast %1508 : vector<1x32xf32> to vector<16x32xf32>
    %1514 = arith.mulf %1502, %1513 : vector<16x32xf32>
    %1515 = arith.addf %1512, %1514 : vector<16x32xf32>
    %c1_681 = arith.constant 1 : index
    %c0_682 = arith.constant 0 : index
    %c0_683 = arith.constant 0 : index
    %1516 = vector.load %arg24[%c1_681, %c0_682, %c0_683] : memref<2x32x32xf32, #tpu.memory_space<vmem>>, vector<1x32x32xf32>
    %1517 = vector.shape_cast %1516 : vector<1x32x32xf32> to vector<32x32xf32>
    %cst_684 = arith.constant dense<0.000000e+00> : vector<16x32xf32>
    %1518 = tpu.matmul %1515, %1517, %cst_684 {dimension_numbers = #tpu.dot_dimension_numbers<[1], [0], [0], [1], [0, 0, 1, 1], [], []>} : vector<16x32xf32>, vector<32x32xf32>, vector<16x32xf32> -> vector<16x32xf32>
    %c1_685 = arith.constant 1 : index
    %c0_686 = arith.constant 0 : index
    %c0_687 = arith.constant 0 : index
    %1519 = vector.load %arg25[%c1_685, %c0_686, %c0_687] : memref<2x32x32xf32, #tpu.memory_space<vmem>>, vector<1x32x32xf32>
    %1520 = vector.shape_cast %1519 : vector<1x32x32xf32> to vector<32x32xf32>
    %cst_688 = arith.constant dense<0.000000e+00> : vector<16x32xf32>
    %1521 = tpu.matmul %734, %1520, %cst_688 {dimension_numbers = #tpu.dot_dimension_numbers<[1], [0], [0], [1], [0, 0, 1, 1], [], []>} : vector<16x32xf32>, vector<32x32xf32>, vector<16x32xf32> -> vector<16x32xf32>
    %1522 = arith.addf %1518, %1521 : vector<16x32xf32>
    %c1_689 = arith.constant 1 : index
    %c0_690 = arith.constant 0 : index
    %1523 = vector.load %arg26[%c1_689, %c0_690] : memref<2x32xf32, #tpu.memory_space<vmem>>, vector<1x32xf32>
    %1524 = vector.broadcast %1523 : vector<1x32xf32> to vector<16x32xf32>
    %1525 = arith.addf %1522, %1524 : vector<16x32xf32>
    %cst_691 = arith.constant 1.500000e-01 : f32
    %1526 = vector.broadcast %cst_691 : f32 to vector<16x32xf32>
    %1527 = arith.mulf %1525, %1526 : vector<16x32xf32>
    %1528 = arith.addf %1515, %1527 : vector<16x32xf32>
    %c3_692 = arith.constant 3 : index
    %c0_693 = arith.constant 0 : index
    %1529 = vector.load %arg13[%c3_692, %c0_693] : memref<4x32xf32, #tpu.memory_space<vmem>>, vector<1x32xf32>
    %c3_694 = arith.constant 3 : index
    %c0_695 = arith.constant 0 : index
    %1530 = vector.load %arg14[%c3_694, %c0_695] : memref<4x32xf32, #tpu.memory_space<vmem>>, vector<1x32xf32>
    %cst_696 = arith.constant dense<0.000000e+00> : vector<16xf32>
    %1531 = vector.multi_reduction <add>, %1528, %cst_696 [1] : vector<16x32xf32> to vector<16xf32>
    %1532 = vector.shape_cast %1531 : vector<16xf32> to vector<16x1xf32>
    %cst_697 = arith.constant 3.200000e+01 : f32
    %1533 = vector.broadcast %cst_697 : f32 to vector<16x1xf32>
    %1534 = arith.divf %1532, %1533 : vector<16x1xf32>
    %1535 = vector.broadcast %1534 : vector<16x1xf32> to vector<16x32xf32>
    %1536 = arith.subf %1528, %1535 : vector<16x32xf32>
    %1537 = arith.mulf %1536, %1536 : vector<16x32xf32>
    %cst_698 = arith.constant dense<0.000000e+00> : vector<16xf32>
    %1538 = vector.multi_reduction <add>, %1537, %cst_698 [1] : vector<16x32xf32> to vector<16xf32>
    %1539 = vector.shape_cast %1538 : vector<16xf32> to vector<16x1xf32>
    %cst_699 = arith.constant 3.200000e+01 : f32
    %1540 = vector.broadcast %cst_699 : f32 to vector<16x1xf32>
    %1541 = arith.divf %1539, %1540 : vector<16x1xf32>
    %1542 = vector.broadcast %1534 : vector<16x1xf32> to vector<16x32xf32>
    %1543 = arith.subf %1528, %1542 : vector<16x32xf32>
    %cst_700 = arith.constant 9.99999996E-13 : f32
    %1544 = vector.broadcast %cst_700 : f32 to vector<16x1xf32>
    %1545 = arith.addf %1541, %1544 : vector<16x1xf32>
    %1546 = math.rsqrt %1545 : vector<16x1xf32>
    %1547 = vector.broadcast %1546 : vector<16x1xf32> to vector<16x32xf32>
    %1548 = arith.mulf %1543, %1547 : vector<16x32xf32>
    %1549 = vector.broadcast %1529 : vector<1x32xf32> to vector<16x32xf32>
    %1550 = arith.mulf %1548, %1549 : vector<16x32xf32>
    %1551 = vector.broadcast %1530 : vector<1x32xf32> to vector<16x32xf32>
    %1552 = arith.addf %1550, %1551 : vector<16x32xf32>
    %c3_701 = arith.constant 3 : index
    %c0_702 = arith.constant 0 : index
    %c0_703 = arith.constant 0 : index
    %1553 = vector.load %arg15[%c3_701, %c0_702, %c0_703] : memref<4x32x128xf32, #tpu.memory_space<vmem>>, vector<1x32x128xf32>
    %1554 = vector.shape_cast %1553 : vector<1x32x128xf32> to vector<32x128xf32>
    %cst_704 = arith.constant dense<0.000000e+00> : vector<16x128xf32>
    %1555 = tpu.matmul %1552, %1554, %cst_704 {dimension_numbers = #tpu.dot_dimension_numbers<[1], [0], [0], [1], [0, 0, 1, 1], [], []>} : vector<16x32xf32>, vector<32x128xf32>, vector<16x128xf32> -> vector<16x128xf32>
    %c3_705 = arith.constant 3 : index
    %c0_706 = arith.constant 0 : index
    %1556 = vector.load %arg16[%c3_705, %c0_706] : memref<4x128xf32, #tpu.memory_space<vmem>>, vector<1x128xf32>
    %1557 = vector.broadcast %1556 : vector<1x128xf32> to vector<16x128xf32>
    %1558 = arith.addf %1555, %1557 : vector<16x128xf32>
    %1559 = arith.mulf %1558, %1558 : vector<16x128xf32>
    %1560 = arith.mulf %1558, %1559 : vector<16x128xf32>
    %cst_707 = arith.constant 4.471500e-02 : f32
    %1561 = vector.broadcast %cst_707 : f32 to vector<16x128xf32>
    %1562 = arith.mulf %1561, %1560 : vector<16x128xf32>
    %1563 = arith.addf %1558, %1562 : vector<16x128xf32>
    %cst_708 = arith.constant 0.797884583 : f32
    %1564 = vector.broadcast %cst_708 : f32 to vector<16x128xf32>
    %1565 = arith.mulf %1564, %1563 : vector<16x128xf32>
    %1566 = math.tanh %1565 : vector<16x128xf32>
    %cst_709 = arith.constant 1.000000e+00 : f32
    %1567 = vector.broadcast %cst_709 : f32 to vector<16x128xf32>
    %1568 = arith.addf %1567, %1566 : vector<16x128xf32>
    %cst_710 = arith.constant 5.000000e-01 : f32
    %1569 = vector.broadcast %cst_710 : f32 to vector<16x128xf32>
    %1570 = arith.mulf %1569, %1568 : vector<16x128xf32>
    %1571 = arith.mulf %1558, %1570 : vector<16x128xf32>
    %c3_711 = arith.constant 3 : index
    %c0_712 = arith.constant 0 : index
    %c0_713 = arith.constant 0 : index
    %1572 = vector.load %arg17[%c3_711, %c0_712, %c0_713] : memref<4x128x32xf32, #tpu.memory_space<vmem>>, vector<1x128x32xf32>
    %1573 = vector.shape_cast %1572 : vector<1x128x32xf32> to vector<128x32xf32>
    %cst_714 = arith.constant dense<0.000000e+00> : vector<16x32xf32>
    %1574 = tpu.matmul %1571, %1573, %cst_714 {dimension_numbers = #tpu.dot_dimension_numbers<[1], [0], [0], [1], [0, 0, 1, 1], [], []>} : vector<16x128xf32>, vector<128x32xf32>, vector<16x32xf32> -> vector<16x32xf32>
    %c3_715 = arith.constant 3 : index
    %c0_716 = arith.constant 0 : index
    %1575 = vector.load %arg18[%c3_715, %c0_716] : memref<4x32xf32, #tpu.memory_space<vmem>>, vector<1x32xf32>
    %1576 = vector.broadcast %1575 : vector<1x32xf32> to vector<16x32xf32>
    %1577 = arith.addf %1574, %1576 : vector<16x32xf32>
    %1578 = arith.addf %1528, %1577 : vector<16x32xf32>
    %c0_717 = arith.constant 0 : index
    %c0_718 = arith.constant 0 : index
    %1579 = vector.load %arg43[%c0_717, %c0_718] : memref<1x32xf32, #tpu.memory_space<vmem>>, vector<1x32xf32>
    %c0_719 = arith.constant 0 : index
    %c0_720 = arith.constant 0 : index
    %1580 = vector.load %arg44[%c0_719, %c0_720] : memref<1x32xf32, #tpu.memory_space<vmem>>, vector<1x32xf32>
    %cst_721 = arith.constant dense<0.000000e+00> : vector<16xf32>
    %1581 = vector.multi_reduction <add>, %1578, %cst_721 [1] : vector<16x32xf32> to vector<16xf32>
    %1582 = vector.shape_cast %1581 : vector<16xf32> to vector<16x1xf32>
    %cst_722 = arith.constant 3.200000e+01 : f32
    %1583 = vector.broadcast %cst_722 : f32 to vector<16x1xf32>
    %1584 = arith.divf %1582, %1583 : vector<16x1xf32>
    %1585 = vector.broadcast %1584 : vector<16x1xf32> to vector<16x32xf32>
    %1586 = arith.subf %1578, %1585 : vector<16x32xf32>
    %1587 = arith.mulf %1586, %1586 : vector<16x32xf32>
    %cst_723 = arith.constant dense<0.000000e+00> : vector<16xf32>
    %1588 = vector.multi_reduction <add>, %1587, %cst_723 [1] : vector<16x32xf32> to vector<16xf32>
    %1589 = vector.shape_cast %1588 : vector<16xf32> to vector<16x1xf32>
    %cst_724 = arith.constant 3.200000e+01 : f32
    %1590 = vector.broadcast %cst_724 : f32 to vector<16x1xf32>
    %1591 = arith.divf %1589, %1590 : vector<16x1xf32>
    %1592 = vector.broadcast %1584 : vector<16x1xf32> to vector<16x32xf32>
    %1593 = arith.subf %1578, %1592 : vector<16x32xf32>
    %cst_725 = arith.constant 9.99999974E-6 : f32
    %1594 = vector.broadcast %cst_725 : f32 to vector<16x1xf32>
    %1595 = arith.addf %1591, %1594 : vector<16x1xf32>
    %1596 = math.rsqrt %1595 : vector<16x1xf32>
    %1597 = vector.broadcast %1596 : vector<16x1xf32> to vector<16x32xf32>
    %1598 = arith.mulf %1593, %1597 : vector<16x32xf32>
    %1599 = vector.broadcast %1579 : vector<1x32xf32> to vector<16x32xf32>
    %1600 = arith.mulf %1598, %1599 : vector<16x32xf32>
    %1601 = vector.broadcast %1580 : vector<1x32xf32> to vector<16x32xf32>
    %1602 = arith.addf %1600, %1601 : vector<16x32xf32>
    %c0_726 = arith.constant 0 : index
    %c0_727 = arith.constant 0 : index
    %1603 = vector.load %arg45[%c0_726, %c0_727] : memref<32x128xf32, #tpu.memory_space<vmem>>, vector<32x128xf32>
    %cst_728 = arith.constant dense<0.000000e+00> : vector<16x128xf32>
    %1604 = tpu.matmul %1602, %1603, %cst_728 {dimension_numbers = #tpu.dot_dimension_numbers<[1], [0], [0], [1], [0, 0, 1, 1], [], []>} : vector<16x32xf32>, vector<32x128xf32>, vector<16x128xf32> -> vector<16x128xf32>
    %c0_729 = arith.constant 0 : index
    %c0_730 = arith.constant 0 : index
    %1605 = vector.load %arg46[%c0_729, %c0_730] : memref<16x128xf32, #tpu.memory_space<vmem>>, vector<16x128xf32>
    tpu.vector_store %arg46[%c0_729, %c0_730], %1604 {strides = array<i32>} : memref<16x128xf32, #tpu.memory_space<vmem>>, vector<16x128xf32>,
    return
  }
}

</mosaic_0001>

<bundles_post_ra>
// kernel: forward.1
= control target key start
LH: loop header
LB: loop body
LE: loop exit
PB: predicated region body
PF: predicated region fallthrough
CT: control target
= control target key end

     0   :  { %s17976_s6 = smov 1   ;;  %s17977_s10 = smov 2   ;;  %s20089_s0 = inlined_call_operand.smem [shape: u32[47], index: -1, kind: input, shape index: {}] }
   0x1   :  { %s18040_s5 = sld [smem:[%s20089_s0]]   ;;  %s17978_s14 = smov 3  }
   0x2   :  { %s18045_s9 = sld [smem:[%s20089_s0 + %s17976_s6]]   ;;  %s17979_s18 = smov 4  }
   0x3   :  { %s18050_s13 = sld [smem:[%s20089_s0 + %s17977_s10]]   ;;  %s17980_s22 = smov 5  }
   0x4   :  { %s18055_s17 = sld [smem:[%s20089_s0 + %s17978_s14]]   ;;  %s17981_s26 = smov 6  }
   0x5   :  { %s18060_s21 = sld [smem:[%s20089_s0 + %s17979_s18]]   ;;  %s17982_s30 = smov 7  }
   0x6   :  { %s18065_s25 = sld [smem:[%s20089_s0 + %s17980_s22]]   ;;  %s17983_s4 = smov 8  }
   0x7   :  { %20119 = sst [smem:[#allocation17_spill]] %s18040_s5  ;;  %s17984_s10 = smov 9  }
   0x8   :  { %s18070_s29 = sld [smem:[%s20089_s0 + %s17981_s26]]   ;;  %s17985_s15 = smov 10  }
   0x9   :  { %20120 = sst [smem:[#allocation18_spill]] %s18050_s13  ;;  %s17986_s20 = smov 11  }
   0xa   :  { %20121 = sst [smem:[#allocation19_spill]] %s18055_s17  ;;  %s17987_s26 = smov 12  }
   0xb   :  { %20122 = sst [smem:[#allocation20_spill]] %s18060_s21  ;;  %s17988_s1 = smov 13  }
   0xc   :  { %20123 = sst [smem:[#allocation21_spill]] %s18065_s25  ;;  %s17989_s7 = smov 14  }
   0xd   :  { %s18075_s3 = sld [smem:[%s20089_s0 + %s17982_s30]]   ;;  %s17991_s22 = smov 16  }
   0xe   :  { %20124 = sst [smem:[#allocation22_spill]] %s18070_s29  ;;  %s17992_s28 = smov 17  }
   0xf   :  { %s18080_s8 = sld [smem:[%s20089_s0 + %s17983_s4]]  }
  0x10   :  { %s18085_s14 = sld [smem:[%s20089_s0 + %s17984_s10]]  }
  0x11   :  { %s18090_s19 = sld [smem:[%s20089_s0 + %s17985_s15]]   ;;  %s17990_s15 = smov 15  }
  0x12   :  { %s18095_s24 = sld [smem:[%s20089_s0 + %s17986_s20]]  }
  0x13   :  { %20125 = sst [smem:[#allocation23_spill]] %s18075_s3 }
  0x14   :  { %s18100_s30 = sld [smem:[%s20089_s0 + %s17987_s26]]  }
  0x15   :  { %20126 = sst [smem:[#allocation24_spill]] %s18080_s8 }
  0x16   :  { %20127 = sst [smem:[#allocation25_spill]] %s18085_s14 }
  0x17   :  { %20128 = sst [smem:[#allocation26_spill]] %s18090_s19 }
  0x18   :  { %20129 = sst [smem:[#allocation27_spill]] %s18095_s24 }
  0x19   :  { %s18105_s6 = sld [smem:[%s20089_s0 + %s17988_s1]]  }
  0x1a   :  { %20130 = sst [smem:[#allocation28_spill]] %s18100_s30 }
  0x1b   :  { %s18110_s12 = sld [smem:[%s20089_s0 + %s17989_s7]]   ;;  %s17993_s7 = smov 18  }
  0x1c   :  { %s18115_s20 = sld [smem:[%s20089_s0 + %s17990_s15]]   ;;  %s17994_s15 = smov 19  }
  0x1d   :  { %s18120_s27 = sld [smem:[%s20089_s0 + %s17991_s22]]   ;;  %s17995_s22 = smov 20  }
  0x1e   :  { %s18125_s4 = sld [smem:[%s20089_s0 + %s17992_s28]]   ;;  %s17996_s28 = smov 21  }
  0x1f   :  { %20131 = sst [smem:[#allocation29_spill]] %s18105_s6 }
  0x20   :  { %s18135_s6 = sld [smem:[%s20089_s0 + %s17994_s15]]   ;;  %s17998_s15 = smov 23  }
  0x21   :  { %20132 = sst [smem:[#allocation30_spill]] %s18110_s12 }
  0x22   :  { %20133 = sst [smem:[#allocation31_spill]] %s18115_s20 }
  0x23   :  { %20134 = sst [smem:[#allocation32_spill]] %s18120_s27 }
  0x24   :  { %20135 = sst [smem:[#allocation33_spill]] %s18125_s4 }
  0x25   :  { %s18130_s12 = sld [smem:[%s20089_s0 + %s17993_s7]]   ;;  %s17997_s7 = smov 22  }
  0x26   :  { %s18140_s27 = sld [smem:[%s20089_s0 + %s17995_s22]]   ;;  %s17999_s22 = smov 24  }
  0x27   :  { %s18145_s4 = sld [smem:[%s20089_s0 + %s17996_s28]]   ;;  %s18000_s28 = smov 25  }
  0x28   :  { %s18155_s20 = sld [smem:[%s20089_s0 + %s17998_s15]]   ;;  %s18002_s15 = smov 27  }
  0x29   :  { %s18160_s30 = sld [smem:[%s20089_s0 + %s17999_s22]]   ;;  %s18003_s22 = smov 28  }
  0x2a   :  { %s18175_s19 = sld [smem:[%s20089_s0 + %s18002_s15]]   ;;  %s18006_s15 = smov 31  }
  0x2b   :  { %20136 = sst [smem:[#allocation34_spill]] %s18130_s12 }
  0x2c   :  { %s18150_s12 = sld [smem:[%s20089_s0 + %s17997_s7]]   ;;  %s18001_s7 = smov 26  }
  0x2d   :  { %20137 = sst [smem:[#allocation35_spill]] %s18145_s4 }
  0x2e   :  { %s18165_s4 = sld [smem:[%s20089_s0 + %s18000_s28]]   ;;  %s18004_s28 = smov 29  }
  0x2f   :  { %20138 = sst [smem:[#allocation36_spill]] %s18160_s30 }
  0x30   :  { %s18170_s24 = sld [smem:[%s20089_s0 + %s18001_s7]]   ;;  %s18005_s7 = smov 30  }
  0x31   :  { %s18180_s30 = sld [smem:[%s20089_s0 + %s18003_s22]]   ;;  %s18007_s22 = smov 32  }
  0x32   :  { %s18190_s8 = sld [smem:[%s20089_s0 + %s18005_s7]]   ;;  %s18009_s7 = smov 34  }
  0x33   :  { %s18195_s29 = sld [smem:[%s20089_s0 + %s18006_s15]]   ;;  %s18010_s15 = smov 35  }
  0x34   :  { %20139 = sst [smem:[#allocation37_spill]] %s18165_s4 }
  0x35   :  { %s18185_s4 = sld [smem:[%s20089_s0 + %s18004_s28]]   ;;  %s18008_s28 = smov 33  }
  0x36   :  { %s18200_s14 = sld [smem:[%s20089_s0 + %s18007_s22]]   ;;  %s18011_s22 = smov 36  }
  0x37   :  { %s18205_s3 = sld [smem:[%s20089_s0 + %s18008_s28]]   ;;  %s18012_s28 = smov 37  }
  0x38   :  { %s18210_s21 = sld [smem:[%s20089_s0 + %s18009_s7]]   ;;  %s18013_s7 = smov 38  }
  0x39   :  { %s18215_s17 = sld [smem:[%s20089_s0 + %s18010_s15]]   ;;  %s18014_s15 = smov 39  }
  0x3a   :  { %s18220_s25 = sld [smem:[%s20089_s0 + %s18011_s22]]   ;;  %s18015_s22 = smov 40  }
  0x3b   :  { %s18225_s5 = sld [smem:[%s20089_s0 + %s18012_s28]]   ;;  %s18016_s28 = smov 41  }
  0x3c   :  { %s18230_s13 = sld [smem:[%s20089_s0 + %s18013_s7]]   ;;  %s18017_s7 = smov 42  }
  0x3e   :  { %20140 = sst [smem:[#allocation38_spill]] %s18210_s21 }
  0x3f   :  { %20141 = sst [smem:[#allocation39_spill]] %s18215_s17 }
  0x40   :  { %20142 = sst [smem:[#allocation40_spill]] %s18220_s25 }
  0x41   :  { %20143 = sst [smem:[#allocation41_spill]] %s18225_s5 }
  0x42   :  { %20144 = sst [smem:[#allocation42_spill]] %s18230_s13 }
  0x43   :  { %s18235_s17 = sld [smem:[%s20089_s0 + %s18014_s15]]   ;;  %s18018_s15 = smov 43  }
  0x44   :  { %s18240_s25 = sld [smem:[%s20089_s0 + %s18015_s22]]   ;;  %s18019_s22 = smov 44  }
  0x45   :  { %s18245_s5 = sld [smem:[%s20089_s0 + %s18016_s28]]   ;;  %s18020_s28 = smov 45  }
  0x46   :  { %s18250_s13 = sld [smem:[%s20089_s0 + %s18017_s7]]   ;;  %s18021_s7 = smov 46  }
  0x47   :  { %s18270_s21 = sld [smem:[%s20089_s0 + %s18021_s7]]  }
  0x49   :  { %20145 = sst [smem:[#allocation43_spill]] %s18235_s17 }
  0x4a   :  { %20146 = sst [smem:[#allocation44_spill]] %s18240_s25 }
  0x4b   :  { %20147 = sst [smem:[#allocation45_spill]] %s18245_s5 }
  0x4c   :  { %s18255_s17 = sld [smem:[%s20089_s0 + %s18018_s15]]  }
  0x4d   :  { %s18260_s25 = sld [smem:[%s20089_s0 + %s18019_s22]]  }
  0x4e   :  { %s18265_s5 = sld [smem:[%s20089_s0 + %s18020_s28]]  }
  0x4f   :  { %98 = vsyncpa [#allocation3], 0 }
  0x50   :  { %99 = vsyncpa [#allocation5], 0 }
  0x51   :  { %100 = vsyncpa [#allocation8], 0 }
  0x52   :  { %101 = vsyncpa [#allocation11], 0  ;;  %s18022_s15 = smov [#allocation4]   ;;  %s18023_s18 = smov [#allocation7]  }
  0x53   :  { %s156_s16 = sshll.u32 %s18022_s15, 4  ;;  %s178_s22 = sshll.u32 %s18023_s18, 4  ;;  %s157_s16 = int_to_ptr.vmem [resolvable:$true] %s156_s16  ;;  %s179_s22 = int_to_ptr.vmem [resolvable:$true] %s178_s22 }
  0x54   :  { %s17836_s23 = scalar_lea.vmem %s157_s16, 32  ;;  %p17841_p1 = scmp.lt.s32.totalorder %s157_s16, %s157_s16 }
  0x55   :  { %p17837_p0 = scmp.ne.s32.totalorder %s157_s16, %s17836_s23  ;;  %p17842_p2 = scmp.lt.s32.totalorder %s17836_s23, %s17836_s23 }
  0x57   :  { %p17843_p3 = por %p17842_p2, %p17841_p1 }
  0x59   :  { %p17844_p4 = pnand %p17843_p3, %p17837_p0 }
  0x5b   :  { %17847 = shalt.err (!%p17844_p4)
}
  0x5c   :  { %159 = dma.hbm_to_vmem [thread:$0]  %s18140_s27, 32, %s157_s16, [#allocation5]  }
  0x5d   :  { %s17856_s0 = scalar_lea.vmem %s179_s22, 32  ;;  %p17861_p6 = scmp.lt.s32.totalorder %s179_s22, %s179_s22 }
  0x5e   :  { %p17857_p5 = scmp.ne.s32.totalorder %s179_s22, %s17856_s0  ;;  %p17862_p7 = scmp.lt.s32.totalorder %s17856_s0, %s17856_s0 }
  0x60   :  { %p17863_p8 = por %p17862_p7, %p17861_p6 }
  0x62   :  { %p17864_p9 = pnand %p17863_p8, %p17857_p5 }
  0x64   :  { %17867 = shalt.err (!%p17864_p9)
}
  0x65   :  { %181 = dma.hbm_to_vmem [thread:$0]  %s18155_s20, 32, %s179_s22, [#allocation8]  }
  0x66   :  { %s18024_s26 = smov [#allocation10]   ;;  %s18025_s1 = smov [#allocation2]  }
  0x67   :  { %s232_s28 = sshll.u32 %s18024_s26, 4  ;;  %s146_s2 = sshll.u32 %s18025_s1, 4  ;;  %s233_s28 = int_to_ptr.vmem [resolvable:$true] %s232_s28  ;;  %s147_s2 = int_to_ptr.vmem [resolvable:$true] %s146_s2 }
  0x68   :  { %s17876_s7 = scalar_lea.vmem %s233_s28, 64  ;;  %p17881_p11 = scmp.lt.s32.totalorder %s233_s28, %s233_s28 }
  0x69   :  { %p17877_p10 = scmp.ne.s32.totalorder %s233_s28, %s17876_s7  ;;  %p17882_p12 = scmp.lt.s32.totalorder %s17876_s7, %s17876_s7 }
  0x6b   :  { %p17883_p13 = por %p17882_p12, %p17881_p11 }
  0x6d   :  { %p17884_p0 = pnand %p17883_p13, %p17877_p10 }
  0x6f   :  { %17887 = shalt.err (!%p17884_p0)
}
  0x70   :  { %235 = dma.hbm_to_vmem [thread:$0]  %s18250_s13, 64, %s233_s28, [#allocation11]  }
  0x71   :  { %s17896_s27 = scalar_lea.vmem %s147_s2, 32  ;;  %p17901_p2 = scmp.lt.s32.totalorder %s147_s2, %s147_s2 }
  0x72   :  { %p17897_p1 = scmp.ne.s32.totalorder %s147_s2, %s17896_s27  ;;  %p17902_p3 = scmp.lt.s32.totalorder %s17896_s27, %s17896_s27 }
  0x74   :  { %p17903_p4 = por %p17902_p3, %p17901_p2 }
  0x76   :  { %p17904_p5 = pnand %p17903_p4, %p17897_p1 }
  0x78   :  { %17907 = shalt.err (!%p17904_p5)
}
  0x79   :  { %149 = dma.hbm_to_vmem [thread:$0]  %s18135_s6, 32, %s147_s2, [#allocation3]  }
  0x7a   :  { %s18026_s20 = smov [#allocation6]   ;;  %s18027_s11 = smov [#allocation9]  }
  0x7b   :  { %s168_s10 = sshll.u32 %s18026_s20, 4  ;;  %s192_s15 = sshll.u32 %s18027_s11, 4  ;;  %s169_s10 = int_to_ptr.vmem [resolvable:$true] %s168_s10  ;;  %s193_s15 = int_to_ptr.vmem [resolvable:$true] %s192_s15 }
  0x7c   :  { %s17916_s16 = scalar_lea.vmem %s169_s10, 32  ;;  %p17921_p7 = scmp.lt.s32.totalorder %s169_s10, %s169_s10 }
  0x7d   :  { %p17917_p6 = scmp.ne.s32.totalorder %s169_s10, %s17916_s16  ;;  %p17922_p8 = scmp.lt.s32.totalorder %s17916_s16, %s17916_s16 }
  0x7f   :  { %p17923_p9 = por %p17922_p8, %p17921_p7 }
  0x81   :  { %p17924_p10 = pnand %p17923_p9, %p17917_p6 }
  0x83   :  { %17927 = shalt.err (!%p17924_p10)
}
  0x84   :  { %171 = dma.hbm_to_vmem [thread:$0]  %s18150_s12, 32, %s169_s10, [#allocation5]  }
  0x85   :  { %s17936_s13 = scalar_lea.vmem %s193_s15, 32  ;;  %p17941_p12 = scmp.lt.s32.totalorder %s193_s15, %s193_s15 }
  0x86   :  { %p17937_p11 = scmp.ne.s32.totalorder %s193_s15, %s17936_s13  ;;  %p17942_p13 = scmp.lt.s32.totalorder %s17936_s13, %s17936_s13 }
  0x88   :  { %p17943_p0 = por %p17942_p13, %p17941_p12 }
  0x8a   :  { %p17944_p1 = pnand %p17943_p0, %p17937_p11 }
  0x8c   :  { %17947 = shalt.err (!%p17944_p1)
}
  0x8d   :  { %195 = dma.hbm_to_vmem [thread:$0]  %s18170_s24, 32, %s193_s15, [#allocation8]  }
  0x8e   :  { %s18028_s6 = smov [#allocation12]  }
  0x8f   :  { %s244_s18 = sshll.u32 %s18028_s6, 4  ;;  %s245_s18 = int_to_ptr.vmem [resolvable:$true] %s244_s18 }
  0x90   :  { %s17956_s22 = scalar_lea.vmem %s245_s18, 16  ;;  %s17960_s23 = scalar_lea.vmem %s245_s18, 32 }
  0x91   :  { %p17957_p2 = scmp.ne.s32.totalorder %s245_s18, %s17956_s22  ;;  %p17961_p3 = scmp.lt.s32.totalorder %s245_s18, %s245_s18 }
  0x92   :  { %p17962_p4 = scmp.lt.s32.totalorder %s17960_s23, %s17956_s22 }
  0x94   :  { %p17963_p5 = por %p17962_p4, %p17961_p3 }
  0x96   :  { %p17964_p6 = pnand %p17963_p5, %p17957_p2 }
  0x98   :  { %17967 = shalt.err (!%p17964_p6)
}
  0x99   :  { %247 = dma.hbm_to_vmem [thread:$0]  %s18260_s25, 16, %s245_s18, [#allocation11]  }
  0x9a   :  { %17968 = dma.done.wait [#allocation3], 32  }
  0x9b   :  { %17969 = vsyncadd [#allocation3], 4294967264 }
  0x9c   :  { %17970 = dma.done.wait [#allocation5], 64  }
  0x9d   :  { %17971 = vsyncadd [#allocation5], 4294967232 }
  0x9e   :  { %17972 = dma.done.wait [#allocation8], 64  }
  0x9f   :  { %17973 = vsyncadd [#allocation8], 4294967232 }
  0xa0   :  { %17974 = dma.done.wait [#allocation11], 80  }
  0xa1   :  { %17975 = vsyncadd [#allocation11], 4294967216  ;;  %vm277_vm0 = vcmask 261120   ;;  %v18280_v0 = vld [vmem:[%s18045_s9] sm:$0xff]  ;;  %v18283_v1 = vld [vmem:[%s18045_s9 + $0x8] sm:$0xff]  ;;  %s20148_s9 = sld [smem:[#allocation38_spill]] }
  0xa2   :  { %v278_v2 = vsel %vm277_vm0, %v18280_v0, 0.0  ;;  %v281_v3 = vsel %vm277_vm0, %v18283_v1, 0.0  ;;  %v320_v14 = vld [vmem:[%s18185_s4 + $0x18] sm:$0xff]  ;;  %v319_v16 = vld [vmem:[%s18185_s4 + $0x10] sm:$0xff]  ;;  %v318_v18 = vld [vmem:[%s18185_s4 + $0x8] sm:$0xff]  ;;  %vm580_vm1 = vcmask 64512  }
  0xa3   :  { %279 = vadd.xlane.f32.xlu0 %v278_v2  ;;  %v330_v15 = vld [vmem:[%s18205_s3 + $0x18] sm:$0xff]  ;;  %16073 = vmatprep.subr.mxu1 %v320_v14  ;;  %v329_v17 = vld [vmem:[%s18205_s3 + $0x10] sm:$0xff]  ;;  %v328_v19 = vld [vmem:[%s18205_s3 + $0x8] sm:$0xff]  ;;  %s20149_s25 = sld [smem:[#allocation18_spill]]  ;;  %vm672_vm2 = vcmask 130048   ;;  %s18029_s24 = smov 120  }
  0xa4   :  { %16095 = vmatprep.subr.mxu0 %v330_v15  ;;  %16074 = vmatpush3.msra.mxu1 %v320_v14  ;;  %v317_v20 = vld [vmem:[%s18185_s4] sm:$0xff]  ;;  %v325_v22 = vld [vmem:[%s18195_s29 + $0x18] sm:$0xff]  ;;  %v324_v39 = vld [vmem:[%s18195_s29 + $0x10] sm:$0xff]  ;;  %s20150_s12 = sld [smem:[#allocation39_spill]]  ;;  %s18030_s0 = smov 112  }
  0xa5   :  { %16096 = vmatpush3.msra.mxu0 %v330_v15  ;;  %16075 = vmatprep.subr.mxu1 %v319_v16  ;;  %v327_v21 = vld [vmem:[%s18205_s3] sm:$0xff]  ;;  %v323_v40 = vld [vmem:[%s18195_s29 + $0x8] sm:$0xff]  ;;  %s18031_s26 = smov 104   ;;  %s20151_s28 = sld [smem:[#allocation40_spill]] }
  0xa6   :  { %16097 = vmatprep.subr.mxu0 %v329_v17  ;;  %16076 = vmatpush3.msra.mxu1 %v319_v16  ;;  %v14689_v30 = vld [vmem:[%s18175_s19] ss:$0 sm:$0xff]  ;;  %s20152_s1 = sld [smem:[#allocation43_spill]] }
  0xa7   :  { %282 = vadd.xlane.f32.xlu0 %v281_v3  ;;  %16098 = vmatpush3.msra.mxu0 %v329_v17  ;;  %v14690_v32 = vld [vmem:[%s18180_s30] ss:$0 sm:$0xff]  ;;  %s20153_s2 = sld [smem:[#allocation41_spill]] }
  0xa8   :  { %16077 = vmatprep.subr.mxu1 %v318_v18  ;;  %16099 = vmatprep.subr.mxu0 %v328_v19  ;;  %v322_v41 = vld [vmem:[%s18195_s29] sm:$0xff]  ;;  %s20154_s7 = sld [smem:[#allocation42_spill]] }
  0xa9   :  { %16078 = vmatpush3.msra.mxu1 %v318_v18  ;;  %16100 = vmatpush3.msra.mxu0 %v328_v19  ;;  %v14691_v43 = vld [vmem:[%s18190_s8] ss:$0 sm:$0xff]  ;;  %v18345_v58 = vld [vmem:[%s20149_s25 + $0x8] sm:$0xff]  ;;  %s20155_s27 = sld [smem:[#allocation45_spill]] }
  0xaa   :  { %16079 = vmatprep.subr.mxu1 %v317_v20  ;;  %16101 = vmatprep.subr.mxu0 %v327_v21  ;;  %v14694_v46 = vld [vmem:[%s18200_s14] ss:$0 sm:$0xff]  ;;  %s20156_s20 = sld [smem:[#allocation44_spill]] }
  0xab   :  { %16080 = vmatpush3.msra.mxu1 %v317_v20  ;;  %16102 = vmatpush3.msra.mxu0 %v327_v21  ;;  %v14697_v52 = vld [vmem:[%s20148_s9] ss:$0 sm:$0xff]  ;;  %s20164_s10 = sld [smem:[#allocation24_spill]] }
  0xac   :  { %16084 = vmatprep.subr.mxu1 %v325_v22  ;;  %v18348_v61 = vld [vmem:[%s20149_s25] sm:$0xff]  ;;  %s20165_s11 = sld [smem:[#allocation26_spill]] }
  0xad   :  { %s20166_s15 = sld [smem:[#allocation27_spill]] }
  0xae   :  { %s20167_s16 = sld [smem:[#allocation28_spill]] }
  0xaf   :  { %s20168_s13 = sld [smem:[#allocation31_spill]] }
  0xb0   :  { %s20169_s6 = sld [smem:[#allocation29_spill]] }
  0xb1   :  { %s20170_s18 = sld [smem:[#allocation30_spill]] }
  0xb2   :  { %s20171_s22 = sld [smem:[#allocation33_spill]] }
  0xb3   :  { %s20172_s23 = sld [smem:[#allocation32_spill]] }
 0x12c   :  { %v280_v4 = vpop.xlane.xlu0 %279 }
 0x12d   :  { %v285_v5 = vmul.f32 0.03125, %v280_v4 }
 0x12f   :  { %v287_v6 = vsub.f32 %v18280_v0, %v285_v5 }
 0x130   :  { %v283_v7 = vpop.xlane.xlu0 %282 }
 0x131   :  { %v286_v8 = vmul.f32 0.03125, %v283_v7  ;;  %v289_v9 = vmul.f32 %v287_v6, %v287_v6 }
 0x133   :  { %v288_v10 = vsub.f32 %v18283_v1, %v286_v8  ;;  %v291_v11 = vsel %vm277_vm0, %v289_v9, 0.0 }
 0x134   :  { %292 = vadd.xlane.f32.xlu1 %v291_v11 }
 0x135   :  { %v290_v12 = vmul.f32 %v288_v10, %v288_v10 }
 0x137   :  { %v294_v13 = vsel %vm277_vm0, %v290_v12, 0.0 }
 0x138   :  { %295 = vadd.xlane.f32.xlu1 %v294_v13 }
 0x1bd   :  { %v293_v23 = vpop.xlane.xlu1 %292 }
 0x1be   :  { %v297_v24 = vmul.f32 0.03125, %v293_v23 }
 0x1c0   :  { %v299_v25 = vadd.f32 1e-12, %v297_v24 }
 0x1c1   :  { %v296_v26 = vpop.xlane.xlu1 %295 }
 0x1c2   :  { %17446 = vrsqrt.f32 %v299_v25  ;;  %v298_v27 = vmul.f32 0.03125, %v296_v26  ;;  %v332_v25 = vld [vmem:[%s20150_s12] sm:$0xff] }
 0x1c4   :  { %v300_v28 = vadd.f32 1e-12, %v298_v27 }
 0x1c6   :  { %17448 = vrsqrt.f32 %v300_v28 }
 0x1cf   :  { %v17447_v29 = vpop.eup %17446 }
 0x1d0   :  { %v303_v31 = vmul.f32 %v17447_v29, %v287_v6 }
 0x1d2   :  { %v309_v33 = vmul.f32 %v14689_v30, %v303_v31 }
 0x1d3   :  { %v17449_v34 = vpop.eup %17448 }
 0x1d4   :  { %v304_v35 = vmul.f32 %v17449_v34, %v288_v10  ;;  %v315_v36 = vadd.f32 %v14690_v32, %v309_v33 }
 0x1d6   :  { %v310_v37 = vmul.f32 %v14689_v30, %v304_v35  ;;  %16081 = vmatprep.mubr.msk.f32.mxu1 %vm277_vm0, %v315_v36  ;;  %16103 = vmatprep.mubr.msk.f32.mxu0 %vm277_vm0, %v315_v36 }
 0x1d8   :  { %v316_v38 = vadd.f32 %v14690_v32, %v310_v37 }
 0x1da   :  { %16082 = vmatmul.mubr.msk.f32.vlgmr.msra.gmra.mxu1 %vm277_vm0, %v316_v38  ;;  %16104 = vmatmul.mubr.msk.f32.vlgmr.msra.gmra.mxu0 %vm277_vm0, %v316_v38 }
 0x1db   :  { %16085 = vmatpush3.msra.mxu1 %v325_v22  ;;  %16092 = vmatprep.mubr.msk.f32.mxu1 %vm277_vm0, %v315_v36 }
 0x1dc   :  { %16086 = vmatprep.subr.mxu1 %v324_v39 }
 0x1dd   :  { %16087 = vmatpush3.msra.mxu1 %v324_v39 }
 0x1de   :  { %16088 = vmatprep.subr.mxu1 %v323_v40 }
 0x1df   :  { %16089 = vmatpush3.msra.mxu1 %v323_v40 }
 0x1e0   :  { %16090 = vmatprep.subr.mxu1 %v322_v41 }
 0x1e1   :  { %16091 = vmatpush3.msra.mxu1 %v322_v41 }
 0x1e2   :  { %16093 = vmatmul.mubr.msk.f32.vlgmr.msra.gmra.mxu1 %vm277_vm0, %v316_v38 }
 0x29a   :  { %v16083_v42 = vpop.f32.mrf.mxu1  ;;  %v16105_v51 = vpop.f32.mrf.mxu0 }
 0x29b   :  { %v18330_v53 = vadd.f32 %v16105_v51, %v14697_v52  ;;  %v18334_v55 = vadd.f32 %v16083_v42, %v14691_v43 }
 0x29c   :  { %v413_v44 = vpop.f32.mrf.mxu1  ;;  %v571_v54 = vpop.f32.mrf.mxu0 }
 0x29d   :  { %v18314_v45 = vadd.f32 %v14691_v43, %v413_v44  ;;  %v18337_v56 = vadd.f32 %v14697_v52, %v571_v54  ;;  %v333_v52 = vld [vmem:[%s20150_s12 + $0x8] sm:$0xff] }
 0x29f   :  { %16110 = vmatprep.mubr.msk.f32.mxu1 %vm580_vm1, %v18314_v45 }
 0x2a2   :  { %v16094_v47 = vpop.f32.mrf.mxu1 }
 0x2a3   :  { %v18319_v48 = vadd.f32 %v16094_v47, %v14694_v46 }
 0x2a4   :  { %v492_v49 = vpop.f32.mrf.mxu1 }
 0x2a5   :  { %v18321_v50 = vadd.f32 %v14694_v46, %v492_v49  ;;  %16106 = vmatprep.subr.msk.mxu1 %vm580_vm1, %v18319_v48 }
 0x2a6   :  { %16107 = vmatpush3.xpose.msk.msra.mxu1 %vm580_vm1, %v18319_v48 }
 0x2a7   :  { %16108 = vmatprep.subr.msk.mxu1 %vm580_vm1, %v18321_v50 }
 0x2aa   :  { %16109 = vmatpush3.xpose.msk.msra.mxu1 %vm580_vm1, %v18321_v50 }
 0x2ab   :  { %16113 = vmatprep.subr.mxu1 %v18330_v53 }
 0x2ad   :  { %16111 = vmatmul.mubr.msk.f32.vlgmr.msra.gmra.mxu1 %vm580_vm1, %v18334_v55 }
 0x2ae   :  { %16114 = vmatpush3.msra.mxu1 %v18330_v53 }
 0x2af   :  { %16115 = vmatprep.subr.mxu1 %v18337_v56 }
 0x2b0   :  { %16116 = vmatpush3.msra.mxu1 %v18337_v56 }
 0x36d   :  { %v16112_v57 = vpop.f32.mrf.mxu1 }
 0x36e   :  { %v669_v59 = vmul.f32 0.35355338, %v16112_v57 }
 0x36f   :  { %v659_v60 = vpop.f32.mrf.mxu1 }
 0x370   :  { %v668_v62 = vmul.f32 0.35355338, %v659_v60  ;;  %v671_v63 = vadd.f32 %v669_v59, %v18345_v58 }
 0x372   :  { %v676_v2 = vsel %vm672_vm2, %v671_v63, -inf  ;;  %v670_v3 = vadd.f32 %v668_v62, %v18348_v61 }
 0x373   :  { %677 = vmax.xlane.f32.xlu1 %v676_v2 }
 0x374   :  { %v673_v4 = vsel %vm672_vm2, %v670_v3, -inf }
 0x375   :  { %674 = vmax.xlane.f32.xlu0 %v673_v4 }
 0x3fc   :  { %v678_v5 = vpop.xlane.xlu1 %677 }
 0x3fd   :  { %v680_v6 = vsub.f32 %v671_v63, %v678_v5 }
 0x3fe   :  { %v675_v7 = vpop.xlane.xlu0 %674 }
 0x3ff   :  { %v683_v8 = vmul.f32 1.442695, %v680_v6  ;;  %v679_v9 = vsub.f32 %v670_v3, %v675_v7 }
 0x401   :  { %17450 = vpow2.f32 %v683_v8  ;;  %v681_v10 = vmul.f32 1.442695, %v679_v9 }
 0x403   :  { %17452 = vpow2.f32 %v681_v10 }
 0x40e   :  { %v17451_v11 = vpop.eup %17450 }
 0x40f   :  { %v688_v12 = vsel %vm672_vm2, %v17451_v11, 0.0 }
 0x410   :  { %v17453_v13 = vpop.eup %17452  ;;  %689 = vadd.xlane.f32.xlu1 %v688_v12 }
 0x411   :  { %v685_v14 = vsel %vm672_vm2, %v17453_v13, 0.0 }
 0x412   :  { %686 = vadd.xlane.f32.xlu0 %v685_v14 }
 0x421   :  { %780 = vrot.lane.b32.xlu1 %v18321_v50, %s18029_s24 }
 0x425   :  { %776 = vrot.lane.b32.xlu1 %v18314_v45, %s18029_s24 }
 0x428   :  { %782 = vrot.lane.b32.xlu0 %v18319_v48, %s18029_s24 }
 0x429   :  { %778 = vrot.lane.b32.xlu1 %v18334_v55, %s18029_s24 }
 0x499   :  { %v690_v15 = vpop.xlane.xlu1 %689 }
 0x49a   :  { %17454 = vrcp.f32 %v690_v15 }
 0x49b   :  { %v687_v16 = vpop.xlane.xlu0 %686 }
 0x49c   :  { %17456 = vrcp.f32 %v687_v16 }
 0x49d   :  { %v781_v18 = vpop.permute.xlu1 %780 }
 0x49f   :  { %v783_v17 = vpop.permute.xlu0 %782 }
 0x4a0   :  { %16120 = vmatprep.subr.msk.mxu1 %vm580_vm1, %v783_v17 }
 0x4a1   :  { %v777_v23 = vpop.permute.xlu1 %776 }
 0x4a5   :  { %v779_v24 = vpop.permute.xlu1 %778 }
 0x4a7   :  { %v17455_v19 = vpop.eup %17454 }
 0x4a8   :  { %v694_v22 = vmul.f32 %v17455_v19, %v17451_v11 }
 0x4a9   :  { %v17457_v20 = vpop.eup %17456 }
 0x4aa   :  { %v693_v21 = vmul.f32 %v17457_v20, %v17453_v13 }
 0x4ac   :  { %16117 = vmatprep.mubr.msk.f32.mxu1 %vm672_vm2, %v693_v21 }
 0x4ad   :  { %16118 = vmatmul.mubr.msk.f32.vlgmr.msra.gmra.mxu1 %vm672_vm2, %v694_v22 }
 0x4ae   :  { %16121 = vmatpush3.xpose.msk.msra.mxu1 %vm580_vm1, %v783_v17  ;;  %16124 = vmatprep.mubr.msk.f32.mxu1 %vm580_vm1, %v777_v23 }
 0x4af   :  { %16122 = vmatprep.subr.msk.mxu1 %vm580_vm1, %v781_v18 }
 0x4b2   :  { %16123 = vmatpush3.xpose.msk.msra.mxu1 %vm580_vm1, %v781_v18 }
 0x4b3   :  { %16139 = vmatprep.subr.mxu1 %v332_v25 }
 0x4b5   :  { %16125 = vmatmul.mubr.msk.f32.vlgmr.msra.gmra.mxu1 %vm580_vm1, %v779_v24 }
 0x4b6   :  { %16140 = vmatpush3.msra.mxu1 %v332_v25 }
 0x56d   :  { %v16119_v26 = vpop.f32.mrf.mxu1 }
 0x56f   :  { %v767_v27 = vpop.f32.mrf.mxu1 }
 0x570   :  { %16141 = vmatprep.mubr.msk.f32.mxu1 %vm580_vm1, %v767_v27 }
 0x571   :  { %16142 = vmatmul.mubr.msk.f32.vlgmr.msra.gmra.mxu1 %vm580_vm1, %v16119_v26 }
 0x575   :  { %v16126_v28 = vpop.f32.mrf.mxu1 }
 0x576   :  { %v868_v29 = vmul.f32 0.35355338, %v16126_v28 }
 0x577   :  { %v858_v30 = vpop.f32.mrf.mxu1 }
 0x578   :  { %v867_v31 = vmul.f32 0.35355338, %v858_v30  ;;  %v870_v32 = vadd.f32 %v868_v29, %v18345_v58 }
 0x57a   :  { %v874_v33 = vsel %vm672_vm2, %v870_v32, -inf  ;;  %v869_v34 = vadd.f32 %v867_v31, %v18348_v61 }
 0x57b   :  { %875 = vmax.xlane.f32.xlu1 %v874_v33 }
 0x57c   :  { %v871_v35 = vsel %vm672_vm2, %v869_v34, -inf }
 0x57d   :  { %872 = vmax.xlane.f32.xlu0 %v871_v35 }
 0x58c   :  { %895 = vrot.lane.b32.xlu1 %v18337_v56, %s18029_s24 }
 0x590   :  { %1150 = vrot.lane.b32.xlu1 %v18319_v48, %s18030_s0 }
 0x594   :  { %1148 = vrot.lane.b32.xlu1 %v18321_v50, %s18030_s0 }
 0x598   :  { %1146 = vrot.lane.b32.xlu1 %v18334_v55, %s18030_s0 }
 0x59c   :  { %1435 = vrot.lane.b32.xlu1 %v18321_v50, %s18031_s26 }
 0x5a0   :  { %1433 = vrot.lane.b32.xlu1 %v18334_v55, %s18031_s26 }
 0x604   :  { %v876_v36 = vpop.xlane.xlu1 %875 }
 0x605   :  { %v878_v37 = vsub.f32 %v870_v32, %v876_v36 }
 0x606   :  { %v873_v38 = vpop.xlane.xlu0 %872 }
 0x607   :  { %v881_v39 = vmul.f32 1.442695, %v878_v37  ;;  %v877_v40 = vsub.f32 %v869_v34, %v873_v38 }
 0x608   :  { %v896_v51 = vpop.permute.xlu1 %895 }
 0x609   :  { %17458 = vpow2.f32 %v881_v39  ;;  %v879_v41 = vmul.f32 1.442695, %v877_v40 }
 0x60b   :  { %17460 = vpow2.f32 %v879_v41 }
 0x616   :  { %v17459_v42 = vpop.eup %17458 }
 0x617   :  { %v886_v43 = vsel %vm672_vm2, %v17459_v42, 0.0 }
 0x618   :  { %v17461_v44 = vpop.eup %17460  ;;  %887 = vadd.xlane.f32.xlu0 %v886_v43 }
 0x619   :  { %v883_v46 = vsel %vm672_vm2, %v17461_v44, 0.0 }
 0x61c   :  { %884 = vadd.xlane.f32.xlu0 %v883_v46 }
 0x632   :  { %897 = vrot.lane.b32.xlu0 %v18330_v53, %s18029_s24 }
 0x636   :  { %1144 = vrot.lane.b32.xlu0 %v18314_v45, %s18030_s0 }
 0x63a   :  { %1437 = vrot.lane.b32.xlu0 %v18319_v48, %s18031_s26 }
 0x63e   :  { %1431 = vrot.lane.b32.xlu0 %v18314_v45, %s18031_s26  ;;  %v1151_v45 = vpop.permute.xlu1 %1150 }
 0x642   :  { %v1149_v62 = vpop.permute.xlu1 %1148 }
 0x646   :  { %v1147_v3 = vpop.permute.xlu1 %1146 }
 0x64a   :  { %v1436_v5 = vpop.permute.xlu1 %1435 }
 0x64e   :  { %v1434_v6 = vpop.permute.xlu1 %1433 }
 0x6a1   :  { %v888_v47 = vpop.xlane.xlu0 %887 }
 0x6a2   :  { %17462 = vrcp.f32 %v888_v47 }
 0x6a5   :  { %v885_v49 = vpop.xlane.xlu0 %884 }
 0x6a6   :  { %17464 = vrcp.f32 %v885_v49 }
 0x6a9   :  { %v898_v50 = vpop.permute.xlu0 %897 }
 0x6aa   :  { %16127 = vmatprep.subr.mxu0 %v898_v50 }
 0x6ab   :  { %16128 = vmatpush3.msra.mxu0 %v898_v50 }
 0x6ac   :  { %16129 = vmatprep.subr.mxu0 %v896_v51 }
 0x6ad   :  { %16130 = vmatpush3.msra.mxu0 %v896_v51  ;;  %v1145_v48 = vpop.permute.xlu0 %1144 }
 0x6ae   :  { %16134 = vmatprep.subr.mxu0 %v333_v52 }
 0x6af   :  { %v17463_v54 = vpop.eup %17462 }
 0x6b0   :  { %v892_v59 = vmul.f32 %v17463_v54, %v17459_v42 }
 0x6b1   :  { %v1438_v2 = vpop.permute.xlu0 %1437 }
 0x6b3   :  { %v17465_v55 = vpop.eup %17464 }
 0x6b4   :  { %v891_v57 = vmul.f32 %v17465_v55, %v17461_v44  ;;  %v334_v44 = vld [vmem:[%s20150_s12 + $0x10] sm:$0xff] }
 0x6b5   :  { %v1432_v4 = vpop.permute.xlu0 %1431 }
 0x6b6   :  { %16131 = vmatprep.mubr.msk.f32.mxu0 %vm672_vm2, %v891_v57 }
 0x6b7   :  { %16132 = vmatmul.mubr.msk.f32.vlgmr.msra.gmra.mxu0 %vm672_vm2, %v892_v59 }
 0x6b8   :  { %16135 = vmatpush3.msra.mxu0 %v333_v52 }
 0x6b9   :  { %16144 = vmatprep.subr.msk.mxu0 %vm580_vm1, %v1151_v45 }
 0x777   :  { %v16133_v60 = vpop.f32.mrf.mxu0 }
 0x779   :  { %v973_v63 = vpop.f32.mrf.mxu0 }
 0x77a   :  { %16136 = vmatprep.mubr.msk.f32.mxu0 %vm580_vm1, %v973_v63 }
 0x77b   :  { %16137 = vmatmul.mubr.msk.f32.vlgmr.msra.gmra.mxu0 %vm580_vm1, %v16133_v60 }
 0x77c   :  { %16145 = vmatpush3.xpose.msk.msra.mxu0 %vm580_vm1, %v1151_v45  ;;  %16148 = vmatprep.mubr.msk.f32.mxu0 %vm580_vm1, %v1145_v48  ;;  %v16143_v45 = vpop.f32.mrf.mxu1 }
 0x77d   :  { %16146 = vmatprep.subr.msk.mxu0 %vm580_vm1, %v1149_v62 }
 0x77e   :  { %v1135_v48 = vpop.f32.mrf.mxu1 }
 0x780   :  { %16147 = vmatpush3.xpose.msk.msra.mxu0 %vm580_vm1, %v1149_v62 }
 0x781   :  { %16163 = vmatprep.subr.msk.mxu0 %vm580_vm1, %v1438_v2 }
 0x783   :  { %16149 = vmatmul.mubr.msk.f32.vlgmr.msra.gmra.mxu0 %vm580_vm1, %v1147_v3 }
 0x784   :  { %16164 = vmatpush3.xpose.msk.msra.mxu0 %vm580_vm1, %v1438_v2  ;;  %16167 = vmatprep.mubr.msk.f32.mxu0 %vm580_vm1, %v1432_v4 }
 0x785   :  { %16165 = vmatprep.subr.msk.mxu0 %vm580_vm1, %v1436_v5 }
 0x788   :  { %16166 = vmatpush3.xpose.msk.msra.mxu0 %vm580_vm1, %v1436_v5 }
 0x78b   :  { %16168 = vmatmul.mubr.msk.f32.vlgmr.msra.gmra.mxu0 %vm580_vm1, %v1434_v6  ;;  %v335_v6 = vld [vmem:[%s20150_s12 + $0x18] sm:$0xff] }
 0x83b   :  { %v18418_v7 = vpop.f32.mrf.mxu0 }
 0x83d   :  { %v18420_v8 = vpop.f32.mrf.mxu0 }
 0x843   :  { %v16150_v9 = vpop.f32.mrf.mxu0 }
 0x844   :  { %v1236_v10 = vmul.f32 0.35355338, %v16150_v9  ;;  %v1141_v9 = vadd.f32 %v16143_v45, %v18418_v7  ;;  %v1887_v45 = vld [vmem:[%s20155_s27 + $0x68] sm:$0xff] }
 0x845   :  { %v1226_v11 = vpop.f32.mrf.mxu0 }
 0x846   :  { %v1235_v12 = vmul.f32 0.35355338, %v1226_v11  ;;  %v1238_v13 = vadd.f32 %v1236_v10, %v18345_v58 }
 0x848   :  { %v1242_v14 = vsel %vm672_vm2, %v1238_v13, -inf  ;;  %v1237_v15 = vadd.f32 %v1235_v12, %v18348_v61 }
 0x849   :  { %1243 = vmax.xlane.f32.xlu1 %v1242_v14 }
 0x84a   :  { %v1239_v16 = vsel %vm672_vm2, %v1237_v15, -inf }
 0x84b   :  { %1240 = vmax.xlane.f32.xlu0 %v1239_v16  ;;  %v16169_v17 = vpop.f32.mrf.mxu0  ;;  %v14732_v16 = vld [vmem:[%s20151_s28] ss:$0 sm:$0xff] }
 0x84c   :  { %v1523_v36 = vmul.f32 0.35355338, %v16169_v17 }
 0x84d   :  { %v1513_v18 = vpop.f32.mrf.mxu0 }
 0x84e   :  { %v1522_v19 = vmul.f32 0.35355338, %v1513_v18  ;;  %v1525_v37 = vadd.f32 %v1523_v36, %v18345_v58  ;;  %v1767_v36 = vld [vmem:[%s20152_s1 + $0x8] sm:$0xff] }
 0x850   :  { %v1524_v20 = vadd.f32 %v1522_v19, %v18348_v61  ;;  %v1529_v38 = vsel %vm672_vm2, %v1525_v37, -inf }
 0x852   :  { %v1526_v21 = vsel %vm672_vm2, %v1524_v20, -inf }
 0x85a   :  { %1261 = vrot.lane.b32.xlu1 %v18337_v56, %s18030_s0 }
 0x87e   :  { %1527 = vmax.xlane.f32.xlu1 %v1526_v21 }
 0x8d2   :  { %v1244_v22 = vpop.xlane.xlu1 %1243 }
 0x8d3   :  { %v1246_v23 = vsub.f32 %v1238_v13, %v1244_v22 }
 0x8d4   :  { %v1241_v24 = vpop.xlane.xlu0 %1240 }
 0x8d5   :  { %v1249_v25 = vmul.f32 1.442695, %v1246_v23  ;;  %v1245_v26 = vsub.f32 %v1237_v15, %v1241_v24  ;;  %v1136_v15 = vadd.f32 %v1135_v48, %v18420_v8  ;;  %v1886_v48 = vld [vmem:[%s20155_s27 + $0x60] sm:$0xff] }
 0x8d6   :  { %v1262_v32 = vpop.permute.xlu1 %1261 }
 0x8d7   :  { %17466 = vpow2.f32 %v1249_v25  ;;  %v1247_v27 = vmul.f32 1.442695, %v1245_v26 }
 0x8d9   :  { %17468 = vpow2.f32 %v1247_v27 }
 0x8e4   :  { %v17467_v28 = vpop.eup %17466 }
 0x8e5   :  { %v1254_v29 = vsel %vm672_vm2, %v17467_v28, 0.0 }
 0x8e6   :  { %v17469_v30 = vpop.eup %17468  ;;  %1255 = vadd.xlane.f32.xlu0 %v1254_v29 }
 0x8e7   :  { %v1251_v31 = vsel %vm672_vm2, %v17469_v30, 0.0 }
 0x8ea   :  { %1252 = vadd.xlane.f32.xlu0 %v1251_v31 }
 0x900   :  { %1263 = vrot.lane.b32.xlu0 %v18330_v53, %s18030_s0 }
 0x907   :  { %v1528_v33 = vpop.xlane.xlu1 %1527 }
 0x908   :  { %v1532_v34 = vsub.f32 %v1524_v20, %v1528_v33 }
 0x90a   :  { %v1534_v35 = vmul.f32 1.442695, %v1532_v34  ;;  %v1769_v34 = vld [vmem:[%s20152_s1 + $0x18] sm:$0xff] }
 0x90b   :  { %16182 = vmatprep.subr.mxu0 %v1769_v34 }
 0x90c   :  { %17470 = vpow2.f32 %v1534_v35  ;;  %v1768_v35 = vld [vmem:[%s20152_s1 + $0x10] sm:$0xff]  ;;  %16183 = vmatpush3.msra.mxu0 %v1769_v34 }
 0x90d   :  { %16184 = vmatprep.subr.mxu0 %v1768_v35 }
 0x90e   :  { %16185 = vmatpush3.msra.mxu0 %v1768_v35 }
 0x90f   :  { %16186 = vmatprep.subr.mxu0 %v1767_v36 }
 0x910   :  { %16187 = vmatpush3.msra.mxu0 %v1767_v36 }
 0x919   :  { %v17471_v39 = vpop.eup %17470 }
 0x91a   :  { %v1538_v40 = vsel %vm672_vm2, %v17471_v39, 0.0 }
 0x91f   :  { %1530 = vmax.xlane.f32.xlu0 %v1529_v38 }
 0x923   :  { %1539 = vadd.xlane.f32.xlu0 %v1538_v40 }
 0x939   :  { %1550 = vrot.lane.b32.xlu0 %v18330_v53, %s18031_s26 }
 0x96f   :  { %v1256_v41 = vpop.xlane.xlu0 %1255 }
 0x970   :  { %17472 = vrcp.f32 %v1256_v41 }
 0x973   :  { %v1253_v42 = vpop.xlane.xlu0 %1252 }
 0x974   :  { %17474 = vrcp.f32 %v1253_v42 }
 0x977   :  { %v1264_v43 = vpop.permute.xlu0 %1263 }
 0x978   :  { %16151 = vmatprep.subr.mxu1 %v1264_v43 }
 0x979   :  { %16152 = vmatpush3.msra.mxu1 %v1264_v43 }
 0x97a   :  { %16153 = vmatprep.subr.mxu1 %v1262_v32 }
 0x97b   :  { %16154 = vmatpush3.msra.mxu1 %v1262_v32 }
 0x97c   :  { %16158 = vmatprep.subr.mxu1 %v334_v44 }
 0x97d   :  { %v17473_v46 = vpop.eup %17472 }
 0x97e   :  { %v1260_v50 = vmul.f32 %v17473_v46, %v17467_v28  ;;  %v14733_v46 = vld [vmem:[%s20153_s2] ss:$0 sm:$0xff] }
 0x981   :  { %v17475_v47 = vpop.eup %17474 }
 0x982   :  { %v1259_v49 = vmul.f32 %v17475_v47, %v17469_v30 }
 0x984   :  { %16155 = vmatprep.mubr.msk.f32.mxu1 %vm672_vm2, %v1259_v49 }
 0x985   :  { %16156 = vmatmul.mubr.msk.f32.vlgmr.msra.gmra.mxu1 %vm672_vm2, %v1260_v50 }
 0x986   :  { %16159 = vmatpush3.msra.mxu1 %v334_v44 }
 0x9a8   :  { %v1531_v53 = vpop.xlane.xlu0 %1530 }
 0x9a9   :  { %v1533_v51 = vsub.f32 %v1525_v37, %v1531_v53  ;;  %v1766_v37 = vld [vmem:[%s20152_s1] sm:$0xff] }
 0x9aa   :  { %16188 = vmatprep.subr.mxu0 %v1766_v37 }
 0x9ab   :  { %v1536_v52 = vmul.f32 1.442695, %v1533_v51  ;;  %16189 = vmatpush3.msra.mxu0 %v1766_v37  ;;  %v14734_v51 = vld [vmem:[%s20154_s7] ss:$0 sm:$0xff] }
 0x9ac   :  { %v1540_v54 = vpop.xlane.xlu0 %1539 }
 0x9ad   :  { %17476 = vpow2.f32 %v1536_v52 }
 0x9ae   :  { %17478 = vrcp.f32 %v1540_v54 }
 0x9b0   :  { %v1551_v55 = vpop.permute.xlu0 %1550 }
 0x9b1   :  { %16170 = vmatprep.subr.mxu1 %v1551_v55 }
 0x9ba   :  { %v17477_v57 = vpop.eup %17476 }
 0x9bb   :  { %v1541_v59 = vsel %vm672_vm2, %v17477_v57, 0.0  ;;  %v17479_v60 = vpop.eup %17478 }
 0x9bc   :  { %1542 = vadd.xlane.f32.xlu1 %v1541_v59  ;;  %v1546_v3 = vmul.f32 %v17479_v60, %v17471_v39  ;;  %v1888_v59 = vld [vmem:[%s20155_s27 + $0x70] sm:$0xff]  ;;  %v1885_v60 = vld [vmem:[%s20155_s27 + $0x58] sm:$0xff] }
 0x9cd   :  { %1548 = vrot.lane.b32.xlu1 %v18337_v56, %s18031_s26 }
 0xa45   :  { %v16157_v62 = vpop.f32.mrf.mxu1  ;;  %v1543_v63 = vpop.xlane.xlu1 %1542 }
 0xa46   :  { %17480 = vrcp.f32 %v1543_v63  ;;  %v1883_v63 = vld [vmem:[%s20155_s27 + $0x48] sm:$0xff] }
 0xa47   :  { %v1339_v2 = vpop.f32.mrf.mxu1 }
 0xa48   :  { %16160 = vmatprep.mubr.msk.f32.mxu1 %vm580_vm1, %v1339_v2  ;;  %v1882_v2 = vld [vmem:[%s20155_s27 + $0x40] sm:$0xff] }
 0xa49   :  { %16161 = vmatmul.mubr.msk.f32.vlgmr.msra.gmra.mxu1 %vm580_vm1, %v16157_v62  ;;  %v1549_v4 = vpop.permute.xlu1 %1548  ;;  %v1884_v62 = vld [vmem:[%s20155_s27 + $0x50] sm:$0xff] }
 0xa4a   :  { %16171 = vmatpush3.msra.mxu1 %v1551_v55  ;;  %16174 = vmatprep.mubr.msk.f32.mxu1 %vm672_vm2, %v1546_v3  ;;  %v1881_v3 = vld [vmem:[%s20155_s27 + $0x38] sm:$0xff] }
 0xa4b   :  { %16172 = vmatprep.subr.mxu1 %v1549_v4 }
 0xa4c   :  { %16173 = vmatpush3.msra.mxu1 %v1549_v4  ;;  %v1880_v4 = vld [vmem:[%s20155_s27 + $0x30] sm:$0xff] }
 0xa4d   :  { %16177 = vmatprep.subr.mxu1 %v335_v6 }
 0xa53   :  { %v17481_v56 = vpop.eup %17480 }
 0xa54   :  { %v1547_v5 = vmul.f32 %v17481_v56, %v17477_v57  ;;  %v1889_v57 = vld [vmem:[%s20155_s27 + $0x78] sm:$0xff]  ;;  %v1879_v56 = vld [vmem:[%s20155_s27 + $0x28] sm:$0xff] }
 0xa56   :  { %16175 = vmatmul.mubr.msk.f32.vlgmr.msra.gmra.mxu1 %vm672_vm2, %v1547_v5  ;;  %v1878_v5 = vld [vmem:[%s20155_s27 + $0x20] sm:$0xff] }
 0xa57   :  { %16178 = vmatpush3.msra.mxu1 %v335_v6  ;;  %v1877_v6 = vld [vmem:[%s20155_s27 + $0x18] sm:$0xff] }
 0xa58   :  { %16193 = vmatprep.subr.mxu1 %v1889_v57 }
 0xb09   :  { %v16162_v10 = vpop.f32.mrf.mxu1 }
 0xb0a   :  { %v1430_v11 = vadd.f32 %v16162_v10, %v1141_v9  ;;  %v1876_v9 = vld [vmem:[%s20155_s27 + $0x10] sm:$0xff]  ;;  %v1875_v10 = vld [vmem:[%s20155_s27 + $0x8] sm:$0xff] }
 0xb0b   :  { %v1420_v12 = vpop.f32.mrf.mxu1 }
 0xb0c   :  { %v1429_v18 = vadd.f32 %v1420_v12, %v1136_v15  ;;  %v14735_v12 = vld [vmem:[%s20156_s20] ss:$0 sm:$0xff] }
 0xb16   :  { %v16176_v13 = vpop.f32.mrf.mxu1 }
 0xb18   :  { %v1626_v14 = vpop.f32.mrf.mxu1 }
 0xb19   :  { %16179 = vmatprep.mubr.msk.f32.mxu1 %vm580_vm1, %v1626_v14 }
 0xb1a   :  { %16180 = vmatmul.mubr.msk.f32.vlgmr.msra.gmra.mxu1 %vm580_vm1, %v16176_v13 }
 0xb1b   :  { %16194 = vmatpush3.msra.mxu1 %v1889_v57  ;;  %v14748_v57 = vld [vmem:[%s18195_s29 + $0x38] sm:$0xff] }
 0xb1c   :  { %16195 = vmatprep.subr.mxu1 %v1888_v59 }
 0xb1d   :  { %16196 = vmatpush3.msra.mxu1 %v1888_v59 }
 0xb1e   :  { %16197 = vmatprep.subr.mxu1 %v1887_v45 }
 0xb1f   :  { %16198 = vmatpush3.msra.mxu1 %v1887_v45 }
 0xb20   :  { %16199 = vmatprep.subr.mxu1 %v1886_v48 }
 0xb21   :  { %16200 = vmatpush3.msra.mxu1 %v1886_v48 }
 0xb22   :  { %16201 = vmatprep.subr.mxu1 %v1885_v60 }
 0xb23   :  { %16202 = vmatpush3.msra.mxu1 %v1885_v60 }
 0xb24   :  { %16203 = vmatprep.subr.mxu1 %v1884_v62 }
 0xb25   :  { %16204 = vmatpush3.msra.mxu1 %v1884_v62 }
 0xb26   :  { %16205 = vmatprep.subr.mxu1 %v1883_v63 }
 0xb27   :  { %16206 = vmatpush3.msra.mxu1 %v1883_v63 }
 0xb28   :  { %16207 = vmatprep.subr.mxu1 %v1882_v2 }
 0xb29   :  { %16208 = vmatpush3.msra.mxu1 %v1882_v2 }
 0xb2a   :  { %16209 = vmatprep.subr.mxu1 %v1881_v3 }
 0xb2b   :  { %16210 = vmatpush3.msra.mxu1 %v1881_v3  ;;  %v14739_v3 = vld [vmem:[%s18175_s19 + $0x1] ss:$0 sm:$0xff] }
 0xb2c   :  { %16211 = vmatprep.subr.mxu1 %v1880_v4 }
 0xb2d   :  { %16212 = vmatpush3.msra.mxu1 %v1880_v4 }
 0xb2e   :  { %16213 = vmatprep.subr.mxu1 %v1879_v56 }
 0xb2f   :  { %16214 = vmatpush3.msra.mxu1 %v1879_v56 }
 0xb30   :  { %16215 = vmatprep.subr.mxu1 %v1878_v5 }
 0xb31   :  { %16216 = vmatpush3.msra.mxu1 %v1878_v5 }
 0xb32   :  { %16217 = vmatprep.subr.mxu1 %v1877_v6 }
 0xb33   :  { %16218 = vmatpush3.msra.mxu1 %v1877_v6 }
 0xb34   :  { %16219 = vmatprep.subr.mxu1 %v1876_v9 }
 0xb35   :  { %16220 = vmatpush3.msra.mxu1 %v1876_v9  ;;  %v14740_v9 = vld [vmem:[%s18180_s30 + $0x1] ss:$0 sm:$0xff] }
 0xb36   :  { %16221 = vmatprep.subr.mxu1 %v1875_v10 }
 0xb37   :  { %16222 = vmatpush3.msra.mxu1 %v1875_v10 }
 0xbda   :  { %v16181_v17 = vpop.f32.mrf.mxu1 }
 0xbdb   :  { %v1717_v19 = vadd.f32 %v16181_v17, %v1430_v11  ;;  %v1874_v11 = vld [vmem:[%s20155_s27] sm:$0xff] }
 0xbdc   :  { %v1707_v20 = vpop.f32.mrf.mxu1  ;;  %16223 = vmatprep.subr.mxu1 %v1874_v11 }
 0xbdd   :  { %v1723_v21 = vadd.f32 %v14732_v16, %v1717_v19  ;;  %v1716_v22 = vadd.f32 %v1707_v20, %v1429_v18  ;;  %16224 = vmatpush3.msra.mxu1 %v1874_v11 }
 0xbdf   :  { %v18456_v7 = vadd.f32 %v1723_v21, %v18283_v1  ;;  %v1722_v23 = vadd.f32 %v14732_v16, %v1716_v22 }
 0xbe1   :  { %v1731_v24 = vsel %vm277_vm0, %v18456_v7, 0.0  ;;  %v18461_v25 = vadd.f32 %v1722_v23, %v18280_v0 }
 0xbe2   :  { %1732 = vadd.xlane.f32.xlu0 %v1731_v24 }
 0xbe3   :  { %v1728_v8 = vsel %vm277_vm0, %v18461_v25, 0.0 }
 0xbe4   :  { %1729 = vadd.xlane.f32.xlu1 %v1728_v8 }
 0xc6b   :  { %v1733_v26 = vpop.xlane.xlu0 %1732 }
 0xc6c   :  { %v1735_v27 = vmul.f32 0.03125, %v1733_v26 }
 0xc6d   :  { %v1730_v28 = vpop.xlane.xlu1 %1729 }
 0xc6e   :  { %v1737_v1 = vsub.f32 %v18456_v7, %v1735_v27  ;;  %v1734_v29 = vmul.f32 0.03125, %v1730_v28 }
 0xc70   :  { %v1736_v30 = vsub.f32 %v18461_v25, %v1734_v29  ;;  %v1739_v31 = vmul.f32 %v1737_v1, %v1737_v1 }
 0xc72   :  { %v1743_v0 = vsel %vm277_vm0, %v1739_v31, 0.0  ;;  %v1738_v32 = vmul.f32 %v1736_v30, %v1736_v30 }
 0xc73   :  { %1744 = vadd.xlane.f32.xlu1 %v1743_v0 }
 0xc74   :  { %v1740_v33 = vsel %vm277_vm0, %v1738_v32, 0.0 }
 0xc75   :  { %1741 = vadd.xlane.f32.xlu0 %v1740_v33  ;;  %v14738_v33 = vld [vmem:[#allocation10] ss:$0 sm:$0xff] }
 0xcfc   :  { %v1745_v38 = vpop.xlane.xlu1 %1744 }
 0xcfd   :  { %v1747_v39 = vmul.f32 0.03125, %v1745_v38 }
 0xcfe   :  { %v1742_v40 = vpop.xlane.xlu0 %1741 }
 0xcff   :  { %v1749_v41 = vadd.f32 1e-12, %v1747_v39  ;;  %v1746_v42 = vmul.f32 0.03125, %v1742_v40 }
 0xd01   :  { %17482 = vrsqrt.f32 %v1749_v41  ;;  %v1748_v43 = vadd.f32 1e-12, %v1746_v42 }
 0xd03   :  { %17484 = vrsqrt.f32 %v1748_v43 }
 0xd0e   :  { %v17483_v44 = vpop.eup %17482 }
 0xd0f   :  { %v1753_v47 = vmul.f32 %v17483_v44, %v1737_v1 }
 0xd10   :  { %v17485_v49 = vpop.eup %17484 }
 0xd11   :  { %v1752_v50 = vmul.f32 %v17485_v49, %v1736_v30  ;;  %v1759_v53 = vmul.f32 %v14733_v46, %v1753_v47 }
 0xd13   :  { %v1758_v52 = vmul.f32 %v14733_v46, %v1752_v50  ;;  %v1765_v55 = vadd.f32 %v14734_v51, %v1759_v53 }
 0xd15   :  { %v1764_v54 = vadd.f32 %v14734_v51, %v1758_v52  ;;  %v14744_v51 = vld [vmem:[%s18185_s4 + $0x38] sm:$0xff]  ;;  %v14743_v52 = vld [vmem:[%s18185_s4 + $0x30] sm:$0xff] }
 0xd16   :  { %16228 = vmatprep.subr.mxu0 %v14744_v51 }
 0xd17   :  { %16190 = vmatprep.mubr.msk.f32.mxu0 %vm277_vm0, %v1764_v54  ;;  %v14742_v54 = vld [vmem:[%s18185_s4 + $0x28] sm:$0xff] }
 0xd18   :  { %16191 = vmatmul.mubr.msk.f32.vlgmr.msra.gmra.mxu0 %vm277_vm0, %v1765_v55  ;;  %v14741_v55 = vld [vmem:[%s18185_s4 + $0x20] sm:$0xff] }
 0xd19   :  { %16229 = vmatpush3.msra.mxu0 %v14744_v51 }
 0xd1a   :  { %16230 = vmatprep.subr.mxu0 %v14743_v52 }
 0xd1b   :  { %16231 = vmatpush3.msra.mxu0 %v14743_v52 }
 0xd1c   :  { %16232 = vmatprep.subr.mxu0 %v14742_v54 }
 0xd1d   :  { %16233 = vmatpush3.msra.mxu0 %v14742_v54 }
 0xd1e   :  { %16234 = vmatprep.subr.mxu0 %v14741_v55 }
 0xd1f   :  { %16235 = vmatpush3.msra.mxu0 %v14741_v55 }
 0xd20   :  { %16239 = vmatprep.subr.mxu0 %v14748_v57 }
 0xdd8   :  { %v16192_v13 = vpop.f32.mrf.mxu0 }
 0xdd9   :  { %v1853_v14 = vadd.f32 %v16192_v13, %v14735_v12  ;;  %v14747_v13 = vld [vmem:[%s18195_s29 + $0x30] sm:$0xff] }
 0xdda   :  { %v1847_v15 = vpop.f32.mrf.mxu0 }
 0xddb   :  { %v1857_v16 = vmul.f32 %v1853_v14, %v1853_v14  ;;  %v1848_v17 = vadd.f32 %v14735_v12, %v1847_v15  ;;  %v14745_v15 = vld [vmem:[%s18195_s29 + $0x20] sm:$0xff] }
 0xddd   :  { %v1859_v18 = vmul.f32 %v1857_v16, %v1853_v14  ;;  %v1856_v19 = vmul.f32 %v1848_v17, %v1848_v17  ;;  %v14752_v16 = vld [vmem:[%s18205_s3 + $0x38] sm:$0xff] }
 0xddf   :  { %v1861_v20 = vmul.f32 0.044715, %v1859_v18  ;;  %v1858_v21 = vmul.f32 %v1856_v19, %v1848_v17  ;;  %v14750_v18 = vld [vmem:[%s18205_s3 + $0x28] sm:$0xff]  ;;  %v14749_v19 = vld [vmem:[%s18205_s3 + $0x20] sm:$0xff] }
 0xde1   :  { %v1863_v22 = vadd.f32 %v1861_v20, %v1853_v14  ;;  %v1860_v23 = vmul.f32 0.044715, %v1858_v21  ;;  %v14757_v21 = vld [vmem:[%s18190_s8 + $0x1] ss:$0 sm:$0xff] }
 0xde3   :  { %v1865_v24 = vmul.f32 0.7978846, %v1863_v22  ;;  %v1862_v8 = vadd.f32 %v1860_v23, %v1848_v17 }
 0xde5   :  { %17486 = vtanh.f32 %v1865_v24  ;;  %v1864_v26 = vmul.f32 0.7978846, %v1862_v8  ;;  %v14760_v24 = vld [vmem:[%s18200_s14 + $0x1] ss:$0 sm:$0xff] }
 0xde7   :  { %17488 = vtanh.f32 %v1864_v26 }
 0xdf2   :  { %v17487_v27 = vpop.eup %17486 }
 0xdf3   :  { %v1869_v28 = vadd.f32 1.0, %v17487_v27 }
 0xdf4   :  { %v17489_v1 = vpop.eup %17488 }
 0xdf5   :  { %v1868_v29 = vadd.f32 1.0, %v17489_v1  ;;  %v1871_v30 = vmul.f32 0.5, %v1869_v28  ;;  %v14763_v1 = vld [vmem:[%s20148_s9 + $0x1] ss:$0 sm:$0xff] }
 0xdf7   :  { %v1870_v31 = vmul.f32 0.5, %v1868_v29  ;;  %v1873_v32 = vmul.f32 %v1871_v30, %v1853_v14  ;;  %v14746_v14 = vld [vmem:[%s18195_s29 + $0x28] sm:$0xff] }
 0xdf9   :  { %v1872_v0 = vmul.f32 %v1870_v31, %v1848_v17  ;;  %v14751_v17 = vld [vmem:[%s18205_s3 + $0x30] sm:$0xff] }
 0xdfb   :  { %16225 = vmatprep.mubr.f32.mxu1 %v1872_v0 }
 0xdfc   :  { %16226 = vmatmul.mubr.f32.vlgmr.msra.gmra.mxu1 %v1873_v32 }
 0xebc   :  { %v16227_v34 = vpop.f32.mrf.mxu1 }
 0xebd   :  { %v1967_v35 = vadd.f32 %v16227_v34, %v14738_v33 }
 0xebe   :  { %v1961_v36 = vpop.f32.mrf.mxu1 }
 0xebf   :  { %v18495_v37 = vadd.f32 %v1967_v35, %v18456_v7  ;;  %v1962_v38 = vadd.f32 %v14738_v33, %v1961_v36 }
 0xec1   :  { %v18498_v39 = vadd.f32 %v1962_v38, %v18461_v25  ;;  %v1977_v40 = vsel %vm277_vm0, %v18495_v37, 0.0 }
 0xec2   :  { %1978 = vadd.xlane.f32.xlu1 %v1977_v40 }
 0xec3   :  { %v1974_v41 = vsel %vm277_vm0, %v18498_v39, 0.0 }
 0xec4   :  { %1975 = vadd.xlane.f32.xlu0 %v1974_v41 }
 0xf4b   :  { %v1979_v42 = vpop.xlane.xlu1 %1978 }
 0xf4c   :  { %v1981_v43 = vmul.f32 0.03125, %v1979_v42 }
 0xf4d   :  { %v1976_v44 = vpop.xlane.xlu0 %1975 }
 0xf4e   :  { %v1983_v7 = vsub.f32 %v18495_v37, %v1981_v43  ;;  %v1980_v46 = vmul.f32 0.03125, %v1976_v44 }
 0xf50   :  { %v1982_v25 = vsub.f32 %v18498_v39, %v1980_v46  ;;  %v1985_v47 = vmul.f32 %v1983_v7, %v1983_v7 }
 0xf52   :  { %v1989_v49 = vsel %vm277_vm0, %v1985_v47, 0.0  ;;  %v1984_v50 = vmul.f32 %v1982_v25, %v1982_v25 }
 0xf53   :  { %1990 = vadd.xlane.f32.xlu1 %v1989_v49 }
 0xf54   :  { %v1986_v53 = vsel %vm277_vm0, %v1984_v50, 0.0 }
 0xf55   :  { %1987 = vadd.xlane.f32.xlu0 %v1986_v53 }
 0xfdc   :  { %v1991_v59 = vpop.xlane.xlu1 %1990 }
 0xfdd   :  { %v1993_v45 = vmul.f32 0.03125, %v1991_v59 }
 0xfde   :  { %v1988_v48 = vpop.xlane.xlu0 %1987 }
 0xfdf   :  { %v1995_v60 = vadd.f32 1e-12, %v1993_v45  ;;  %v1992_v62 = vmul.f32 0.03125, %v1988_v48 }
 0xfe1   :  { %17490 = vrsqrt.f32 %v1995_v60  ;;  %v1994_v63 = vadd.f32 1e-12, %v1992_v62  ;;  %v14753_v62 = vld [vmem:[%s20150_s12 + $0x20] sm:$0xff] }
 0xfe3   :  { %17492 = vrsqrt.f32 %v1994_v63 }
 0xfee   :  { %v17491_v2 = vpop.eup %17490 }
 0xfef   :  { %v1999_v4 = vmul.f32 %v17491_v2, %v1983_v7 }
 0xff0   :  { %v17493_v56 = vpop.eup %17492 }
 0xff1   :  { %v1998_v5 = vmul.f32 %v17493_v56, %v1982_v25  ;;  %v2005_v6 = vmul.f32 %v14739_v3, %v1999_v4 }
 0xff3   :  { %v2004_v10 = vmul.f32 %v14739_v3, %v1998_v5  ;;  %v2011_v12 = vadd.f32 %v14740_v9, %v2005_v6  ;;  %v18585_v6 = vld [vmem:[%s20149_s25 + $0x8] sm:$0xff] }
 0xff5   :  { %v2010_v11 = vadd.f32 %v14740_v9, %v2004_v10 }
 0xff7   :  { %16236 = vmatprep.mubr.msk.f32.mxu0 %vm277_vm0, %v2010_v11 }
 0xff8   :  { %16237 = vmatmul.mubr.msk.f32.vlgmr.msra.gmra.mxu0 %vm277_vm0, %v2011_v12 }
 0xff9   :  { %16240 = vmatpush3.msra.mxu0 %v14748_v57  ;;  %16247 = vmatprep.mubr.msk.f32.mxu0 %vm277_vm0, %v2010_v11 }
 0xffa   :  { %16241 = vmatprep.subr.mxu0 %v14747_v13 }
 0xffb   :  { %16242 = vmatpush3.msra.mxu0 %v14747_v13 }
 0xffc   :  { %16243 = vmatprep.subr.mxu0 %v14746_v14 }
 0xffd   :  { %16244 = vmatpush3.msra.mxu0 %v14746_v14 }
 0xffe   :  { %16245 = vmatprep.subr.mxu0 %v14745_v15 }
 0xfff   :  { %16246 = vmatpush3.msra.mxu0 %v14745_v15 }
0x1000   :  { %16248 = vmatmul.mubr.msk.f32.vlgmr.msra.gmra.mxu0 %vm277_vm0, %v2011_v12  ;;  %16250 = vmatprep.subr.mxu0 %v14752_v16 }
0x1001   :  { %16251 = vmatpush3.msra.mxu0 %v14752_v16  ;;  %16258 = vmatprep.mubr.msk.f32.mxu0 %vm277_vm0, %v2010_v11  ;;  %v18590_v11 = vld [vmem:[%s20149_s25] sm:$0xff] }
0x1002   :  { %16252 = vmatprep.subr.mxu0 %v14751_v17 }
0x1003   :  { %16253 = vmatpush3.msra.mxu0 %v14751_v17 }
0x1004   :  { %16254 = vmatprep.subr.mxu0 %v14750_v18 }
0x1005   :  { %16255 = vmatpush3.msra.mxu0 %v14750_v18 }
0x1006   :  { %16256 = vmatprep.subr.mxu0 %v14749_v19 }
0x1007   :  { %16257 = vmatpush3.msra.mxu0 %v14749_v19 }
0x1008   :  { %16259 = vmatmul.mubr.msk.f32.vlgmr.msra.gmra.mxu0 %vm277_vm0, %v2011_v12 }
0x10b8   :  { %v16238_v20 = vpop.f32.mrf.mxu0 }
0x10b9   :  { %v18547_v30 = vadd.f32 %v16238_v20, %v14757_v21 }
0x10ba   :  { %v2112_v22 = vpop.f32.mrf.mxu0 }
0x10bb   :  { %v18529_v23 = vadd.f32 %v14757_v21, %v2112_v22 }
0x10bd   :  { %16265 = vmatprep.mubr.msk.f32.mxu0 %vm580_vm1, %v18529_v23 }
0x10c0   :  { %v16249_v8 = vpop.f32.mrf.mxu0 }
0x10c1   :  { %v18534_v26 = vadd.f32 %v16249_v8, %v14760_v24 }
0x10c2   :  { %v2191_v27 = vpop.f32.mrf.mxu0 }
0x10c3   :  { %v18536_v28 = vadd.f32 %v14760_v24, %v2191_v27  ;;  %16261 = vmatprep.subr.msk.mxu0 %vm580_vm1, %v18534_v26 }
0x10c4   :  { %16262 = vmatpush3.xpose.msk.msra.mxu0 %vm580_vm1, %v18534_v26 }
0x10c5   :  { %16263 = vmatprep.subr.msk.mxu0 %vm580_vm1, %v18536_v28 }
0x10c8   :  { %v16260_v29 = vpop.f32.mrf.mxu0  ;;  %16264 = vmatpush3.xpose.msk.msra.mxu0 %vm580_vm1, %v18536_v28 }
0x10c9   :  { %v18549_v31 = vadd.f32 %v16260_v29, %v14763_v1  ;;  %v14754_v29 = vld [vmem:[%s20150_s12 + $0x28] sm:$0xff] }
0x10ca   :  { %v2270_v0 = vpop.f32.mrf.mxu0 }
0x10cb   :  { %v18551_v32 = vadd.f32 %v14763_v1, %v2270_v0  ;;  %16266 = vmatmul.mubr.msk.f32.vlgmr.msra.gmra.mxu0 %vm580_vm1, %v18547_v30  ;;  %16268 = vmatprep.subr.mxu1 %v18549_v31 }
0x10cc   :  { %16269 = vmatpush3.msra.mxu1 %v18549_v31 }
0x10cd   :  { %16270 = vmatprep.subr.mxu1 %v18551_v32 }
0x10ce   :  { %16271 = vmatpush3.msra.mxu1 %v18551_v32 }
0x118b   :  { %v16267_v33 = vpop.f32.mrf.mxu0 }
0x118c   :  { %v2367_v34 = vmul.f32 0.35355338, %v16267_v33 }
0x118d   :  { %v2357_v35 = vpop.f32.mrf.mxu0 }
0x118e   :  { %v2366_v36 = vmul.f32 0.35355338, %v2357_v35  ;;  %v2369_v38 = vadd.f32 %v2367_v34, %v18345_v58 }
0x1190   :  { %v2373_v40 = vsel %vm672_vm2, %v2369_v38, -inf  ;;  %v2368_v41 = vadd.f32 %v2366_v36, %v18348_v61 }
0x1191   :  { %2374 = vmax.xlane.f32.xlu1 %v2373_v40 }
0x1192   :  { %v2370_v42 = vsel %vm672_vm2, %v2368_v41, -inf }
0x1193   :  { %2371 = vmax.xlane.f32.xlu0 %v2370_v42 }
0x121a   :  { %v2375_v43 = vpop.xlane.xlu1 %2374 }
0x121b   :  { %v2377_v44 = vsub.f32 %v2369_v38, %v2375_v43 }
0x121c   :  { %v2372_v7 = vpop.xlane.xlu0 %2371 }
0x121d   :  { %v2380_v46 = vmul.f32 1.442695, %v2377_v44  ;;  %v2376_v25 = vsub.f32 %v2368_v41, %v2372_v7 }
0x121f   :  { %17494 = vpow2.f32 %v2380_v46  ;;  %v2378_v47 = vmul.f32 1.442695, %v2376_v25 }
0x1221   :  { %17496 = vpow2.f32 %v2378_v47 }
0x122c   :  { %v17495_v49 = vpop.eup %17494 }
0x122d   :  { %v2385_v50 = vsel %vm672_vm2, %v17495_v49, 0.0 }
0x122e   :  { %v17497_v58 = vpop.eup %17496  ;;  %2386 = vadd.xlane.f32.xlu1 %v2385_v50 }
0x122f   :  { %v2382_v53 = vsel %vm672_vm2, %v17497_v58, 0.0 }
0x1230   :  { %2383 = vadd.xlane.f32.xlu0 %v2382_v53 }
0x123f   :  { %2477 = vrot.lane.b32.xlu1 %v18536_v28, %s18029_s24 }
0x1243   :  { %2473 = vrot.lane.b32.xlu1 %v18529_v23, %s18029_s24 }
0x1246   :  { %2479 = vrot.lane.b32.xlu0 %v18534_v26, %s18029_s24 }
0x1247   :  { %2475 = vrot.lane.b32.xlu1 %v18547_v30, %s18029_s24 }
0x12b7   :  { %v2387_v61 = vpop.xlane.xlu1 %2386 }
0x12b8   :  { %17498 = vrcp.f32 %v2387_v61 }
0x12b9   :  { %v2384_v51 = vpop.xlane.xlu0 %2383 }
0x12ba   :  { %17500 = vrcp.f32 %v2384_v51 }
0x12bb   :  { %v2478_v54 = vpop.permute.xlu1 %2477 }
0x12bd   :  { %v2480_v52 = vpop.permute.xlu0 %2479 }
0x12be   :  { %16275 = vmatprep.subr.msk.mxu1 %vm580_vm1, %v2480_v52 }
0x12bf   :  { %v2474_v48 = vpop.permute.xlu1 %2473 }
0x12c3   :  { %v2476_v60 = vpop.permute.xlu1 %2475 }
0x12c5   :  { %v17499_v55 = vpop.eup %17498 }
0x12c6   :  { %v2391_v45 = vmul.f32 %v17499_v55, %v17495_v49 }
0x12c7   :  { %v17501_v57 = vpop.eup %17500 }
0x12c8   :  { %v2390_v59 = vmul.f32 %v17501_v57, %v17497_v58 }
0x12ca   :  { %16272 = vmatprep.mubr.msk.f32.mxu1 %vm672_vm2, %v2390_v59 }
0x12cb   :  { %16273 = vmatmul.mubr.msk.f32.vlgmr.msra.gmra.mxu1 %vm672_vm2, %v2391_v45 }
0x12cc   :  { %16276 = vmatpush3.xpose.msk.msra.mxu1 %vm580_vm1, %v2480_v52  ;;  %16279 = vmatprep.mubr.msk.f32.mxu1 %vm580_vm1, %v2474_v48 }
0x12cd   :  { %16277 = vmatprep.subr.msk.mxu1 %vm580_vm1, %v2478_v54 }
0x12d0   :  { %16278 = vmatpush3.xpose.msk.msra.mxu1 %vm580_vm1, %v2478_v54 }
0x12d1   :  { %16294 = vmatprep.subr.mxu1 %v14753_v62 }
0x12d3   :  { %16280 = vmatmul.mubr.msk.f32.vlgmr.msra.gmra.mxu1 %vm580_vm1, %v2476_v60 }
0x12d4   :  { %16295 = vmatpush3.msra.mxu1 %v14753_v62 }
0x138b   :  { %v16274_v63 = vpop.f32.mrf.mxu1 }
0x138d   :  { %v2464_v2 = vpop.f32.mrf.mxu1 }
0x138e   :  { %16296 = vmatprep.mubr.msk.f32.mxu1 %vm580_vm1, %v2464_v2 }
0x138f   :  { %16297 = vmatmul.mubr.msk.f32.vlgmr.msra.gmra.mxu1 %vm580_vm1, %v16274_v63 }
0x1393   :  { %v16281_v3 = vpop.f32.mrf.mxu1 }
0x1394   :  { %v2565_v4 = vmul.f32 0.35355338, %v16281_v3 }
0x1395   :  { %v2555_v56 = vpop.f32.mrf.mxu1 }
0x1396   :  { %v2564_v5 = vmul.f32 0.35355338, %v2555_v56  ;;  %v2567_v9 = vadd.f32 %v18585_v6, %v2565_v4 }
0x1398   :  { %v2571_v10 = vsel %vm672_vm2, %v2567_v9, -inf  ;;  %v2566_v12 = vadd.f32 %v18590_v11, %v2564_v5 }
0x1399   :  { %2572 = vmax.xlane.f32.xlu1 %v2571_v10 }
0x139a   :  { %v2568_v13 = vsel %vm672_vm2, %v2566_v12, -inf }
0x139b   :  { %2569 = vmax.xlane.f32.xlu0 %v2568_v13 }
0x13aa   :  { %2592 = vrot.lane.b32.xlu1 %v18551_v32, %s18029_s24 }
0x13ae   :  { %2847 = vrot.lane.b32.xlu1 %v18534_v26, %s18030_s0 }
0x13b2   :  { %2845 = vrot.lane.b32.xlu1 %v18536_v28, %s18030_s0 }
0x13b6   :  { %2843 = vrot.lane.b32.xlu1 %v18547_v30, %s18030_s0 }
0x13ba   :  { %3132 = vrot.lane.b32.xlu1 %v18536_v28, %s18031_s26 }
0x13be   :  { %3130 = vrot.lane.b32.xlu1 %v18547_v30, %s18031_s26 }
0x1422   :  { %v2573_v14 = vpop.xlane.xlu1 %2572 }
0x1423   :  { %v2575_v15 = vsub.f32 %v2567_v9, %v2573_v14 }
0x1424   :  { %v2570_v16 = vpop.xlane.xlu0 %2569 }
0x1425   :  { %v2578_v17 = vmul.f32 1.442695, %v2575_v15  ;;  %v2574_v18 = vsub.f32 %v2566_v12, %v2570_v16 }
0x1426   :  { %v2593_v1 = vpop.permute.xlu1 %2592 }
0x1427   :  { %17502 = vpow2.f32 %v2578_v17  ;;  %v2576_v19 = vmul.f32 1.442695, %v2574_v18 }
0x1429   :  { %17504 = vpow2.f32 %v2576_v19 }
0x1434   :  { %v17503_v20 = vpop.eup %17502 }
0x1435   :  { %v2583_v21 = vsel %vm672_vm2, %v17503_v20, 0.0 }
0x1436   :  { %v17505_v22 = vpop.eup %17504  ;;  %2584 = vadd.xlane.f32.xlu0 %v2583_v21 }
0x1437   :  { %v2580_v24 = vsel %vm672_vm2, %v17505_v22, 0.0 }
0x143a   :  { %2581 = vadd.xlane.f32.xlu0 %v2580_v24 }
0x1450   :  { %2594 = vrot.lane.b32.xlu0 %v18549_v31, %s18029_s24 }
0x1454   :  { %2841 = vrot.lane.b32.xlu0 %v18529_v23, %s18030_s0 }
0x1458   :  { %3134 = vrot.lane.b32.xlu0 %v18534_v26, %s18031_s26 }
0x145c   :  { %3128 = vrot.lane.b32.xlu0 %v18529_v23, %s18031_s26  ;;  %v2848_v23 = vpop.permute.xlu1 %2847 }
0x1460   :  { %v2846_v36 = vpop.permute.xlu1 %2845 }
0x1464   :  { %v2844_v41 = vpop.permute.xlu1 %2843 }
0x1468   :  { %v3133_v43 = vpop.permute.xlu1 %3132 }
0x146c   :  { %v3131_v44 = vpop.permute.xlu1 %3130 }
0x14bf   :  { %v2585_v8 = vpop.xlane.xlu0 %2584 }
0x14c0   :  { %17506 = vrcp.f32 %v2585_v8 }
0x14c3   :  { %v2582_v27 = vpop.xlane.xlu0 %2581 }
0x14c4   :  { %17508 = vrcp.f32 %v2582_v27 }
0x14c7   :  { %v2595_v28 = vpop.permute.xlu0 %2594 }
0x14c8   :  { %16282 = vmatprep.subr.mxu0 %v2595_v28 }
0x14c9   :  { %16283 = vmatpush3.msra.mxu0 %v2595_v28 }
0x14ca   :  { %16284 = vmatprep.subr.mxu0 %v2593_v1 }
0x14cb   :  { %16285 = vmatpush3.msra.mxu0 %v2593_v1  ;;  %v2842_v26 = vpop.permute.xlu0 %2841 }
0x14cc   :  { %16289 = vmatprep.subr.mxu0 %v14754_v29 }
0x14cd   :  { %v17507_v30 = vpop.eup %17506 }
0x14ce   :  { %v2589_v34 = vmul.f32 %v17507_v30, %v17503_v20 }
0x14cf   :  { %v3135_v40 = vpop.permute.xlu0 %3134 }
0x14d1   :  { %v17509_v0 = vpop.eup %17508 }
0x14d2   :  { %v2588_v33 = vmul.f32 %v17509_v0, %v17505_v22  ;;  %v14755_v22 = vld [vmem:[%s20150_s12 + $0x30] sm:$0xff] }
0x14d3   :  { %v3129_v42 = vpop.permute.xlu0 %3128 }
0x14d4   :  { %16286 = vmatprep.mubr.msk.f32.mxu0 %vm672_vm2, %v2588_v33 }
0x14d5   :  { %16287 = vmatmul.mubr.msk.f32.vlgmr.msra.gmra.mxu0 %vm672_vm2, %v2589_v34 }
0x14d6   :  { %16290 = vmatpush3.msra.mxu0 %v14754_v29 }
0x14d7   :  { %16299 = vmatprep.subr.msk.mxu0 %vm580_vm1, %v2848_v23 }
0x1595   :  { %v16288_v35 = vpop.f32.mrf.mxu0 }
0x1597   :  { %v2670_v38 = vpop.f32.mrf.mxu0 }
0x1598   :  { %16291 = vmatprep.mubr.msk.f32.mxu0 %vm580_vm1, %v2670_v38 }
0x1599   :  { %16292 = vmatmul.mubr.msk.f32.vlgmr.msra.gmra.mxu0 %vm580_vm1, %v16288_v35 }
0x159a   :  { %16300 = vmatpush3.xpose.msk.msra.mxu0 %vm580_vm1, %v2848_v23  ;;  %16303 = vmatprep.mubr.msk.f32.mxu0 %vm580_vm1, %v2842_v26  ;;  %v16298_v23 = vpop.f32.mrf.mxu1 }
0x159b   :  { %16301 = vmatprep.subr.msk.mxu0 %vm580_vm1, %v2846_v36 }
0x159c   :  { %v2832_v26 = vpop.f32.mrf.mxu1 }
0x159e   :  { %16302 = vmatpush3.xpose.msk.msra.mxu0 %vm580_vm1, %v2846_v36 }
0x159f   :  { %16318 = vmatprep.subr.msk.mxu0 %vm580_vm1, %v3135_v40 }
0x15a1   :  { %16304 = vmatmul.mubr.msk.f32.vlgmr.msra.gmra.mxu0 %vm580_vm1, %v2844_v41 }
0x15a2   :  { %16319 = vmatpush3.xpose.msk.msra.mxu0 %vm580_vm1, %v3135_v40  ;;  %16322 = vmatprep.mubr.msk.f32.mxu0 %vm580_vm1, %v3129_v42 }
0x15a3   :  { %16320 = vmatprep.subr.msk.mxu0 %vm580_vm1, %v3133_v43 }
0x15a6   :  { %16321 = vmatpush3.xpose.msk.msra.mxu0 %vm580_vm1, %v3133_v43 }
0x15a9   :  { %16323 = vmatmul.mubr.msk.f32.vlgmr.msra.gmra.mxu0 %vm580_vm1, %v3131_v44  ;;  %v14756_v44 = vld [vmem:[%s20150_s12 + $0x38] sm:$0xff] }
0x1659   :  { %v18633_v7 = vpop.f32.mrf.mxu0 }
0x165b   :  { %v18635_v46 = vpop.f32.mrf.mxu0 }
0x1661   :  { %v16305_v25 = vpop.f32.mrf.mxu0 }
0x1662   :  { %v2933_v47 = vmul.f32 0.35355338, %v16305_v25  ;;  %v2838_v25 = vadd.f32 %v16298_v23, %v18633_v7  ;;  %v14821_v23 = vld [vmem:[%s20155_s27 + $0xe8] sm:$0xff] }
0x1663   :  { %v2923_v49 = vpop.f32.mrf.mxu0 }
0x1664   :  { %v2932_v50 = vmul.f32 0.35355338, %v2923_v49  ;;  %v2935_v58 = vadd.f32 %v18585_v6, %v2933_v47 }
0x1666   :  { %v2939_v53 = vsel %vm672_vm2, %v2935_v58, -inf  ;;  %v2934_v61 = vadd.f32 %v18590_v11, %v2932_v50 }
0x1667   :  { %2940 = vmax.xlane.f32.xlu1 %v2939_v53 }
0x1668   :  { %v2936_v51 = vsel %vm672_vm2, %v2934_v61, -inf }
0x1669   :  { %2937 = vmax.xlane.f32.xlu0 %v2936_v51  ;;  %v16324_v52 = vpop.f32.mrf.mxu0  ;;  %v14798_v51 = vld [vmem:[%s20151_s28 + $0x1] ss:$0 sm:$0xff] }
0x166a   :  { %v3220_v14 = vmul.f32 0.35355338, %v16324_v52 }
0x166b   :  { %v3210_v54 = vpop.f32.mrf.mxu0 }
0x166c   :  { %v3219_v55 = vmul.f32 0.35355338, %v3210_v54  ;;  %v3222_v15 = vadd.f32 %v18585_v6, %v3220_v14  ;;  %v14802_v14 = vld [vmem:[%s20152_s1 + $0x28] sm:$0xff] }
0x166e   :  { %v3221_v57 = vadd.f32 %v18590_v11, %v3219_v55  ;;  %v3226_v16 = vsel %vm672_vm2, %v3222_v15, -inf }
0x1670   :  { %v3223_v59 = vsel %vm672_vm2, %v3221_v57, -inf }
0x1678   :  { %2958 = vrot.lane.b32.xlu1 %v18551_v32, %s18030_s0 }
0x169c   :  { %3224 = vmax.xlane.f32.xlu1 %v3223_v59 }
0x16f0   :  { %v2941_v45 = vpop.xlane.xlu1 %2940 }
0x16f1   :  { %v2943_v48 = vsub.f32 %v2935_v58, %v2941_v45 }
0x16f2   :  { %v2938_v60 = vpop.xlane.xlu0 %2937 }
0x16f3   :  { %v2946_v62 = vmul.f32 1.442695, %v2943_v48  ;;  %v2942_v63 = vsub.f32 %v2934_v61, %v2938_v60  ;;  %v2833_v61 = vadd.f32 %v2832_v26, %v18635_v46  ;;  %v14820_v26 = vld [vmem:[%s20155_s27 + $0xe0] sm:$0xff] }
0x16f4   :  { %v2959_v9 = vpop.permute.xlu1 %2958 }
0x16f5   :  { %17510 = vpow2.f32 %v2946_v62  ;;  %v2944_v2 = vmul.f32 1.442695, %v2942_v63 }
0x16f7   :  { %17512 = vpow2.f32 %v2944_v2 }
0x1702   :  { %v17511_v3 = vpop.eup %17510 }
0x1703   :  { %v2951_v4 = vsel %vm672_vm2, %v17511_v3, 0.0 }
0x1704   :  { %v17513_v56 = vpop.eup %17512  ;;  %2952 = vadd.xlane.f32.xlu0 %v2951_v4 }
0x1705   :  { %v2948_v5 = vsel %vm672_vm2, %v17513_v56, 0.0 }
0x1708   :  { %2949 = vadd.xlane.f32.xlu0 %v2948_v5 }
0x171e   :  { %2960 = vrot.lane.b32.xlu0 %v18549_v31, %s18030_s0 }
0x1725   :  { %v3225_v10 = vpop.xlane.xlu1 %3224 }
0x1726   :  { %v3229_v12 = vsub.f32 %v3221_v57, %v3225_v10 }
0x1728   :  { %v3231_v13 = vmul.f32 1.442695, %v3229_v12  ;;  %v14804_v12 = vld [vmem:[%s20152_s1 + $0x38] sm:$0xff] }
0x1729   :  { %16337 = vmatprep.subr.mxu0 %v14804_v12 }
0x172a   :  { %17514 = vpow2.f32 %v3231_v13  ;;  %v14803_v13 = vld [vmem:[%s20152_s1 + $0x30] sm:$0xff]  ;;  %16338 = vmatpush3.msra.mxu0 %v14804_v12 }
0x172b   :  { %16339 = vmatprep.subr.mxu0 %v14803_v13 }
0x172c   :  { %16340 = vmatpush3.msra.mxu0 %v14803_v13 }
0x172d   :  { %16341 = vmatprep.subr.mxu0 %v14802_v14 }
0x172e   :  { %16342 = vmatpush3.msra.mxu0 %v14802_v14 }
0x1737   :  { %v17515_v17 = vpop.eup %17514 }
0x1738   :  { %v3235_v18 = vsel %vm672_vm2, %v17515_v17, 0.0 }
0x173d   :  { %3227 = vmax.xlane.f32.xlu0 %v3226_v16 }
0x1741   :  { %3236 = vadd.xlane.f32.xlu0 %v3235_v18 }
0x1757   :  { %3247 = vrot.lane.b32.xlu0 %v18549_v31, %s18031_s26 }
0x178d   :  { %v2953_v19 = vpop.xlane.xlu0 %2952 }
0x178e   :  { %17516 = vrcp.f32 %v2953_v19 }
0x1791   :  { %v2950_v20 = vpop.xlane.xlu0 %2949 }
0x1792   :  { %17518 = vrcp.f32 %v2950_v20 }
0x1795   :  { %v2961_v21 = vpop.permute.xlu0 %2960 }
0x1796   :  { %16306 = vmatprep.subr.mxu1 %v2961_v21 }
0x1797   :  { %16307 = vmatpush3.msra.mxu1 %v2961_v21 }
0x1798   :  { %16308 = vmatprep.subr.mxu1 %v2959_v9 }
0x1799   :  { %16309 = vmatpush3.msra.mxu1 %v2959_v9 }
0x179a   :  { %16313 = vmatprep.subr.mxu1 %v14755_v22 }
0x179b   :  { %v17517_v24 = vpop.eup %17516 }
0x179c   :  { %v2957_v28 = vmul.f32 %v17517_v24, %v17511_v3  ;;  %v14799_v24 = vld [vmem:[%s20153_s2 + $0x1] ss:$0 sm:$0xff] }
0x179f   :  { %v17519_v8 = vpop.eup %17518 }
0x17a0   :  { %v2956_v27 = vmul.f32 %v17519_v8, %v17513_v56 }
0x17a2   :  { %16310 = vmatprep.mubr.msk.f32.mxu1 %vm672_vm2, %v2956_v27 }
0x17a3   :  { %16311 = vmatmul.mubr.msk.f32.vlgmr.msra.gmra.mxu1 %vm672_vm2, %v2957_v28 }
0x17a4   :  { %16314 = vmatpush3.msra.mxu1 %v14755_v22 }
0x17c6   :  { %v3228_v31 = vpop.xlane.xlu0 %3227 }
0x17c7   :  { %v3230_v1 = vsub.f32 %v3222_v15, %v3228_v31  ;;  %v14801_v15 = vld [vmem:[%s20152_s1 + $0x20] sm:$0xff] }
0x17c8   :  { %16343 = vmatprep.subr.mxu0 %v14801_v15 }
0x17c9   :  { %v3233_v29 = vmul.f32 1.442695, %v3230_v1  ;;  %16344 = vmatpush3.msra.mxu0 %v14801_v15  ;;  %v14800_v1 = vld [vmem:[%s20154_s7 + $0x1] ss:$0 sm:$0xff] }
0x17ca   :  { %v3237_v30 = vpop.xlane.xlu0 %3236 }
0x17cb   :  { %17520 = vpow2.f32 %v3233_v29 }
0x17cc   :  { %17522 = vrcp.f32 %v3237_v30 }
0x17ce   :  { %v3248_v0 = vpop.permute.xlu0 %3247 }
0x17cf   :  { %16325 = vmatprep.subr.mxu1 %v3248_v0 }
0x17d8   :  { %v17521_v33 = vpop.eup %17520 }
0x17d9   :  { %v3238_v34 = vsel %vm672_vm2, %v17521_v33, 0.0  ;;  %v17523_v35 = vpop.eup %17522 }
0x17da   :  { %3239 = vadd.xlane.f32.xlu1 %v3238_v34  ;;  %v3243_v41 = vmul.f32 %v17523_v35, %v17515_v17  ;;  %v14822_v34 = vld [vmem:[%s20155_s27 + $0xf0] sm:$0xff]  ;;  %v14819_v35 = vld [vmem:[%s20155_s27 + $0xd8] sm:$0xff] }
0x17eb   :  { %3245 = vrot.lane.b32.xlu1 %v18551_v32, %s18031_s26 }
0x1863   :  { %v16312_v36 = vpop.f32.mrf.mxu1  ;;  %v3240_v38 = vpop.xlane.xlu1 %3239 }
0x1864   :  { %17524 = vrcp.f32 %v3240_v38  ;;  %v14817_v38 = vld [vmem:[%s20155_s27 + $0xc8] sm:$0xff] }
0x1865   :  { %v3036_v40 = vpop.f32.mrf.mxu1 }
0x1866   :  { %16315 = vmatprep.mubr.msk.f32.mxu1 %vm580_vm1, %v3036_v40  ;;  %v14816_v40 = vld [vmem:[%s20155_s27 + $0xc0] sm:$0xff] }
0x1867   :  { %16316 = vmatmul.mubr.msk.f32.vlgmr.msra.gmra.mxu1 %vm580_vm1, %v16312_v36  ;;  %v3246_v42 = vpop.permute.xlu1 %3245  ;;  %v14818_v36 = vld [vmem:[%s20155_s27 + $0xd0] sm:$0xff] }
0x1868   :  { %16326 = vmatpush3.msra.mxu1 %v3248_v0  ;;  %16329 = vmatprep.mubr.msk.f32.mxu1 %vm672_vm2, %v3243_v41  ;;  %v14815_v41 = vld [vmem:[%s20155_s27 + $0xb8] sm:$0xff] }
0x1869   :  { %16327 = vmatprep.subr.mxu1 %v3246_v42 }
0x186a   :  { %16328 = vmatpush3.msra.mxu1 %v3246_v42  ;;  %v14814_v42 = vld [vmem:[%s20155_s27 + $0xb0] sm:$0xff] }
0x186b   :  { %16332 = vmatprep.subr.mxu1 %v14756_v44 }
0x1871   :  { %v17525_v32 = vpop.eup %17524 }
0x1872   :  { %v3244_v43 = vmul.f32 %v17525_v32, %v17521_v33  ;;  %v14823_v33 = vld [vmem:[%s20155_s27 + $0xf8] sm:$0xff]  ;;  %v14813_v32 = vld [vmem:[%s20155_s27 + $0xa8] sm:$0xff] }
0x1874   :  { %16330 = vmatmul.mubr.msk.f32.vlgmr.msra.gmra.mxu1 %vm672_vm2, %v3244_v43  ;;  %v14812_v43 = vld [vmem:[%s20155_s27 + $0xa0] sm:$0xff] }
0x1875   :  { %16333 = vmatpush3.msra.mxu1 %v14756_v44  ;;  %v14811_v44 = vld [vmem:[%s20155_s27 + $0x98] sm:$0xff] }
0x1876   :  { %16348 = vmatprep.subr.mxu1 %v14823_v33 }
0x1927   :  { %v16317_v47 = vpop.f32.mrf.mxu1 }
0x1928   :  { %v3127_v49 = vadd.f32 %v16317_v47, %v2838_v25  ;;  %v14810_v25 = vld [vmem:[%s20155_s27 + $0x90] sm:$0xff]  ;;  %v14809_v47 = vld [vmem:[%s20155_s27 + $0x88] sm:$0xff] }
0x1929   :  { %v3117_v50 = vpop.f32.mrf.mxu1 }
0x192a   :  { %v3126_v54 = vadd.f32 %v3117_v50, %v2833_v61  ;;  %v14805_v50 = vld [vmem:[%s20156_s20 + $0x1] ss:$0 sm:$0xff] }
0x1934   :  { %v16331_v58 = vpop.f32.mrf.mxu1 }
0x1936   :  { %v3323_v53 = vpop.f32.mrf.mxu1 }
0x1937   :  { %16334 = vmatprep.mubr.msk.f32.mxu1 %vm580_vm1, %v3323_v53 }
0x1938   :  { %16335 = vmatmul.mubr.msk.f32.vlgmr.msra.gmra.mxu1 %vm580_vm1, %v16331_v58 }
0x1939   :  { %16349 = vmatpush3.msra.mxu1 %v14823_v33  ;;  %v14834_v33 = vld [vmem:[%s18195_s29 + $0x58] sm:$0xff] }
0x193a   :  { %16350 = vmatprep.subr.mxu1 %v14822_v34 }
0x193b   :  { %16351 = vmatpush3.msra.mxu1 %v14822_v34 }
0x193c   :  { %16352 = vmatprep.subr.mxu1 %v14821_v23 }
0x193d   :  { %16353 = vmatpush3.msra.mxu1 %v14821_v23 }
0x193e   :  { %16354 = vmatprep.subr.mxu1 %v14820_v26 }
0x193f   :  { %16355 = vmatpush3.msra.mxu1 %v14820_v26 }
0x1940   :  { %16356 = vmatprep.subr.mxu1 %v14819_v35 }
0x1941   :  { %16357 = vmatpush3.msra.mxu1 %v14819_v35 }
0x1942   :  { %16358 = vmatprep.subr.mxu1 %v14818_v36 }
0x1943   :  { %16359 = vmatpush3.msra.mxu1 %v14818_v36 }
0x1944   :  { %16360 = vmatprep.subr.mxu1 %v14817_v38 }
0x1945   :  { %16361 = vmatpush3.msra.mxu1 %v14817_v38 }
0x1946   :  { %16362 = vmatprep.subr.mxu1 %v14816_v40 }
0x1947   :  { %16363 = vmatpush3.msra.mxu1 %v14816_v40 }
0x1948   :  { %16364 = vmatprep.subr.mxu1 %v14815_v41 }
0x1949   :  { %16365 = vmatpush3.msra.mxu1 %v14815_v41  ;;  %v14825_v41 = vld [vmem:[%s18175_s19 + $0x2] ss:$0 sm:$0xff] }
0x194a   :  { %16366 = vmatprep.subr.mxu1 %v14814_v42 }
0x194b   :  { %16367 = vmatpush3.msra.mxu1 %v14814_v42 }
0x194c   :  { %16368 = vmatprep.subr.mxu1 %v14813_v32 }
0x194d   :  { %16369 = vmatpush3.msra.mxu1 %v14813_v32 }
0x194e   :  { %16370 = vmatprep.subr.mxu1 %v14812_v43 }
0x194f   :  { %16371 = vmatpush3.msra.mxu1 %v14812_v43 }
0x1950   :  { %16372 = vmatprep.subr.mxu1 %v14811_v44 }
0x1951   :  { %16373 = vmatpush3.msra.mxu1 %v14811_v44 }
0x1952   :  { %16374 = vmatprep.subr.mxu1 %v14810_v25 }
0x1953   :  { %16375 = vmatpush3.msra.mxu1 %v14810_v25  ;;  %v14826_v25 = vld [vmem:[%s18180_s30 + $0x2] ss:$0 sm:$0xff] }
0x1954   :  { %16376 = vmatprep.subr.mxu1 %v14809_v47 }
0x1955   :  { %16377 = vmatpush3.msra.mxu1 %v14809_v47 }
0x19f8   :  { %v16336_v52 = vpop.f32.mrf.mxu1 }
0x19f9   :  { %v3414_v55 = vadd.f32 %v16336_v52, %v3127_v49  ;;  %v14808_v49 = vld [vmem:[%s20155_s27 + $0x80] sm:$0xff] }
0x19fa   :  { %v3404_v57 = vpop.f32.mrf.mxu1  ;;  %16378 = vmatprep.subr.mxu1 %v14808_v49 }
0x19fb   :  { %v3420_v59 = vadd.f32 %v14798_v51, %v3414_v55  ;;  %v3413_v45 = vadd.f32 %v3404_v57, %v3126_v54  ;;  %16379 = vmatpush3.msra.mxu1 %v14808_v49 }
0x19fd   :  { %v18671_v7 = vadd.f32 %v3420_v59, %v18495_v37  ;;  %v3419_v48 = vadd.f32 %v14798_v51, %v3413_v45 }
0x19ff   :  { %v18674_v60 = vadd.f32 %v3419_v48, %v18498_v39  ;;  %v3428_v62 = vsel %vm277_vm0, %v18671_v7, 0.0 }
0x1a00   :  { %3429 = vadd.xlane.f32.xlu0 %v3428_v62 }
0x1a01   :  { %v3425_v46 = vsel %vm277_vm0, %v18674_v60, 0.0 }
0x1a02   :  { %3426 = vadd.xlane.f32.xlu1 %v3425_v46 }
0x1a89   :  { %v3430_v63 = vpop.xlane.xlu0 %3429 }
0x1a8a   :  { %v3432_v2 = vmul.f32 0.03125, %v3430_v63 }
0x1a8b   :  { %v3427_v3 = vpop.xlane.xlu1 %3426 }
0x1a8c   :  { %v3434_v37 = vsub.f32 %v18671_v7, %v3432_v2  ;;  %v3431_v4 = vmul.f32 0.03125, %v3427_v3 }
0x1a8e   :  { %v3433_v39 = vsub.f32 %v18674_v60, %v3431_v4  ;;  %v3436_v56 = vmul.f32 %v3434_v37, %v3434_v37 }
0x1a90   :  { %v3440_v5 = vsel %vm277_vm0, %v3436_v56, 0.0  ;;  %v3435_v9 = vmul.f32 %v3433_v39, %v3433_v39 }
0x1a91   :  { %3441 = vadd.xlane.f32.xlu1 %v3440_v5 }
0x1a92   :  { %v3437_v10 = vsel %vm277_vm0, %v3435_v9, 0.0 }
0x1a93   :  { %3438 = vadd.xlane.f32.xlu0 %v3437_v10  ;;  %v14824_v10 = vld [vmem:[#allocation10 + $0x1] ss:$0 sm:$0xff] }
0x1b1a   :  { %v3442_v16 = vpop.xlane.xlu1 %3441 }
0x1b1b   :  { %v3444_v17 = vmul.f32 0.03125, %v3442_v16 }
0x1b1c   :  { %v3439_v18 = vpop.xlane.xlu0 %3438 }
0x1b1d   :  { %v3446_v19 = vadd.f32 1e-12, %v3444_v17  ;;  %v3443_v20 = vmul.f32 0.03125, %v3439_v18 }
0x1b1f   :  { %17526 = vrsqrt.f32 %v3446_v19  ;;  %v3445_v21 = vadd.f32 1e-12, %v3443_v20 }
0x1b21   :  { %17528 = vrsqrt.f32 %v3445_v21 }
0x1b2c   :  { %v17527_v22 = vpop.eup %17526 }
0x1b2d   :  { %v3450_v8 = vmul.f32 %v17527_v22, %v3434_v37 }
0x1b2e   :  { %v17529_v27 = vpop.eup %17528 }
0x1b2f   :  { %v3449_v28 = vmul.f32 %v17529_v27, %v3433_v39  ;;  %v3456_v31 = vmul.f32 %v14799_v24, %v3450_v8 }
0x1b31   :  { %v3455_v29 = vmul.f32 %v14799_v24, %v3449_v28  ;;  %v3462_v0 = vadd.f32 %v14800_v1, %v3456_v31 }
0x1b33   :  { %v3461_v30 = vadd.f32 %v14800_v1, %v3455_v29  ;;  %v14830_v1 = vld [vmem:[%s18185_s4 + $0x58] sm:$0xff]  ;;  %v14829_v29 = vld [vmem:[%s18185_s4 + $0x50] sm:$0xff] }
0x1b34   :  { %16383 = vmatprep.subr.mxu0 %v14830_v1 }
0x1b35   :  { %16345 = vmatprep.mubr.msk.f32.mxu0 %vm277_vm0, %v3461_v30  ;;  %v14828_v30 = vld [vmem:[%s18185_s4 + $0x48] sm:$0xff] }
0x1b36   :  { %16346 = vmatmul.mubr.msk.f32.vlgmr.msra.gmra.mxu0 %vm277_vm0, %v3462_v0  ;;  %v14827_v0 = vld [vmem:[%s18185_s4 + $0x40] sm:$0xff] }
0x1b37   :  { %16384 = vmatpush3.msra.mxu0 %v14830_v1 }
0x1b38   :  { %16385 = vmatprep.subr.mxu0 %v14829_v29 }
0x1b39   :  { %16386 = vmatpush3.msra.mxu0 %v14829_v29 }
0x1b3a   :  { %16387 = vmatprep.subr.mxu0 %v14828_v30 }
0x1b3b   :  { %16388 = vmatpush3.msra.mxu0 %v14828_v30 }
0x1b3c   :  { %16389 = vmatprep.subr.mxu0 %v14827_v0 }
0x1b3d   :  { %16390 = vmatpush3.msra.mxu0 %v14827_v0 }
0x1b3e   :  { %16394 = vmatprep.subr.mxu0 %v14834_v33 }
0x1bf6   :  { %v16347_v58 = vpop.f32.mrf.mxu0 }
0x1bf7   :  { %v3551_v53 = vadd.f32 %v16347_v58, %v14805_v50  ;;  %v14833_v58 = vld [vmem:[%s18195_s29 + $0x50] sm:$0xff] }
0x1bf8   :  { %v3545_v61 = vpop.f32.mrf.mxu0 }
0x1bf9   :  { %v3555_v51 = vmul.f32 %v3551_v53, %v3551_v53  ;;  %v3546_v52 = vadd.f32 %v14805_v50, %v3545_v61  ;;  %v14831_v61 = vld [vmem:[%s18195_s29 + $0x40] sm:$0xff] }
0x1bfb   :  { %v3557_v54 = vmul.f32 %v3555_v51, %v3551_v53  ;;  %v3554_v55 = vmul.f32 %v3546_v52, %v3546_v52  ;;  %v14838_v51 = vld [vmem:[%s18205_s3 + $0x58] sm:$0xff] }
0x1bfd   :  { %v3559_v57 = vmul.f32 0.044715, %v3557_v54  ;;  %v3556_v59 = vmul.f32 %v3554_v55, %v3546_v52  ;;  %v14836_v54 = vld [vmem:[%s18205_s3 + $0x48] sm:$0xff]  ;;  %v14835_v55 = vld [vmem:[%s18205_s3 + $0x40] sm:$0xff] }
0x1bff   :  { %v3561_v45 = vadd.f32 %v3559_v57, %v3551_v53  ;;  %v3558_v48 = vmul.f32 0.044715, %v3556_v59  ;;  %v14843_v59 = vld [vmem:[%s18190_s8 + $0x2] ss:$0 sm:$0xff] }
0x1c01   :  { %v3563_v62 = vmul.f32 0.7978846, %v3561_v45  ;;  %v3560_v46 = vadd.f32 %v3558_v48, %v3546_v52 }
0x1c03   :  { %17530 = vtanh.f32 %v3563_v62  ;;  %v3562_v63 = vmul.f32 0.7978846, %v3560_v46  ;;  %v14846_v62 = vld [vmem:[%s18200_s14 + $0x2] ss:$0 sm:$0xff] }
0x1c05   :  { %17532 = vtanh.f32 %v3562_v63 }
0x1c10   :  { %v17531_v2 = vpop.eup %17530 }
0x1c11   :  { %v3567_v3 = vadd.f32 1.0, %v17531_v2 }
0x1c12   :  { %v17533_v37 = vpop.eup %17532 }
0x1c13   :  { %v3566_v4 = vadd.f32 1.0, %v17533_v37  ;;  %v3569_v39 = vmul.f32 0.5, %v3567_v3  ;;  %v14849_v37 = vld [vmem:[%s20148_s9 + $0x2] ss:$0 sm:$0xff] }
0x1c15   :  { %v3568_v56 = vmul.f32 0.5, %v3566_v4  ;;  %v3571_v9 = vmul.f32 %v3569_v39, %v3551_v53  ;;  %v14832_v53 = vld [vmem:[%s18195_s29 + $0x48] sm:$0xff] }
0x1c17   :  { %v3570_v5 = vmul.f32 %v3568_v56, %v3546_v52  ;;  %v14837_v52 = vld [vmem:[%s18205_s3 + $0x50] sm:$0xff] }
0x1c19   :  { %16380 = vmatprep.mubr.f32.mxu1 %v3570_v5 }
0x1c1a   :  { %16381 = vmatmul.mubr.f32.vlgmr.msra.gmra.mxu1 %v3571_v9 }
0x1cda   :  { %v16382_v12 = vpop.f32.mrf.mxu1 }
0x1cdb   :  { %v3666_v13 = vadd.f32 %v16382_v12, %v14824_v10 }
0x1cdc   :  { %v3660_v14 = vpop.f32.mrf.mxu1 }
0x1cdd   :  { %v18710_v15 = vadd.f32 %v3666_v13, %v18671_v7  ;;  %v3661_v16 = vadd.f32 %v14824_v10, %v3660_v14 }
0x1cdf   :  { %v18713_v17 = vadd.f32 %v3661_v16, %v18674_v60  ;;  %v3676_v18 = vsel %vm277_vm0, %v18710_v15, 0.0 }
0x1ce0   :  { %3677 = vadd.xlane.f32.xlu1 %v3676_v18 }
0x1ce1   :  { %v3673_v19 = vsel %vm277_vm0, %v18713_v17, 0.0 }
0x1ce2   :  { %3674 = vadd.xlane.f32.xlu0 %v3673_v19 }
0x1d69   :  { %v3678_v20 = vpop.xlane.xlu1 %3677 }
0x1d6a   :  { %v3680_v21 = vmul.f32 0.03125, %v3678_v20 }
0x1d6b   :  { %v3675_v22 = vpop.xlane.xlu0 %3674 }
0x1d6c   :  { %v3682_v7 = vsub.f32 %v18710_v15, %v3680_v21  ;;  %v3679_v24 = vmul.f32 0.03125, %v3675_v22 }
0x1d6e   :  { %v3681_v60 = vsub.f32 %v18713_v17, %v3679_v24  ;;  %v3684_v8 = vmul.f32 %v3682_v7, %v3682_v7 }
0x1d70   :  { %v3688_v27 = vsel %vm277_vm0, %v3684_v8, 0.0  ;;  %v3683_v28 = vmul.f32 %v3681_v60, %v3681_v60 }
0x1d71   :  { %3689 = vadd.xlane.f32.xlu1 %v3688_v27 }
0x1d72   :  { %v3685_v31 = vsel %vm277_vm0, %v3683_v28, 0.0 }
0x1d73   :  { %3686 = vadd.xlane.f32.xlu0 %v3685_v31 }
0x1dfa   :  { %v3690_v34 = vpop.xlane.xlu1 %3689 }
0x1dfb   :  { %v3692_v23 = vmul.f32 0.03125, %v3690_v34 }
0x1dfc   :  { %v3687_v26 = vpop.xlane.xlu0 %3686 }
0x1dfd   :  { %v3694_v35 = vadd.f32 1e-12, %v3692_v23  ;;  %v3691_v36 = vmul.f32 0.03125, %v3687_v26 }
0x1dff   :  { %17534 = vrsqrt.f32 %v3694_v35  ;;  %v3693_v38 = vadd.f32 1e-12, %v3691_v36 }
0x1e01   :  { %17536 = vrsqrt.f32 %v3693_v38 }
0x1e0c   :  { %v17535_v40 = vpop.eup %17534 }
0x1e0d   :  { %v3698_v42 = vmul.f32 %v17535_v40, %v3682_v7  ;;  %v14839_v40 = vld [vmem:[%s20150_s12 + $0x40] sm:$0xff] }
0x1e0e   :  { %v17537_v32 = vpop.eup %17536 }
0x1e0f   :  { %v3697_v43 = vmul.f32 %v17537_v32, %v3681_v60  ;;  %v3704_v44 = vmul.f32 %v14825_v41, %v3698_v42 }
0x1e11   :  { %v3703_v47 = vmul.f32 %v14825_v41, %v3697_v43  ;;  %v3710_v50 = vadd.f32 %v14826_v25, %v3704_v44 }
0x1e13   :  { %v3709_v49 = vadd.f32 %v14826_v25, %v3703_v47 }
0x1e15   :  { %16391 = vmatprep.mubr.msk.f32.mxu0 %vm277_vm0, %v3709_v49 }
0x1e16   :  { %16392 = vmatmul.mubr.msk.f32.vlgmr.msra.gmra.mxu0 %vm277_vm0, %v3710_v50 }
0x1e17   :  { %16395 = vmatpush3.msra.mxu0 %v14834_v33  ;;  %16402 = vmatprep.mubr.msk.f32.mxu0 %vm277_vm0, %v3709_v49 }
0x1e18   :  { %16396 = vmatprep.subr.mxu0 %v14833_v58 }
0x1e19   :  { %16397 = vmatpush3.msra.mxu0 %v14833_v58 }
0x1e1a   :  { %16398 = vmatprep.subr.mxu0 %v14832_v53 }
0x1e1b   :  { %16399 = vmatpush3.msra.mxu0 %v14832_v53 }
0x1e1c   :  { %16400 = vmatprep.subr.mxu0 %v14831_v61 }
0x1e1d   :  { %16401 = vmatpush3.msra.mxu0 %v14831_v61 }
0x1e1e   :  { %16403 = vmatmul.mubr.msk.f32.vlgmr.msra.gmra.mxu0 %vm277_vm0, %v3710_v50  ;;  %16405 = vmatprep.subr.mxu0 %v14838_v51 }
0x1e1f   :  { %16406 = vmatpush3.msra.mxu0 %v14838_v51  ;;  %16413 = vmatprep.mubr.msk.f32.mxu0 %vm277_vm0, %v3709_v49 }
0x1e20   :  { %16407 = vmatprep.subr.mxu0 %v14837_v52 }
0x1e21   :  { %16408 = vmatpush3.msra.mxu0 %v14837_v52 }
0x1e22   :  { %16409 = vmatprep.subr.mxu0 %v14836_v54 }
0x1e23   :  { %16410 = vmatpush3.msra.mxu0 %v14836_v54 }
0x1e24   :  { %16411 = vmatprep.subr.mxu0 %v14835_v55 }
0x1e25   :  { %16412 = vmatpush3.msra.mxu0 %v14835_v55 }
0x1e26   :  { %16414 = vmatmul.mubr.msk.f32.vlgmr.msra.gmra.mxu0 %vm277_vm0, %v3710_v50 }
0x1ed6   :  { %v16393_v57 = vpop.f32.mrf.mxu0 }
0x1ed7   :  { %v18762_v39 = vadd.f32 %v16393_v57, %v14843_v59 }
0x1ed8   :  { %v3811_v45 = vpop.f32.mrf.mxu0 }
0x1ed9   :  { %v18744_v48 = vadd.f32 %v14843_v59, %v3811_v45 }
0x1edb   :  { %16420 = vmatprep.mubr.msk.f32.mxu0 %vm580_vm1, %v18744_v48 }
0x1ede   :  { %v16404_v46 = vpop.f32.mrf.mxu0 }
0x1edf   :  { %v18749_v63 = vadd.f32 %v16404_v46, %v14846_v62 }
0x1ee0   :  { %v3890_v2 = vpop.f32.mrf.mxu0 }
0x1ee1   :  { %v18751_v3 = vadd.f32 %v14846_v62, %v3890_v2  ;;  %16416 = vmatprep.subr.msk.mxu0 %vm580_vm1, %v18749_v63 }
0x1ee2   :  { %16417 = vmatpush3.xpose.msk.msra.mxu0 %vm580_vm1, %v18749_v63 }
0x1ee3   :  { %16418 = vmatprep.subr.msk.mxu0 %vm580_vm1, %v18751_v3 }
0x1ee6   :  { %v16415_v4 = vpop.f32.mrf.mxu0  ;;  %16419 = vmatpush3.xpose.msk.msra.mxu0 %vm580_vm1, %v18751_v3 }
0x1ee7   :  { %v18764_v56 = vadd.f32 %v16415_v4, %v14849_v37 }
0x1ee8   :  { %v3969_v5 = vpop.f32.mrf.mxu0 }
0x1ee9   :  { %v18766_v9 = vadd.f32 %v14849_v37, %v3969_v5  ;;  %16421 = vmatmul.mubr.msk.f32.vlgmr.msra.gmra.mxu0 %vm580_vm1, %v18762_v39  ;;  %16423 = vmatprep.subr.mxu1 %v18764_v56 }
0x1eea   :  { %16424 = vmatpush3.msra.mxu1 %v18764_v56 }
0x1eeb   :  { %16425 = vmatprep.subr.mxu1 %v18766_v9 }
0x1eec   :  { %16426 = vmatpush3.msra.mxu1 %v18766_v9 }
0x1fa9   :  { %v16422_v10 = vpop.f32.mrf.mxu0 }
0x1faa   :  { %v4066_v12 = vmul.f32 0.35355338, %v16422_v10 }
0x1fab   :  { %v4056_v13 = vpop.f32.mrf.mxu0 }
0x1fac   :  { %v4065_v14 = vmul.f32 0.35355338, %v4056_v13  ;;  %v4068_v16 = vadd.f32 %v18585_v6, %v4066_v12 }
0x1fae   :  { %v4072_v18 = vsel %vm672_vm2, %v4068_v16, -inf  ;;  %v4067_v19 = vadd.f32 %v18590_v11, %v4065_v14 }
0x1faf   :  { %4073 = vmax.xlane.f32.xlu1 %v4072_v18 }
0x1fb0   :  { %v4069_v20 = vsel %vm672_vm2, %v4067_v19, -inf }
0x1fb1   :  { %4070 = vmax.xlane.f32.xlu0 %v4069_v20 }
0x2038   :  { %v4074_v21 = vpop.xlane.xlu1 %4073 }
0x2039   :  { %v4076_v22 = vsub.f32 %v4068_v16, %v4074_v21 }
0x203a   :  { %v4071_v7 = vpop.xlane.xlu0 %4070 }
0x203b   :  { %v4079_v24 = vmul.f32 1.442695, %v4076_v22  ;;  %v4075_v60 = vsub.f32 %v4067_v19, %v4071_v7 }
0x203d   :  { %17538 = vpow2.f32 %v4079_v24  ;;  %v4077_v8 = vmul.f32 1.442695, %v4075_v60 }
0x203f   :  { %17540 = vpow2.f32 %v4077_v8  ;;  %v18847_v8 = vld [vmem:[%s20149_s25 + $0x8] sm:$0xff] }
0x204a   :  { %v17539_v27 = vpop.eup %17538 }
0x204b   :  { %v4084_v28 = vsel %vm672_vm2, %v17539_v27, 0.0 }
0x204c   :  { %v17541_v31 = vpop.eup %17540  ;;  %4085 = vadd.xlane.f32.xlu1 %v4084_v28 }
0x204d   :  { %v4081_v1 = vsel %vm672_vm2, %v17541_v31, 0.0 }
0x204e   :  { %4082 = vadd.xlane.f32.xlu0 %v4081_v1 }
0x205d   :  { %4176 = vrot.lane.b32.xlu1 %v18751_v3, %s18029_s24 }
0x2061   :  { %4172 = vrot.lane.b32.xlu1 %v18744_v48, %s18029_s24 }
0x2064   :  { %4178 = vrot.lane.b32.xlu0 %v18749_v63, %s18029_s24 }
0x2065   :  { %4174 = vrot.lane.b32.xlu1 %v18762_v39, %s18029_s24 }
0x20d5   :  { %v4086_v29 = vpop.xlane.xlu1 %4085 }
0x20d6   :  { %17542 = vrcp.f32 %v4086_v29 }
0x20d7   :  { %v4083_v30 = vpop.xlane.xlu0 %4082 }
0x20d8   :  { %17544 = vrcp.f32 %v4083_v30 }
0x20d9   :  { %v4177_v33 = vpop.permute.xlu1 %4176 }
0x20db   :  { %v4179_v0 = vpop.permute.xlu0 %4178 }
0x20dc   :  { %16430 = vmatprep.subr.msk.mxu1 %vm580_vm1, %v4179_v0 }
0x20dd   :  { %v4173_v36 = vpop.permute.xlu1 %4172 }
0x20e1   :  { %v4175_v38 = vpop.permute.xlu1 %4174 }
0x20e3   :  { %v17543_v34 = vpop.eup %17542 }
0x20e4   :  { %v4090_v35 = vmul.f32 %v17543_v34, %v17539_v27 }
0x20e5   :  { %v17545_v23 = vpop.eup %17544 }
0x20e6   :  { %v4089_v26 = vmul.f32 %v17545_v23, %v17541_v31  ;;  %v18851_v31 = vld [vmem:[%s20149_s25] sm:$0xff] }
0x20e8   :  { %16427 = vmatprep.mubr.msk.f32.mxu1 %vm672_vm2, %v4089_v26 }
0x20e9   :  { %16428 = vmatmul.mubr.msk.f32.vlgmr.msra.gmra.mxu1 %vm672_vm2, %v4090_v35 }
0x20ea   :  { %16431 = vmatpush3.xpose.msk.msra.mxu1 %vm580_vm1, %v4179_v0  ;;  %16434 = vmatprep.mubr.msk.f32.mxu1 %vm580_vm1, %v4173_v36 }
0x20eb   :  { %16432 = vmatprep.subr.msk.mxu1 %vm580_vm1, %v4177_v33 }
0x20ee   :  { %16433 = vmatpush3.xpose.msk.msra.mxu1 %vm580_vm1, %v4177_v33 }
0x20ef   :  { %16449 = vmatprep.subr.mxu1 %v14839_v40 }
0x20f1   :  { %16435 = vmatmul.mubr.msk.f32.vlgmr.msra.gmra.mxu1 %vm580_vm1, %v4175_v38 }
0x20f2   :  { %16450 = vmatpush3.msra.mxu1 %v14839_v40 }
0x21a9   :  { %v16429_v41 = vpop.f32.mrf.mxu1 }
0x21ab   :  { %v4163_v42 = vpop.f32.mrf.mxu1 }
0x21ac   :  { %16451 = vmatprep.mubr.msk.f32.mxu1 %vm580_vm1, %v4163_v42 }
0x21ad   :  { %16452 = vmatmul.mubr.msk.f32.vlgmr.msra.gmra.mxu1 %vm580_vm1, %v16429_v41 }
0x21b1   :  { %v16436_v32 = vpop.f32.mrf.mxu1 }
0x21b2   :  { %v4264_v43 = vmul.f32 0.35355338, %v16436_v32 }
0x21b3   :  { %v4254_v44 = vpop.f32.mrf.mxu1 }
0x21b4   :  { %v4266_v25 = vadd.f32 %v18585_v6, %v4264_v43  ;;  %v4263_v47 = vmul.f32 0.35355338, %v4254_v44 }
0x21b6   :  { %v4270_v49 = vsel %vm672_vm2, %v4266_v25, -inf  ;;  %v4265_v50 = vadd.f32 %v18590_v11, %v4263_v47 }
0x21b7   :  { %4271 = vmax.xlane.f32.xlu1 %v4270_v49 }
0x21b8   :  { %v4267_v58 = vsel %vm672_vm2, %v4265_v50, -inf }
0x21b9   :  { %4268 = vmax.xlane.f32.xlu0 %v4267_v58 }
0x21c8   :  { %4291 = vrot.lane.b32.xlu1 %v18766_v9, %s18029_s24 }
0x21cc   :  { %4546 = vrot.lane.b32.xlu1 %v18749_v63, %s18030_s0 }
0x21d0   :  { %4544 = vrot.lane.b32.xlu1 %v18751_v3, %s18030_s0 }
0x21d4   :  { %4542 = vrot.lane.b32.xlu1 %v18762_v39, %s18030_s0 }
0x21d8   :  { %4831 = vrot.lane.b32.xlu1 %v18751_v3, %s18031_s26  ;;  %v14840_v3 = vld [vmem:[%s20150_s12 + $0x48] sm:$0xff] }
0x21dc   :  { %4829 = vrot.lane.b32.xlu1 %v18762_v39, %s18031_s26 }
0x2240   :  { %v4272_v6 = vpop.xlane.xlu1 %4271 }
0x2241   :  { %v4274_v11 = vsub.f32 %v4266_v25, %v4272_v6 }
0x2242   :  { %v4269_v53 = vpop.xlane.xlu0 %4268 }
0x2243   :  { %v4277_v61 = vmul.f32 1.442695, %v4274_v11  ;;  %v4273_v51 = vsub.f32 %v4265_v50, %v4269_v53 }
0x2244   :  { %v4292_v2 = vpop.permute.xlu1 %4291 }
0x2245   :  { %17546 = vpow2.f32 %v4277_v61  ;;  %v4275_v52 = vmul.f32 1.442695, %v4273_v51 }
0x2247   :  { %17548 = vpow2.f32 %v4275_v52 }
0x2252   :  { %v17547_v54 = vpop.eup %17546 }
0x2253   :  { %v4282_v55 = vsel %vm672_vm2, %v17547_v54, 0.0 }
0x2254   :  { %v17549_v57 = vpop.eup %17548  ;;  %4283 = vadd.xlane.f32.xlu0 %v4282_v55 }
0x2255   :  { %v4279_v59 = vsel %vm672_vm2, %v17549_v57, 0.0 }
0x2258   :  { %4280 = vadd.xlane.f32.xlu0 %v4279_v59 }
0x226e   :  { %4293 = vrot.lane.b32.xlu0 %v18764_v56, %s18029_s24 }
0x2272   :  { %4540 = vrot.lane.b32.xlu0 %v18744_v48, %s18030_s0 }
0x2276   :  { %4833 = vrot.lane.b32.xlu0 %v18749_v63, %s18031_s26 }
0x227a   :  { %4827 = vrot.lane.b32.xlu0 %v18744_v48, %s18031_s26  ;;  %v4547_v48 = vpop.permute.xlu1 %4546 }
0x227e   :  { %v4545_v12 = vpop.permute.xlu1 %4544 }
0x2282   :  { %v4543_v16 = vpop.permute.xlu1 %4542 }
0x2286   :  { %v4832_v19 = vpop.permute.xlu1 %4831 }
0x228a   :  { %v4830_v20 = vpop.permute.xlu1 %4829 }
0x22dd   :  { %v4284_v45 = vpop.xlane.xlu0 %4283 }
0x22de   :  { %17550 = vrcp.f32 %v4284_v45 }
0x22e1   :  { %v4281_v62 = vpop.xlane.xlu0 %4280 }
0x22e2   :  { %17552 = vrcp.f32 %v4281_v62 }
0x22e5   :  { %v4294_v46 = vpop.permute.xlu0 %4293 }
0x22e6   :  { %16437 = vmatprep.subr.mxu0 %v4294_v46 }
0x22e7   :  { %16438 = vmatpush3.msra.mxu0 %v4294_v46 }
0x22e8   :  { %16439 = vmatprep.subr.mxu0 %v4292_v2 }
0x22e9   :  { %16440 = vmatpush3.msra.mxu0 %v4292_v2  ;;  %v4541_v63 = vpop.permute.xlu0 %4540 }
0x22ea   :  { %16444 = vmatprep.subr.mxu0 %v14840_v3 }
0x22eb   :  { %v17551_v37 = vpop.eup %17550 }
0x22ec   :  { %v4288_v5 = vmul.f32 %v17551_v37, %v17547_v54 }
0x22ed   :  { %v4834_v14 = vpop.permute.xlu0 %4833 }
0x22ef   :  { %v17553_v4 = vpop.eup %17552 }
0x22f0   :  { %v4287_v39 = vmul.f32 %v17553_v4, %v17549_v57  ;;  %v14841_v57 = vld [vmem:[%s20150_s12 + $0x50] sm:$0xff] }
0x22f1   :  { %v4828_v18 = vpop.permute.xlu0 %4827 }
0x22f2   :  { %16441 = vmatprep.mubr.msk.f32.mxu0 %vm672_vm2, %v4287_v39 }
0x22f3   :  { %16442 = vmatmul.mubr.msk.f32.vlgmr.msra.gmra.mxu0 %vm672_vm2, %v4288_v5 }
0x22f4   :  { %16445 = vmatpush3.msra.mxu0 %v14840_v3 }
0x22f5   :  { %16454 = vmatprep.subr.msk.mxu0 %vm580_vm1, %v4547_v48 }
0x23b3   :  { %v16443_v10 = vpop.f32.mrf.mxu0 }
0x23b5   :  { %v4369_v13 = vpop.f32.mrf.mxu0 }
0x23b6   :  { %16446 = vmatprep.mubr.msk.f32.mxu0 %vm580_vm1, %v4369_v13 }
0x23b7   :  { %16447 = vmatmul.mubr.msk.f32.vlgmr.msra.gmra.mxu0 %vm580_vm1, %v16443_v10 }
0x23b8   :  { %16455 = vmatpush3.xpose.msk.msra.mxu0 %vm580_vm1, %v4547_v48  ;;  %16458 = vmatprep.mubr.msk.f32.mxu0 %vm580_vm1, %v4541_v63  ;;  %v16453_v48 = vpop.f32.mrf.mxu1 }
0x23b9   :  { %16456 = vmatprep.subr.msk.mxu0 %vm580_vm1, %v4545_v12 }
0x23ba   :  { %v4531_v63 = vpop.f32.mrf.mxu1 }
0x23bc   :  { %16457 = vmatpush3.xpose.msk.msra.mxu0 %vm580_vm1, %v4545_v12 }
0x23bd   :  { %16473 = vmatprep.subr.msk.mxu0 %vm580_vm1, %v4834_v14 }
0x23bf   :  { %16459 = vmatmul.mubr.msk.f32.vlgmr.msra.gmra.mxu0 %vm580_vm1, %v4543_v16 }
0x23c0   :  { %16474 = vmatpush3.xpose.msk.msra.mxu0 %vm580_vm1, %v4834_v14  ;;  %16477 = vmatprep.mubr.msk.f32.mxu0 %vm580_vm1, %v4828_v18 }
0x23c1   :  { %16475 = vmatprep.subr.msk.mxu0 %vm580_vm1, %v4832_v19 }
0x23c4   :  { %16476 = vmatpush3.xpose.msk.msra.mxu0 %vm580_vm1, %v4832_v19 }
0x23c7   :  { %16478 = vmatmul.mubr.msk.f32.vlgmr.msra.gmra.mxu0 %vm580_vm1, %v4830_v20  ;;  %v14842_v20 = vld [vmem:[%s20150_s12 + $0x58] sm:$0xff] }
0x2477   :  { %v18842_v21 = vpop.f32.mrf.mxu0 }
0x2479   :  { %v18844_v22 = vpop.f32.mrf.mxu0 }
0x247f   :  { %v16460_v7 = vpop.f32.mrf.mxu0 }
0x2480   :  { %v4632_v24 = vmul.f32 0.35355338, %v16460_v7  ;;  %v4537_v7 = vadd.f32 %v16453_v48, %v18842_v21  ;;  %v14907_v48 = vld [vmem:[%s20155_s27 + $0x168] sm:$0xff] }
0x2481   :  { %v4622_v60 = vpop.f32.mrf.mxu0 }
0x2482   :  { %v4634_v27 = vadd.f32 %v18847_v8, %v4632_v24  ;;  %v4631_v28 = vmul.f32 0.35355338, %v4622_v60  ;;  %v4532_v60 = vadd.f32 %v4531_v63, %v18844_v22  ;;  %v14906_v63 = vld [vmem:[%s20155_s27 + $0x160] sm:$0xff] }
0x2484   :  { %v4633_v1 = vadd.f32 %v18851_v31, %v4631_v28  ;;  %v4638_v29 = vsel %vm672_vm2, %v4634_v27, -inf }
0x2485   :  { %4639 = vmax.xlane.f32.xlu1 %v4638_v29 }
0x2486   :  { %v4635_v30 = vsel %vm672_vm2, %v4633_v1, -inf }
0x2487   :  { %4636 = vmax.xlane.f32.xlu0 %v4635_v30  ;;  %v16479_v0 = vpop.f32.mrf.mxu0 }
0x2488   :  { %v4919_v6 = vmul.f32 0.35355338, %v16479_v0  ;;  %v14884_v0 = vld [vmem:[%s20151_s28 + $0x2] ss:$0 sm:$0xff] }
0x2489   :  { %v4909_v33 = vpop.f32.mrf.mxu0 }
0x248a   :  { %v4918_v34 = vmul.f32 0.35355338, %v4909_v33  ;;  %v4921_v11 = vadd.f32 %v18847_v8, %v4919_v6  ;;  %v14888_v6 = vld [vmem:[%s20152_s1 + $0x48] sm:$0xff] }
0x248c   :  { %v4920_v23 = vadd.f32 %v18851_v31, %v4918_v34  ;;  %v4925_v53 = vsel %vm672_vm2, %v4921_v11, -inf }
0x248e   :  { %v4922_v26 = vsel %vm672_vm2, %v4920_v23, -inf }
0x2496   :  { %4657 = vrot.lane.b32.xlu1 %v18766_v9, %s18030_s0 }
0x24ba   :  { %4923 = vmax.xlane.f32.xlu1 %v4922_v26 }
0x250e   :  { %v4640_v35 = vpop.xlane.xlu1 %4639 }
0x250f   :  { %v4642_v36 = vsub.f32 %v4634_v27, %v4640_v35 }
0x2510   :  { %v4637_v38 = vpop.xlane.xlu0 %4636 }
0x2511   :  { %v4645_v40 = vmul.f32 1.442695, %v4642_v36  ;;  %v4641_v41 = vsub.f32 %v4633_v1, %v4637_v38 }
0x2512   :  { %v4658_v47 = vpop.permute.xlu1 %4657 }
0x2513   :  { %17554 = vpow2.f32 %v4645_v40  ;;  %v4643_v42 = vmul.f32 1.442695, %v4641_v41 }
0x2515   :  { %17556 = vpow2.f32 %v4643_v42 }
0x2520   :  { %v17555_v32 = vpop.eup %17554 }
0x2521   :  { %v4650_v43 = vsel %vm672_vm2, %v17555_v32, 0.0 }
0x2522   :  { %v17557_v44 = vpop.eup %17556  ;;  %4651 = vadd.xlane.f32.xlu0 %v4650_v43 }
0x2523   :  { %v4647_v25 = vsel %vm672_vm2, %v17557_v44, 0.0 }
0x2526   :  { %4648 = vadd.xlane.f32.xlu0 %v4647_v25 }
0x253c   :  { %4659 = vrot.lane.b32.xlu0 %v18764_v56, %s18030_s0 }
0x2543   :  { %v4924_v49 = vpop.xlane.xlu1 %4923 }
0x2544   :  { %v4928_v50 = vsub.f32 %v4920_v23, %v4924_v49 }
0x2546   :  { %v4930_v58 = vmul.f32 1.442695, %v4928_v50  ;;  %v14890_v50 = vld [vmem:[%s20152_s1 + $0x58] sm:$0xff] }
0x2547   :  { %16492 = vmatprep.subr.mxu0 %v14890_v50 }
0x2548   :  { %17558 = vpow2.f32 %v4930_v58  ;;  %v14889_v58 = vld [vmem:[%s20152_s1 + $0x50] sm:$0xff]  ;;  %16493 = vmatpush3.msra.mxu0 %v14890_v50 }
0x2549   :  { %16494 = vmatprep.subr.mxu0 %v14889_v58 }
0x254a   :  { %16495 = vmatpush3.msra.mxu0 %v14889_v58 }
0x254b   :  { %16496 = vmatprep.subr.mxu0 %v14888_v6 }
0x254c   :  { %16497 = vmatpush3.msra.mxu0 %v14888_v6 }
0x2555   :  { %v17559_v61 = vpop.eup %17558 }
0x2556   :  { %v4934_v51 = vsel %vm672_vm2, %v17559_v61, 0.0 }
0x255b   :  { %4926 = vmax.xlane.f32.xlu0 %v4925_v53 }
0x255f   :  { %4935 = vadd.xlane.f32.xlu0 %v4934_v51 }
0x2575   :  { %4946 = vrot.lane.b32.xlu0 %v18764_v56, %s18031_s26 }
0x25ab   :  { %v4652_v52 = vpop.xlane.xlu0 %4651 }
0x25ac   :  { %17560 = vrcp.f32 %v4652_v52 }
0x25af   :  { %v4649_v54 = vpop.xlane.xlu0 %4648 }
0x25b0   :  { %17562 = vrcp.f32 %v4649_v54 }
0x25b3   :  { %v4660_v55 = vpop.permute.xlu0 %4659 }
0x25b4   :  { %16461 = vmatprep.subr.mxu1 %v4660_v55 }
0x25b5   :  { %16462 = vmatpush3.msra.mxu1 %v4660_v55 }
0x25b6   :  { %16463 = vmatprep.subr.mxu1 %v4658_v47 }
0x25b7   :  { %16464 = vmatpush3.msra.mxu1 %v4658_v47 }
0x25b8   :  { %16468 = vmatprep.subr.mxu1 %v14841_v57 }
0x25b9   :  { %v17561_v59 = vpop.eup %17560 }
0x25ba   :  { %v4656_v46 = vmul.f32 %v17561_v59, %v17555_v32  ;;  %v14885_v59 = vld [vmem:[%s20153_s2 + $0x2] ss:$0 sm:$0xff] }
0x25bd   :  { %v17563_v45 = vpop.eup %17562 }
0x25be   :  { %v4655_v62 = vmul.f32 %v17563_v45, %v17557_v44 }
0x25c0   :  { %16465 = vmatprep.mubr.msk.f32.mxu1 %vm672_vm2, %v4655_v62 }
0x25c1   :  { %16466 = vmatmul.mubr.msk.f32.vlgmr.msra.gmra.mxu1 %vm672_vm2, %v4656_v46 }
0x25c2   :  { %16469 = vmatpush3.msra.mxu1 %v14841_v57 }
0x25e4   :  { %v4927_v56 = vpop.xlane.xlu0 %4926 }
0x25e5   :  { %v4929_v2 = vsub.f32 %v4921_v11, %v4927_v56  ;;  %v14887_v11 = vld [vmem:[%s20152_s1 + $0x40] sm:$0xff] }
0x25e6   :  { %16498 = vmatprep.subr.mxu0 %v14887_v11 }
0x25e7   :  { %v4932_v3 = vmul.f32 1.442695, %v4929_v2  ;;  %16499 = vmatpush3.msra.mxu0 %v14887_v11  ;;  %v14886_v2 = vld [vmem:[%s20154_s7 + $0x2] ss:$0 sm:$0xff] }
0x25e8   :  { %v4936_v37 = vpop.xlane.xlu0 %4935 }
0x25e9   :  { %17564 = vpow2.f32 %v4932_v3 }
0x25ea   :  { %17566 = vrcp.f32 %v4936_v37 }
0x25ec   :  { %v4947_v4 = vpop.permute.xlu0 %4946 }
0x25ed   :  { %16480 = vmatprep.subr.mxu1 %v4947_v4 }
0x25f6   :  { %v17565_v39 = vpop.eup %17564 }
0x25f7   :  { %v4937_v5 = vsel %vm672_vm2, %v17565_v39, 0.0  ;;  %v17567_v10 = vpop.eup %17566 }
0x25f8   :  { %4938 = vadd.xlane.f32.xlu1 %v4937_v5  ;;  %v4942_v16 = vmul.f32 %v17567_v10, %v17559_v61  ;;  %v14908_v5 = vld [vmem:[%s20155_s27 + $0x170] sm:$0xff]  ;;  %v14905_v10 = vld [vmem:[%s20155_s27 + $0x158] sm:$0xff] }
0x2609   :  { %4944 = vrot.lane.b32.xlu1 %v18766_v9, %s18031_s26 }
0x2681   :  { %v16467_v12 = vpop.f32.mrf.mxu1  ;;  %v4939_v13 = vpop.xlane.xlu1 %4938 }
0x2682   :  { %17568 = vrcp.f32 %v4939_v13  ;;  %v14903_v13 = vld [vmem:[%s20155_s27 + $0x148] sm:$0xff] }
0x2683   :  { %v4735_v14 = vpop.f32.mrf.mxu1 }
0x2684   :  { %16470 = vmatprep.mubr.msk.f32.mxu1 %vm580_vm1, %v4735_v14  ;;  %v14902_v14 = vld [vmem:[%s20155_s27 + $0x140] sm:$0xff] }
0x2685   :  { %16471 = vmatmul.mubr.msk.f32.vlgmr.msra.gmra.mxu1 %vm580_vm1, %v16467_v12  ;;  %v4945_v18 = vpop.permute.xlu1 %4944  ;;  %v14904_v12 = vld [vmem:[%s20155_s27 + $0x150] sm:$0xff] }
0x2686   :  { %16481 = vmatpush3.msra.mxu1 %v4947_v4  ;;  %16484 = vmatprep.mubr.msk.f32.mxu1 %vm672_vm2, %v4942_v16  ;;  %v14901_v16 = vld [vmem:[%s20155_s27 + $0x138] sm:$0xff] }
0x2687   :  { %16482 = vmatprep.subr.mxu1 %v4945_v18 }
0x2688   :  { %16483 = vmatpush3.msra.mxu1 %v4945_v18  ;;  %v14900_v18 = vld [vmem:[%s20155_s27 + $0x130] sm:$0xff] }
0x2689   :  { %16487 = vmatprep.subr.mxu1 %v14842_v20 }
0x268f   :  { %v17569_v9 = vpop.eup %17568 }
0x2690   :  { %v4943_v19 = vmul.f32 %v17569_v9, %v17565_v39  ;;  %v14909_v39 = vld [vmem:[%s20155_s27 + $0x178] sm:$0xff]  ;;  %v14899_v9 = vld [vmem:[%s20155_s27 + $0x128] sm:$0xff] }
0x2692   :  { %16485 = vmatmul.mubr.msk.f32.vlgmr.msra.gmra.mxu1 %vm672_vm2, %v4943_v19  ;;  %v14898_v19 = vld [vmem:[%s20155_s27 + $0x120] sm:$0xff] }
0x2693   :  { %16488 = vmatpush3.msra.mxu1 %v14842_v20  ;;  %v14897_v20 = vld [vmem:[%s20155_s27 + $0x118] sm:$0xff] }
0x2694   :  { %16503 = vmatprep.subr.mxu1 %v14909_v39 }
0x2745   :  { %v16472_v24 = vpop.f32.mrf.mxu1 }
0x2746   :  { %v4826_v27 = vadd.f32 %v16472_v24, %v4537_v7  ;;  %v14896_v7 = vld [vmem:[%s20155_s27 + $0x110] sm:$0xff]  ;;  %v14895_v24 = vld [vmem:[%s20155_s27 + $0x108] sm:$0xff] }
0x2747   :  { %v4816_v28 = vpop.f32.mrf.mxu1 }
0x2748   :  { %v4825_v1 = vadd.f32 %v4816_v28, %v4532_v60  ;;  %v14894_v60 = vld [vmem:[%s20155_s27 + $0x100] sm:$0xff] }
0x2752   :  { %v16486_v29 = vpop.f32.mrf.mxu1 }
0x2754   :  { %v5022_v30 = vpop.f32.mrf.mxu1 }
0x2755   :  { %16489 = vmatprep.mubr.msk.f32.mxu1 %vm580_vm1, %v5022_v30 }
0x2756   :  { %16490 = vmatmul.mubr.msk.f32.vlgmr.msra.gmra.mxu1 %vm580_vm1, %v16486_v29 }
0x2757   :  { %16504 = vmatpush3.msra.mxu1 %v14909_v39  ;;  %v14920_v39 = vld [vmem:[%s18195_s29 + $0x78] sm:$0xff] }
0x2758   :  { %16505 = vmatprep.subr.mxu1 %v14908_v5 }
0x2759   :  { %16506 = vmatpush3.msra.mxu1 %v14908_v5 }
0x275a   :  { %16507 = vmatprep.subr.mxu1 %v14907_v48 }
0x275b   :  { %16508 = vmatpush3.msra.mxu1 %v14907_v48 }
0x275c   :  { %16509 = vmatprep.subr.mxu1 %v14906_v63 }
0x275d   :  { %16510 = vmatpush3.msra.mxu1 %v14906_v63 }
0x275e   :  { %16511 = vmatprep.subr.mxu1 %v14905_v10 }
0x275f   :  { %16512 = vmatpush3.msra.mxu1 %v14905_v10 }
0x2760   :  { %16513 = vmatprep.subr.mxu1 %v14904_v12 }
0x2761   :  { %16514 = vmatpush3.msra.mxu1 %v14904_v12 }
0x2762   :  { %16515 = vmatprep.subr.mxu1 %v14903_v13 }
0x2763   :  { %16516 = vmatpush3.msra.mxu1 %v14903_v13 }
0x2764   :  { %16517 = vmatprep.subr.mxu1 %v14902_v14 }
0x2765   :  { %16518 = vmatpush3.msra.mxu1 %v14902_v14 }
0x2766   :  { %16519 = vmatprep.subr.mxu1 %v14901_v16 }
0x2767   :  { %16520 = vmatpush3.msra.mxu1 %v14901_v16  ;;  %v14911_v16 = vld [vmem:[%s18175_s19 + $0x3] ss:$0 sm:$0xff]  ;;  %s20161_s19 = sld [smem:[#allocation23_spill]] }
0x2768   :  { %16521 = vmatprep.subr.mxu1 %v14900_v18 }
0x2769   :  { %16522 = vmatpush3.msra.mxu1 %v14900_v18 }
0x276a   :  { %16523 = vmatprep.subr.mxu1 %v14899_v9 }
0x276b   :  { %16524 = vmatpush3.msra.mxu1 %v14899_v9 }
0x276c   :  { %16525 = vmatprep.subr.mxu1 %v14898_v19 }
0x276d   :  { %16526 = vmatpush3.msra.mxu1 %v14898_v19 }
0x276e   :  { %16527 = vmatprep.subr.mxu1 %v14897_v20 }
0x276f   :  { %16528 = vmatpush3.msra.mxu1 %v14897_v20 }
0x2770   :  { %16529 = vmatprep.subr.mxu1 %v14896_v7 }
0x2771   :  { %16530 = vmatpush3.msra.mxu1 %v14896_v7  ;;  %v14912_v7 = vld [vmem:[%s18180_s30 + $0x3] ss:$0 sm:$0xff]  ;;  %s20162_s30 = sld [smem:[#allocation25_spill]] }
0x2772   :  { %16531 = vmatprep.subr.mxu1 %v14895_v24 }
0x2773   :  { %16532 = vmatpush3.msra.mxu1 %v14895_v24 }
0x2774   :  { %16533 = vmatprep.subr.mxu1 %v14894_v60 }
0x2775   :  { %16534 = vmatpush3.msra.mxu1 %v14894_v60 }
0x2816   :  { %v16491_v33 = vpop.f32.mrf.mxu1 }
0x2817   :  { %v5113_v34 = vadd.f32 %v16491_v33, %v4826_v27  ;;  %v14891_v27 = vld [vmem:[%s20156_s20 + $0x2] ss:$0 sm:$0xff] }
0x2818   :  { %v5103_v23 = vpop.f32.mrf.mxu1 }
0x2819   :  { %v5119_v26 = vadd.f32 %v14884_v0, %v5113_v34  ;;  %v5112_v35 = vadd.f32 %v5103_v23, %v4825_v1 }
0x281b   :  { %v18886_v21 = vadd.f32 %v5119_v26, %v18710_v15  ;;  %v5118_v36 = vadd.f32 %v14884_v0, %v5112_v35 }
0x281d   :  { %v18889_v22 = vadd.f32 %v5118_v36, %v18713_v17  ;;  %v5127_v38 = vsel %vm277_vm0, %v18886_v21, 0.0 }
0x281e   :  { %5128 = vadd.xlane.f32.xlu0 %v5127_v38 }
0x281f   :  { %v5124_v40 = vsel %vm277_vm0, %v18889_v22, 0.0 }
0x2820   :  { %5125 = vadd.xlane.f32.xlu1 %v5124_v40 }
0x28a7   :  { %v5129_v41 = vpop.xlane.xlu0 %5128 }
0x28a8   :  { %v5131_v42 = vmul.f32 0.03125, %v5129_v41 }
0x28a9   :  { %v5126_v32 = vpop.xlane.xlu1 %5125 }
0x28aa   :  { %v5133_v15 = vsub.f32 %v18886_v21, %v5131_v42  ;;  %v5130_v43 = vmul.f32 0.03125, %v5126_v32 }
0x28ac   :  { %v5132_v17 = vsub.f32 %v18889_v22, %v5130_v43  ;;  %v5135_v44 = vmul.f32 %v5133_v15, %v5133_v15 }
0x28ae   :  { %v5139_v25 = vsel %vm277_vm0, %v5135_v44, 0.0  ;;  %v5134_v47 = vmul.f32 %v5132_v17, %v5132_v17 }
0x28af   :  { %5140 = vadd.xlane.f32.xlu1 %v5139_v25 }
0x28b0   :  { %v5136_v49 = vsel %vm277_vm0, %v5134_v47, 0.0 }
0x28b1   :  { %5137 = vadd.xlane.f32.xlu0 %v5136_v49  ;;  %v14910_v49 = vld [vmem:[#allocation10 + $0x2] ss:$0 sm:$0xff] }
0x2938   :  { %v5141_v53 = vpop.xlane.xlu1 %5140 }
0x2939   :  { %v5143_v61 = vmul.f32 0.03125, %v5141_v53 }
0x293a   :  { %v5138_v51 = vpop.xlane.xlu0 %5137 }
0x293b   :  { %v5145_v52 = vadd.f32 1e-12, %v5143_v61  ;;  %v5142_v54 = vmul.f32 0.03125, %v5138_v51 }
0x293d   :  { %17570 = vrsqrt.f32 %v5145_v52  ;;  %v5144_v55 = vadd.f32 1e-12, %v5142_v54 }
0x293f   :  { %17572 = vrsqrt.f32 %v5144_v55 }
0x294a   :  { %v17571_v57 = vpop.eup %17570 }
0x294b   :  { %v5149_v45 = vmul.f32 %v17571_v57, %v5133_v15 }
0x294c   :  { %v17573_v62 = vpop.eup %17572 }
0x294d   :  { %v5148_v46 = vmul.f32 %v17573_v62, %v5132_v17  ;;  %v5155_v56 = vmul.f32 %v14885_v59, %v5149_v45 }
0x294f   :  { %v5154_v3 = vmul.f32 %v14885_v59, %v5148_v46  ;;  %v5161_v4 = vadd.f32 %v14886_v2, %v5155_v56 }
0x2951   :  { %v5160_v37 = vadd.f32 %v14886_v2, %v5154_v3  ;;  %v14916_v2 = vld [vmem:[%s18185_s4 + $0x78] sm:$0xff]  ;;  %v14915_v3 = vld [vmem:[%s18185_s4 + $0x70] sm:$0xff] }
0x2952   :  { %16538 = vmatprep.subr.mxu0 %v14916_v2 }
0x2953   :  { %16500 = vmatprep.mubr.msk.f32.mxu0 %vm277_vm0, %v5160_v37  ;;  %v14914_v37 = vld [vmem:[%s18185_s4 + $0x68] sm:$0xff] }
0x2954   :  { %16501 = vmatmul.mubr.msk.f32.vlgmr.msra.gmra.mxu0 %vm277_vm0, %v5161_v4  ;;  %v14913_v4 = vld [vmem:[%s18185_s4 + $0x60] sm:$0xff]  ;;  %s20163_s4 = sld [smem:[#allocation22_spill]] }
0x2955   :  { %16539 = vmatpush3.msra.mxu0 %v14916_v2 }
0x2956   :  { %16540 = vmatprep.subr.mxu0 %v14915_v3 }
0x2957   :  { %16541 = vmatpush3.msra.mxu0 %v14915_v3 }
0x2958   :  { %16542 = vmatprep.subr.mxu0 %v14914_v37 }
0x2959   :  { %16543 = vmatpush3.msra.mxu0 %v14914_v37 }
0x295a   :  { %16544 = vmatprep.subr.mxu0 %v14913_v4 }
0x295b   :  { %16545 = vmatpush3.msra.mxu0 %v14913_v4 }
0x295c   :  { %16549 = vmatprep.subr.mxu0 %v14920_v39 }
0x2a14   :  { %v16502_v28 = vpop.f32.mrf.mxu0 }
0x2a15   :  { %v5250_v1 = vadd.f32 %v16502_v28, %v14891_v27  ;;  %v14919_v28 = vld [vmem:[%s18195_s29 + $0x70] sm:$0xff] }
0x2a16   :  { %v5244_v29 = vpop.f32.mrf.mxu0 }
0x2a17   :  { %v5254_v30 = vmul.f32 %v5250_v1, %v5250_v1  ;;  %v5245_v0 = vadd.f32 %v14891_v27, %v5244_v29  ;;  %v14917_v29 = vld [vmem:[%s18195_s29 + $0x60] sm:$0xff] }
0x2a19   :  { %v5256_v33 = vmul.f32 %v5254_v30, %v5250_v1  ;;  %v5253_v34 = vmul.f32 %v5245_v0, %v5245_v0  ;;  %v14924_v30 = vld [vmem:[%s18205_s3 + $0x78] sm:$0xff] }
0x2a1b   :  { %v5258_v23 = vmul.f32 0.044715, %v5256_v33  ;;  %v5255_v26 = vmul.f32 %v5253_v34, %v5245_v0  ;;  %v14922_v33 = vld [vmem:[%s18205_s3 + $0x68] sm:$0xff]  ;;  %v14921_v34 = vld [vmem:[%s18205_s3 + $0x60] sm:$0xff] }
0x2a1d   :  { %v5260_v35 = vadd.f32 %v5258_v23, %v5250_v1  ;;  %v5257_v36 = vmul.f32 0.044715, %v5255_v26  ;;  %v14929_v26 = vld [vmem:[%s18190_s8 + $0x3] ss:$0 sm:$0xff]  ;;  %s20159_s8 = sld [smem:[#allocation19_spill]] }
0x2a1f   :  { %v5262_v38 = vmul.f32 0.7978846, %v5260_v35  ;;  %v5259_v40 = vadd.f32 %v5257_v36, %v5245_v0 }
0x2a21   :  { %17574 = vtanh.f32 %v5262_v38  ;;  %v5261_v41 = vmul.f32 0.7978846, %v5259_v40  ;;  %v14932_v38 = vld [vmem:[%s18200_s14 + $0x3] ss:$0 sm:$0xff]  ;;  %s20160_s14 = sld [smem:[#allocation20_spill]] }
0x2a23   :  { %17576 = vtanh.f32 %v5261_v41 }
0x2a2e   :  { %v17575_v42 = vpop.eup %17574 }
0x2a2f   :  { %v5266_v32 = vadd.f32 1.0, %v17575_v42 }
0x2a30   :  { %v17577_v15 = vpop.eup %17576 }
0x2a31   :  { %v5265_v43 = vadd.f32 1.0, %v17577_v15  ;;  %v5268_v17 = vmul.f32 0.5, %v5266_v32  ;;  %v14935_v15 = vld [vmem:[%s20148_s9 + $0x3] ss:$0 sm:$0xff]  ;;  %s20173_s9 = sld [smem:[#allocation34_spill]] }
0x2a33   :  { %v5267_v44 = vmul.f32 0.5, %v5265_v43  ;;  %v5270_v47 = vmul.f32 %v5268_v17, %v5250_v1  ;;  %v14918_v1 = vld [vmem:[%s18195_s29 + $0x68] sm:$0xff]  ;;  %s20157_s29 = sld [smem:[#allocation17_spill]] }
0x2a35   :  { %v5269_v25 = vmul.f32 %v5267_v44, %v5245_v0  ;;  %v14923_v0 = vld [vmem:[%s18205_s3 + $0x70] sm:$0xff]  ;;  %s20158_s3 = sld [smem:[#allocation21_spill]] }
0x2a37   :  { %16535 = vmatprep.mubr.f32.mxu1 %v5269_v25 }
0x2a38   :  { %16536 = vmatmul.mubr.f32.vlgmr.msra.gmra.mxu1 %v5270_v47 }
0x2af8   :  { %v16537_v50 = vpop.f32.mrf.mxu1 }
0x2af9   :  { %v5365_v58 = vadd.f32 %v16537_v50, %v14910_v49 }
0x2afa   :  { %v5359_v6 = vpop.f32.mrf.mxu1 }
0x2afb   :  { %v18925_v11 = vadd.f32 %v5365_v58, %v18886_v21  ;;  %v5360_v53 = vadd.f32 %v14910_v49, %v5359_v6 }
0x2afd   :  { %v18928_v61 = vadd.f32 %v5360_v53, %v18889_v22  ;;  %v5375_v51 = vsel %vm277_vm0, %v18925_v11, 0.0 }
0x2afe   :  { %5376 = vadd.xlane.f32.xlu1 %v5375_v51 }
0x2aff   :  { %v5372_v52 = vsel %vm277_vm0, %v18928_v61, 0.0 }
0x2b00   :  { %5373 = vadd.xlane.f32.xlu0 %v5372_v52 }
0x2b87   :  { %v5377_v54 = vpop.xlane.xlu1 %5376 }
0x2b88   :  { %v5379_v55 = vmul.f32 0.03125, %v5377_v54 }
0x2b89   :  { %v5374_v57 = vpop.xlane.xlu0 %5373 }
0x2b8a   :  { %v5381_v21 = vsub.f32 %v18925_v11, %v5379_v55  ;;  %v5378_v59 = vmul.f32 0.03125, %v5374_v57 }
0x2b8c   :  { %v5380_v22 = vsub.f32 %v18928_v61, %v5378_v59  ;;  %v5383_v45 = vmul.f32 %v5381_v21, %v5381_v21 }
0x2b8e   :  { %v5387_v62 = vsel %vm277_vm0, %v5383_v45, 0.0  ;;  %v5382_v46 = vmul.f32 %v5380_v22, %v5380_v22 }
0x2b8f   :  { %5388 = vadd.xlane.f32.xlu1 %v5387_v62 }
0x2b90   :  { %v5384_v56 = vsel %vm277_vm0, %v5382_v46, 0.0 }
0x2b91   :  { %5385 = vadd.xlane.f32.xlu0 %v5384_v56 }
0x2c18   :  { %v5389_v5 = vpop.xlane.xlu1 %5388 }
0x2c19   :  { %v5391_v48 = vmul.f32 0.03125, %v5389_v5 }
0x2c1a   :  { %v5386_v63 = vpop.xlane.xlu0 %5385 }
0x2c1b   :  { %v5393_v10 = vadd.f32 1e-12, %v5391_v48  ;;  %v5390_v12 = vmul.f32 0.03125, %v5386_v63 }
0x2c1d   :  { %17578 = vrsqrt.f32 %v5393_v10  ;;  %v5392_v13 = vadd.f32 1e-12, %v5390_v12 }
0x2c1f   :  { %17580 = vrsqrt.f32 %v5392_v13 }
0x2c2a   :  { %v17579_v14 = vpop.eup %17578 }
0x2c2b   :  { %v18944_v18 = vmul.f32 %v17579_v14, %v5381_v21  ;;  %v14925_v14 = vld [vmem:[%s20150_s12 + $0x60] sm:$0xff] }
0x2c2c   :  { %v17581_v9 = vpop.eup %17580 }
0x2c2d   :  { %v18946_v19 = vmul.f32 %v17581_v9, %v5380_v22  ;;  %v5403_v20 = vmul.f32 %v14911_v16, %v18944_v18 }
0x2c2f   :  { %v5402_v24 = vmul.f32 %v14911_v16, %v18946_v19  ;;  %v5409_v27 = vadd.f32 %v14912_v7, %v5403_v20 }
0x2c31   :  { %v5408_v60 = vadd.f32 %v14912_v7, %v5402_v24 }
0x2c33   :  { %16546 = vmatprep.mubr.msk.f32.mxu0 %vm277_vm0, %v5408_v60 }
0x2c34   :  { %16547 = vmatmul.mubr.msk.f32.vlgmr.msra.gmra.mxu0 %vm277_vm0, %v5409_v27 }
0x2c35   :  { %16550 = vmatpush3.msra.mxu0 %v14920_v39  ;;  %16557 = vmatprep.mubr.msk.f32.mxu0 %vm277_vm0, %v5408_v60 }
0x2c36   :  { %16551 = vmatprep.subr.mxu0 %v14919_v28 }
0x2c37   :  { %16552 = vmatpush3.msra.mxu0 %v14919_v28 }
0x2c38   :  { %16553 = vmatprep.subr.mxu0 %v14918_v1 }
0x2c39   :  { %16554 = vmatpush3.msra.mxu0 %v14918_v1 }
0x2c3a   :  { %16555 = vmatprep.subr.mxu0 %v14917_v29 }
0x2c3b   :  { %16556 = vmatpush3.msra.mxu0 %v14917_v29 }
0x2c3c   :  { %16558 = vmatmul.mubr.msk.f32.vlgmr.msra.gmra.mxu0 %vm277_vm0, %v5409_v27  ;;  %16560 = vmatprep.subr.mxu0 %v14924_v30 }
0x2c3d   :  { %16561 = vmatpush3.msra.mxu0 %v14924_v30  ;;  %16568 = vmatprep.mubr.msk.f32.mxu0 %vm277_vm0, %v5408_v60 }
0x2c3e   :  { %16562 = vmatprep.subr.mxu0 %v14923_v0 }
0x2c3f   :  { %16563 = vmatpush3.msra.mxu0 %v14923_v0 }
0x2c40   :  { %16564 = vmatprep.subr.mxu0 %v14922_v33 }
0x2c41   :  { %16565 = vmatpush3.msra.mxu0 %v14922_v33 }
0x2c42   :  { %16566 = vmatprep.subr.mxu0 %v14921_v34 }
0x2c43   :  { %16567 = vmatpush3.msra.mxu0 %v14921_v34 }
0x2c44   :  { %16569 = vmatmul.mubr.msk.f32.vlgmr.msra.gmra.mxu0 %vm277_vm0, %v5409_v27 }
0x2cf4   :  { %v16548_v23 = vpop.f32.mrf.mxu0 }
0x2cf5   :  { %v18983_v17 = vadd.f32 %v16548_v23, %v14929_v26 }
0x2cf6   :  { %v5510_v35 = vpop.f32.mrf.mxu0 }
0x2cf7   :  { %v18965_v36 = vadd.f32 %v14929_v26, %v5510_v35 }
0x2cf9   :  { %16575 = vmatprep.mubr.msk.f32.mxu0 %vm580_vm1, %v18965_v36 }
0x2cfc   :  { %v16559_v40 = vpop.f32.mrf.mxu0 }
0x2cfd   :  { %v18970_v41 = vadd.f32 %v16559_v40, %v14932_v38 }
0x2cfe   :  { %v5589_v42 = vpop.f32.mrf.mxu0 }
0x2cff   :  { %v18972_v32 = vadd.f32 %v14932_v38, %v5589_v42  ;;  %16571 = vmatprep.subr.msk.mxu0 %vm580_vm1, %v18970_v41 }
0x2d00   :  { %16572 = vmatpush3.xpose.msk.msra.mxu0 %vm580_vm1, %v18970_v41 }
0x2d01   :  { %16573 = vmatprep.subr.msk.mxu0 %vm580_vm1, %v18972_v32 }
0x2d04   :  { %v16570_v43 = vpop.f32.mrf.mxu0  ;;  %16574 = vmatpush3.xpose.msk.msra.mxu0 %vm580_vm1, %v18972_v32 }
0x2d05   :  { %v18985_v44 = vadd.f32 %v16570_v43, %v14935_v15 }
0x2d06   :  { %v5668_v25 = vpop.f32.mrf.mxu0 }
0x2d07   :  { %v18987_v47 = vadd.f32 %v14935_v15, %v5668_v25  ;;  %16576 = vmatmul.mubr.msk.f32.vlgmr.msra.gmra.mxu0 %vm580_vm1, %v18983_v17  ;;  %16578 = vmatprep.subr.mxu1 %v18985_v44  ;;  %v14926_v25 = vld [vmem:[%s20150_s12 + $0x68] sm:$0xff] }
0x2d08   :  { %16579 = vmatpush3.msra.mxu1 %v18985_v44 }
0x2d09   :  { %16580 = vmatprep.subr.mxu1 %v18987_v47 }
0x2d0a   :  { %16581 = vmatpush3.msra.mxu1 %v18987_v47 }
0x2dc7   :  { %v16577_v49 = vpop.f32.mrf.mxu0 }
0x2dc8   :  { %v5765_v50 = vmul.f32 0.35355338, %v16577_v49 }
0x2dc9   :  { %v5755_v58 = vpop.f32.mrf.mxu0 }
0x2dca   :  { %v5767_v6 = vadd.f32 %v18847_v8, %v5765_v50  ;;  %v5764_v53 = vmul.f32 0.35355338, %v5755_v58 }
0x2dcc   :  { %v5766_v51 = vadd.f32 %v18851_v31, %v5764_v53  ;;  %v5771_v52 = vsel %vm672_vm2, %v5767_v6, -inf }
0x2dcd   :  { %5772 = vmax.xlane.f32.xlu1 %v5771_v52 }
0x2dce   :  { %v5768_v54 = vsel %vm672_vm2, %v5766_v51, -inf }
0x2dcf   :  { %5769 = vmax.xlane.f32.xlu0 %v5768_v54 }
0x2e56   :  { %v5773_v55 = vpop.xlane.xlu1 %5772 }
0x2e57   :  { %v5775_v57 = vsub.f32 %v5767_v6, %v5773_v55 }
0x2e58   :  { %v5770_v21 = vpop.xlane.xlu0 %5769 }
0x2e59   :  { %v5778_v59 = vmul.f32 1.442695, %v5775_v57  ;;  %v5774_v22 = vsub.f32 %v5766_v51, %v5770_v21 }
0x2e5b   :  { %17582 = vpow2.f32 %v5778_v59  ;;  %v5776_v45 = vmul.f32 1.442695, %v5774_v22 }
0x2e5d   :  { %17584 = vpow2.f32 %v5776_v45 }
0x2e68   :  { %v17583_v62 = vpop.eup %17582 }
0x2e69   :  { %v5783_v46 = vsel %vm672_vm2, %v17583_v62, 0.0 }
0x2e6a   :  { %v17585_v56 = vpop.eup %17584  ;;  %5784 = vadd.xlane.f32.xlu1 %v5783_v46 }
0x2e6b   :  { %v5780_v2 = vsel %vm672_vm2, %v17585_v56, 0.0 }
0x2e6c   :  { %5781 = vadd.xlane.f32.xlu0 %v5780_v2 }
0x2e7b   :  { %5875 = vrot.lane.b32.xlu1 %v18972_v32, %s18029_s24 }
0x2e7f   :  { %5871 = vrot.lane.b32.xlu1 %v18965_v36, %s18029_s24 }
0x2e82   :  { %5877 = vrot.lane.b32.xlu0 %v18970_v41, %s18029_s24 }
0x2e83   :  { %5873 = vrot.lane.b32.xlu1 %v18983_v17, %s18029_s24 }
0x2ef3   :  { %v5785_v3 = vpop.xlane.xlu1 %5784 }
0x2ef4   :  { %17586 = vrcp.f32 %v5785_v3 }
0x2ef5   :  { %v5782_v37 = vpop.xlane.xlu0 %5781 }
0x2ef6   :  { %17588 = vrcp.f32 %v5782_v37 }
0x2ef7   :  { %v5876_v39 = vpop.permute.xlu1 %5875 }
0x2ef9   :  { %v5878_v4 = vpop.permute.xlu0 %5877 }
0x2efa   :  { %16585 = vmatprep.subr.msk.mxu1 %vm580_vm1, %v5878_v4 }
0x2efb   :  { %v5872_v12 = vpop.permute.xlu1 %5871 }
0x2eff   :  { %v5874_v13 = vpop.permute.xlu1 %5873 }
0x2f01   :  { %v17587_v5 = vpop.eup %17586 }
0x2f02   :  { %v5789_v10 = vmul.f32 %v17587_v5, %v17583_v62 }
0x2f03   :  { %v17589_v48 = vpop.eup %17588 }
0x2f04   :  { %v5788_v63 = vmul.f32 %v17589_v48, %v17585_v56 }
0x2f06   :  { %16582 = vmatprep.mubr.msk.f32.mxu1 %vm672_vm2, %v5788_v63 }
0x2f07   :  { %16583 = vmatmul.mubr.msk.f32.vlgmr.msra.gmra.mxu1 %vm672_vm2, %v5789_v10 }
0x2f08   :  { %16586 = vmatpush3.xpose.msk.msra.mxu1 %vm580_vm1, %v5878_v4  ;;  %16589 = vmatprep.mubr.msk.f32.mxu1 %vm580_vm1, %v5872_v12 }
0x2f09   :  { %16587 = vmatprep.subr.msk.mxu1 %vm580_vm1, %v5876_v39 }
0x2f0c   :  { %16588 = vmatpush3.xpose.msk.msra.mxu1 %vm580_vm1, %v5876_v39 }
0x2f0d   :  { %16604 = vmatprep.subr.mxu1 %v14925_v14 }
0x2f0f   :  { %16590 = vmatmul.mubr.msk.f32.vlgmr.msra.gmra.mxu1 %vm580_vm1, %v5874_v13 }
0x2f10   :  { %16605 = vmatpush3.msra.mxu1 %v14925_v14 }
0x2fc7   :  { %v16584_v16 = vpop.f32.mrf.mxu1 }
0x2fc9   :  { %v5862_v9 = vpop.f32.mrf.mxu1 }
0x2fca   :  { %16606 = vmatprep.mubr.msk.f32.mxu1 %vm580_vm1, %v5862_v9 }
0x2fcb   :  { %16607 = vmatmul.mubr.msk.f32.vlgmr.msra.gmra.mxu1 %vm580_vm1, %v16584_v16 }
0x2fcf   :  { %v16591_v20 = vpop.f32.mrf.mxu1 }
0x2fd0   :  { %v5963_v7 = vmul.f32 0.35355338, %v16591_v20 }
0x2fd1   :  { %v5953_v24 = vpop.f32.mrf.mxu1 }
0x2fd2   :  { %v5965_v60 = vadd.f32 %v18847_v8, %v5963_v7  ;;  %v5962_v27 = vmul.f32 0.35355338, %v5953_v24 }
0x2fd4   :  { %v5964_v28 = vadd.f32 %v18851_v31, %v5962_v27  ;;  %v5969_v1 = vsel %vm672_vm2, %v5965_v60, -inf }
0x2fd5   :  { %5970 = vmax.xlane.f32.xlu1 %v5969_v1 }
0x2fd6   :  { %v5966_v29 = vsel %vm672_vm2, %v5964_v28, -inf }
0x2fd7   :  { %5967 = vmax.xlane.f32.xlu0 %v5966_v29 }
0x2fe6   :  { %5990 = vrot.lane.b32.xlu1 %v18987_v47, %s18029_s24 }
0x2fea   :  { %6245 = vrot.lane.b32.xlu1 %v18970_v41, %s18030_s0 }
0x2fee   :  { %6243 = vrot.lane.b32.xlu1 %v18972_v32, %s18030_s0 }
0x2ff2   :  { %6241 = vrot.lane.b32.xlu1 %v18983_v17, %s18030_s0 }
0x2ff6   :  { %6530 = vrot.lane.b32.xlu1 %v18972_v32, %s18031_s26 }
0x2ffa   :  { %6528 = vrot.lane.b32.xlu1 %v18983_v17, %s18031_s26 }
0x305e   :  { %v5971_v30 = vpop.xlane.xlu1 %5970 }
0x305f   :  { %v5973_v0 = vsub.f32 %v5965_v60, %v5971_v30 }
0x3060   :  { %v5968_v33 = vpop.xlane.xlu0 %5967 }
0x3061   :  { %v5976_v34 = vmul.f32 1.442695, %v5973_v0  ;;  %v5972_v23 = vsub.f32 %v5964_v28, %v5968_v33  ;;  %v19080_v0 = vld [vmem:[%s20149_s25 + $0x8] sm:$0xff] }
0x3062   :  { %v5991_v17 = vpop.permute.xlu1 %5990 }
0x3063   :  { %17590 = vpow2.f32 %v5976_v34  ;;  %v5974_v26 = vmul.f32 1.442695, %v5972_v23 }
0x3065   :  { %17592 = vpow2.f32 %v5974_v26 }
0x3070   :  { %v17591_v35 = vpop.eup %17590 }
0x3071   :  { %v5981_v38 = vsel %vm672_vm2, %v17591_v35, 0.0 }
0x3072   :  { %v17593_v40 = vpop.eup %17592  ;;  %5982 = vadd.xlane.f32.xlu0 %v5981_v38 }
0x3073   :  { %v5978_v42 = vsel %vm672_vm2, %v17593_v40, 0.0 }
0x3076   :  { %5979 = vadd.xlane.f32.xlu0 %v5978_v42  ;;  %v14927_v42 = vld [vmem:[%s20150_s12 + $0x70] sm:$0xff] }
0x308c   :  { %5992 = vrot.lane.b32.xlu0 %v18985_v44, %s18029_s24 }
0x3090   :  { %6239 = vrot.lane.b32.xlu0 %v18965_v36, %s18030_s0 }
0x3094   :  { %6532 = vrot.lane.b32.xlu0 %v18970_v41, %s18031_s26 }
0x3098   :  { %6526 = vrot.lane.b32.xlu0 %v18965_v36, %s18031_s26  ;;  %v6246_v36 = vpop.permute.xlu1 %6245 }
0x309c   :  { %v6244_v51 = vpop.permute.xlu1 %6243 }
0x30a0   :  { %v6242_v55 = vpop.permute.xlu1 %6241 }
0x30a4   :  { %v6531_v21 = vpop.permute.xlu1 %6530 }
0x30a8   :  { %v6529_v59 = vpop.permute.xlu1 %6528 }
0x30fb   :  { %v5983_v32 = vpop.xlane.xlu0 %5982 }
0x30fc   :  { %17594 = vrcp.f32 %v5983_v32 }
0x30ff   :  { %v5980_v15 = vpop.xlane.xlu0 %5979 }
0x3100   :  { %17596 = vrcp.f32 %v5980_v15 }
0x3103   :  { %v5993_v43 = vpop.permute.xlu0 %5992 }
0x3104   :  { %16592 = vmatprep.subr.mxu0 %v5993_v43 }
0x3105   :  { %16593 = vmatpush3.msra.mxu0 %v5993_v43 }
0x3106   :  { %16594 = vmatprep.subr.mxu0 %v5991_v17 }
0x3107   :  { %16595 = vmatpush3.msra.mxu0 %v5991_v17  ;;  %v6240_v41 = vpop.permute.xlu0 %6239 }
0x3108   :  { %16599 = vmatprep.subr.mxu0 %v14926_v25 }
0x3109   :  { %v17595_v49 = vpop.eup %17594 }
0x310a   :  { %v5987_v6 = vmul.f32 %v17595_v49, %v17591_v35 }
0x310b   :  { %v6533_v54 = vpop.permute.xlu0 %6532 }
0x310d   :  { %v17597_v50 = vpop.eup %17596 }
0x310e   :  { %v5986_v58 = vmul.f32 %v17597_v50, %v17593_v40 }
0x310f   :  { %v6527_v57 = vpop.permute.xlu0 %6526 }
0x3110   :  { %16596 = vmatprep.mubr.msk.f32.mxu0 %vm672_vm2, %v5986_v58 }
0x3111   :  { %16597 = vmatmul.mubr.msk.f32.vlgmr.msra.gmra.mxu0 %vm672_vm2, %v5987_v6 }
0x3112   :  { %16600 = vmatpush3.msra.mxu0 %v14926_v25 }
0x3113   :  { %16609 = vmatprep.subr.msk.mxu0 %vm580_vm1, %v6246_v36 }
0x31d1   :  { %v16598_v53 = vpop.f32.mrf.mxu0 }
0x31d3   :  { %v6068_v52 = vpop.f32.mrf.mxu0 }
0x31d4   :  { %16601 = vmatprep.mubr.msk.f32.mxu0 %vm580_vm1, %v6068_v52 }
0x31d5   :  { %16602 = vmatmul.mubr.msk.f32.vlgmr.msra.gmra.mxu0 %vm580_vm1, %v16598_v53 }
0x31d6   :  { %16610 = vmatpush3.xpose.msk.msra.mxu0 %vm580_vm1, %v6246_v36  ;;  %16613 = vmatprep.mubr.msk.f32.mxu0 %vm580_vm1, %v6240_v41  ;;  %v16608_v41 = vpop.f32.mrf.mxu1 }
0x31d7   :  { %16611 = vmatprep.subr.msk.mxu0 %vm580_vm1, %v6244_v51 }
0x31d8   :  { %v6230_v53 = vpop.f32.mrf.mxu1 }
0x31da   :  { %16612 = vmatpush3.xpose.msk.msra.mxu0 %vm580_vm1, %v6244_v51 }
0x31db   :  { %16628 = vmatprep.subr.msk.mxu0 %vm580_vm1, %v6533_v54 }
0x31dd   :  { %16614 = vmatmul.mubr.msk.f32.vlgmr.msra.gmra.mxu0 %vm580_vm1, %v6242_v55 }
0x31de   :  { %16629 = vmatpush3.xpose.msk.msra.mxu0 %vm580_vm1, %v6533_v54  ;;  %16632 = vmatprep.mubr.msk.f32.mxu0 %vm580_vm1, %v6527_v57 }
0x31df   :  { %16630 = vmatprep.subr.msk.mxu0 %vm580_vm1, %v6531_v21 }
0x31e2   :  { %16631 = vmatpush3.xpose.msk.msra.mxu0 %vm580_vm1, %v6531_v21 }
0x31e5   :  { %16633 = vmatmul.mubr.msk.f32.vlgmr.msra.gmra.mxu0 %vm580_vm1, %v6529_v59 }
0x3295   :  { %v19063_v22 = vpop.f32.mrf.mxu0 }
0x3297   :  { %v19065_v45 = vpop.f32.mrf.mxu0 }
0x329d   :  { %v16615_v62 = vpop.f32.mrf.mxu0 }
0x329e   :  { %v6331_v46 = vmul.f32 0.35355338, %v16615_v62  ;;  %v14928_v62 = vld [vmem:[%s20150_s12 + $0x78] sm:$0xff]  ;;  %s20174_s12 = sld [smem:[#allocation35_spill]] }
0x329f   :  { %v6321_v56 = vpop.f32.mrf.mxu0 }
0x32a0   :  { %v6333_v2 = vadd.f32 %v18847_v8, %v6331_v46  ;;  %v6330_v3 = vmul.f32 0.35355338, %v6321_v56  ;;  %v6236_v46 = vadd.f32 %v16608_v41, %v19063_v22  ;;  %v14993_v41 = vld [vmem:[%s20155_s27 + $0x1e8] sm:$0xff] }
0x32a2   :  { %v6332_v37 = vadd.f32 %v18851_v31, %v6330_v3  ;;  %v6337_v4 = vsel %vm672_vm2, %v6333_v2, -inf }
0x32a3   :  { %6338 = vmax.xlane.f32.xlu1 %v6337_v4 }
0x32a4   :  { %v6334_v39 = vsel %vm672_vm2, %v6332_v37, -inf }
0x32a5   :  { %6335 = vmax.xlane.f32.xlu0 %v6334_v39  ;;  %v16634_v5 = vpop.f32.mrf.mxu0 }
0x32a6   :  { %v6618_v30 = vmul.f32 0.35355338, %v16634_v5 }
0x32a7   :  { %v6608_v48 = vpop.f32.mrf.mxu0 }
0x32a8   :  { %v6617_v63 = vmul.f32 0.35355338, %v6608_v48  ;;  %v6620_v33 = vadd.f32 %v19080_v0, %v6618_v30  ;;  %v14970_v48 = vld [vmem:[%s20151_s28 + $0x3] ss:$0 sm:$0xff]  ;;  %s20175_s28 = sld [smem:[#allocation37_spill]] }
0x32aa   :  { %v6619_v10 = vadd.f32 %v18851_v31, %v6617_v63  ;;  %v6624_v34 = vsel %vm672_vm2, %v6620_v33, -inf }
0x32ac   :  { %v6621_v12 = vsel %vm672_vm2, %v6619_v10, -inf }
0x32b4   :  { %6356 = vrot.lane.b32.xlu1 %v18987_v47, %s18030_s0 }
0x32d8   :  { %6622 = vmax.xlane.f32.xlu1 %v6621_v12 }
0x332c   :  { %v6339_v8 = vpop.xlane.xlu1 %6338 }
0x332d   :  { %v6341_v13 = vsub.f32 %v6333_v2, %v6339_v8  ;;  %v6231_v2 = vadd.f32 %v6230_v53, %v19065_v45 }
0x332e   :  { %v6336_v14 = vpop.xlane.xlu0 %6335 }
0x332f   :  { %v6344_v16 = vmul.f32 1.442695, %v6341_v13  ;;  %v6340_v9 = vsub.f32 %v6332_v37, %v6336_v14  ;;  %v19107_v14 = vld [vmem:[%s20157_s29] sm:$0xff] }
0x3330   :  { %v6357_v31 = vpop.permute.xlu1 %6356 }
0x3331   :  { %17598 = vpow2.f32 %v6344_v16  ;;  %v6342_v20 = vmul.f32 1.442695, %v6340_v9 }
0x3333   :  { %17600 = vpow2.f32 %v6342_v20  ;;  %v19115_v20 = vld [vmem:[%s20157_s29 + $0x8] sm:$0xff] }
0x333e   :  { %v17599_v7 = vpop.eup %17598 }
0x333f   :  { %v6349_v24 = vsel %vm672_vm2, %v17599_v7, 0.0 }
0x3340   :  { %v17601_v60 = vpop.eup %17600  ;;  %6350 = vadd.xlane.f32.xlu0 %v6349_v24  ;;  %v7073_v24 = vsel %vm277_vm0, %v19107_v14, 0.0 }
0x3341   :  { %v6346_v27 = vsel %vm672_vm2, %v17601_v60, 0.0 }
0x3344   :  { %6347 = vadd.xlane.f32.xlu0 %v6346_v27 }
0x335a   :  { %6358 = vrot.lane.b32.xlu0 %v18985_v44, %s18030_s0 }
0x3361   :  { %v6623_v28 = vpop.xlane.xlu1 %6622 }
0x3362   :  { %v6627_v1 = vsub.f32 %v6619_v10, %v6623_v28 }
0x3364   :  { %v6629_v29 = vmul.f32 1.442695, %v6627_v1 }
0x3366   :  { %17602 = vpow2.f32 %v6629_v29 }
0x3373   :  { %v17603_v23 = vpop.eup %17602 }
0x3374   :  { %v6633_v26 = vsel %vm672_vm2, %v17603_v23, 0.0 }
0x3379   :  { %6625 = vmax.xlane.f32.xlu0 %v6624_v34 }
0x337d   :  { %6634 = vadd.xlane.f32.xlu0 %v6633_v26 }
0x3393   :  { %6645 = vrot.lane.b32.xlu0 %v18985_v44, %s18031_s26 }
0x33c9   :  { %v6351_v35 = vpop.xlane.xlu0 %6350 }
0x33ca   :  { %17604 = vrcp.f32 %v6351_v35 }
0x33cd   :  { %v6348_v38 = vpop.xlane.xlu0 %6347 }
0x33ce   :  { %17606 = vrcp.f32 %v6348_v38 }
0x33d1   :  { %v6359_v40 = vpop.permute.xlu0 %6358 }
0x33d2   :  { %16616 = vmatprep.subr.mxu1 %v6359_v40 }
0x33d3   :  { %16617 = vmatpush3.msra.mxu1 %v6359_v40 }
0x33d4   :  { %16618 = vmatprep.subr.mxu1 %v6357_v31 }
0x33d5   :  { %16619 = vmatpush3.msra.mxu1 %v6357_v31 }
0x33d6   :  { %16623 = vmatprep.subr.mxu1 %v14927_v42 }
0x33d7   :  { %v17605_v32 = vpop.eup %17604 }
0x33d8   :  { %v6355_v17 = vmul.f32 %v17605_v32, %v17599_v7 }
0x33db   :  { %v17607_v15 = vpop.eup %17606 }
0x33dc   :  { %v6354_v43 = vmul.f32 %v17607_v15, %v17601_v60 }
0x33de   :  { %16620 = vmatprep.mubr.msk.f32.mxu1 %vm672_vm2, %v6354_v43 }
0x33df   :  { %16621 = vmatmul.mubr.msk.f32.vlgmr.msra.gmra.mxu1 %vm672_vm2, %v6355_v17 }
0x33e0   :  { %16624 = vmatpush3.msra.mxu1 %v14927_v42 }
0x3402   :  { %v6626_v44 = vpop.xlane.xlu0 %6625 }
0x3403   :  { %v6628_v25 = vsub.f32 %v6620_v33, %v6626_v44  ;;  %v14976_v44 = vld [vmem:[%s20152_s1 + $0x78] sm:$0xff] }
0x3404   :  { %16647 = vmatprep.subr.mxu0 %v14976_v44 }
0x3405   :  { %v6631_v49 = vmul.f32 1.442695, %v6628_v25  ;;  %v14975_v25 = vld [vmem:[%s20152_s1 + $0x70] sm:$0xff]  ;;  %16648 = vmatpush3.msra.mxu0 %v14976_v44 }
0x3406   :  { %v6635_v50 = vpop.xlane.xlu0 %6634  ;;  %16649 = vmatprep.subr.mxu0 %v14975_v25  ;;  %v14986_v44 = vld [vmem:[%s20155_s27 + $0x1b0] sm:$0xff] }
0x3407   :  { %17608 = vpow2.f32 %v6631_v49  ;;  %v14974_v49 = vld [vmem:[%s20152_s1 + $0x68] sm:$0xff]  ;;  %16650 = vmatpush3.msra.mxu0 %v14975_v25 }
0x3408   :  { %17610 = vrcp.f32 %v6635_v50  ;;  %v14973_v50 = vld [vmem:[%s20152_s1 + $0x60] sm:$0xff]  ;;  %16651 = vmatprep.subr.mxu0 %v14974_v49  ;;  %v14985_v25 = vld [vmem:[%s20155_s27 + $0x1a8] sm:$0xff]  ;;  %s20176_s1 = sld [smem:[#allocation36_spill]] }
0x3409   :  { %16652 = vmatpush3.msra.mxu0 %v14974_v49  ;;  %v14984_v49 = vld [vmem:[%s20155_s27 + $0x1a0] sm:$0xff] }
0x340a   :  { %v6646_v58 = vpop.permute.xlu0 %6645  ;;  %16653 = vmatprep.subr.mxu0 %v14973_v50 }
0x340b   :  { %16635 = vmatprep.subr.mxu1 %v6646_v58  ;;  %16654 = vmatpush3.msra.mxu0 %v14973_v50  ;;  %v14983_v50 = vld [vmem:[%s20155_s27 + $0x198] sm:$0xff] }
0x3414   :  { %v17609_v6 = vpop.eup %17608 }
0x3415   :  { %v6636_v36 = vsel %vm672_vm2, %v17609_v6, 0.0  ;;  %v17611_v51 = vpop.eup %17610 }
0x3416   :  { %6637 = vadd.xlane.f32.xlu1 %v6636_v36  ;;  %v6641_v57 = vmul.f32 %v17611_v51, %v17603_v23  ;;  %v14994_v36 = vld [vmem:[%s20155_s27 + $0x1f0] sm:$0xff] }
0x3427   :  { %6643 = vrot.lane.b32.xlu1 %v18987_v47, %s18031_s26 }
0x349f   :  { %v16622_v52 = vpop.f32.mrf.mxu1  ;;  %v6638_v54 = vpop.xlane.xlu1 %6637 }
0x34a0   :  { %17612 = vrcp.f32 %v6638_v54 }
0x34a1   :  { %v6434_v55 = vpop.f32.mrf.mxu1 }
0x34a2   :  { %16625 = vmatprep.mubr.msk.f32.mxu1 %vm580_vm1, %v6434_v55 }
0x34a3   :  { %16626 = vmatmul.mubr.msk.f32.vlgmr.msra.gmra.mxu1 %vm580_vm1, %v16622_v52  ;;  %v6644_v21 = vpop.permute.xlu1 %6643 }
0x34a4   :  { %16636 = vmatpush3.msra.mxu1 %v6646_v58  ;;  %16639 = vmatprep.mubr.msk.f32.mxu1 %vm672_vm2, %v6641_v57  ;;  %v7114_v58 = vld [vmem:[%s20158_s3 + $0x18] sm:$0xff] }
0x34a5   :  { %16637 = vmatprep.subr.mxu1 %v6644_v21  ;;  %16693 = vmatprep.subr.mxu0 %v7114_v58 }
0x34a6   :  { %16638 = vmatpush3.msra.mxu1 %v6644_v21 }
0x34a7   :  { %16642 = vmatprep.subr.mxu1 %v14928_v62 }
0x34ad   :  { %v17613_v47 = vpop.eup %17612 }
0x34ae   :  { %v6642_v59 = vmul.f32 %v17613_v47, %v17609_v6  ;;  %v14995_v6 = vld [vmem:[%s20155_s27 + $0x1f8] sm:$0xff] }
0x34b0   :  { %16640 = vmatmul.mubr.msk.f32.vlgmr.msra.gmra.mxu1 %vm672_vm2, %v6642_v59 }
0x34b1   :  { %16643 = vmatpush3.msra.mxu1 %v14928_v62 }
0x34b2   :  { %16658 = vmatprep.subr.mxu1 %v14995_v6 }
0x3563   :  { %v16627_v56 = vpop.f32.mrf.mxu1 }
0x3564   :  { %v6525_v3 = vadd.f32 %v16627_v56, %v6236_v46 }
0x3565   :  { %v6515_v37 = vpop.f32.mrf.mxu1 }
0x3566   :  { %v6524_v4 = vadd.f32 %v6515_v37, %v6231_v2 }
0x3570   :  { %v16641_v39 = vpop.f32.mrf.mxu1 }
0x3572   :  { %v6721_v5 = vpop.f32.mrf.mxu1 }
0x3573   :  { %16644 = vmatprep.mubr.msk.f32.mxu1 %vm580_vm1, %v6721_v5 }
0x3574   :  { %16645 = vmatmul.mubr.msk.f32.vlgmr.msra.gmra.mxu1 %vm580_vm1, %v16641_v39 }
0x3575   :  { %16659 = vmatpush3.msra.mxu1 %v14995_v6  ;;  %v14981_v6 = vld [vmem:[%s20155_s27 + $0x188] sm:$0xff] }
0x3576   :  { %16660 = vmatprep.subr.mxu1 %v14994_v36 }
0x3577   :  { %16661 = vmatpush3.msra.mxu1 %v14994_v36  ;;  %v14980_v36 = vld [vmem:[%s20155_s27 + $0x180] sm:$0xff] }
0x3578   :  { %16662 = vmatprep.subr.mxu1 %v14993_v41 }
0x3579   :  { %16663 = vmatpush3.msra.mxu1 %v14993_v41  ;;  %v14977_v41 = vld [vmem:[%s20156_s20 + $0x3] ss:$0 sm:$0xff] }
0x3634   :  { %v16646_v63 = vpop.f32.mrf.mxu1 }
0x3635   :  { %v6812_v10 = vadd.f32 %v16646_v63, %v6525_v3  ;;  %v14971_v3 = vld [vmem:[%s20153_s2 + $0x3] ss:$0 sm:$0xff] }
0x3636   :  { %v6802_v12 = vpop.f32.mrf.mxu1 }
0x3637   :  { %v6818_v8 = vadd.f32 %v14970_v48, %v6812_v10  ;;  %v6811_v22 = vadd.f32 %v6802_v12, %v6524_v4  ;;  %v14997_v12 = vld [vmem:[%s20159_s8] ss:$0 sm:$0xff] }
0x3639   :  { %v19104_v13 = vadd.f32 %v6818_v8, %v18925_v11  ;;  %v6817_v45 = vadd.f32 %v14970_v48, %v6811_v22  ;;  %v7076_v11 = vsel %vm277_vm0, %v19115_v20, 0.0  ;;  %v14972_v48 = vld [vmem:[%s20154_s7 + $0x3] ss:$0 sm:$0xff] }
0x363b   :  { %v19110_v16 = vadd.f32 %v6817_v45, %v18928_v61  ;;  %v6826_v9 = vsel %vm277_vm0, %v19104_v13, 0.0 }
0x363c   :  { %6827 = vadd.xlane.f32.xlu0 %v6826_v9 }
0x363d   :  { %v6823_v7 = vsel %vm277_vm0, %v19110_v16, 0.0 }
0x363e   :  { %6824 = vadd.xlane.f32.xlu1 %v6823_v7  ;;  %v14998_v7 = vld [vmem:[%s20160_s14] ss:$0 sm:$0xff] }
0x3640   :  { %7074 = vadd.xlane.f32.xlu0 %v7073_v24 }
0x3642   :  { %7077 = vadd.xlane.f32.xlu1 %v7076_v11  ;;  %v7113_v11 = vld [vmem:[%s20158_s3 + $0x10] sm:$0xff] }
0x36c5   :  { %v6828_v61 = vpop.xlane.xlu0 %6827 }
0x36c6   :  { %v6830_v60 = vmul.f32 0.03125, %v6828_v61 }
0x36c7   :  { %v6825_v27 = vpop.xlane.xlu1 %6824 }
0x36c8   :  { %v6832_v31 = vsub.f32 %v19104_v13, %v6830_v60  ;;  %v6829_v28 = vmul.f32 0.03125, %v6825_v27  ;;  %v7112_v60 = vld [vmem:[%s20158_s3 + $0x8] sm:$0xff] }
0x36c9   :  { %v7075_v1 = vpop.xlane.xlu0 %7074 }
0x36ca   :  { %v6831_v29 = vsub.f32 %v19110_v16, %v6829_v28  ;;  %v7079_v30 = vmul.f32 0.03125, %v7075_v1  ;;  %v6834_v33 = vmul.f32 %v6832_v31, %v6832_v31  ;;  %v7111_v28 = vld [vmem:[%s20158_s3] sm:$0xff]  ;;  %v7119_v1 = vld [vmem:[%s20161_s19 + $0x18] sm:$0xff] }
0x36cb   :  { %v7078_v34 = vpop.xlane.xlu1 %7077 }
0x36cc   :  { %v19126_v23 = vsub.f32 %v19107_v14, %v7079_v30  ;;  %v7080_v26 = vmul.f32 0.03125, %v7078_v34  ;;  %v6838_v35 = vsel %vm277_vm0, %v6834_v33, 0.0  ;;  %v6833_v38 = vmul.f32 %v6831_v29, %v6831_v29  ;;  %v7118_v30 = vld [vmem:[%s20161_s19 + $0x10] sm:$0xff]  ;;  %v7117_v33 = vld [vmem:[%s20161_s19 + $0x8] sm:$0xff]  ;;  %v7116_v34 = vld [vmem:[%s20161_s19] sm:$0xff] }
0x36cd   :  { %6839 = vadd.xlane.f32.xlu1 %v6838_v35  ;;  %v7122_v35 = vld [vmem:[%s20162_s30 + $0x8] sm:$0xff] }
0x36ce   :  { %v19130_v40 = vsub.f32 %v19115_v20, %v7080_v26  ;;  %v6835_v42 = vsel %vm277_vm0, %v6833_v38, 0.0  ;;  %v7083_v32 = vmul.f32 %v19126_v23, %v19126_v23  ;;  %v7123_v26 = vld [vmem:[%s20162_s30 + $0x10] sm:$0xff]  ;;  %v7121_v38 = vld [vmem:[%s20162_s30] sm:$0xff] }
0x36cf   :  { %6836 = vadd.xlane.f32.xlu0 %v6835_v42  ;;  %v14991_v42 = vld [vmem:[%s20155_s27 + $0x1d8] sm:$0xff] }
0x36d0   :  { %v7085_v15 = vsel %vm277_vm0, %v7083_v32, 0.0  ;;  %v7084_v43 = vmul.f32 %v19130_v40, %v19130_v40  ;;  %v14990_v32 = vld [vmem:[%s20155_s27 + $0x1d0] sm:$0xff] }
0x36d2   :  { %v7088_v17 = vsel %vm277_vm0, %v7084_v43, 0.0  ;;  %v14988_v43 = vld [vmem:[%s20155_s27 + $0x1c0] sm:$0xff] }
0x36d3   :  { %7086 = vadd.xlane.f32.xlu0 %v7085_v15  ;;  %7089 = vadd.xlane.f32.xlu1 %v7088_v17  ;;  %v14989_v15 = vld [vmem:[%s20155_s27 + $0x1c8] sm:$0xff]  ;;  %v14987_v17 = vld [vmem:[%s20155_s27 + $0x1b8] sm:$0xff] }
0x3756   :  { %v6840_v53 = vpop.xlane.xlu1 %6839 }
0x3757   :  { %v6842_v51 = vmul.f32 0.03125, %v6840_v53 }
0x3758   :  { %v6837_v52 = vpop.xlane.xlu0 %6836 }
0x3759   :  { %v6844_v54 = vadd.f32 1e-12, %v6842_v51  ;;  %v6841_v55 = vmul.f32 0.03125, %v6837_v52 }
0x375b   :  { %17614 = vrsqrt.f32 %v6844_v54  ;;  %v6843_v57 = vadd.f32 1e-12, %v6841_v55 }
0x375c   :  { %v7087_v21 = vpop.xlane.xlu0 %7086  ;;  %v7090_v47 = vpop.xlane.xlu1 %7089 }
0x375d   :  { %17616 = vrsqrt.f32 %v6843_v57  ;;  %v7091_v59 = vmul.f32 0.03125, %v7087_v21  ;;  %v7092_v62 = vmul.f32 0.03125, %v7090_v47 }
0x375f   :  { %v7093_v46 = vadd.f32 1e-12, %v7091_v59  ;;  %v7094_v56 = vadd.f32 1e-12, %v7092_v62 }
0x3761   :  { %17618 = vrsqrt.f32 %v7093_v46 }
0x3762   :  { %17620 = vrsqrt.f32 %v7094_v56 }
0x3768   :  { %v17615_v2 = vpop.eup %17614 }
0x3769   :  { %v6848_v37 = vmul.f32 %v17615_v2, %v6832_v31  ;;  %v14999_v2 = vld [vmem:[%s20163_s4] ss:$0 sm:$0xff] }
0x376a   :  { %v17617_v4 = vpop.eup %17616 }
0x376b   :  { %v6847_v39 = vmul.f32 %v17617_v4, %v6831_v29  ;;  %v6854_v5 = vmul.f32 %v14971_v3, %v6848_v37 }
0x376d   :  { %v6853_v63 = vmul.f32 %v14971_v3, %v6847_v39  ;;  %v6860_v9 = vadd.f32 %v14972_v48, %v6854_v5 }
0x376e   :  { %v17619_v10 = vpop.eup %17618 }
0x376f   :  { %v17621_v8 = vpop.eup %17620  ;;  %v6859_v22 = vadd.f32 %v14972_v48, %v6853_v63  ;;  %v7097_v45 = vmul.f32 %v17619_v10, %v19126_v23  ;;  %v7124_v23 = vld [vmem:[%s20162_s30 + $0x18] sm:$0xff]  ;;  %v15002_v48 = vld [vmem:[%s20164_s10] ss:$0 sm:$0xff] }
0x3770   :  { %v7098_v24 = vmul.f32 %v17621_v8, %v19130_v40  ;;  %v14992_v40 = vld [vmem:[%s20155_s27 + $0x1e0] sm:$0xff] }
0x3771   :  { %16655 = vmatprep.mubr.msk.f32.mxu0 %vm277_vm0, %v6859_v22  ;;  %v7103_v61 = vmul.f32 %v14997_v12, %v7097_v45  ;;  %16664 = vmatprep.subr.mxu1 %v14992_v40  ;;  %v15005_v22 = vld [vmem:[%s20165_s11] ss:$0 sm:$0xff] }
0x3772   :  { %16656 = vmatmul.mubr.msk.f32.vlgmr.msra.gmra.mxu0 %vm277_vm0, %v6860_v9  ;;  %v7104_v31 = vmul.f32 %v14997_v12, %v7098_v24  ;;  %16665 = vmatpush3.msra.mxu1 %v14992_v40 }
0x3773   :  { %16694 = vmatpush3.msra.mxu0 %v7114_v58  ;;  %v7109_v27 = vadd.f32 %v14998_v7, %v7103_v61  ;;  %16666 = vmatprep.subr.mxu1 %v14991_v42  ;;  %v14982_v58 = vld [vmem:[%s20155_s27 + $0x190] sm:$0xff] }
0x3774   :  { %16695 = vmatprep.subr.mxu0 %v7113_v11  ;;  %v7110_v29 = vadd.f32 %v14998_v7, %v7104_v31  ;;  %16667 = vmatpush3.msra.mxu1 %v14991_v42 }
0x3775   :  { %16696 = vmatpush3.msra.mxu0 %v7113_v11  ;;  %16701 = vmatprep.mubr.msk.f32.mxu0 %vm277_vm0, %v7109_v27 }
0x3776   :  { %16697 = vmatprep.subr.mxu0 %v7112_v60  ;;  %16668 = vmatprep.subr.mxu1 %v14990_v32 }
0x3777   :  { %16698 = vmatpush3.msra.mxu0 %v7112_v60  ;;  %16669 = vmatpush3.msra.mxu1 %v14990_v32 }
0x3778   :  { %16699 = vmatprep.subr.mxu0 %v7111_v28  ;;  %16670 = vmatprep.subr.mxu1 %v14989_v15 }
0x3779   :  { %16700 = vmatpush3.msra.mxu0 %v7111_v28  ;;  %16671 = vmatpush3.msra.mxu1 %v14989_v15 }
0x377a   :  { %16702 = vmatmul.mubr.msk.f32.vlgmr.msra.gmra.mxu0 %vm277_vm0, %v7110_v29  ;;  %16704 = vmatprep.subr.mxu0 %v7119_v1 }
0x377b   :  { %16705 = vmatpush3.msra.mxu0 %v7119_v1  ;;  %16712 = vmatprep.mubr.msk.f32.mxu0 %vm277_vm0, %v7109_v27 }
0x377c   :  { %16706 = vmatprep.subr.mxu0 %v7118_v30  ;;  %16672 = vmatprep.subr.mxu1 %v14988_v43 }
0x377d   :  { %16707 = vmatpush3.msra.mxu0 %v7118_v30  ;;  %16673 = vmatpush3.msra.mxu1 %v14988_v43 }
0x377e   :  { %16708 = vmatprep.subr.mxu0 %v7117_v33  ;;  %16674 = vmatprep.subr.mxu1 %v14987_v17 }
0x377f   :  { %16709 = vmatpush3.msra.mxu0 %v7117_v33  ;;  %16675 = vmatpush3.msra.mxu1 %v14987_v17 }
0x3780   :  { %16710 = vmatprep.subr.mxu0 %v7116_v34  ;;  %16676 = vmatprep.subr.mxu1 %v14986_v44 }
0x3781   :  { %16711 = vmatpush3.msra.mxu0 %v7116_v34  ;;  %16677 = vmatpush3.msra.mxu1 %v14986_v44 }
0x3782   :  { %16713 = vmatmul.mubr.msk.f32.vlgmr.msra.gmra.mxu0 %vm277_vm0, %v7110_v29  ;;  %16715 = vmatprep.subr.mxu0 %v7124_v23 }
0x3783   :  { %16716 = vmatpush3.msra.mxu0 %v7124_v23  ;;  %16723 = vmatprep.mubr.msk.f32.mxu0 %vm277_vm0, %v7109_v27 }
0x3784   :  { %16717 = vmatprep.subr.mxu0 %v7123_v26  ;;  %16678 = vmatprep.subr.mxu1 %v14985_v25 }
0x3785   :  { %16718 = vmatpush3.msra.mxu0 %v7123_v26  ;;  %16679 = vmatpush3.msra.mxu1 %v14985_v25 }
0x3786   :  { %16719 = vmatprep.subr.mxu0 %v7122_v35  ;;  %16680 = vmatprep.subr.mxu1 %v14984_v49 }
0x3787   :  { %16720 = vmatpush3.msra.mxu0 %v7122_v35  ;;  %16681 = vmatpush3.msra.mxu1 %v14984_v49 }
0x3788   :  { %16721 = vmatprep.subr.mxu0 %v7121_v38  ;;  %16682 = vmatprep.subr.mxu1 %v14983_v50 }
0x3789   :  { %16722 = vmatpush3.msra.mxu0 %v7121_v38  ;;  %16683 = vmatpush3.msra.mxu1 %v14983_v50  ;;  %v19219_v38 = vld [vmem:[%s20149_s25] sm:$0xff] }
0x378a   :  { %16724 = vmatmul.mubr.msk.f32.vlgmr.msra.gmra.mxu0 %vm277_vm0, %v7110_v29  ;;  %16684 = vmatprep.subr.mxu1 %v14982_v58 }
0x378b   :  { %16685 = vmatpush3.msra.mxu1 %v14982_v58 }
0x378c   :  { %16686 = vmatprep.subr.mxu1 %v14981_v6 }
0x378d   :  { %16687 = vmatpush3.msra.mxu1 %v14981_v6 }
0x378e   :  { %16688 = vmatprep.subr.mxu1 %v14980_v36 }
0x378f   :  { %16689 = vmatpush3.msra.mxu1 %v14980_v36 }
0x3832   :  { %v16657_v53 = vpop.f32.mrf.mxu0 }
0x3833   :  { %v6949_v51 = vadd.f32 %v16657_v53, %v14977_v41 }
0x3834   :  { %v6943_v52 = vpop.f32.mrf.mxu0 }
0x3835   :  { %v6953_v54 = vmul.f32 %v6949_v51, %v6949_v51  ;;  %v6944_v55 = vadd.f32 %v14977_v41, %v6943_v52 }
0x3837   :  { %v6955_v57 = vmul.f32 %v6953_v54, %v6949_v51  ;;  %v6952_v21 = vmul.f32 %v6944_v55, %v6944_v55 }
0x3839   :  { %v6957_v47 = vmul.f32 0.044715, %v6955_v57  ;;  %v6954_v59 = vmul.f32 %v6952_v21, %v6944_v55 }
0x383a   :  { %v16703_v62 = vpop.f32.mrf.mxu0 }
0x383b   :  { %v6959_v46 = vadd.f32 %v6957_v47, %v6949_v51  ;;  %v6956_v56 = vmul.f32 0.044715, %v6954_v59  ;;  %v19205_v9 = vadd.f32 %v16703_v62, %v14999_v2  ;;  %v7126_v62 = vld [vmem:[%s20166_s15] sm:$0xff] }
0x383c   :  { %v7207_v3 = vpop.f32.mrf.mxu0 }
0x383d   :  { %v6961_v37 = vmul.f32 0.7978846, %v6959_v46  ;;  %v6958_v4 = vadd.f32 %v6956_v56, %v6944_v55  ;;  %v19187_v39 = vadd.f32 %v14999_v2, %v7207_v3 }
0x383f   :  { %17622 = vtanh.f32 %v6961_v37  ;;  %v6960_v5 = vmul.f32 0.7978846, %v6958_v4  ;;  %16730 = vmatprep.mubr.msk.f32.mxu0 %vm580_vm1, %v19187_v39 }
0x3841   :  { %17624 = vtanh.f32 %v6960_v5 }
0x3842   :  { %v16714_v63 = vpop.f32.mrf.mxu0 }
0x3843   :  { %v19192_v10 = vadd.f32 %v16714_v63, %v15002_v48 }
0x3844   :  { %v7286_v12 = vpop.f32.mrf.mxu0 }
0x3845   :  { %v19194_v8 = vadd.f32 %v15002_v48, %v7286_v12  ;;  %16726 = vmatprep.subr.msk.mxu0 %vm580_vm1, %v19192_v10 }
0x3846   :  { %16727 = vmatpush3.xpose.msk.msra.mxu0 %vm580_vm1, %v19192_v10 }
0x3847   :  { %16728 = vmatprep.subr.msk.mxu0 %vm580_vm1, %v19194_v8 }
0x384a   :  { %v16725_v45 = vpop.f32.mrf.mxu0  ;;  %16729 = vmatpush3.xpose.msk.msra.mxu0 %vm580_vm1, %v19194_v8 }
0x384b   :  { %v19207_v7 = vadd.f32 %v16725_v45, %v15005_v22 }
0x384c   :  { %v17623_v24 = vpop.eup %17622  ;;  %v7365_v28 = vpop.f32.mrf.mxu0 }
0x384d   :  { %16731 = vmatmul.mubr.msk.f32.vlgmr.msra.gmra.mxu0 %vm580_vm1, %v19205_v9  ;;  %16733 = vmatprep.subr.mxu1 %v19207_v7  ;;  %v6965_v11 = vadd.f32 1.0, %v17623_v24  ;;  %v19212_v30 = vadd.f32 %v15005_v22, %v7365_v28 }
0x384e   :  { %v17625_v61 = vpop.eup %17624 }
0x384f   :  { %v6964_v60 = vadd.f32 1.0, %v17625_v61  ;;  %v6967_v27 = vmul.f32 0.5, %v6965_v11 }
0x3851   :  { %v6966_v31 = vmul.f32 0.5, %v6964_v60  ;;  %v6969_v29 = vmul.f32 %v6967_v27, %v6949_v51 }
0x3853   :  { %v6968_v1 = vmul.f32 %v6966_v31, %v6944_v55 }
0x3855   :  { %16690 = vmatprep.mubr.f32.mxu1 %v6968_v1 }
0x3856   :  { %16691 = vmatmul.mubr.f32.vlgmr.msra.gmra.mxu1 %v6969_v29 }
0x3857   :  { %16734 = vmatpush3.msra.mxu1 %v19207_v7 }
0x3858   :  { %16735 = vmatprep.subr.mxu1 %v19212_v30 }
0x3859   :  { %16736 = vmatpush3.msra.mxu1 %v19212_v30 }
0x390d   :  { %v16732_v33 = vpop.f32.mrf.mxu0 }
0x390e   :  { %v7462_v34 = vmul.f32 0.35355338, %v16732_v33 }
0x390f   :  { %v7452_v23 = vpop.f32.mrf.mxu0 }
0x3910   :  { %v7464_v26 = vadd.f32 %v19080_v0, %v7462_v34  ;;  %v7461_v35 = vmul.f32 0.35355338, %v7452_v23 }
0x3912   :  { %v7463_v40 = vadd.f32 %v19219_v38, %v7461_v35  ;;  %v7468_v42 = vsel %vm672_vm2, %v7464_v26, -inf }
0x3913   :  { %7469 = vmax.xlane.f32.xlu1 %v7468_v42 }
0x3914   :  { %v7465_v32 = vsel %vm672_vm2, %v7463_v40, -inf }
0x3915   :  { %7466 = vmax.xlane.f32.xlu0 %v7465_v32 }
0x3916   :  { %v19243_v46 = vpop.f32.mrf.mxu1 }
0x3918   :  { %v19245_v56 = vpop.f32.mrf.mxu1 }
0x399c   :  { %v7470_v15 = vpop.xlane.xlu1 %7469 }
0x399d   :  { %v7472_v43 = vsub.f32 %v7464_v26, %v7470_v15  ;;  %v7127_v26 = vld [vmem:[%s20166_s15 + $0x8] sm:$0xff] }
0x399e   :  { %v7467_v17 = vpop.xlane.xlu0 %7466 }
0x399f   :  { %v7475_v44 = vmul.f32 1.442695, %v7472_v43  ;;  %v7471_v25 = vsub.f32 %v7463_v40, %v7467_v17 }
0x39a1   :  { %17626 = vpow2.f32 %v7475_v44  ;;  %v7473_v49 = vmul.f32 1.442695, %v7471_v25 }
0x39a3   :  { %17628 = vpow2.f32 %v7473_v49 }
0x39ae   :  { %v17627_v50 = vpop.eup %17626 }
0x39af   :  { %v7480_v58 = vsel %vm672_vm2, %v17627_v50, 0.0 }
0x39b0   :  { %v17629_v6 = vpop.eup %17628  ;;  %7481 = vadd.xlane.f32.xlu1 %v7480_v58 }
0x39b1   :  { %v7477_v36 = vsel %vm672_vm2, %v17629_v6, 0.0 }
0x39b2   :  { %7478 = vadd.xlane.f32.xlu0 %v7477_v36 }
0x39c1   :  { %7572 = vrot.lane.b32.xlu1 %v19194_v8, %s18029_s24 }
0x39c5   :  { %7568 = vrot.lane.b32.xlu1 %v19187_v39, %s18029_s24 }
0x39c8   :  { %7574 = vrot.lane.b32.xlu0 %v19192_v10, %s18029_s24 }
0x39c9   :  { %7570 = vrot.lane.b32.xlu1 %v19205_v9, %s18029_s24 }
0x3a39   :  { %v7482_v41 = vpop.xlane.xlu1 %7481 }
0x3a3a   :  { %17630 = vrcp.f32 %v7482_v41 }
0x3a3b   :  { %v7479_v53 = vpop.xlane.xlu0 %7478 }
0x3a3c   :  { %17632 = vrcp.f32 %v7479_v53 }
0x3a3d   :  { %v7573_v52 = vpop.permute.xlu1 %7572 }
0x3a3f   :  { %v7575_v51 = vpop.permute.xlu0 %7574 }
0x3a40   :  { %16740 = vmatprep.subr.msk.mxu1 %vm580_vm1, %v7575_v51 }
0x3a41   :  { %v7569_v47 = vpop.permute.xlu1 %7568 }
0x3a45   :  { %v7571_v59 = vpop.permute.xlu1 %7570 }
0x3a47   :  { %v17631_v54 = vpop.eup %17630 }
0x3a48   :  { %v7486_v21 = vmul.f32 %v17631_v54, %v17627_v50 }
0x3a49   :  { %v17633_v55 = vpop.eup %17632 }
0x3a4a   :  { %v7485_v57 = vmul.f32 %v17633_v55, %v17629_v6 }
0x3a4c   :  { %16737 = vmatprep.mubr.msk.f32.mxu1 %vm672_vm2, %v7485_v57 }
0x3a4d   :  { %16738 = vmatmul.mubr.msk.f32.vlgmr.msra.gmra.mxu1 %vm672_vm2, %v7486_v21 }
0x3a4e   :  { %16741 = vmatpush3.xpose.msk.msra.mxu1 %vm580_vm1, %v7575_v51  ;;  %16744 = vmatprep.mubr.msk.f32.mxu1 %vm580_vm1, %v7569_v47 }
0x3a4f   :  { %16742 = vmatprep.subr.msk.mxu1 %vm580_vm1, %v7573_v52 }
0x3a52   :  { %16743 = vmatpush3.xpose.msk.msra.mxu1 %vm580_vm1, %v7573_v52 }
0x3a53   :  { %16759 = vmatprep.subr.mxu1 %v7126_v62 }
0x3a55   :  { %16745 = vmatmul.mubr.msk.f32.vlgmr.msra.gmra.mxu1 %vm580_vm1, %v7571_v59 }
0x3a56   :  { %16760 = vmatpush3.msra.mxu1 %v7126_v62 }
0x3b0d   :  { %v16739_v2 = vpop.f32.mrf.mxu1 }
0x3b0f   :  { %v7559_v3 = vpop.f32.mrf.mxu1 }
0x3b10   :  { %16761 = vmatprep.mubr.msk.f32.mxu1 %vm580_vm1, %v7559_v3 }
0x3b11   :  { %16762 = vmatmul.mubr.msk.f32.vlgmr.msra.gmra.mxu1 %vm580_vm1, %v16739_v2 }
0x3b15   :  { %v16746_v37 = vpop.f32.mrf.mxu1 }
0x3b16   :  { %v7660_v4 = vmul.f32 0.35355338, %v16746_v37 }
0x3b17   :  { %v7650_v5 = vpop.f32.mrf.mxu1 }
0x3b18   :  { %v7662_v48 = vadd.f32 %v19080_v0, %v7660_v4  ;;  %v7659_v63 = vmul.f32 0.35355338, %v7650_v5 }
0x3b1a   :  { %v7661_v12 = vadd.f32 %v19219_v38, %v7659_v63  ;;  %v7666_v22 = vsel %vm672_vm2, %v7662_v48, -inf }
0x3b1b   :  { %7667 = vmax.xlane.f32.xlu1 %v7666_v22 }
0x3b1c   :  { %v7663_v45 = vsel %vm672_vm2, %v7661_v12, -inf }
0x3b1d   :  { %7664 = vmax.xlane.f32.xlu0 %v7663_v45 }
0x3b2c   :  { %7687 = vrot.lane.b32.xlu1 %v19212_v30, %s18029_s24 }
0x3b30   :  { %7942 = vrot.lane.b32.xlu1 %v19192_v10, %s18030_s0 }
0x3b34   :  { %7940 = vrot.lane.b32.xlu1 %v19194_v8, %s18030_s0 }
0x3b38   :  { %7938 = vrot.lane.b32.xlu1 %v19205_v9, %s18030_s0 }
0x3b3c   :  { %8227 = vrot.lane.b32.xlu1 %v19194_v8, %s18031_s26 }
0x3b40   :  { %8225 = vrot.lane.b32.xlu1 %v19205_v9, %s18031_s26 }
0x3ba4   :  { %v7668_v24 = vpop.xlane.xlu1 %7667 }
0x3ba5   :  { %v7670_v11 = vsub.f32 %v7662_v48, %v7668_v24 }
0x3ba6   :  { %v7665_v61 = vpop.xlane.xlu0 %7664 }
0x3ba7   :  { %v7673_v60 = vmul.f32 1.442695, %v7670_v11  ;;  %v7669_v27 = vsub.f32 %v7661_v12, %v7665_v61 }
0x3ba8   :  { %v7688_v23 = vpop.permute.xlu1 %7687 }
0x3ba9   :  { %17634 = vpow2.f32 %v7673_v60  ;;  %v7671_v31 = vmul.f32 1.442695, %v7669_v27 }
0x3bab   :  { %17636 = vpow2.f32 %v7671_v31 }
0x3bb6   :  { %v17635_v28 = vpop.eup %17634 }
0x3bb7   :  { %v7678_v1 = vsel %vm672_vm2, %v17635_v28, 0.0 }
0x3bb8   :  { %v17637_v29 = vpop.eup %17636  ;;  %7679 = vadd.xlane.f32.xlu0 %v7678_v1 }
0x3bb9   :  { %v7675_v33 = vsel %vm672_vm2, %v17637_v29, 0.0 }
0x3bbc   :  { %7676 = vadd.xlane.f32.xlu0 %v7675_v33 }
0x3bd2   :  { %7689 = vrot.lane.b32.xlu0 %v19207_v7, %s18029_s24 }
0x3bd6   :  { %7936 = vrot.lane.b32.xlu0 %v19187_v39, %s18030_s0 }
0x3bda   :  { %8229 = vrot.lane.b32.xlu0 %v19192_v10, %s18031_s26 }
0x3bde   :  { %8223 = vrot.lane.b32.xlu0 %v19187_v39, %s18031_s26  ;;  %v7943_v39 = vpop.permute.xlu1 %7942 }
0x3be2   :  { %v7941_v43 = vpop.permute.xlu1 %7940 }
0x3be6   :  { %v7939_v25 = vpop.permute.xlu1 %7938 }
0x3bea   :  { %v8228_v50 = vpop.permute.xlu1 %8227 }
0x3bee   :  { %v8226_v58 = vpop.permute.xlu1 %8225 }
0x3c41   :  { %v7680_v8 = vpop.xlane.xlu0 %7679 }
0x3c42   :  { %17638 = vrcp.f32 %v7680_v8 }
0x3c45   :  { %v7677_v9 = vpop.xlane.xlu0 %7676 }
0x3c46   :  { %17640 = vrcp.f32 %v7677_v9 }
0x3c49   :  { %v7690_v34 = vpop.permute.xlu0 %7689 }
0x3c4a   :  { %16747 = vmatprep.subr.mxu0 %v7690_v34 }
0x3c4b   :  { %16748 = vmatpush3.msra.mxu0 %v7690_v34 }
0x3c4c   :  { %16749 = vmatprep.subr.mxu0 %v7688_v23 }
0x3c4d   :  { %16750 = vmatpush3.msra.mxu0 %v7688_v23  ;;  %v7937_v10 = vpop.permute.xlu0 %7936 }
0x3c4e   :  { %16754 = vmatprep.subr.mxu0 %v7127_v26 }
0x3c4f   :  { %v17639_v35 = vpop.eup %17638 }
0x3c50   :  { %v7684_v32 = vmul.f32 %v17639_v35, %v17635_v28 }
0x3c51   :  { %v8230_v44 = vpop.permute.xlu0 %8229 }
0x3c53   :  { %v17641_v40 = vpop.eup %17640 }
0x3c54   :  { %v7683_v42 = vmul.f32 %v17641_v40, %v17637_v29 }
0x3c55   :  { %v8224_v49 = vpop.permute.xlu0 %8223 }
0x3c56   :  { %16751 = vmatprep.mubr.msk.f32.mxu0 %vm672_vm2, %v7683_v42 }
0x3c57   :  { %16752 = vmatmul.mubr.msk.f32.vlgmr.msra.gmra.mxu0 %vm672_vm2, %v7684_v32 }
0x3c58   :  { %16755 = vmatpush3.msra.mxu0 %v7127_v26  ;;  %v7128_v26 = vld [vmem:[%s20166_s15 + $0x10] sm:$0xff] }
0x3c59   :  { %16764 = vmatprep.subr.msk.mxu0 %vm580_vm1, %v7943_v39 }
0x3d17   :  { %v16753_v15 = vpop.f32.mrf.mxu0 }
0x3d19   :  { %v7765_v17 = vpop.f32.mrf.mxu0 }
0x3d1a   :  { %16756 = vmatprep.mubr.msk.f32.mxu0 %vm580_vm1, %v7765_v17 }
0x3d1b   :  { %16757 = vmatmul.mubr.msk.f32.vlgmr.msra.gmra.mxu0 %vm580_vm1, %v16753_v15 }
0x3d1c   :  { %16765 = vmatpush3.xpose.msk.msra.mxu0 %vm580_vm1, %v7943_v39  ;;  %16768 = vmatprep.mubr.msk.f32.mxu0 %vm580_vm1, %v7937_v10 }
0x3d1d   :  { %16766 = vmatprep.subr.msk.mxu0 %vm580_vm1, %v7941_v43 }
0x3d20   :  { %16767 = vmatpush3.xpose.msk.msra.mxu0 %vm580_vm1, %v7941_v43 }
0x3d21   :  { %16783 = vmatprep.subr.msk.mxu0 %vm580_vm1, %v8230_v44 }
0x3d23   :  { %16769 = vmatmul.mubr.msk.f32.vlgmr.msra.gmra.mxu0 %vm580_vm1, %v7939_v25 }
0x3d24   :  { %16784 = vmatpush3.xpose.msk.msra.mxu0 %vm580_vm1, %v8230_v44  ;;  %16787 = vmatprep.mubr.msk.f32.mxu0 %vm580_vm1, %v8224_v49  ;;  %v16763_v44 = vpop.f32.mrf.mxu1 }
0x3d25   :  { %16785 = vmatprep.subr.msk.mxu0 %vm580_vm1, %v8228_v50 }
0x3d26   :  { %v7927_v25 = vpop.f32.mrf.mxu1 }
0x3d28   :  { %16786 = vmatpush3.xpose.msk.msra.mxu0 %vm580_vm1, %v8228_v50 }
0x3d2b   :  { %16788 = vmatmul.mubr.msk.f32.vlgmr.msra.gmra.mxu0 %vm580_vm1, %v8226_v58 }
0x3ddb   :  { %v19292_v6 = vpop.f32.mrf.mxu0 }
0x3ddd   :  { %v19294_v36 = vpop.f32.mrf.mxu0 }
0x3de3   :  { %v16770_v41 = vpop.f32.mrf.mxu0 }
0x3de4   :  { %v8028_v53 = vmul.f32 0.35355338, %v16770_v41 }
0x3de5   :  { %v8018_v51 = vpop.f32.mrf.mxu0 }
0x3de6   :  { %v8030_v52 = vadd.f32 %v19080_v0, %v8028_v53  ;;  %v8027_v54 = vmul.f32 0.35355338, %v8018_v51 }
0x3de8   :  { %v8029_v55 = vadd.f32 %v19219_v38, %v8027_v54  ;;  %v8034_v57 = vsel %vm672_vm2, %v8030_v52, -inf  ;;  %v7129_v54 = vld [vmem:[%s20166_s15 + $0x18] sm:$0xff] }
0x3de9   :  { %8035 = vmax.xlane.f32.xlu1 %v8034_v57 }
0x3dea   :  { %v8031_v21 = vsel %vm672_vm2, %v8029_v55, -inf }
0x3deb   :  { %8032 = vmax.xlane.f32.xlu0 %v8031_v21  ;;  %v16789_v47 = vpop.f32.mrf.mxu0  ;;  %v7928_v21 = vadd.f32 %v7927_v25, %v19294_v36 }
0x3dec   :  { %v8315_v28 = vmul.f32 0.35355338, %v16789_v47 }
0x3ded   :  { %v8305_v59 = vpop.f32.mrf.mxu0 }
0x3dee   :  { %v8314_v62 = vmul.f32 0.35355338, %v8305_v59  ;;  %v8317_v1 = vadd.f32 %v19080_v0, %v8315_v28 }
0x3df0   :  { %v8316_v2 = vadd.f32 %v19219_v38, %v8314_v62  ;;  %v8321_v29 = vsel %vm672_vm2, %v8317_v1, -inf }
0x3df2   :  { %v8318_v3 = vsel %vm672_vm2, %v8316_v2, -inf }
0x3dfa   :  { %8053 = vrot.lane.b32.xlu1 %v19212_v30, %s18030_s0 }
0x3e1e   :  { %8319 = vmax.xlane.f32.xlu1 %v8318_v3 }
0x3e72   :  { %v8036_v37 = vpop.xlane.xlu1 %8035 }
0x3e73   :  { %v8038_v4 = vsub.f32 %v8030_v52, %v8036_v37  ;;  %v15040_v37 = vld [vmem:[%s20167_s16] ss:$0 sm:$0xff] }
0x3e74   :  { %v8033_v5 = vpop.xlane.xlu0 %8032 }
0x3e75   :  { %v8041_v48 = vmul.f32 1.442695, %v8038_v4  ;;  %v8037_v63 = vsub.f32 %v8029_v55, %v8033_v5  ;;  %v7933_v55 = vadd.f32 %v16763_v44, %v19292_v6 }
0x3e76   :  { %v8054_v61 = vpop.permute.xlu1 %8053 }
0x3e77   :  { %17642 = vpow2.f32 %v8041_v48  ;;  %v8039_v12 = vmul.f32 1.442695, %v8037_v63 }
0x3e79   :  { %17644 = vpow2.f32 %v8039_v12 }
0x3e84   :  { %v17643_v22 = vpop.eup %17642 }
0x3e85   :  { %v8046_v45 = vsel %vm672_vm2, %v17643_v22, 0.0 }
0x3e86   :  { %v17645_v24 = vpop.eup %17644  ;;  %8047 = vadd.xlane.f32.xlu0 %v8046_v45 }
0x3e87   :  { %v8043_v11 = vsel %vm672_vm2, %v17645_v24, 0.0 }
0x3e8a   :  { %8044 = vadd.xlane.f32.xlu0 %v8043_v11 }
0x3ea0   :  { %8055 = vrot.lane.b32.xlu0 %v19207_v7, %s18030_s0 }
0x3ea7   :  { %v8320_v60 = vpop.xlane.xlu1 %8319 }
0x3ea8   :  { %v8324_v27 = vsub.f32 %v8316_v2, %v8320_v60 }
0x3eaa   :  { %v8326_v31 = vmul.f32 1.442695, %v8324_v27 }
0x3eac   :  { %17646 = vpow2.f32 %v8326_v31 }
0x3eb9   :  { %v17647_v33 = vpop.eup %17646 }
0x3eba   :  { %v8330_v8 = vsel %vm672_vm2, %v17647_v33, 0.0 }
0x3ebf   :  { %8322 = vmax.xlane.f32.xlu0 %v8321_v29 }
0x3ec3   :  { %8331 = vadd.xlane.f32.xlu0 %v8330_v8  ;;  %v8560_v8 = vld [vmem:[%s20168_s13 + $0x10] sm:$0xff] }
0x3ed9   :  { %8342 = vrot.lane.b32.xlu0 %v19207_v7, %s18031_s26 }
0x3f0f   :  { %v8048_v9 = vpop.xlane.xlu0 %8047 }
0x3f10   :  { %17648 = vrcp.f32 %v8048_v9  ;;  %v8559_v9 = vld [vmem:[%s20168_s13 + $0x8] sm:$0xff] }
0x3f13   :  { %v8045_v34 = vpop.xlane.xlu0 %8044 }
0x3f14   :  { %17650 = vrcp.f32 %v8045_v34  ;;  %v8558_v34 = vld [vmem:[%s20168_s13] sm:$0xff] }
0x3f17   :  { %v8056_v23 = vpop.permute.xlu0 %8055 }
0x3f18   :  { %16771 = vmatprep.subr.mxu1 %v8056_v23 }
0x3f19   :  { %16772 = vmatpush3.msra.mxu1 %v8056_v23 }
0x3f1a   :  { %16773 = vmatprep.subr.mxu1 %v8054_v61 }
0x3f1b   :  { %16774 = vmatpush3.msra.mxu1 %v8054_v61 }
0x3f1c   :  { %16778 = vmatprep.subr.mxu1 %v7128_v26 }
0x3f1d   :  { %v17649_v0 = vpop.eup %17648 }
0x3f1e   :  { %v8052_v42 = vmul.f32 %v17649_v0, %v17643_v22 }
0x3f21   :  { %v17651_v35 = vpop.eup %17650 }
0x3f22   :  { %v8051_v40 = vmul.f32 %v17651_v35, %v17645_v24 }
0x3f24   :  { %16775 = vmatprep.mubr.msk.f32.mxu1 %vm672_vm2, %v8051_v40 }
0x3f25   :  { %16776 = vmatmul.mubr.msk.f32.vlgmr.msra.gmra.mxu1 %vm672_vm2, %v8052_v42 }
0x3f26   :  { %16779 = vmatpush3.msra.mxu1 %v7128_v26 }
0x3f48   :  { %v8323_v7 = vpop.xlane.xlu0 %8322 }
0x3f49   :  { %v8325_v32 = vsub.f32 %v8317_v1, %v8323_v7 }
0x3f4b   :  { %v8328_v39 = vmul.f32 1.442695, %v8325_v32  ;;  %v15041_v32 = vld [vmem:[%s20169_s6] ss:$0 sm:$0xff] }
0x3f4c   :  { %v8332_v10 = vpop.xlane.xlu0 %8331 }
0x3f4d   :  { %17652 = vpow2.f32 %v8328_v39 }
0x3f4e   :  { %17654 = vrcp.f32 %v8332_v10 }
0x3f50   :  { %v8343_v15 = vpop.permute.xlu0 %8342 }
0x3f51   :  { %16790 = vmatprep.subr.mxu1 %v8343_v15 }
0x3f5a   :  { %v17653_v43 = vpop.eup %17652 }
0x3f5b   :  { %v8333_v17 = vsel %vm672_vm2, %v17653_v43, 0.0  ;;  %v17655_v49 = vpop.eup %17654 }
0x3f5c   :  { %8334 = vadd.xlane.f32.xlu1 %v8333_v17  ;;  %v8338_v53 = vmul.f32 %v17655_v49, %v17647_v33  ;;  %v8561_v33 = vld [vmem:[%s20168_s13 + $0x18] sm:$0xff]  ;;  %v15042_v17 = vld [vmem:[%s20170_s18] ss:$0 sm:$0xff] }
0x3f5d   :  { %16802 = vmatprep.subr.mxu0 %v8561_v33 }
0x3f5e   :  { %16803 = vmatpush3.msra.mxu0 %v8561_v33 }
0x3f5f   :  { %16804 = vmatprep.subr.mxu0 %v8560_v8 }
0x3f60   :  { %16805 = vmatpush3.msra.mxu0 %v8560_v8 }
0x3f61   :  { %16806 = vmatprep.subr.mxu0 %v8559_v9 }
0x3f62   :  { %16807 = vmatpush3.msra.mxu0 %v8559_v9 }
0x3f63   :  { %16808 = vmatprep.subr.mxu0 %v8558_v34 }
0x3f64   :  { %16809 = vmatpush3.msra.mxu0 %v8558_v34 }
0x3f6d   :  { %8340 = vrot.lane.b32.xlu1 %v19212_v30, %s18031_s26 }
0x3fe5   :  { %v16777_v50 = vpop.f32.mrf.mxu1  ;;  %v8335_v58 = vpop.xlane.xlu1 %8334 }
0x3fe6   :  { %17656 = vrcp.f32 %v8335_v58  ;;  %v8680_v58 = vld [vmem:[%s20171_s22 + $0x70] sm:$0xff] }
0x3fe7   :  { %v8131_v41 = vpop.f32.mrf.mxu1 }
0x3fe8   :  { %16780 = vmatprep.mubr.msk.f32.mxu1 %vm580_vm1, %v8131_v41  ;;  %v8679_v41 = vld [vmem:[%s20171_s22 + $0x68] sm:$0xff] }
0x3fe9   :  { %16781 = vmatmul.mubr.msk.f32.vlgmr.msra.gmra.mxu1 %vm580_vm1, %v16777_v50  ;;  %v8341_v51 = vpop.permute.xlu1 %8340  ;;  %v8681_v50 = vld [vmem:[%s20171_s22 + $0x78] sm:$0xff] }
0x3fea   :  { %16791 = vmatpush3.msra.mxu1 %v8343_v15  ;;  %16794 = vmatprep.mubr.msk.f32.mxu1 %vm672_vm2, %v8338_v53  ;;  %v8678_v53 = vld [vmem:[%s20171_s22 + $0x60] sm:$0xff] }
0x3feb   :  { %16792 = vmatprep.subr.mxu1 %v8341_v51 }
0x3fec   :  { %16793 = vmatpush3.msra.mxu1 %v8341_v51  ;;  %v8677_v51 = vld [vmem:[%s20171_s22 + $0x58] sm:$0xff] }
0x3fed   :  { %16797 = vmatprep.subr.mxu1 %v7129_v54 }
0x3ff3   :  { %v17657_v30 = vpop.eup %17656 }
0x3ff4   :  { %v8339_v52 = vmul.f32 %v17657_v30, %v17653_v43  ;;  %v8676_v30 = vld [vmem:[%s20171_s22 + $0x50] sm:$0xff] }
0x3ff6   :  { %16795 = vmatmul.mubr.msk.f32.vlgmr.msra.gmra.mxu1 %vm672_vm2, %v8339_v52  ;;  %v8675_v52 = vld [vmem:[%s20171_s22 + $0x48] sm:$0xff] }
0x3ff7   :  { %16798 = vmatpush3.msra.mxu1 %v7129_v54  ;;  %v8674_v54 = vld [vmem:[%s20171_s22 + $0x40] sm:$0xff] }
0x3ff8   :  { %16813 = vmatprep.subr.mxu1 %v8681_v50 }
0x40a9   :  { %v16782_v57 = vpop.f32.mrf.mxu1 }
0x40aa   :  { %v8222_v47 = vadd.f32 %v16782_v57, %v7933_v55  ;;  %v8673_v55 = vld [vmem:[%s20171_s22 + $0x38] sm:$0xff]  ;;  %v8672_v57 = vld [vmem:[%s20171_s22 + $0x30] sm:$0xff] }
0x40ab   :  { %v8212_v59 = vpop.f32.mrf.mxu1 }
0x40ac   :  { %v8221_v62 = vadd.f32 %v8212_v59, %v7928_v21  ;;  %v8671_v21 = vld [vmem:[%s20171_s22 + $0x28] sm:$0xff]  ;;  %v8669_v59 = vld [vmem:[%s20171_s22 + $0x18] sm:$0xff] }
0x40b6   :  { %v16796_v2 = vpop.f32.mrf.mxu1 }
0x40b8   :  { %v8418_v3 = vpop.f32.mrf.mxu1 }
0x40b9   :  { %16799 = vmatprep.mubr.msk.f32.mxu1 %vm580_vm1, %v8418_v3  ;;  %v8666_v3 = vld [vmem:[%s20171_s22] sm:$0xff] }
0x40ba   :  { %16800 = vmatmul.mubr.msk.f32.vlgmr.msra.gmra.mxu1 %vm580_vm1, %v16796_v2  ;;  %v8667_v2 = vld [vmem:[%s20171_s22 + $0x8] sm:$0xff] }
0x40bb   :  { %16814 = vmatpush3.msra.mxu1 %v8681_v50 }
0x40bc   :  { %16815 = vmatprep.subr.mxu1 %v8680_v58 }
0x40bd   :  { %16816 = vmatpush3.msra.mxu1 %v8680_v58  ;;  %v15052_v58 = vld [vmem:[%s20158_s3 + $0x38] sm:$0xff] }
0x40be   :  { %16817 = vmatprep.subr.mxu1 %v8679_v41  ;;  %16848 = vmatprep.subr.mxu0 %v15052_v58 }
0x40bf   :  { %16818 = vmatpush3.msra.mxu1 %v8679_v41  ;;  %v15051_v41 = vld [vmem:[%s20158_s3 + $0x30] sm:$0xff] }
0x40c0   :  { %16819 = vmatprep.subr.mxu1 %v8678_v53 }
0x40c1   :  { %16820 = vmatpush3.msra.mxu1 %v8678_v53  ;;  %v15050_v53 = vld [vmem:[%s20158_s3 + $0x28] sm:$0xff] }
0x40c2   :  { %16821 = vmatprep.subr.mxu1 %v8677_v51 }
0x40c3   :  { %16822 = vmatpush3.msra.mxu1 %v8677_v51  ;;  %v15049_v51 = vld [vmem:[%s20158_s3 + $0x20] sm:$0xff] }
0x40c4   :  { %16823 = vmatprep.subr.mxu1 %v8676_v30 }
0x40c5   :  { %16824 = vmatpush3.msra.mxu1 %v8676_v30  ;;  %v15056_v30 = vld [vmem:[%s20161_s19 + $0x38] sm:$0xff] }
0x40c6   :  { %16825 = vmatprep.subr.mxu1 %v8675_v52 }
0x40c7   :  { %16826 = vmatpush3.msra.mxu1 %v8675_v52 }
0x40c8   :  { %16827 = vmatprep.subr.mxu1 %v8674_v54 }
0x40c9   :  { %16828 = vmatpush3.msra.mxu1 %v8674_v54 }
0x40ca   :  { %16829 = vmatprep.subr.mxu1 %v8673_v55 }
0x40cb   :  { %16830 = vmatpush3.msra.mxu1 %v8673_v55 }
0x40cc   :  { %16831 = vmatprep.subr.mxu1 %v8672_v57 }
0x40cd   :  { %16832 = vmatpush3.msra.mxu1 %v8672_v57 }
0x40ce   :  { %16833 = vmatprep.subr.mxu1 %v8671_v21 }
0x40cf   :  { %16834 = vmatpush3.msra.mxu1 %v8671_v21 }
0x417a   :  { %v16801_v4 = vpop.f32.mrf.mxu1 }
0x417b   :  { %v8509_v5 = vadd.f32 %v16801_v4, %v8222_v47  ;;  %v8670_v47 = vld [vmem:[%s20171_s22 + $0x20] sm:$0xff] }
0x417c   :  { %v8499_v48 = vpop.f32.mrf.mxu1  ;;  %16835 = vmatprep.subr.mxu1 %v8670_v47 }
0x417d   :  { %v8515_v63 = vadd.f32 %v15040_v37, %v8509_v5  ;;  %v8508_v12 = vadd.f32 %v8499_v48, %v8221_v62  ;;  %16836 = vmatpush3.msra.mxu1 %v8670_v47  ;;  %v8668_v62 = vld [vmem:[%s20171_s22 + $0x10] sm:$0xff] }
0x417e   :  { %16837 = vmatprep.subr.mxu1 %v8669_v59 }
0x417f   :  { %v19330_v6 = vadd.f32 %v8515_v63, %v19115_v20  ;;  %v8514_v22 = vadd.f32 %v15040_v37, %v8508_v12  ;;  %16838 = vmatpush3.msra.mxu1 %v8669_v59  ;;  %v15043_v37 = vld [vmem:[%s20172_s23] ss:$0 sm:$0xff] }
0x4180   :  { %16839 = vmatprep.subr.mxu1 %v8668_v62 }
0x4181   :  { %v19333_v36 = vadd.f32 %v8514_v22, %v19107_v14  ;;  %v8523_v45 = vsel %vm277_vm0, %v19330_v6, 0.0  ;;  %16840 = vmatpush3.msra.mxu1 %v8668_v62  ;;  %v15047_v62 = vld [vmem:[%s20159_s8 + $0x1] ss:$0 sm:$0xff] }
0x4182   :  { %8524 = vadd.xlane.f32.xlu0 %v8523_v45  ;;  %16841 = vmatprep.subr.mxu1 %v8667_v2 }
0x4183   :  { %v8520_v24 = vsel %vm277_vm0, %v19333_v36, 0.0  ;;  %16842 = vmatpush3.msra.mxu1 %v8667_v2 }
0x4184   :  { %8521 = vadd.xlane.f32.xlu1 %v8520_v24  ;;  %16843 = vmatprep.subr.mxu1 %v8666_v3 }
0x4185   :  { %16844 = vmatpush3.msra.mxu1 %v8666_v3 }
0x420b   :  { %v8525_v11 = vpop.xlane.xlu0 %8524 }
0x420c   :  { %v8527_v61 = vmul.f32 0.03125, %v8525_v11 }
0x420d   :  { %v8522_v60 = vpop.xlane.xlu1 %8521 }
0x420e   :  { %v8529_v20 = vsub.f32 %v19330_v6, %v8527_v61  ;;  %v8526_v27 = vmul.f32 0.03125, %v8522_v60 }
0x4210   :  { %v8528_v14 = vsub.f32 %v19333_v36, %v8526_v27  ;;  %v8531_v31 = vmul.f32 %v8529_v20, %v8529_v20 }
0x4212   :  { %v8535_v28 = vsel %vm277_vm0, %v8531_v31, 0.0  ;;  %v8530_v1 = vmul.f32 %v8528_v14, %v8528_v14 }
0x4213   :  { %8536 = vadd.xlane.f32.xlu1 %v8535_v28 }
0x4214   :  { %v8532_v29 = vsel %vm277_vm0, %v8530_v1, 0.0 }
0x4215   :  { %8533 = vadd.xlane.f32.xlu0 %v8532_v29 }
0x429c   :  { %v8537_v23 = vpop.xlane.xlu1 %8536 }
0x429d   :  { %v8539_v26 = vmul.f32 0.03125, %v8537_v23  ;;  %v15046_v23 = vld [vmem:[%s20173_s9] ss:$0 sm:$0xff] }
0x429e   :  { %v8534_v0 = vpop.xlane.xlu0 %8533 }
0x429f   :  { %v8541_v35 = vadd.f32 1e-12, %v8539_v26  ;;  %v8538_v40 = vmul.f32 0.03125, %v8534_v0 }
0x42a1   :  { %17658 = vrsqrt.f32 %v8541_v35  ;;  %v8540_v42 = vadd.f32 1e-12, %v8538_v40 }
0x42a3   :  { %17660 = vrsqrt.f32 %v8540_v42 }
0x42ae   :  { %v17659_v7 = vpop.eup %17658 }
0x42af   :  { %v8545_v39 = vmul.f32 %v17659_v7, %v8529_v20 }
0x42b0   :  { %v17661_v10 = vpop.eup %17660 }
0x42b1   :  { %v8544_v15 = vmul.f32 %v17661_v10, %v8528_v14  ;;  %v8551_v43 = vmul.f32 %v15041_v32, %v8545_v39 }
0x42b3   :  { %v8550_v44 = vmul.f32 %v15041_v32, %v8544_v15  ;;  %v8557_v49 = vadd.f32 %v15042_v17, %v8551_v43 }
0x42b5   :  { %v8556_v25 = vadd.f32 %v15042_v17, %v8550_v44 }
0x42b7   :  { %16810 = vmatprep.mubr.msk.f32.mxu0 %vm277_vm0, %v8556_v25 }
0x42b8   :  { %16811 = vmatmul.mubr.msk.f32.vlgmr.msra.gmra.mxu0 %vm277_vm0, %v8557_v49 }
0x42b9   :  { %16849 = vmatpush3.msra.mxu0 %v15052_v58 }
0x42ba   :  { %16850 = vmatprep.subr.mxu0 %v15051_v41 }
0x42bb   :  { %16851 = vmatpush3.msra.mxu0 %v15051_v41 }
0x42bc   :  { %16852 = vmatprep.subr.mxu0 %v15050_v53 }
0x42bd   :  { %16853 = vmatpush3.msra.mxu0 %v15050_v53 }
0x42be   :  { %16854 = vmatprep.subr.mxu0 %v15049_v51 }
0x42bf   :  { %16855 = vmatpush3.msra.mxu0 %v15049_v51 }
0x42c0   :  { %16859 = vmatprep.subr.mxu0 %v15056_v30 }
0x4378   :  { %v16812_v4 = vpop.f32.mrf.mxu0 }
0x4379   :  { %v8645_v5 = vadd.f32 %v16812_v4, %v15043_v37 }
0x437a   :  { %v8639_v48 = vpop.f32.mrf.mxu0 }
0x437b   :  { %v8649_v63 = vmul.f32 %v8645_v5, %v8645_v5  ;;  %v8640_v12 = vadd.f32 %v15043_v37, %v8639_v48 }
0x437d   :  { %v8651_v22 = vmul.f32 %v8649_v63, %v8645_v5  ;;  %v8648_v45 = vmul.f32 %v8640_v12, %v8640_v12 }
0x437f   :  { %v8653_v24 = vmul.f32 0.044715, %v8651_v22  ;;  %v8650_v11 = vmul.f32 %v8648_v45, %v8640_v12  ;;  %v15055_v22 = vld [vmem:[%s20161_s19 + $0x30] sm:$0xff]  ;;  %v15054_v45 = vld [vmem:[%s20161_s19 + $0x28] sm:$0xff] }
0x4381   :  { %v8655_v61 = vadd.f32 %v8653_v24, %v8645_v5  ;;  %v8652_v60 = vmul.f32 0.044715, %v8650_v11  ;;  %v15053_v24 = vld [vmem:[%s20161_s19 + $0x20] sm:$0xff]  ;;  %v15060_v11 = vld [vmem:[%s20162_s30 + $0x38] sm:$0xff] }
0x4383   :  { %v8657_v20 = vmul.f32 0.7978846, %v8655_v61  ;;  %v8654_v27 = vadd.f32 %v8652_v60, %v8640_v12  ;;  %v15059_v61 = vld [vmem:[%s20162_s30 + $0x30] sm:$0xff]  ;;  %v15058_v60 = vld [vmem:[%s20162_s30 + $0x28] sm:$0xff] }
0x4385   :  { %17662 = vtanh.f32 %v8657_v20  ;;  %v8656_v14 = vmul.f32 0.7978846, %v8654_v27  ;;  %v15057_v20 = vld [vmem:[%s20162_s30 + $0x20] sm:$0xff] }
0x4387   :  { %17664 = vtanh.f32 %v8656_v14  ;;  %v15065_v14 = vld [vmem:[%s20163_s4 + $0x1] ss:$0 sm:$0xff] }
0x4392   :  { %v17663_v31 = vpop.eup %17662 }
0x4393   :  { %v8661_v28 = vadd.f32 1.0, %v17663_v31 }
0x4394   :  { %v17665_v1 = vpop.eup %17664 }
0x4395   :  { %v8660_v29 = vadd.f32 1.0, %v17665_v1  ;;  %v8663_v33 = vmul.f32 0.5, %v8661_v28  ;;  %v15068_v1 = vld [vmem:[%s20164_s10 + $0x1] ss:$0 sm:$0xff] }
0x4397   :  { %v8662_v8 = vmul.f32 0.5, %v8660_v29  ;;  %v8665_v34 = vmul.f32 %v8663_v33, %v8645_v5  ;;  %v15048_v5 = vld [vmem:[%s20160_s14 + $0x1] ss:$0 sm:$0xff] }
0x4399   :  { %v8664_v9 = vmul.f32 %v8662_v8, %v8640_v12 }
0x439b   :  { %16845 = vmatprep.mubr.f32.mxu1 %v8664_v9 }
0x439c   :  { %16846 = vmatmul.mubr.f32.vlgmr.msra.gmra.mxu1 %v8665_v34  ;;  %v15071_v34 = vld [vmem:[%s20165_s11 + $0x1] ss:$0 sm:$0xff] }
0x445c   :  { %v16847_v26 = vpop.f32.mrf.mxu1 }
0x445d   :  { %v8759_v0 = vadd.f32 %v16847_v26, %v15046_v23 }
0x445e   :  { %v8753_v35 = vpop.f32.mrf.mxu1 }
0x445f   :  { %v19370_v40 = vadd.f32 %v8759_v0, %v19330_v6  ;;  %v8754_v42 = vadd.f32 %v15046_v23, %v8753_v35 }
0x4461   :  { %v19373_v7 = vadd.f32 %v8754_v42, %v19333_v36  ;;  %v8769_v32 = vsel %vm277_vm0, %v19370_v40, 0.0 }
0x4462   :  { %8770 = vadd.xlane.f32.xlu1 %v8769_v32 }
0x4463   :  { %v8766_v39 = vsel %vm277_vm0, %v19373_v7, 0.0 }
0x4464   :  { %8767 = vadd.xlane.f32.xlu0 %v8766_v39 }
0x44eb   :  { %v8771_v10 = vpop.xlane.xlu1 %8770 }
0x44ec   :  { %v8773_v15 = vmul.f32 0.03125, %v8771_v10 }
0x44ed   :  { %v8768_v43 = vpop.xlane.xlu0 %8767 }
0x44ee   :  { %v8775_v6 = vsub.f32 %v19370_v40, %v8773_v15  ;;  %v8772_v17 = vmul.f32 0.03125, %v8768_v43  ;;  %v19435_v15 = vld [vmem:[%s20149_s25 + $0x8] sm:$0xff] }
0x44f0   :  { %v8774_v36 = vsub.f32 %v19373_v7, %v8772_v17  ;;  %v8777_v44 = vmul.f32 %v8775_v6, %v8775_v6 }
0x44f2   :  { %v8781_v25 = vsel %vm277_vm0, %v8777_v44, 0.0  ;;  %v8776_v49 = vmul.f32 %v8774_v36, %v8774_v36 }
0x44f3   :  { %8782 = vadd.xlane.f32.xlu1 %v8781_v25 }
0x44f4   :  { %v8778_v50 = vsel %vm277_vm0, %v8776_v49, 0.0 }
0x44f5   :  { %8779 = vadd.xlane.f32.xlu0 %v8778_v50 }
0x457c   :  { %v8783_v52 = vpop.xlane.xlu1 %8782 }
0x457d   :  { %v8785_v54 = vmul.f32 0.03125, %v8783_v52 }
0x457e   :  { %v8780_v55 = vpop.xlane.xlu0 %8779 }
0x457f   :  { %v8787_v57 = vadd.f32 1e-12, %v8785_v54  ;;  %v8784_v21 = vmul.f32 0.03125, %v8780_v55 }
0x4581   :  { %17666 = vrsqrt.f32 %v8787_v57  ;;  %v8786_v47 = vadd.f32 1e-12, %v8784_v21 }
0x4583   :  { %17668 = vrsqrt.f32 %v8786_v47 }
0x458e   :  { %v17667_v59 = vpop.eup %17666 }
0x458f   :  { %v8791_v2 = vmul.f32 %v17667_v59, %v8775_v6 }
0x4590   :  { %v17669_v3 = vpop.eup %17668 }
0x4591   :  { %v8790_v37 = vmul.f32 %v17669_v3, %v8774_v36  ;;  %v8797_v4 = vmul.f32 %v15047_v62, %v8791_v2 }
0x4593   :  { %v8796_v48 = vmul.f32 %v15047_v62, %v8790_v37  ;;  %v8803_v12 = vadd.f32 %v15048_v5, %v8797_v4  ;;  %v15061_v4 = vld [vmem:[%s20166_s15 + $0x20] sm:$0xff] }
0x4595   :  { %v8802_v63 = vadd.f32 %v15048_v5, %v8796_v48 }
0x4597   :  { %16856 = vmatprep.mubr.msk.f32.mxu0 %vm277_vm0, %v8802_v63 }
0x4598   :  { %16857 = vmatmul.mubr.msk.f32.vlgmr.msra.gmra.mxu0 %vm277_vm0, %v8803_v12 }
0x4599   :  { %16860 = vmatpush3.msra.mxu0 %v15056_v30  ;;  %16867 = vmatprep.mubr.msk.f32.mxu0 %vm277_vm0, %v8802_v63 }
0x459a   :  { %16861 = vmatprep.subr.mxu0 %v15055_v22 }
0x459b   :  { %16862 = vmatpush3.msra.mxu0 %v15055_v22 }
0x459c   :  { %16863 = vmatprep.subr.mxu0 %v15054_v45 }
0x459d   :  { %16864 = vmatpush3.msra.mxu0 %v15054_v45 }
0x459e   :  { %16865 = vmatprep.subr.mxu0 %v15053_v24 }
0x459f   :  { %16866 = vmatpush3.msra.mxu0 %v15053_v24 }
0x45a0   :  { %16868 = vmatmul.mubr.msk.f32.vlgmr.msra.gmra.mxu0 %vm277_vm0, %v8803_v12  ;;  %16870 = vmatprep.subr.mxu0 %v15060_v11 }
0x45a1   :  { %16871 = vmatpush3.msra.mxu0 %v15060_v11  ;;  %16878 = vmatprep.mubr.msk.f32.mxu0 %vm277_vm0, %v8802_v63  ;;  %v19464_v11 = vld [vmem:[%s20149_s25] sm:$0xff] }
0x45a2   :  { %16872 = vmatprep.subr.mxu0 %v15059_v61 }
0x45a3   :  { %16873 = vmatpush3.msra.mxu0 %v15059_v61 }
0x45a4   :  { %16874 = vmatprep.subr.mxu0 %v15058_v60 }
0x45a5   :  { %16875 = vmatpush3.msra.mxu0 %v15058_v60 }
0x45a6   :  { %16876 = vmatprep.subr.mxu0 %v15057_v20 }
0x45a7   :  { %16877 = vmatpush3.msra.mxu0 %v15057_v20 }
0x45a8   :  { %16879 = vmatmul.mubr.msk.f32.vlgmr.msra.gmra.mxu0 %vm277_vm0, %v8803_v12 }
0x4658   :  { %v16858_v27 = vpop.f32.mrf.mxu0 }
0x4659   :  { %v19422_v26 = vadd.f32 %v16858_v27, %v15065_v14 }
0x465a   :  { %v8904_v31 = vpop.f32.mrf.mxu0 }
0x465b   :  { %v19404_v28 = vadd.f32 %v15065_v14, %v8904_v31 }
0x465d   :  { %16885 = vmatprep.mubr.msk.f32.mxu0 %vm580_vm1, %v19404_v28 }
0x4660   :  { %v16869_v29 = vpop.f32.mrf.mxu0 }
0x4661   :  { %v19409_v33 = vadd.f32 %v16869_v29, %v15068_v1 }
0x4662   :  { %v8983_v8 = vpop.f32.mrf.mxu0 }
0x4663   :  { %v19411_v9 = vadd.f32 %v15068_v1, %v8983_v8  ;;  %16881 = vmatprep.subr.msk.mxu0 %vm580_vm1, %v19409_v33 }
0x4664   :  { %16882 = vmatpush3.xpose.msk.msra.mxu0 %vm580_vm1, %v19409_v33 }
0x4665   :  { %16883 = vmatprep.subr.msk.mxu0 %vm580_vm1, %v19411_v9 }
0x4668   :  { %v16880_v23 = vpop.f32.mrf.mxu0  ;;  %16884 = vmatpush3.xpose.msk.msra.mxu0 %vm580_vm1, %v19411_v9 }
0x4669   :  { %v19424_v0 = vadd.f32 %v16880_v23, %v15071_v34 }
0x466a   :  { %v9062_v35 = vpop.f32.mrf.mxu0 }
0x466b   :  { %v19426_v42 = vadd.f32 %v15071_v34, %v9062_v35  ;;  %16886 = vmatmul.mubr.msk.f32.vlgmr.msra.gmra.mxu0 %vm580_vm1, %v19422_v26  ;;  %16888 = vmatprep.subr.mxu1 %v19424_v0 }
0x466c   :  { %16889 = vmatpush3.msra.mxu1 %v19424_v0 }
0x466d   :  { %16890 = vmatprep.subr.mxu1 %v19426_v42 }
0x466e   :  { %16891 = vmatpush3.msra.mxu1 %v19426_v42 }
0x472b   :  { %v16887_v32 = vpop.f32.mrf.mxu0 }
0x472c   :  { %v9159_v39 = vmul.f32 0.35355338, %v16887_v32 }
0x472d   :  { %v9149_v10 = vpop.f32.mrf.mxu0 }
0x472e   :  { %v9161_v43 = vadd.f32 %v19435_v15, %v9159_v39  ;;  %v9158_v6 = vmul.f32 0.35355338, %v9149_v10 }
0x4730   :  { %v9160_v17 = vadd.f32 %v19219_v38, %v9158_v6  ;;  %v9165_v36 = vsel %vm672_vm2, %v9161_v43, -inf }
0x4731   :  { %9166 = vmax.xlane.f32.xlu1 %v9165_v36 }
0x4732   :  { %v9162_v44 = vsel %vm672_vm2, %v9160_v17, -inf }
0x4733   :  { %9163 = vmax.xlane.f32.xlu0 %v9162_v44 }
0x47ba   :  { %v9167_v25 = vpop.xlane.xlu1 %9166 }
0x47bb   :  { %v9169_v49 = vsub.f32 %v9161_v43, %v9167_v25  ;;  %v15062_v43 = vld [vmem:[%s20166_s15 + $0x28] sm:$0xff] }
0x47bc   :  { %v9164_v50 = vpop.xlane.xlu0 %9163 }
0x47bd   :  { %v9172_v58 = vmul.f32 1.442695, %v9169_v49  ;;  %v9168_v41 = vsub.f32 %v9160_v17, %v9164_v50 }
0x47bf   :  { %17670 = vpow2.f32 %v9172_v58  ;;  %v9170_v53 = vmul.f32 1.442695, %v9168_v41 }
0x47c1   :  { %17672 = vpow2.f32 %v9170_v53 }
0x47cc   :  { %v17671_v51 = vpop.eup %17670 }
0x47cd   :  { %v9177_v30 = vsel %vm672_vm2, %v17671_v51, 0.0 }
0x47ce   :  { %v17673_v52 = vpop.eup %17672  ;;  %9178 = vadd.xlane.f32.xlu1 %v9177_v30 }
0x47cf   :  { %v9174_v38 = vsel %vm672_vm2, %v17673_v52, 0.0 }
0x47d0   :  { %9175 = vadd.xlane.f32.xlu0 %v9174_v38 }
0x47df   :  { %9269 = vrot.lane.b32.xlu1 %v19411_v9, %s18029_s24 }
0x47e3   :  { %9265 = vrot.lane.b32.xlu1 %v19404_v28, %s18029_s24 }
0x47e6   :  { %9271 = vrot.lane.b32.xlu0 %v19409_v33, %s18029_s24 }
0x47e7   :  { %9267 = vrot.lane.b32.xlu1 %v19422_v26, %s18029_s24 }
0x4857   :  { %v9179_v54 = vpop.xlane.xlu1 %9178 }
0x4858   :  { %17674 = vrcp.f32 %v9179_v54 }
0x4859   :  { %v9176_v55 = vpop.xlane.xlu0 %9175 }
0x485a   :  { %17676 = vrcp.f32 %v9176_v55 }
0x485b   :  { %v9270_v21 = vpop.permute.xlu1 %9269 }
0x485d   :  { %v9272_v57 = vpop.permute.xlu0 %9271 }
0x485e   :  { %16895 = vmatprep.subr.msk.mxu1 %vm580_vm1, %v9272_v57 }
0x485f   :  { %v9266_v3 = vpop.permute.xlu1 %9265 }
0x4863   :  { %v9268_v37 = vpop.permute.xlu1 %9267 }
0x4865   :  { %v17675_v47 = vpop.eup %17674 }
0x4866   :  { %v9183_v2 = vmul.f32 %v17675_v47, %v17671_v51 }
0x4867   :  { %v17677_v59 = vpop.eup %17676 }
0x4868   :  { %v9182_v62 = vmul.f32 %v17677_v59, %v17673_v52 }
0x486a   :  { %16892 = vmatprep.mubr.msk.f32.mxu1 %vm672_vm2, %v9182_v62 }
0x486b   :  { %16893 = vmatmul.mubr.msk.f32.vlgmr.msra.gmra.mxu1 %vm672_vm2, %v9183_v2 }
0x486c   :  { %16896 = vmatpush3.xpose.msk.msra.mxu1 %vm580_vm1, %v9272_v57  ;;  %16899 = vmatprep.mubr.msk.f32.mxu1 %vm580_vm1, %v9266_v3 }
0x486d   :  { %16897 = vmatprep.subr.msk.mxu1 %vm580_vm1, %v9270_v21 }
0x4870   :  { %16898 = vmatpush3.xpose.msk.msra.mxu1 %vm580_vm1, %v9270_v21 }
0x4871   :  { %16914 = vmatprep.subr.mxu1 %v15061_v4 }
0x4873   :  { %16900 = vmatmul.mubr.msk.f32.vlgmr.msra.gmra.mxu1 %vm580_vm1, %v9268_v37 }
0x4874   :  { %16915 = vmatpush3.msra.mxu1 %v15061_v4 }
0x492b   :  { %v16894_v5 = vpop.f32.mrf.mxu1 }
0x492d   :  { %v9256_v48 = vpop.f32.mrf.mxu1 }
0x492e   :  { %16916 = vmatprep.mubr.msk.f32.mxu1 %vm580_vm1, %v9256_v48 }
0x492f   :  { %16917 = vmatmul.mubr.msk.f32.vlgmr.msra.gmra.mxu1 %vm580_vm1, %v16894_v5 }
0x4933   :  { %v16901_v63 = vpop.f32.mrf.mxu1 }
0x4934   :  { %v9357_v12 = vmul.f32 0.35355338, %v16901_v63 }
0x4935   :  { %v9347_v22 = vpop.f32.mrf.mxu1 }
0x4936   :  { %v9359_v45 = vadd.f32 %v19435_v15, %v9357_v12  ;;  %v9356_v24 = vmul.f32 0.35355338, %v9347_v22 }
0x4938   :  { %v9358_v61 = vadd.f32 %v19464_v11, %v9356_v24  ;;  %v9363_v60 = vsel %vm672_vm2, %v9359_v45, -inf }
0x4939   :  { %9364 = vmax.xlane.f32.xlu1 %v9363_v60 }
0x493a   :  { %v9360_v20 = vsel %vm672_vm2, %v9358_v61, -inf }
0x493b   :  { %9361 = vmax.xlane.f32.xlu0 %v9360_v20 }
0x494a   :  { %9384 = vrot.lane.b32.xlu1 %v19426_v42, %s18029_s24 }
0x494e   :  { %9639 = vrot.lane.b32.xlu1 %v19409_v33, %s18030_s0 }
0x4952   :  { %9637 = vrot.lane.b32.xlu1 %v19411_v9, %s18030_s0 }
0x4956   :  { %9635 = vrot.lane.b32.xlu1 %v19422_v26, %s18030_s0 }
0x495a   :  { %9924 = vrot.lane.b32.xlu1 %v19411_v9, %s18031_s26 }
0x495e   :  { %9922 = vrot.lane.b32.xlu1 %v19422_v26, %s18031_s26 }
0x49c2   :  { %v9365_v27 = vpop.xlane.xlu1 %9364 }
0x49c3   :  { %v9367_v14 = vsub.f32 %v9359_v45, %v9365_v27 }
0x49c4   :  { %v9362_v31 = vpop.xlane.xlu0 %9361 }
0x49c5   :  { %v9370_v1 = vmul.f32 1.442695, %v9367_v14  ;;  %v9366_v29 = vsub.f32 %v9358_v61, %v9362_v31 }
0x49c6   :  { %v9385_v10 = vpop.permute.xlu1 %9384 }
0x49c7   :  { %17678 = vpow2.f32 %v9370_v1  ;;  %v9368_v8 = vmul.f32 1.442695, %v9366_v29 }
0x49c9   :  { %17680 = vpow2.f32 %v9368_v8 }
0x49d4   :  { %v17679_v34 = vpop.eup %17678 }
0x49d5   :  { %v9375_v23 = vsel %vm672_vm2, %v17679_v34, 0.0 }
0x49d6   :  { %v17681_v35 = vpop.eup %17680  ;;  %9376 = vadd.xlane.f32.xlu0 %v9375_v23 }
0x49d7   :  { %v9372_v32 = vsel %vm672_vm2, %v17681_v35, 0.0 }
0x49da   :  { %9373 = vadd.xlane.f32.xlu0 %v9372_v32 }
0x49f0   :  { %9386 = vrot.lane.b32.xlu0 %v19424_v0, %s18029_s24 }
0x49f4   :  { %9633 = vrot.lane.b32.xlu0 %v19404_v28, %s18030_s0 }
0x49f8   :  { %9926 = vrot.lane.b32.xlu0 %v19409_v33, %s18031_s26 }
0x49fc   :  { %9920 = vrot.lane.b32.xlu0 %v19404_v28, %s18031_s26  ;;  %v9640_v28 = vpop.permute.xlu1 %9639 }
0x4a00   :  { %v9638_v49 = vpop.permute.xlu1 %9637 }
0x4a04   :  { %v9636_v41 = vpop.permute.xlu1 %9635 }
0x4a08   :  { %v9925_v51 = vpop.permute.xlu1 %9924 }
0x4a0c   :  { %v9923_v30 = vpop.permute.xlu1 %9922 }
0x4a5f   :  { %v9377_v9 = vpop.xlane.xlu0 %9376 }
0x4a60   :  { %17682 = vrcp.f32 %v9377_v9 }
0x4a63   :  { %v9374_v26 = vpop.xlane.xlu0 %9373 }
0x4a64   :  { %17684 = vrcp.f32 %v9374_v26 }
0x4a67   :  { %v9387_v39 = vpop.permute.xlu0 %9386 }
0x4a68   :  { %16902 = vmatprep.subr.mxu0 %v9387_v39 }
0x4a69   :  { %16903 = vmatpush3.msra.mxu0 %v9387_v39 }
0x4a6a   :  { %16904 = vmatprep.subr.mxu0 %v9385_v10 }
0x4a6b   :  { %16905 = vmatpush3.msra.mxu0 %v9385_v10  ;;  %v9634_v33 = vpop.permute.xlu0 %9633 }
0x4a6c   :  { %16909 = vmatprep.subr.mxu0 %v15062_v43 }
0x4a6d   :  { %v17683_v6 = vpop.eup %17682 }
0x4a6e   :  { %v9381_v44 = vmul.f32 %v17683_v6, %v17679_v34 }
0x4a6f   :  { %v9927_v58 = vpop.permute.xlu0 %9926 }
0x4a71   :  { %v17685_v17 = vpop.eup %17684 }
0x4a72   :  { %v9380_v36 = vmul.f32 %v17685_v17, %v17681_v35 }
0x4a73   :  { %v9921_v53 = vpop.permute.xlu0 %9920 }
0x4a74   :  { %16906 = vmatprep.mubr.msk.f32.mxu0 %vm672_vm2, %v9380_v36 }
0x4a75   :  { %16907 = vmatmul.mubr.msk.f32.vlgmr.msra.gmra.mxu0 %vm672_vm2, %v9381_v44 }
0x4a76   :  { %16910 = vmatpush3.msra.mxu0 %v15062_v43  ;;  %v15063_v43 = vld [vmem:[%s20166_s15 + $0x30] sm:$0xff] }
0x4a77   :  { %16919 = vmatprep.subr.msk.mxu0 %vm580_vm1, %v9640_v28 }
0x4b35   :  { %v16908_v25 = vpop.f32.mrf.mxu0 }
0x4b37   :  { %v9462_v50 = vpop.f32.mrf.mxu0 }
0x4b38   :  { %16911 = vmatprep.mubr.msk.f32.mxu0 %vm580_vm1, %v9462_v50 }
0x4b39   :  { %16912 = vmatmul.mubr.msk.f32.vlgmr.msra.gmra.mxu0 %vm580_vm1, %v16908_v25 }
0x4b3a   :  { %16920 = vmatpush3.xpose.msk.msra.mxu0 %vm580_vm1, %v9640_v28  ;;  %16923 = vmatprep.mubr.msk.f32.mxu0 %vm580_vm1, %v9634_v33 }
0x4b3b   :  { %16921 = vmatprep.subr.msk.mxu0 %vm580_vm1, %v9638_v49 }
0x4b3e   :  { %16922 = vmatpush3.xpose.msk.msra.mxu0 %vm580_vm1, %v9638_v49 }
0x4b3f   :  { %16938 = vmatprep.subr.msk.mxu0 %vm580_vm1, %v9927_v58 }
0x4b41   :  { %16924 = vmatmul.mubr.msk.f32.vlgmr.msra.gmra.mxu0 %vm580_vm1, %v9636_v41  ;;  %v16918_v41 = vpop.f32.mrf.mxu1 }
0x4b42   :  { %16939 = vmatpush3.xpose.msk.msra.mxu0 %vm580_vm1, %v9927_v58  ;;  %16942 = vmatprep.mubr.msk.f32.mxu0 %vm580_vm1, %v9921_v53 }
0x4b43   :  { %16940 = vmatprep.subr.msk.mxu0 %vm580_vm1, %v9925_v51  ;;  %v9624_v53 = vpop.f32.mrf.mxu1 }
0x4b46   :  { %16941 = vmatpush3.xpose.msk.msra.mxu0 %vm580_vm1, %v9925_v51 }
0x4b49   :  { %16943 = vmatmul.mubr.msk.f32.vlgmr.msra.gmra.mxu0 %vm580_vm1, %v9923_v30 }
0x4bf9   :  { %v19508_v52 = vpop.f32.mrf.mxu0 }
0x4bfb   :  { %v19510_v38 = vpop.f32.mrf.mxu0 }
0x4c01   :  { %v16925_v54 = vpop.f32.mrf.mxu0 }
0x4c02   :  { %v9725_v55 = vmul.f32 0.35355338, %v16925_v54 }
0x4c03   :  { %v9715_v57 = vpop.f32.mrf.mxu0 }
0x4c04   :  { %v9727_v21 = vadd.f32 %v19435_v15, %v9725_v55  ;;  %v9724_v47 = vmul.f32 0.35355338, %v9715_v57 }
0x4c06   :  { %v9726_v59 = vadd.f32 %v19464_v11, %v9724_v47  ;;  %v9731_v62 = vsel %vm672_vm2, %v9727_v21, -inf }
0x4c07   :  { %9732 = vmax.xlane.f32.xlu1 %v9731_v62  ;;  %v9630_v62 = vadd.f32 %v16918_v41, %v19508_v52 }
0x4c08   :  { %v9728_v2 = vsel %vm672_vm2, %v9726_v59, -inf }
0x4c09   :  { %9729 = vmax.xlane.f32.xlu0 %v9728_v2  ;;  %v16944_v3 = vpop.f32.mrf.mxu0 }
0x4c0a   :  { %v10012_v34 = vmul.f32 0.35355338, %v16944_v3  ;;  %v9625_v3 = vadd.f32 %v9624_v53, %v19510_v38 }
0x4c0b   :  { %v10002_v37 = vpop.f32.mrf.mxu0 }
0x4c0c   :  { %v10011_v4 = vmul.f32 0.35355338, %v10002_v37  ;;  %v10014_v23 = vadd.f32 %v19435_v15, %v10012_v34 }
0x4c0e   :  { %v10013_v5 = vadd.f32 %v19464_v11, %v10011_v4  ;;  %v10018_v35 = vsel %vm672_vm2, %v10014_v23, -inf }
0x4c10   :  { %v10015_v48 = vsel %vm672_vm2, %v10013_v5, -inf }
0x4c18   :  { %9750 = vrot.lane.b32.xlu1 %v19426_v42, %s18030_s0 }
0x4c3c   :  { %10016 = vmax.xlane.f32.xlu1 %v10015_v48 }
0x4c90   :  { %v9733_v63 = vpop.xlane.xlu1 %9732 }
0x4c91   :  { %v9735_v12 = vsub.f32 %v9727_v21, %v9733_v63 }
0x4c92   :  { %v9730_v22 = vpop.xlane.xlu0 %9729 }
0x4c93   :  { %v9738_v45 = vmul.f32 1.442695, %v9735_v12  ;;  %v9734_v24 = vsub.f32 %v9726_v59, %v9730_v22  ;;  %v15064_v59 = vld [vmem:[%s20166_s15 + $0x38] sm:$0xff]  ;;  %v15106_v12 = vld [vmem:[%s20167_s16 + $0x1] ss:$0 sm:$0xff] }
0x4c94   :  { %v9751_v31 = vpop.permute.xlu1 %9750 }
0x4c95   :  { %17686 = vpow2.f32 %v9738_v45  ;;  %v9736_v61 = vmul.f32 1.442695, %v9734_v24 }
0x4c97   :  { %17688 = vpow2.f32 %v9736_v61 }
0x4ca2   :  { %v17687_v60 = vpop.eup %17686 }
0x4ca3   :  { %v9743_v20 = vsel %vm672_vm2, %v17687_v60, 0.0 }
0x4ca4   :  { %v17689_v27 = vpop.eup %17688  ;;  %9744 = vadd.xlane.f32.xlu0 %v9743_v20 }
0x4ca5   :  { %v9740_v14 = vsel %vm672_vm2, %v17689_v27, 0.0 }
0x4ca8   :  { %9741 = vadd.xlane.f32.xlu0 %v9740_v14 }
0x4cbe   :  { %9752 = vrot.lane.b32.xlu0 %v19424_v0, %s18030_s0 }
0x4cc5   :  { %v10017_v1 = vpop.xlane.xlu1 %10016 }
0x4cc6   :  { %v10021_v29 = vsub.f32 %v10013_v5, %v10017_v1 }
0x4cc8   :  { %v10023_v8 = vmul.f32 1.442695, %v10021_v29 }
0x4cca   :  { %17690 = vpow2.f32 %v10023_v8 }
0x4cd7   :  { %v17691_v32 = vpop.eup %17690 }
0x4cd8   :  { %v10027_v9 = vsel %vm672_vm2, %v17691_v32, 0.0 }
0x4cdd   :  { %10019 = vmax.xlane.f32.xlu0 %v10018_v35 }
0x4ce1   :  { %10028 = vadd.xlane.f32.xlu0 %v10027_v9 }
0x4cf7   :  { %10039 = vrot.lane.b32.xlu0 %v19424_v0, %s18031_s26 }
0x4d2d   :  { %v9745_v26 = vpop.xlane.xlu0 %9744 }
0x4d2e   :  { %17692 = vrcp.f32 %v9745_v26 }
0x4d31   :  { %v9742_v39 = vpop.xlane.xlu0 %9741 }
0x4d32   :  { %17694 = vrcp.f32 %v9742_v39  ;;  %v15112_v39 = vld [vmem:[%s20168_s13 + $0x38] sm:$0xff] }
0x4d33   :  { %16957 = vmatprep.subr.mxu0 %v15112_v39 }
0x4d34   :  { %16958 = vmatpush3.msra.mxu0 %v15112_v39 }
0x4d35   :  { %v9753_v10 = vpop.permute.xlu0 %9752 }
0x4d36   :  { %16926 = vmatprep.subr.mxu1 %v9753_v10 }
0x4d37   :  { %16927 = vmatpush3.msra.mxu1 %v9753_v10  ;;  %v15111_v10 = vld [vmem:[%s20168_s13 + $0x30] sm:$0xff] }
0x4d38   :  { %16928 = vmatprep.subr.mxu1 %v9751_v31  ;;  %16959 = vmatprep.subr.mxu0 %v15111_v10 }
0x4d39   :  { %16929 = vmatpush3.msra.mxu1 %v9751_v31  ;;  %16960 = vmatpush3.msra.mxu0 %v15111_v10 }
0x4d3a   :  { %16933 = vmatprep.subr.mxu1 %v15063_v43 }
0x4d3b   :  { %v17693_v6 = vpop.eup %17692 }
0x4d3c   :  { %v9749_v44 = vmul.f32 %v17693_v6, %v17687_v60  ;;  %v15109_v6 = vld [vmem:[%s20168_s13 + $0x20] sm:$0xff] }
0x4d3f   :  { %v17695_v17 = vpop.eup %17694 }
0x4d40   :  { %v9748_v36 = vmul.f32 %v17695_v17, %v17689_v27 }
0x4d42   :  { %16930 = vmatprep.mubr.msk.f32.mxu1 %vm672_vm2, %v9748_v36 }
0x4d43   :  { %16931 = vmatmul.mubr.msk.f32.vlgmr.msra.gmra.mxu1 %vm672_vm2, %v9749_v44 }
0x4d44   :  { %16934 = vmatpush3.msra.mxu1 %v15063_v43  ;;  %v15110_v43 = vld [vmem:[%s20168_s13 + $0x28] sm:$0xff] }
0x4d45   :  { %16961 = vmatprep.subr.mxu0 %v15110_v43 }
0x4d46   :  { %16962 = vmatpush3.msra.mxu0 %v15110_v43 }
0x4d47   :  { %16963 = vmatprep.subr.mxu0 %v15109_v6 }
0x4d48   :  { %16964 = vmatpush3.msra.mxu0 %v15109_v6 }
0x4d66   :  { %v10020_v0 = vpop.xlane.xlu0 %10019 }
0x4d67   :  { %v10022_v28 = vsub.f32 %v10014_v23, %v10020_v0 }
0x4d69   :  { %v10025_v33 = vmul.f32 1.442695, %v10022_v28 }
0x4d6a   :  { %v10029_v25 = vpop.xlane.xlu0 %10028 }
0x4d6b   :  { %17696 = vpow2.f32 %v10025_v33 }
0x4d6c   :  { %17698 = vrcp.f32 %v10029_v25 }
0x4d6e   :  { %v10040_v49 = vpop.permute.xlu0 %10039 }
0x4d6f   :  { %16945 = vmatprep.subr.mxu1 %v10040_v49 }
0x4d78   :  { %v17697_v50 = vpop.eup %17696 }
0x4d79   :  { %v10030_v58 = vsel %vm672_vm2, %v17697_v50, 0.0  ;;  %v17699_v51 = vpop.eup %17698 }
0x4d7a   :  { %10031 = vadd.xlane.f32.xlu1 %v10030_v58  ;;  %v10035_v57 = vmul.f32 %v17699_v51, %v17691_v32  ;;  %v15108_v51 = vld [vmem:[%s20170_s18 + $0x1] ss:$0 sm:$0xff] }
0x4d8b   :  { %10037 = vrot.lane.b32.xlu1 %v19426_v42, %s18031_s26 }
0x4e03   :  { %v16932_v30 = vpop.f32.mrf.mxu1  ;;  %v10032_v54 = vpop.xlane.xlu1 %10031 }
0x4e04   :  { %17700 = vrcp.f32 %v10032_v54 }
0x4e05   :  { %v9828_v55 = vpop.f32.mrf.mxu1 }
0x4e06   :  { %16935 = vmatprep.mubr.msk.f32.mxu1 %vm580_vm1, %v9828_v55 }
0x4e07   :  { %16936 = vmatmul.mubr.msk.f32.vlgmr.msra.gmra.mxu1 %vm580_vm1, %v16932_v30  ;;  %v10038_v21 = vpop.permute.xlu1 %10037 }
0x4e08   :  { %16946 = vmatpush3.msra.mxu1 %v10040_v49  ;;  %16949 = vmatprep.mubr.msk.f32.mxu1 %vm672_vm2, %v10035_v57  ;;  %v15107_v49 = vld [vmem:[%s20169_s6 + $0x1] ss:$0 sm:$0xff]  ;;  %v15131_v57 = vld [vmem:[%s20171_s22 + $0xf8] sm:$0xff] }
0x4e09   :  { %16947 = vmatprep.subr.mxu1 %v10038_v21 }
0x4e0a   :  { %16948 = vmatpush3.msra.mxu1 %v10038_v21  ;;  %v15130_v21 = vld [vmem:[%s20171_s22 + $0xf0] sm:$0xff] }
0x4e0b   :  { %16952 = vmatprep.subr.mxu1 %v15064_v59 }
0x4e11   :  { %v17701_v42 = vpop.eup %17700 }
0x4e12   :  { %v10036_v47 = vmul.f32 %v17701_v42, %v17697_v50  ;;  %v15129_v42 = vld [vmem:[%s20171_s22 + $0xe8] sm:$0xff] }
0x4e14   :  { %16950 = vmatmul.mubr.msk.f32.vlgmr.msra.gmra.mxu1 %vm672_vm2, %v10036_v47  ;;  %v15128_v47 = vld [vmem:[%s20171_s22 + $0xe0] sm:$0xff] }
0x4e15   :  { %16953 = vmatpush3.msra.mxu1 %v15064_v59  ;;  %v15127_v59 = vld [vmem:[%s20171_s22 + $0xd8] sm:$0xff] }
0x4e16   :  { %16968 = vmatprep.subr.mxu1 %v15131_v57 }
0x4ec7   :  { %v16937_v2 = vpop.f32.mrf.mxu1 }
0x4ec8   :  { %v9919_v37 = vadd.f32 %v16937_v2, %v9630_v62  ;;  %v15126_v62 = vld [vmem:[%s20171_s22 + $0xd0] sm:$0xff]  ;;  %v15125_v2 = vld [vmem:[%s20171_s22 + $0xc8] sm:$0xff] }
0x4ec9   :  { %v9909_v4 = vpop.f32.mrf.mxu1 }
0x4eca   :  { %v9918_v5 = vadd.f32 %v9909_v4, %v9625_v3  ;;  %v15124_v3 = vld [vmem:[%s20171_s22 + $0xc0] sm:$0xff]  ;;  %v15122_v4 = vld [vmem:[%s20171_s22 + $0xb0] sm:$0xff] }
0x4ed4   :  { %v16951_v48 = vpop.f32.mrf.mxu1 }
0x4ed6   :  { %v10115_v63 = vpop.f32.mrf.mxu1 }
0x4ed7   :  { %16954 = vmatprep.mubr.msk.f32.mxu1 %vm580_vm1, %v10115_v63  ;;  %v15119_v63 = vld [vmem:[%s20171_s22 + $0x98] sm:$0xff] }
0x4ed8   :  { %16955 = vmatmul.mubr.msk.f32.vlgmr.msra.gmra.mxu1 %vm580_vm1, %v16951_v48  ;;  %v15120_v48 = vld [vmem:[%s20171_s22 + $0xa0] sm:$0xff] }
0x4ed9   :  { %16969 = vmatpush3.msra.mxu1 %v15131_v57 }
0x4eda   :  { %16970 = vmatprep.subr.mxu1 %v15130_v21 }
0x4edb   :  { %16971 = vmatpush3.msra.mxu1 %v15130_v21 }
0x4edc   :  { %16972 = vmatprep.subr.mxu1 %v15129_v42 }
0x4edd   :  { %16973 = vmatpush3.msra.mxu1 %v15129_v42 }
0x4ede   :  { %16974 = vmatprep.subr.mxu1 %v15128_v47 }
0x4edf   :  { %16975 = vmatpush3.msra.mxu1 %v15128_v47 }
0x4ee0   :  { %16976 = vmatprep.subr.mxu1 %v15127_v59 }
0x4ee1   :  { %16977 = vmatpush3.msra.mxu1 %v15127_v59  ;;  %v15138_v59 = vld [vmem:[%s20158_s3 + $0x58] sm:$0xff] }
0x4ee2   :  { %16978 = vmatprep.subr.mxu1 %v15126_v62  ;;  %17003 = vmatprep.subr.mxu0 %v15138_v59 }
0x4ee3   :  { %16979 = vmatpush3.msra.mxu1 %v15126_v62  ;;  %v15137_v62 = vld [vmem:[%s20158_s3 + $0x50] sm:$0xff] }
0x4ee4   :  { %16980 = vmatprep.subr.mxu1 %v15125_v2 }
0x4ee5   :  { %16981 = vmatpush3.msra.mxu1 %v15125_v2  ;;  %v15136_v2 = vld [vmem:[%s20158_s3 + $0x48] sm:$0xff] }
0x4ee6   :  { %16982 = vmatprep.subr.mxu1 %v15124_v3 }
0x4ee7   :  { %16983 = vmatpush3.msra.mxu1 %v15124_v3  ;;  %v15135_v3 = vld [vmem:[%s20158_s3 + $0x40] sm:$0xff] }
0x4f98   :  { %v16956_v22 = vpop.f32.mrf.mxu1 }
0x4f99   :  { %v10206_v45 = vadd.f32 %v16956_v22, %v9919_v37  ;;  %v15123_v37 = vld [vmem:[%s20171_s22 + $0xb8] sm:$0xff]  ;;  %v15117_v22 = vld [vmem:[%s20171_s22 + $0x88] sm:$0xff] }
0x4f9a   :  { %v10196_v24 = vpop.f32.mrf.mxu1  ;;  %16984 = vmatprep.subr.mxu1 %v15123_v37 }
0x4f9b   :  { %v10212_v61 = vadd.f32 %v15106_v12, %v10206_v45  ;;  %v10205_v60 = vadd.f32 %v10196_v24, %v9918_v5  ;;  %16985 = vmatpush3.msra.mxu1 %v15123_v37  ;;  %v15121_v5 = vld [vmem:[%s20171_s22 + $0xa8] sm:$0xff]  ;;  %v15116_v45 = vld [vmem:[%s20171_s22 + $0x80] sm:$0xff]  ;;  %v15142_v37 = vld [vmem:[%s20161_s19 + $0x58] sm:$0xff] }
0x4f9c   :  { %16986 = vmatprep.subr.mxu1 %v15122_v4  ;;  %v15113_v24 = vld [vmem:[%s20172_s23 + $0x1] ss:$0 sm:$0xff] }
0x4f9d   :  { %v19546_v52 = vadd.f32 %v10212_v61, %v19370_v40  ;;  %v10211_v20 = vadd.f32 %v15106_v12, %v10205_v60  ;;  %16987 = vmatpush3.msra.mxu1 %v15122_v4  ;;  %v15118_v12 = vld [vmem:[%s20171_s22 + $0x90] sm:$0xff] }
0x4f9e   :  { %16988 = vmatprep.subr.mxu1 %v15121_v5 }
0x4f9f   :  { %v19549_v38 = vadd.f32 %v10211_v20, %v19373_v7  ;;  %v10220_v27 = vsel %vm277_vm0, %v19546_v52, 0.0  ;;  %16989 = vmatpush3.msra.mxu1 %v15121_v5 }
0x4fa0   :  { %10221 = vadd.xlane.f32.xlu0 %v10220_v27  ;;  %16990 = vmatprep.subr.mxu1 %v15120_v48 }
0x4fa1   :  { %v10217_v14 = vsel %vm277_vm0, %v19549_v38, 0.0  ;;  %16991 = vmatpush3.msra.mxu1 %v15120_v48 }
0x4fa2   :  { %10218 = vadd.xlane.f32.xlu1 %v10217_v14  ;;  %16992 = vmatprep.subr.mxu1 %v15119_v63 }
0x4fa3   :  { %16993 = vmatpush3.msra.mxu1 %v15119_v63 }
0x4fa4   :  { %16994 = vmatprep.subr.mxu1 %v15118_v12 }
0x4fa5   :  { %16995 = vmatpush3.msra.mxu1 %v15118_v12 }
0x4fa6   :  { %16996 = vmatprep.subr.mxu1 %v15117_v22 }
0x4fa7   :  { %16997 = vmatpush3.msra.mxu1 %v15117_v22 }
0x4fa8   :  { %16998 = vmatprep.subr.mxu1 %v15116_v45 }
0x4fa9   :  { %16999 = vmatpush3.msra.mxu1 %v15116_v45 }
0x5029   :  { %v10222_v31 = vpop.xlane.xlu0 %10221 }
0x502a   :  { %v10224_v1 = vmul.f32 0.03125, %v10222_v31 }
0x502b   :  { %v10219_v29 = vpop.xlane.xlu1 %10218 }
0x502c   :  { %v10226_v8 = vsub.f32 %v19546_v52, %v10224_v1  ;;  %v10223_v34 = vmul.f32 0.03125, %v10219_v29 }
0x502e   :  { %v10225_v23 = vsub.f32 %v19549_v38, %v10223_v34  ;;  %v10228_v35 = vmul.f32 %v10226_v8, %v10226_v8 }
0x5030   :  { %v10232_v32 = vsel %vm277_vm0, %v10228_v35, 0.0  ;;  %v10227_v9 = vmul.f32 %v10225_v23, %v10225_v23 }
0x5031   :  { %10233 = vadd.xlane.f32.xlu1 %v10232_v32 }
0x5032   :  { %v10229_v26 = vsel %vm277_vm0, %v10227_v9, 0.0 }
0x5033   :  { %10230 = vadd.xlane.f32.xlu0 %v10229_v26 }
0x50ba   :  { %v10234_v17 = vpop.xlane.xlu1 %10233 }
0x50bb   :  { %v10236_v36 = vmul.f32 0.03125, %v10234_v17 }
0x50bc   :  { %v10231_v44 = vpop.xlane.xlu0 %10230 }
0x50bd   :  { %v10238_v0 = vadd.f32 1e-12, %v10236_v36  ;;  %v10235_v28 = vmul.f32 0.03125, %v10231_v44 }
0x50bf   :  { %17702 = vrsqrt.f32 %v10238_v0  ;;  %v10237_v33 = vadd.f32 1e-12, %v10235_v28  ;;  %v15132_v0 = vld [vmem:[%s20173_s9 + $0x1] ss:$0 sm:$0xff] }
0x50c1   :  { %17704 = vrsqrt.f32 %v10237_v33 }
0x50cc   :  { %v17703_v25 = vpop.eup %17702 }
0x50cd   :  { %v10242_v50 = vmul.f32 %v17703_v25, %v10226_v8 }
0x50ce   :  { %v17705_v58 = vpop.eup %17704 }
0x50cf   :  { %v10241_v41 = vmul.f32 %v17705_v58, %v10225_v23  ;;  %v10248_v53 = vmul.f32 %v15107_v49, %v10242_v50 }
0x50d1   :  { %v10247_v30 = vmul.f32 %v15107_v49, %v10241_v41  ;;  %v10254_v55 = vadd.f32 %v15108_v51, %v10248_v53 }
0x50d3   :  { %v10253_v54 = vadd.f32 %v15108_v51, %v10247_v30 }
0x50d5   :  { %16965 = vmatprep.mubr.msk.f32.mxu0 %vm277_vm0, %v10253_v54 }
0x50d6   :  { %16966 = vmatmul.mubr.msk.f32.vlgmr.msra.gmra.mxu0 %vm277_vm0, %v10254_v55 }
0x50d7   :  { %17004 = vmatpush3.msra.mxu0 %v15138_v59 }
0x50d8   :  { %17005 = vmatprep.subr.mxu0 %v15137_v62 }
0x50d9   :  { %17006 = vmatpush3.msra.mxu0 %v15137_v62 }
0x50da   :  { %17007 = vmatprep.subr.mxu0 %v15136_v2 }
0x50db   :  { %17008 = vmatpush3.msra.mxu0 %v15136_v2 }
0x50dc   :  { %17009 = vmatprep.subr.mxu0 %v15135_v3 }
0x50dd   :  { %17010 = vmatpush3.msra.mxu0 %v15135_v3 }
0x50de   :  { %17014 = vmatprep.subr.mxu0 %v15142_v37 }
0x5196   :  { %v16967_v61 = vpop.f32.mrf.mxu0 }
0x5197   :  { %v10343_v60 = vadd.f32 %v16967_v61, %v15113_v24 }
0x5198   :  { %v10337_v20 = vpop.f32.mrf.mxu0 }
0x5199   :  { %v10347_v27 = vmul.f32 %v10343_v60, %v10343_v60  ;;  %v10338_v14 = vadd.f32 %v15113_v24, %v10337_v20  ;;  %v15133_v24 = vld [vmem:[%s20159_s8 + $0x2] ss:$0 sm:$0xff] }
0x519b   :  { %v10349_v31 = vmul.f32 %v10347_v27, %v10343_v60  ;;  %v10346_v1 = vmul.f32 %v10338_v14, %v10338_v14 }
0x519d   :  { %v10351_v29 = vmul.f32 0.044715, %v10349_v31  ;;  %v10348_v8 = vmul.f32 %v10346_v1, %v10338_v14 }
0x519f   :  { %v10353_v34 = vadd.f32 %v10351_v29, %v10343_v60  ;;  %v10350_v23 = vmul.f32 0.044715, %v10348_v8  ;;  %v15141_v8 = vld [vmem:[%s20161_s19 + $0x50] sm:$0xff] }
0x51a1   :  { %v10355_v35 = vmul.f32 0.7978846, %v10353_v34  ;;  %v10352_v32 = vadd.f32 %v10350_v23, %v10338_v14  ;;  %v15140_v34 = vld [vmem:[%s20161_s19 + $0x48] sm:$0xff]  ;;  %v15139_v23 = vld [vmem:[%s20161_s19 + $0x40] sm:$0xff] }
0x51a3   :  { %17706 = vtanh.f32 %v10355_v35  ;;  %v10354_v9 = vmul.f32 0.7978846, %v10352_v32  ;;  %v15146_v35 = vld [vmem:[%s20162_s30 + $0x58] sm:$0xff]  ;;  %v15145_v32 = vld [vmem:[%s20162_s30 + $0x50] sm:$0xff] }
0x51a5   :  { %17708 = vtanh.f32 %v10354_v9  ;;  %v15144_v9 = vld [vmem:[%s20162_s30 + $0x48] sm:$0xff] }
0x51b0   :  { %v17707_v26 = vpop.eup %17706 }
0x51b1   :  { %v10359_v39 = vadd.f32 1.0, %v17707_v26  ;;  %v15143_v26 = vld [vmem:[%s20162_s30 + $0x40] sm:$0xff] }
0x51b2   :  { %v17709_v10 = vpop.eup %17708 }
0x51b3   :  { %v10358_v43 = vadd.f32 1.0, %v17709_v10  ;;  %v10361_v6 = vmul.f32 0.5, %v10359_v39  ;;  %v15151_v10 = vld [vmem:[%s20163_s4 + $0x2] ss:$0 sm:$0xff] }
0x51b5   :  { %v10360_v17 = vmul.f32 0.5, %v10358_v43  ;;  %v10363_v44 = vmul.f32 %v10361_v6, %v10343_v60 }
0x51b7   :  { %v10362_v36 = vmul.f32 %v10360_v17, %v10338_v14  ;;  %v15134_v14 = vld [vmem:[%s20160_s14 + $0x2] ss:$0 sm:$0xff] }
0x51b8   :  { %v15154_v17 = vld [vmem:[%s20164_s10 + $0x2] ss:$0 sm:$0xff] }
0x51b9   :  { %17000 = vmatprep.mubr.f32.mxu1 %v10362_v36 }
0x51ba   :  { %17001 = vmatmul.mubr.f32.vlgmr.msra.gmra.mxu1 %v10363_v44 }
0x527a   :  { %v17002_v28 = vpop.f32.mrf.mxu1 }
0x527b   :  { %v10458_v33 = vadd.f32 %v17002_v28, %v15132_v0 }
0x527c   :  { %v10452_v25 = vpop.f32.mrf.mxu1 }
0x527d   :  { %v19586_v49 = vadd.f32 %v10458_v33, %v19546_v52  ;;  %v10453_v50 = vadd.f32 %v15132_v0, %v10452_v25  ;;  %v15157_v33 = vld [vmem:[%s20165_s11 + $0x2] ss:$0 sm:$0xff] }
0x527f   :  { %v19589_v58 = vadd.f32 %v10453_v50, %v19549_v38  ;;  %v10468_v41 = vsel %vm277_vm0, %v19586_v49, 0.0 }
0x5280   :  { %10469 = vadd.xlane.f32.xlu1 %v10468_v41 }
0x5281   :  { %v10465_v53 = vsel %vm277_vm0, %v19589_v58, 0.0 }
0x5282   :  { %10466 = vadd.xlane.f32.xlu0 %v10465_v53 }
0x5309   :  { %v10470_v51 = vpop.xlane.xlu1 %10469 }
0x530a   :  { %v10472_v30 = vmul.f32 0.03125, %v10470_v51 }
0x530b   :  { %v10467_v54 = vpop.xlane.xlu0 %10466 }
0x530c   :  { %v10474_v52 = vsub.f32 %v19586_v49, %v10472_v30  ;;  %v10471_v55 = vmul.f32 0.03125, %v10467_v54 }
0x530e   :  { %v10473_v38 = vsub.f32 %v19589_v58, %v10471_v55  ;;  %v10476_v57 = vmul.f32 %v10474_v52, %v10474_v52 }
0x5310   :  { %v10480_v21 = vsel %vm277_vm0, %v10476_v57, 0.0  ;;  %v10475_v42 = vmul.f32 %v10473_v38, %v10473_v38 }
0x5311   :  { %10481 = vadd.xlane.f32.xlu1 %v10480_v21 }
0x5312   :  { %v10477_v47 = vsel %vm277_vm0, %v10475_v42, 0.0 }
0x5313   :  { %10478 = vadd.xlane.f32.xlu0 %v10477_v47 }
0x539a   :  { %v10482_v4 = vpop.xlane.xlu1 %10481 }
0x539b   :  { %v10484_v5 = vmul.f32 0.03125, %v10482_v4 }
0x539c   :  { %v10479_v48 = vpop.xlane.xlu0 %10478 }
0x539d   :  { %v10486_v63 = vadd.f32 1e-12, %v10484_v5  ;;  %v10483_v12 = vmul.f32 0.03125, %v10479_v48 }
0x539f   :  { %17710 = vrsqrt.f32 %v10486_v63  ;;  %v10485_v22 = vadd.f32 1e-12, %v10483_v12 }
0x53a1   :  { %17712 = vrsqrt.f32 %v10485_v22 }
0x53ac   :  { %v17711_v45 = vpop.eup %17710 }
0x53ad   :  { %v10490_v61 = vmul.f32 %v17711_v45, %v10474_v52 }
0x53ae   :  { %v17713_v60 = vpop.eup %17712 }
0x53af   :  { %v10489_v20 = vmul.f32 %v17713_v60, %v10473_v38  ;;  %v10496_v27 = vmul.f32 %v15133_v24, %v10490_v61 }
0x53b1   :  { %v10495_v31 = vmul.f32 %v15133_v24, %v10489_v20  ;;  %v10502_v29 = vadd.f32 %v15134_v14, %v10496_v27 }
0x53b3   :  { %v10501_v1 = vadd.f32 %v15134_v14, %v10495_v31  ;;  %v15147_v31 = vld [vmem:[%s20166_s15 + $0x40] sm:$0xff] }
0x53b5   :  { %17011 = vmatprep.mubr.msk.f32.mxu0 %vm277_vm0, %v10501_v1 }
0x53b6   :  { %17012 = vmatmul.mubr.msk.f32.vlgmr.msra.gmra.mxu0 %vm277_vm0, %v10502_v29 }
0x53b7   :  { %17015 = vmatpush3.msra.mxu0 %v15142_v37  ;;  %17022 = vmatprep.mubr.msk.f32.mxu0 %vm277_vm0, %v10501_v1 }
0x53b8   :  { %17016 = vmatprep.subr.mxu0 %v15141_v8 }
0x53b9   :  { %17017 = vmatpush3.msra.mxu0 %v15141_v8 }
0x53ba   :  { %17018 = vmatprep.subr.mxu0 %v15140_v34 }
0x53bb   :  { %17019 = vmatpush3.msra.mxu0 %v15140_v34 }
0x53bc   :  { %17020 = vmatprep.subr.mxu0 %v15139_v23 }
0x53bd   :  { %17021 = vmatpush3.msra.mxu0 %v15139_v23 }
0x53be   :  { %17023 = vmatmul.mubr.msk.f32.vlgmr.msra.gmra.mxu0 %vm277_vm0, %v10502_v29  ;;  %17025 = vmatprep.subr.mxu0 %v15146_v35 }
0x53bf   :  { %17026 = vmatpush3.msra.mxu0 %v15146_v35  ;;  %17033 = vmatprep.mubr.msk.f32.mxu0 %vm277_vm0, %v10501_v1  ;;  %v19676_v35 = vld [vmem:[%s20149_s25 + $0x8] sm:$0xff] }
0x53c0   :  { %17027 = vmatprep.subr.mxu0 %v15145_v32 }
0x53c1   :  { %17028 = vmatpush3.msra.mxu0 %v15145_v32 }
0x53c2   :  { %17029 = vmatprep.subr.mxu0 %v15144_v9 }
0x53c3   :  { %17030 = vmatpush3.msra.mxu0 %v15144_v9 }
0x53c4   :  { %17031 = vmatprep.subr.mxu0 %v15143_v26 }
0x53c5   :  { %17032 = vmatpush3.msra.mxu0 %v15143_v26 }
0x53c6   :  { %17034 = vmatmul.mubr.msk.f32.vlgmr.msra.gmra.mxu0 %vm277_vm0, %v10502_v29 }
0x5476   :  { %v17013_v39 = vpop.f32.mrf.mxu0 }
0x5477   :  { %v19638_v50 = vadd.f32 %v17013_v39, %v15151_v10 }
0x5478   :  { %v10603_v43 = vpop.f32.mrf.mxu0 }
0x5479   :  { %v19620_v6 = vadd.f32 %v15151_v10, %v10603_v43 }
0x547b   :  { %17040 = vmatprep.mubr.msk.f32.mxu0 %vm580_vm1, %v19620_v6 }
0x547e   :  { %v17024_v36 = vpop.f32.mrf.mxu0 }
0x547f   :  { %v19625_v44 = vadd.f32 %v17024_v36, %v15154_v17 }
0x5480   :  { %v10682_v0 = vpop.f32.mrf.mxu0 }
0x5481   :  { %v19627_v28 = vadd.f32 %v15154_v17, %v10682_v0  ;;  %17036 = vmatprep.subr.msk.mxu0 %vm580_vm1, %v19625_v44 }
0x5482   :  { %17037 = vmatpush3.xpose.msk.msra.mxu0 %vm580_vm1, %v19625_v44 }
0x5483   :  { %17038 = vmatprep.subr.msk.mxu0 %vm580_vm1, %v19627_v28 }
0x5486   :  { %v17035_v25 = vpop.f32.mrf.mxu0  ;;  %17039 = vmatpush3.xpose.msk.msra.mxu0 %vm580_vm1, %v19627_v28 }
0x5487   :  { %v19640_v41 = vadd.f32 %v17035_v25, %v15157_v33 }
0x5488   :  { %v10761_v53 = vpop.f32.mrf.mxu0 }
0x5489   :  { %v19642_v51 = vadd.f32 %v15157_v33, %v10761_v53  ;;  %17041 = vmatmul.mubr.msk.f32.vlgmr.msra.gmra.mxu0 %vm580_vm1, %v19638_v50  ;;  %17043 = vmatprep.subr.mxu1 %v19640_v41 }
0x548a   :  { %17044 = vmatpush3.msra.mxu1 %v19640_v41 }
0x548b   :  { %17045 = vmatprep.subr.mxu1 %v19642_v51 }
0x548c   :  { %17046 = vmatpush3.msra.mxu1 %v19642_v51 }
0x5549   :  { %v17042_v30 = vpop.f32.mrf.mxu0 }
0x554a   :  { %v10858_v54 = vmul.f32 0.35355338, %v17042_v30 }
0x554b   :  { %v10848_v52 = vpop.f32.mrf.mxu0 }
0x554c   :  { %v10860_v55 = vadd.f32 %v19435_v15, %v10858_v54  ;;  %v10857_v38 = vmul.f32 0.35355338, %v10848_v52 }
0x554e   :  { %v10859_v57 = vadd.f32 %v19464_v11, %v10857_v38  ;;  %v10864_v21 = vsel %vm672_vm2, %v10860_v55, -inf  ;;  %v15148_v38 = vld [vmem:[%s20166_s15 + $0x48] sm:$0xff] }
0x554f   :  { %10865 = vmax.xlane.f32.xlu1 %v10864_v21 }
0x5550   :  { %v10861_v42 = vsel %vm672_vm2, %v10859_v57, -inf }
0x5551   :  { %10862 = vmax.xlane.f32.xlu0 %v10861_v42 }
0x55d8   :  { %v10866_v47 = vpop.xlane.xlu1 %10865 }
0x55d9   :  { %v10868_v59 = vsub.f32 %v10860_v55, %v10866_v47 }
0x55da   :  { %v10863_v62 = vpop.xlane.xlu0 %10862 }
0x55db   :  { %v10871_v2 = vmul.f32 1.442695, %v10868_v59  ;;  %v10867_v3 = vsub.f32 %v10859_v57, %v10863_v62 }
0x55dd   :  { %17714 = vpow2.f32 %v10871_v2  ;;  %v10869_v37 = vmul.f32 1.442695, %v10867_v3 }
0x55df   :  { %17716 = vpow2.f32 %v10869_v37 }
0x55ea   :  { %v17715_v4 = vpop.eup %17714 }
0x55eb   :  { %v10876_v15 = vsel %vm672_vm2, %v17715_v4, 0.0 }
0x55ec   :  { %v17717_v5 = vpop.eup %17716  ;;  %10877 = vadd.xlane.f32.xlu1 %v10876_v15 }
0x55ed   :  { %v10873_v48 = vsel %vm672_vm2, %v17717_v5, 0.0 }
0x55ee   :  { %10874 = vadd.xlane.f32.xlu0 %v10873_v48  ;;  %v11931_v48 = vld [vmem:[%s20174_s12 + $0x18] sm:$0xff] }
0x55fd   :  { %10968 = vrot.lane.b32.xlu1 %v19627_v28, %s18029_s24 }
0x5601   :  { %10964 = vrot.lane.b32.xlu1 %v19620_v6, %s18029_s24 }
0x5604   :  { %10970 = vrot.lane.b32.xlu0 %v19625_v44, %s18029_s24 }
0x5605   :  { %10966 = vrot.lane.b32.xlu1 %v19638_v50, %s18029_s24 }
0x5675   :  { %v10878_v63 = vpop.xlane.xlu1 %10877 }
0x5676   :  { %17718 = vrcp.f32 %v10878_v63 }
0x5677   :  { %v10875_v12 = vpop.xlane.xlu0 %10874 }
0x5678   :  { %17720 = vrcp.f32 %v10875_v12  ;;  %v15194_v12 = vld [vmem:[#allocation4] ss:$0 sm:$0xff] }
0x5679   :  { %v10969_v45 = vpop.permute.xlu1 %10968 }
0x567b   :  { %v10971_v22 = vpop.permute.xlu0 %10970 }
0x567c   :  { %17050 = vmatprep.subr.msk.mxu1 %vm580_vm1, %v10971_v22 }
0x567d   :  { %v10965_v27 = vpop.permute.xlu1 %10964 }
0x5681   :  { %v10967_v14 = vpop.permute.xlu1 %10966 }
0x5683   :  { %v17719_v24 = vpop.eup %17718 }
0x5684   :  { %v10882_v20 = vmul.f32 %v17719_v24, %v17715_v4  ;;  %v11930_v24 = vld [vmem:[%s20174_s12 + $0x10] sm:$0xff] }
0x5685   :  { %v17721_v61 = vpop.eup %17720 }
0x5686   :  { %v10881_v60 = vmul.f32 %v17721_v61, %v17717_v5  ;;  %v15193_v5 = vld [vmem:[#allocation2] ss:$0 sm:$0xff]  ;;  %v11929_v61 = vld [vmem:[%s20174_s12 + $0x8] sm:$0xff] }
0x5687   :  { %v11920_v63 = vmul.f32 %v15193_v5, %v18946_v19 }
0x5688   :  { %17047 = vmatprep.mubr.msk.f32.mxu1 %vm672_vm2, %v10881_v60  ;;  %v11921_v60 = vmul.f32 %v15193_v5, %v18944_v18 }
0x5689   :  { %17048 = vmatmul.mubr.msk.f32.vlgmr.msra.gmra.mxu1 %vm672_vm2, %v10882_v20  ;;  %v11928_v20 = vld [vmem:[%s20174_s12] sm:$0xff] }
0x568a   :  { %17051 = vmatpush3.xpose.msk.msra.mxu1 %vm580_vm1, %v10971_v22  ;;  %17054 = vmatprep.mubr.msk.f32.mxu1 %vm580_vm1, %v10965_v27  ;;  %v11927_v19 = vadd.f32 %v15194_v12, %v11921_v60 }
0x568b   :  { %17052 = vmatprep.subr.msk.mxu1 %vm580_vm1, %v10969_v45 }
0x568e   :  { %17053 = vmatpush3.xpose.msk.msra.mxu1 %vm580_vm1, %v10969_v45  ;;  %v11926_v45 = vadd.f32 %v15194_v12, %v11920_v63 }
0x568f   :  { %17069 = vmatprep.subr.mxu1 %v15147_v31 }
0x5691   :  { %17055 = vmatmul.mubr.msk.f32.vlgmr.msra.gmra.mxu1 %vm580_vm1, %v10967_v14 }
0x5692   :  { %17070 = vmatpush3.msra.mxu1 %v15147_v31 }
0x5749   :  { %v17049_v1 = vpop.f32.mrf.mxu1 }
0x574b   :  { %v10955_v29 = vpop.f32.mrf.mxu1 }
0x574c   :  { %17071 = vmatprep.mubr.msk.f32.mxu1 %vm580_vm1, %v10955_v29 }
0x574d   :  { %17072 = vmatmul.mubr.msk.f32.vlgmr.msra.gmra.mxu1 %vm580_vm1, %v17049_v1 }
0x5751   :  { %v17056_v8 = vpop.f32.mrf.mxu1 }
0x5752   :  { %v11056_v34 = vmul.f32 0.35355338, %v17056_v8 }
0x5753   :  { %v11046_v23 = vpop.f32.mrf.mxu1 }
0x5754   :  { %v11058_v32 = vadd.f32 %v19676_v35, %v11056_v34  ;;  %v11055_v9 = vmul.f32 0.35355338, %v11046_v23  ;;  %v19735_v34 = vld [vmem:[%s20149_s25] sm:$0xff] }
0x5756   :  { %v11057_v26 = vadd.f32 %v19464_v11, %v11055_v9  ;;  %v11062_v39 = vsel %vm672_vm2, %v11058_v32, -inf }
0x5757   :  { %11063 = vmax.xlane.f32.xlu1 %v11062_v39 }
0x5758   :  { %v11059_v10 = vsel %vm672_vm2, %v11057_v26, -inf }
0x5759   :  { %11060 = vmax.xlane.f32.xlu0 %v11059_v10 }
0x5768   :  { %11083 = vrot.lane.b32.xlu1 %v19642_v51, %s18029_s24 }
0x576c   :  { %11338 = vrot.lane.b32.xlu1 %v19625_v44, %s18030_s0 }
0x5770   :  { %11336 = vrot.lane.b32.xlu1 %v19627_v28, %s18030_s0 }
0x5774   :  { %11334 = vrot.lane.b32.xlu1 %v19638_v50, %s18030_s0 }
0x5778   :  { %11623 = vrot.lane.b32.xlu1 %v19627_v28, %s18031_s26 }
0x577c   :  { %11621 = vrot.lane.b32.xlu1 %v19638_v50, %s18031_s26 }
0x57e0   :  { %v11064_v11 = vpop.xlane.xlu1 %11063 }
0x57e1   :  { %v11066_v43 = vsub.f32 %v11058_v32, %v11064_v11 }
0x57e2   :  { %v11061_v17 = vpop.xlane.xlu0 %11060 }
0x57e3   :  { %v11069_v36 = vmul.f32 1.442695, %v11066_v43  ;;  %v11065_v0 = vsub.f32 %v11057_v26, %v11061_v17 }
0x57e4   :  { %v11084_v55 = vpop.permute.xlu1 %11083 }
0x57e5   :  { %17722 = vpow2.f32 %v11069_v36  ;;  %v11067_v33 = vmul.f32 1.442695, %v11065_v0 }
0x57e7   :  { %17724 = vpow2.f32 %v11067_v33 }
0x57f2   :  { %v17723_v25 = vpop.eup %17722 }
0x57f3   :  { %v11074_v53 = vsel %vm672_vm2, %v17723_v25, 0.0 }
0x57f4   :  { %v17725_v30 = vpop.eup %17724  ;;  %11075 = vadd.xlane.f32.xlu0 %v11074_v53 }
0x57f5   :  { %v11071_v54 = vsel %vm672_vm2, %v17725_v30, 0.0 }
0x57f8   :  { %11072 = vadd.xlane.f32.xlu0 %v11071_v54 }
0x580e   :  { %11085 = vrot.lane.b32.xlu0 %v19640_v41, %s18029_s24 }
0x5812   :  { %11332 = vrot.lane.b32.xlu0 %v19620_v6, %s18030_s0 }
0x5816   :  { %11625 = vrot.lane.b32.xlu0 %v19625_v44, %s18031_s26 }
0x581a   :  { %11619 = vrot.lane.b32.xlu0 %v19620_v6, %s18031_s26  ;;  %v11339_v6 = vpop.permute.xlu1 %11338 }
0x581e   :  { %v11337_v62 = vpop.permute.xlu1 %11336 }
0x5822   :  { %v11335_v37 = vpop.permute.xlu1 %11334 }
0x5826   :  { %v11624_v15 = vpop.permute.xlu1 %11623 }
0x582a   :  { %v11622_v22 = vpop.permute.xlu1 %11621 }
0x587d   :  { %v11076_v28 = vpop.xlane.xlu0 %11075 }
0x587e   :  { %17726 = vrcp.f32 %v11076_v28 }
0x5881   :  { %v11073_v50 = vpop.xlane.xlu0 %11072 }
0x5882   :  { %17728 = vrcp.f32 %v11073_v50 }
0x5885   :  { %v11086_v52 = vpop.permute.xlu0 %11085 }
0x5886   :  { %17057 = vmatprep.subr.mxu0 %v11086_v52 }
0x5887   :  { %17058 = vmatpush3.msra.mxu0 %v11086_v52 }
0x5888   :  { %17059 = vmatprep.subr.mxu0 %v11084_v55 }
0x5889   :  { %17060 = vmatpush3.msra.mxu0 %v11084_v55  ;;  %v11333_v44 = vpop.permute.xlu0 %11332 }
0x588a   :  { %17064 = vmatprep.subr.mxu0 %v15148_v38 }
0x588b   :  { %v17727_v57 = vpop.eup %17726 }
0x588c   :  { %v11080_v47 = vmul.f32 %v17727_v57, %v17723_v25 }
0x588d   :  { %v11626_v3 = vpop.permute.xlu0 %11625 }
0x588f   :  { %v17729_v21 = vpop.eup %17728 }
0x5890   :  { %v11079_v42 = vmul.f32 %v17729_v21, %v17725_v30 }
0x5891   :  { %v11620_v4 = vpop.permute.xlu0 %11619 }
0x5892   :  { %17061 = vmatprep.mubr.msk.f32.mxu0 %vm672_vm2, %v11079_v42 }
0x5893   :  { %17062 = vmatmul.mubr.msk.f32.vlgmr.msra.gmra.mxu0 %vm672_vm2, %v11080_v47 }
0x5894   :  { %17065 = vmatpush3.msra.mxu0 %v15148_v38 }
0x5895   :  { %17074 = vmatprep.subr.msk.mxu0 %vm580_vm1, %v11339_v6 }
0x5953   :  { %v17063_v59 = vpop.f32.mrf.mxu0 }
0x5955   :  { %v11161_v2 = vpop.f32.mrf.mxu0 }
0x5956   :  { %17066 = vmatprep.mubr.msk.f32.mxu0 %vm580_vm1, %v11161_v2 }
0x5957   :  { %17067 = vmatmul.mubr.msk.f32.vlgmr.msra.gmra.mxu0 %vm580_vm1, %v17063_v59 }
0x5958   :  { %17075 = vmatpush3.xpose.msk.msra.mxu0 %vm580_vm1, %v11339_v6  ;;  %17078 = vmatprep.mubr.msk.f32.mxu0 %vm580_vm1, %v11333_v44 }
0x5959   :  { %17076 = vmatprep.subr.msk.mxu0 %vm580_vm1, %v11337_v62 }
0x595c   :  { %17077 = vmatpush3.xpose.msk.msra.mxu0 %vm580_vm1, %v11337_v62 }
0x595d   :  { %17093 = vmatprep.subr.msk.mxu0 %vm580_vm1, %v11626_v3 }
0x595f   :  { %17079 = vmatmul.mubr.msk.f32.vlgmr.msra.gmra.mxu0 %vm580_vm1, %v11335_v37 }
0x5960   :  { %17094 = vmatpush3.xpose.msk.msra.mxu0 %vm580_vm1, %v11626_v3  ;;  %17097 = vmatprep.mubr.msk.f32.mxu0 %vm580_vm1, %v11620_v4  ;;  %v15149_v3 = vld [vmem:[%s20166_s15 + $0x50] sm:$0xff] }
0x5961   :  { %17095 = vmatprep.subr.msk.mxu0 %vm580_vm1, %v11624_v15 }
0x5964   :  { %17096 = vmatpush3.xpose.msk.msra.mxu0 %vm580_vm1, %v11624_v15 }
0x5965   :  { %17112 = vmatprep.subr.mxu0 %v11931_v48 }
0x5967   :  { %17098 = vmatmul.mubr.msk.f32.vlgmr.msra.gmra.mxu0 %vm580_vm1, %v11622_v22 }
0x5968   :  { %17113 = vmatpush3.msra.mxu0 %v11931_v48  ;;  %17120 = vmatprep.mubr.msk.f32.mxu0 %vm277_vm0, %v11926_v45 }
0x5969   :  { %17114 = vmatprep.subr.mxu0 %v11930_v24 }
0x596a   :  { %17115 = vmatpush3.msra.mxu0 %v11930_v24  ;;  %v17073_v24 = vpop.f32.mrf.mxu1 }
0x596b   :  { %17116 = vmatprep.subr.mxu0 %v11929_v61 }
0x596c   :  { %17117 = vmatpush3.msra.mxu0 %v11929_v61  ;;  %v11323_v61 = vpop.f32.mrf.mxu1 }
0x596d   :  { %17118 = vmatprep.subr.mxu0 %v11928_v20 }
0x596e   :  { %17119 = vmatpush3.msra.mxu0 %v11928_v20 }
0x596f   :  { %17121 = vmatmul.mubr.msk.f32.vlgmr.msra.gmra.mxu0 %vm277_vm0, %v11927_v19 }
0x5a17   :  { %v19729_v27 = vpop.f32.mrf.mxu0 }
0x5a19   :  { %v19731_v14 = vpop.f32.mrf.mxu0 }
0x5a1f   :  { %v17080_v31 = vpop.f32.mrf.mxu0 }
0x5a20   :  { %v11424_v1 = vmul.f32 0.35355338, %v17080_v31 }
0x5a21   :  { %v11414_v29 = vpop.f32.mrf.mxu0 }
0x5a22   :  { %v11426_v18 = vadd.f32 %v19676_v35, %v11424_v1  ;;  %v11423_v8 = vmul.f32 0.35355338, %v11414_v29 }
0x5a24   :  { %v11425_v23 = vadd.f32 %v19735_v34, %v11423_v8  ;;  %v11430_v32 = vsel %vm672_vm2, %v11426_v18, -inf  ;;  %v15150_v8 = vld [vmem:[%s20166_s15 + $0x58] sm:$0xff] }
0x5a25   :  { %11431 = vmax.xlane.f32.xlu1 %v11430_v32  ;;  %v11329_v32 = vadd.f32 %v17073_v24, %v19729_v27  ;;  %v12045_v27 = vld [vmem:[%s20175_s28 + $0x8] sm:$0xff] }
0x5a26   :  { %v11427_v9 = vsel %vm672_vm2, %v11425_v23, -inf }
0x5a27   :  { %11428 = vmax.xlane.f32.xlu0 %v11427_v9  ;;  %v17099_v26 = vpop.f32.mrf.mxu0 }
0x5a28   :  { %v11711_v21 = vmul.f32 0.35355338, %v17099_v26  ;;  %v11324_v26 = vadd.f32 %v11323_v61, %v19731_v14  ;;  %v12044_v14 = vld [vmem:[%s20175_s28] sm:$0xff] }
0x5a29   :  { %v11701_v39 = vpop.f32.mrf.mxu0 }
0x5a2a   :  { %v11710_v10 = vmul.f32 0.35355338, %v11701_v39  ;;  %v11713_v42 = vadd.f32 %v19676_v35, %v11711_v21 }
0x5a2c   :  { %v11712_v11 = vadd.f32 %v19735_v34, %v11710_v10  ;;  %v11717_v47 = vsel %vm672_vm2, %v11713_v42, -inf }
0x5a2e   :  { %v11714_v43 = vsel %vm672_vm2, %v11712_v11, -inf }
0x5a36   :  { %11449 = vrot.lane.b32.xlu1 %v19642_v51, %s18030_s0 }
0x5a5a   :  { %11715 = vmax.xlane.f32.xlu1 %v11714_v43 }
0x5aae   :  { %v11432_v17 = vpop.xlane.xlu1 %11431 }
0x5aaf   :  { %v11434_v36 = vsub.f32 %v11426_v18, %v11432_v17 }
0x5ab0   :  { %v11429_v0 = vpop.xlane.xlu0 %11428 }
0x5ab1   :  { %v11437_v33 = vmul.f32 1.442695, %v11434_v36  ;;  %v11433_v25 = vsub.f32 %v11425_v23, %v11429_v0  ;;  %v12047_v23 = vld [vmem:[%s20175_s28 + $0x18] sm:$0xff]  ;;  %v12046_v36 = vld [vmem:[%s20175_s28 + $0x10] sm:$0xff] }
0x5ab2   :  { %v11450_v52 = vpop.permute.xlu1 %11449  ;;  %v12043_v0 = vld [vmem:[%s20176_s1 + $0x18] sm:$0xff] }
0x5ab3   :  { %17730 = vpow2.f32 %v11437_v33  ;;  %v11435_v53 = vmul.f32 1.442695, %v11433_v25  ;;  %17134 = vmatprep.subr.mxu0 %v12043_v0  ;;  %v12042_v33 = vld [vmem:[%s20176_s1 + $0x10] sm:$0xff]  ;;  %v12040_v25 = vld [vmem:[%s20176_s1] sm:$0xff] }
0x5ab4   :  { %17135 = vmatpush3.msra.mxu0 %v12043_v0 }
0x5ab5   :  { %17732 = vpow2.f32 %v11435_v53  ;;  %17136 = vmatprep.subr.mxu0 %v12042_v33  ;;  %v12018_v53 = vld [vmem:[#allocation7] sm:$0x1] }
0x5ab6   :  { %17137 = vmatpush3.msra.mxu0 %v12042_v33  ;;  %v15209_v33 = vld [vmem:[%s20168_s13 + $0x58] sm:$0xff] }
0x5ac0   :  { %v17731_v30 = vpop.eup %17730 }
0x5ac1   :  { %v11442_v54 = vsel %vm672_vm2, %v17731_v30, 0.0 }
0x5ac2   :  { %v17733_v28 = vpop.eup %17732  ;;  %11443 = vadd.xlane.f32.xlu0 %v11442_v54 }
0x5ac3   :  { %v11439_v50 = vsel %vm672_vm2, %v17733_v28, 0.0 }
0x5ac6   :  { %11440 = vadd.xlane.f32.xlu0 %v11439_v50  ;;  %v17122_v50 = vpop.f32.mrf.mxu0 }
0x5adc   :  { %11451 = vrot.lane.b32.xlu0 %v19640_v41, %s18030_s0 }
0x5ae3   :  { %v11716_v55 = vpop.xlane.xlu1 %11715 }
0x5ae4   :  { %v11720_v38 = vsub.f32 %v11712_v11, %v11716_v55 }
0x5ae6   :  { %v11722_v57 = vmul.f32 1.442695, %v11720_v38  ;;  %v15192_v38 = vld [vmem:[%s20167_s16 + $0x2] ss:$0 sm:$0xff] }
0x5ae8   :  { %17734 = vpow2.f32 %v11722_v57 }
0x5af5   :  { %v17735_v6 = vpop.eup %17734 }
0x5af6   :  { %v11726_v44 = vsel %vm672_vm2, %v17735_v6, 0.0 }
0x5afb   :  { %11718 = vmax.xlane.f32.xlu0 %v11717_v47 }
0x5aff   :  { %11727 = vadd.xlane.f32.xlu0 %v11726_v44 }
0x5b15   :  { %11738 = vrot.lane.b32.xlu0 %v19640_v41, %s18031_s26 }
0x5b4b   :  { %v11444_v59 = vpop.xlane.xlu0 %11443 }
0x5b4c   :  { %17736 = vrcp.f32 %v11444_v59  ;;  %v15195_v59 = vld [vmem:[#allocation6] ss:$0 sm:$0xff] }
0x5b4f   :  { %v11441_v62 = vpop.xlane.xlu0 %11440 }
0x5b50   :  { %17738 = vrcp.f32 %v11441_v62 }
0x5b53   :  { %v11452_v2 = vpop.permute.xlu0 %11451 }
0x5b54   :  { %17081 = vmatprep.subr.mxu1 %v11452_v2 }
0x5b55   :  { %17082 = vmatpush3.msra.mxu1 %v11452_v2 }
0x5b56   :  { %17083 = vmatprep.subr.mxu1 %v11450_v52 }
0x5b57   :  { %17084 = vmatpush3.msra.mxu1 %v11450_v52 }
0x5b58   :  { %17088 = vmatprep.subr.mxu1 %v15149_v3 }
0x5b59   :  { %v17737_v35 = vpop.eup %17736 }
0x5b5a   :  { %v11448_v15 = vmul.f32 %v17737_v35, %v17731_v30  ;;  %v15198_v30 = vmul.f32 -1.442695, %v12018_v53  ;;  %v15206_v53 = vld [vmem:[%s20168_s13 + $0x40] sm:$0xff] }
0x5b5d   :  { %v17739_v37 = vpop.eup %17738 }
0x5b5e   :  { %v11447_v4 = vmul.f32 %v17739_v37, %v17733_v28 }
0x5b60   :  { %17085 = vmatprep.mubr.msk.f32.mxu1 %vm672_vm2, %v11447_v4 }
0x5b61   :  { %17086 = vmatmul.mubr.msk.f32.vlgmr.msra.gmra.mxu1 %vm672_vm2, %v11448_v15  ;;  %v12015_v15 = vadd.f32 %v17122_v50, %v15195_v59 }
0x5b62   :  { %17089 = vmatpush3.msra.mxu1 %v15149_v3 }
0x5b84   :  { %v11719_v41 = vpop.xlane.xlu0 %11718 }
0x5b85   :  { %v11721_v5 = vsub.f32 %v11713_v42, %v11719_v41 }
0x5b87   :  { %v11724_v48 = vmul.f32 1.442695, %v11721_v5 }
0x5b88   :  { %v11728_v63 = vpop.xlane.xlu0 %11727 }
0x5b89   :  { %17740 = vpow2.f32 %v11724_v48 }
0x5b8a   :  { %17742 = vrcp.f32 %v11728_v63 }
0x5b8c   :  { %v11739_v12 = vpop.permute.xlu0 %11738 }
0x5b8d   :  { %17100 = vmatprep.subr.mxu1 %v11739_v12 }
0x5b96   :  { %v17741_v22 = vpop.eup %17740 }
0x5b97   :  { %v11729_v45 = vsel %vm672_vm2, %v17741_v22, 0.0  ;;  %v17743_v60 = vpop.eup %17742 }
0x5b98   :  { %11730 = vadd.xlane.f32.xlu1 %v11729_v45  ;;  %v11734_v1 = vmul.f32 %v17743_v60, %v17735_v6  ;;  %v12009_v6 = vpop.f32.mrf.mxu0 }
0x5b99   :  { %v12010_v35 = vadd.f32 %v15195_v59, %v12009_v6 }
0x5ba9   :  { %11736 = vrot.lane.b32.xlu1 %v19642_v51, %s18031_s26 }
0x5c21   :  { %v17087_v20 = vpop.f32.mrf.mxu1  ;;  %v11731_v19 = vpop.xlane.xlu1 %11730 }
0x5c22   :  { %17744 = vrcp.f32 %v11731_v19 }
0x5c23   :  { %v11527_v31 = vpop.f32.mrf.mxu1  ;;  %17746 = vpow2.f32 %v15198_v30 }
0x5c24   :  { %17090 = vmatprep.mubr.msk.f32.mxu1 %vm580_vm1, %v11527_v31 }
0x5c25   :  { %17091 = vmatmul.mubr.msk.f32.vlgmr.msra.gmra.mxu1 %vm580_vm1, %v17087_v20  ;;  %v11737_v29 = vpop.permute.xlu1 %11736  ;;  %v15203_v20 = vld [vmem:[#allocation9] ss:$0 sm:$0xff] }
0x5c26   :  { %17101 = vmatpush3.msra.mxu1 %v11739_v12  ;;  %17104 = vmatprep.mubr.msk.f32.mxu1 %vm672_vm2, %v11734_v1 }
0x5c27   :  { %17102 = vmatprep.subr.mxu1 %v11737_v29 }
0x5c28   :  { %17103 = vmatpush3.msra.mxu1 %v11737_v29 }
0x5c29   :  { %17107 = vmatprep.subr.mxu1 %v15150_v8 }
0x5c2f   :  { %v17745_v51 = vpop.eup %17744 }
0x5c30   :  { %v11735_v18 = vmul.f32 %v17745_v51, %v17741_v22  ;;  %v17747_v54 = vpop.eup %17746 }
0x5c31   :  { %v12022_v28 = vadd.f32 1.0, %v17747_v54 }
0x5c32   :  { %17105 = vmatmul.mubr.msk.f32.vlgmr.msra.gmra.mxu1 %vm672_vm2, %v11735_v18 }
0x5c33   :  { %17108 = vmatpush3.msra.mxu1 %v15150_v8  ;;  %17748 = vrcp.f32 %v12022_v28 }
0x5c34   :  { %17123 = vmatprep.subr.mxu1 %v12047_v23 }
0x5c40   :  { %v17749_v55 = vpop.eup %17748 }
0x5c41   :  { %v12025_v21 = vsub.f32 1.0, %v17749_v55 }
0x5ce5   :  { %v17092_v9 = vpop.f32.mrf.mxu1 }
0x5ce6   :  { %v11618_v39 = vadd.f32 %v17092_v9, %v11329_v32 }
0x5ce7   :  { %v11608_v10 = vpop.f32.mrf.mxu1 }
0x5ce8   :  { %v11617_v11 = vadd.f32 %v11608_v10, %v11324_v26 }
0x5cf2   :  { %v17106_v43 = vpop.f32.mrf.mxu1 }
0x5cf4   :  { %v11814_v17 = vpop.f32.mrf.mxu1 }
0x5cf5   :  { %17109 = vmatprep.mubr.msk.f32.mxu1 %vm580_vm1, %v11814_v17 }
0x5cf6   :  { %17110 = vmatmul.mubr.msk.f32.vlgmr.msra.gmra.mxu1 %vm580_vm1, %v17106_v43 }
0x5cf7   :  { %17124 = vmatpush3.msra.mxu1 %v12047_v23  ;;  %17131 = vmatprep.mubr.msk.f32.mxu1 %vm277_vm0, %v19373_v7  ;;  %v12041_v7 = vld [vmem:[%s20176_s1 + $0x8] sm:$0xff] }
0x5cf8   :  { %17125 = vmatprep.subr.mxu1 %v12046_v36  ;;  %17138 = vmatprep.subr.mxu0 %v12041_v7 }
0x5cf9   :  { %17126 = vmatpush3.msra.mxu1 %v12046_v36  ;;  %17139 = vmatpush3.msra.mxu0 %v12041_v7  ;;  %v15208_v7 = vld [vmem:[%s20168_s13 + $0x50] sm:$0xff] }
0x5cfa   :  { %17127 = vmatprep.subr.mxu1 %v12045_v27  ;;  %17140 = vmatprep.subr.mxu0 %v12040_v25 }
0x5cfb   :  { %17128 = vmatpush3.msra.mxu1 %v12045_v27  ;;  %17141 = vmatpush3.msra.mxu0 %v12040_v25  ;;  %v15207_v25 = vld [vmem:[%s20168_s13 + $0x48] sm:$0xff] }
0x5cfc   :  { %17129 = vmatprep.subr.mxu1 %v12044_v14 }
0x5cfd   :  { %17130 = vmatpush3.msra.mxu1 %v12044_v14 }
0x5cfe   :  { %17132 = vmatmul.mubr.msk.f32.vlgmr.msra.gmra.mxu1 %vm277_vm0, %v19370_v40  ;;  %v12026_v40 = vlaneseq  ;;  %17145 = vmatprep.subr.mxu1 %v15209_v33 }
0x5cff   :  { %17146 = vmatpush3.msra.mxu1 %v15209_v33 }
0x5d00   :  { %v12027_v52 = vshrl.u32 %v12026_v40, 7  ;;  %17147 = vmatprep.subr.mxu1 %v15208_v7 }
0x5d01   :  { %17148 = vmatpush3.msra.mxu1 %v15208_v7 }
0x5d02   :  { %v19781_v47 = vsub.s32 0, %v12027_v52  ;;  %17149 = vmatprep.subr.mxu1 %v15207_v25 }
0x5d03   :  { %17150 = vmatpush3.msra.mxu1 %v15207_v25 }
0x5d04   :  { %v12029_v3 = vrot.slane %v12025_v21, %v19781_v47  ;;  %v12035_v41 = vrot.slane %v17749_v55, %v19781_v47  ;;  %17151 = vmatprep.subr.mxu1 %v15206_v53 }
0x5d05   :  { %17152 = vmatpush3.msra.mxu1 %v15206_v53  ;;  %v15229_v53 = vld [vmem:[%s20173_s9 + $0x2] ss:$0 sm:$0xff] }
0x5d06   :  { %v12036_v63 = vmul.f32 %v12035_v41, %v12010_v35  ;;  %v12037_v22 = vmul.f32 %v12035_v41, %v12015_v15  ;;  %v15227_v35 = vld [vmem:[%s20171_s22 + $0x170] sm:$0xff]  ;;  %v15224_v15 = vld [vmem:[%s20171_s22 + $0x158] sm:$0xff] }
0x5d07   :  { %v15223_v41 = vld [vmem:[%s20171_s22 + $0x150] sm:$0xff] }
0x5db6   :  { %v17111_v57 = vpop.f32.mrf.mxu1 }
0x5db7   :  { %v11905_v42 = vadd.f32 %v17111_v57, %v11618_v39 }
0x5db8   :  { %v11895_v44 = vpop.f32.mrf.mxu1 }
0x5db9   :  { %v11911_v62 = vadd.f32 %v15192_v38, %v11905_v42  ;;  %v11904_v2 = vadd.f32 %v11895_v44, %v11617_v11  ;;  %v15205_v44 = vld [vmem:[%s20170_s18 + $0x2] ss:$0 sm:$0xff] }
0x5dbb   :  { %v11913_v37 = vadd.f32 %v11911_v62, %v19586_v49  ;;  %v11910_v4 = vadd.f32 %v15192_v38, %v11904_v2  ;;  %v15204_v38 = vld [vmem:[%s20169_s6 + $0x2] ss:$0 sm:$0xff] }
0x5dbd   :  { %v11912_v5 = vadd.f32 %v11910_v4, %v19589_v58  ;;  %v12031_v48 = vmul.f32 %v12029_v3, %v11913_v37  ;;  %v15226_v37 = vld [vmem:[%s20171_s22 + $0x168] sm:$0xff]  ;;  %v15225_v4 = vld [vmem:[%s20171_s22 + $0x160] sm:$0xff] }
0x5dbe   :  { %v17133_v61 = vpop.f32.mrf.mxu1 }
0x5dbf   :  { %v12030_v12 = vmul.f32 %v12029_v3, %v11912_v5  ;;  %v12039_v24 = vadd.f32 %v12037_v22, %v12031_v48  ;;  %v15228_v3 = vld [vmem:[%s20171_s22 + $0x178] sm:$0xff]  ;;  %v15222_v5 = vld [vmem:[%s20171_s22 + $0x148] sm:$0xff]  ;;  %v15221_v48 = vld [vmem:[%s20171_s22 + $0x140] sm:$0xff] }
0x5dc0   :  { %v12120_v19 = vpop.f32.mrf.mxu1  ;;  %17156 = vmatprep.subr.mxu0 %v15228_v3  ;;  %v15218_v22 = vld [vmem:[%s20171_s22 + $0x128] sm:$0xff] }
0x5dc1   :  { %v12038_v45 = vadd.f32 %v12036_v63, %v12030_v12  ;;  %v15220_v63 = vld [vmem:[%s20171_s22 + $0x138] sm:$0xff]  ;;  %v15219_v12 = vld [vmem:[%s20171_s22 + $0x130] sm:$0xff] }
0x5dc3   :  { %17142 = vmatprep.mubr.msk.f32.mxu0 %vm277_vm0, %v12038_v45 }
0x5dc4   :  { %17143 = vmatmul.mubr.msk.f32.vlgmr.msra.gmra.mxu0 %vm277_vm0, %v12039_v24 }
0x5dc5   :  { %17157 = vmatpush3.msra.mxu0 %v15228_v3  ;;  %v15235_v3 = vld [vmem:[%s20158_s3 + $0x78] sm:$0xff] }
0x5dc6   :  { %17158 = vmatprep.subr.mxu0 %v15227_v35  ;;  %17191 = vmatprep.subr.mxu1 %v15235_v3 }
0x5dc7   :  { %17159 = vmatpush3.msra.mxu0 %v15227_v35  ;;  %v15234_v35 = vld [vmem:[%s20158_s3 + $0x70] sm:$0xff] }
0x5dc8   :  { %17160 = vmatprep.subr.mxu0 %v15226_v37 }
0x5dc9   :  { %17161 = vmatpush3.msra.mxu0 %v15226_v37  ;;  %v15233_v37 = vld [vmem:[%s20158_s3 + $0x68] sm:$0xff] }
0x5dca   :  { %17162 = vmatprep.subr.mxu0 %v15225_v4 }
0x5dcb   :  { %17163 = vmatpush3.msra.mxu0 %v15225_v4  ;;  %v15232_v4 = vld [vmem:[%s20158_s3 + $0x60] sm:$0xff] }
0x5dcc   :  { %17164 = vmatprep.subr.mxu0 %v15224_v15 }
0x5dcd   :  { %17165 = vmatpush3.msra.mxu0 %v15224_v15  ;;  %v15239_v15 = vld [vmem:[%s20161_s19 + $0x78] sm:$0xff] }
0x5dce   :  { %17166 = vmatprep.subr.mxu0 %v15223_v41 }
0x5dcf   :  { %17167 = vmatpush3.msra.mxu0 %v15223_v41 }
0x5dd0   :  { %17168 = vmatprep.subr.mxu0 %v15222_v5 }
0x5dd1   :  { %17169 = vmatpush3.msra.mxu0 %v15222_v5 }
0x5dd2   :  { %17170 = vmatprep.subr.mxu0 %v15221_v48 }
0x5dd3   :  { %17171 = vmatpush3.msra.mxu0 %v15221_v48 }
0x5dd4   :  { %17172 = vmatprep.subr.mxu0 %v15220_v63 }
0x5dd5   :  { %17173 = vmatpush3.msra.mxu0 %v15220_v63 }
0x5dd6   :  { %17174 = vmatprep.subr.mxu0 %v15219_v12 }
0x5dd7   :  { %17175 = vmatpush3.msra.mxu0 %v15219_v12 }
0x5dd8   :  { %17176 = vmatprep.subr.mxu0 %v15218_v22 }
0x5dd9   :  { %17177 = vmatpush3.msra.mxu0 %v15218_v22 }
0x5e84   :  { %v17144_v60 = vpop.f32.mrf.mxu0 }
0x5e85   :  { %v12207_v49 = vadd.f32 %v17144_v60, %v17133_v61  ;;  %v15215_v61 = vld [vmem:[%s20171_s22 + $0x110] sm:$0xff]  ;;  %v15214_v60 = vld [vmem:[%s20171_s22 + $0x108] sm:$0xff] }
0x5e86   :  { %v12201_v31 = vpop.f32.mrf.mxu0 }
0x5e87   :  { %v12216_v1 = vadd.f32 %v15203_v20, %v12207_v49  ;;  %v12202_v29 = vadd.f32 %v12201_v31, %v12120_v19  ;;  %v15210_v49 = vld [vmem:[%s20172_s23 + $0x2] ss:$0 sm:$0xff] }
0x5e89   :  { %v12218_v51 = vmul.f32 0.1, %v12216_v1  ;;  %v12215_v58 = vadd.f32 %v15203_v20, %v12202_v29  ;;  %v15213_v20 = vld [vmem:[%s20171_s22 + $0x100] sm:$0xff] }
0x5e8b   :  { %v19789_v18 = vadd.f32 %v12218_v51, %v12039_v24  ;;  %v12217_v8 = vmul.f32 0.1, %v12215_v58  ;;  %v15216_v24 = vld [vmem:[%s20171_s22 + $0x118] sm:$0xff] }
0x5e8d   :  { %v19791_v23 = vadd.f32 %v12217_v8, %v12038_v45  ;;  %v12226_v32 = vsel %vm277_vm0, %v19789_v18, 0.0  ;;  %v15217_v45 = vld [vmem:[%s20171_s22 + $0x120] sm:$0xff] }
0x5e8e   :  { %12227 = vadd.xlane.f32.xlu0 %v12226_v32  ;;  %17178 = vmatprep.subr.mxu0 %v15217_v45 }
0x5e8f   :  { %v12223_v9 = vsel %vm277_vm0, %v19791_v23, 0.0  ;;  %17179 = vmatpush3.msra.mxu0 %v15217_v45 }
0x5e90   :  { %12224 = vadd.xlane.f32.xlu1 %v12223_v9  ;;  %17180 = vmatprep.subr.mxu0 %v15216_v24 }
0x5e91   :  { %17181 = vmatpush3.msra.mxu0 %v15216_v24  ;;  %v15230_v24 = vld [vmem:[%s20159_s8 + $0x3] ss:$0 sm:$0xff] }
0x5e92   :  { %17182 = vmatprep.subr.mxu0 %v15215_v61 }
0x5e93   :  { %17183 = vmatpush3.msra.mxu0 %v15215_v61 }
0x5e94   :  { %17184 = vmatprep.subr.mxu0 %v15214_v60 }
0x5e95   :  { %17185 = vmatpush3.msra.mxu0 %v15214_v60 }
0x5e96   :  { %17186 = vmatprep.subr.mxu0 %v15213_v20 }
0x5e97   :  { %17187 = vmatpush3.msra.mxu0 %v15213_v20 }
0x5f17   :  { %v12228_v26 = vpop.xlane.xlu0 %12227 }
0x5f18   :  { %v12230_v39 = vmul.f32 0.03125, %v12228_v26 }
0x5f19   :  { %v12225_v10 = vpop.xlane.xlu1 %12224 }
0x5f1a   :  { %v12232_v11 = vsub.f32 %v19789_v18, %v12230_v39  ;;  %v12229_v43 = vmul.f32 0.03125, %v12225_v10 }
0x5f1c   :  { %v12231_v17 = vsub.f32 %v19791_v23, %v12229_v43  ;;  %v12234_v36 = vmul.f32 %v12232_v11, %v12232_v11 }
0x5f1e   :  { %v12238_v27 = vsel %vm277_vm0, %v12234_v36, 0.0  ;;  %v12233_v14 = vmul.f32 %v12231_v17, %v12231_v17 }
0x5f1f   :  { %12239 = vadd.xlane.f32.xlu1 %v12238_v27 }
0x5f20   :  { %v12235_v0 = vsel %vm277_vm0, %v12233_v14, 0.0 }
0x5f21   :  { %12236 = vadd.xlane.f32.xlu0 %v12235_v0 }
0x5fa8   :  { %v12240_v30 = vpop.xlane.xlu1 %12239 }
0x5fa9   :  { %v12242_v54 = vmul.f32 0.03125, %v12240_v30 }
0x5faa   :  { %v12237_v28 = vpop.xlane.xlu0 %12236 }
0x5fab   :  { %v12244_v40 = vadd.f32 1e-12, %v12242_v54  ;;  %v12241_v50 = vmul.f32 0.03125, %v12237_v28 }
0x5fad   :  { %17750 = vrsqrt.f32 %v12244_v40  ;;  %v12243_v52 = vadd.f32 1e-12, %v12241_v50 }
0x5faf   :  { %17752 = vrsqrt.f32 %v12243_v52 }
0x5fba   :  { %v17751_v55 = vpop.eup %17750 }
0x5fbb   :  { %v12248_v57 = vmul.f32 %v17751_v55, %v12232_v11 }
0x5fbc   :  { %v17753_v21 = vpop.eup %17752 }
0x5fbd   :  { %v12247_v42 = vmul.f32 %v17753_v21, %v12231_v17  ;;  %v12254_v6 = vmul.f32 %v15204_v38, %v12248_v57 }
0x5fbf   :  { %v12253_v59 = vmul.f32 %v15204_v38, %v12247_v42  ;;  %v12260_v2 = vadd.f32 %v15205_v44, %v12254_v6 }
0x5fc1   :  { %v12259_v62 = vadd.f32 %v15205_v44, %v12253_v59 }
0x5fc3   :  { %17153 = vmatprep.mubr.msk.f32.mxu1 %vm277_vm0, %v12259_v62 }
0x5fc4   :  { %17154 = vmatmul.mubr.msk.f32.vlgmr.msra.gmra.mxu1 %vm277_vm0, %v12260_v2 }
0x5fc5   :  { %17192 = vmatpush3.msra.mxu1 %v15235_v3 }
0x5fc6   :  { %17193 = vmatprep.subr.mxu1 %v15234_v35 }
0x5fc7   :  { %17194 = vmatpush3.msra.mxu1 %v15234_v35 }
0x5fc8   :  { %17195 = vmatprep.subr.mxu1 %v15233_v37 }
0x5fc9   :  { %17196 = vmatpush3.msra.mxu1 %v15233_v37 }
0x5fca   :  { %17197 = vmatprep.subr.mxu1 %v15232_v4 }
0x5fcb   :  { %17198 = vmatpush3.msra.mxu1 %v15232_v4 }
0x5fcc   :  { %17202 = vmatprep.subr.mxu1 %v15239_v15 }
0x6084   :  { %v17155_v19 = vpop.f32.mrf.mxu1 }
0x6085   :  { %v12349_v31 = vadd.f32 %v17155_v19, %v15210_v49  ;;  %v15231_v19 = vld [vmem:[%s20160_s14 + $0x3] ss:$0 sm:$0xff] }
0x6086   :  { %v12343_v1 = vpop.f32.mrf.mxu1 }
0x6087   :  { %v12353_v29 = vmul.f32 %v12349_v31, %v12349_v31  ;;  %v12344_v51 = vadd.f32 %v15210_v49, %v12343_v1 }
0x6089   :  { %v12355_v58 = vmul.f32 %v12353_v29, %v12349_v31  ;;  %v12352_v8 = vmul.f32 %v12344_v51, %v12344_v51 }
0x608b   :  { %v12357_v32 = vmul.f32 0.044715, %v12355_v58  ;;  %v12354_v9 = vmul.f32 %v12352_v8, %v12344_v51  ;;  %v15237_v58 = vld [vmem:[%s20161_s19 + $0x68] sm:$0xff]  ;;  %v15236_v8 = vld [vmem:[%s20161_s19 + $0x60] sm:$0xff] }
0x608d   :  { %v12359_v26 = vadd.f32 %v12357_v32, %v12349_v31  ;;  %v12356_v39 = vmul.f32 0.044715, %v12354_v9  ;;  %v15243_v32 = vld [vmem:[%s20162_s30 + $0x78] sm:$0xff]  ;;  %v15242_v9 = vld [vmem:[%s20162_s30 + $0x70] sm:$0xff] }
0x608f   :  { %v12361_v10 = vmul.f32 0.7978846, %v12359_v26  ;;  %v12358_v11 = vadd.f32 %v12356_v39, %v12344_v51  ;;  %v15241_v26 = vld [vmem:[%s20162_s30 + $0x68] sm:$0xff]  ;;  %v15240_v39 = vld [vmem:[%s20162_s30 + $0x60] sm:$0xff] }
0x6091   :  { %17754 = vtanh.f32 %v12361_v10  ;;  %v12360_v43 = vmul.f32 0.7978846, %v12358_v11  ;;  %v15248_v11 = vld [vmem:[%s20163_s4 + $0x3] ss:$0 sm:$0xff] }
0x6093   :  { %17756 = vtanh.f32 %v12360_v43 }
0x609e   :  { %v17755_v17 = vpop.eup %17754 }
0x609f   :  { %v12365_v36 = vadd.f32 1.0, %v17755_v17 }
0x60a0   :  { %v17757_v27 = vpop.eup %17756 }
0x60a1   :  { %v12364_v14 = vadd.f32 1.0, %v17757_v27  ;;  %v12367_v0 = vmul.f32 0.5, %v12365_v36  ;;  %v15251_v36 = vld [vmem:[%s20164_s10 + $0x3] ss:$0 sm:$0xff] }
0x60a3   :  { %v12366_v33 = vmul.f32 0.5, %v12364_v14  ;;  %v12369_v25 = vmul.f32 %v12367_v0, %v12349_v31 }
0x60a5   :  { %v12368_v7 = vmul.f32 %v12366_v33, %v12344_v51  ;;  %v15238_v51 = vld [vmem:[%s20161_s19 + $0x70] sm:$0xff] }
0x60a7   :  { %17188 = vmatprep.mubr.f32.mxu0 %v12368_v7  ;;  %v15254_v7 = vld [vmem:[%s20165_s11 + $0x3] ss:$0 sm:$0xff] }
0x60a8   :  { %17189 = vmatmul.mubr.f32.vlgmr.msra.gmra.mxu0 %v12369_v25 }
0x6168   :  { %v17190_v30 = vpop.f32.mrf.mxu0 }
0x6169   :  { %v12464_v54 = vadd.f32 %v17190_v30, %v15229_v53 }
0x616a   :  { %v12458_v28 = vpop.f32.mrf.mxu0 }
0x616b   :  { %v19828_v40 = vadd.f32 %v12464_v54, %v19789_v18  ;;  %v12459_v50 = vadd.f32 %v15229_v53, %v12458_v28 }
0x616d   :  { %v19831_v52 = vadd.f32 %v12459_v50, %v19791_v23  ;;  %v12474_v55 = vsel %vm277_vm0, %v19828_v40, 0.0 }
0x616e   :  { %12475 = vadd.xlane.f32.xlu1 %v12474_v55 }
0x616f   :  { %v12471_v38 = vsel %vm277_vm0, %v19831_v52, 0.0 }
0x6170   :  { %12472 = vadd.xlane.f32.xlu0 %v12471_v38 }
0x61f7   :  { %v12476_v57 = vpop.xlane.xlu1 %12475 }
0x61f8   :  { %v12478_v21 = vmul.f32 0.03125, %v12476_v57 }
0x61f9   :  { %v12473_v42 = vpop.xlane.xlu0 %12472 }
0x61fa   :  { %v12480_v18 = vsub.f32 %v19828_v40, %v12478_v21  ;;  %v12477_v6 = vmul.f32 0.03125, %v12473_v42 }
0x61fc   :  { %v12479_v23 = vsub.f32 %v19831_v52, %v12477_v6  ;;  %v12482_v44 = vmul.f32 %v12480_v18, %v12480_v18  ;;  %v19907_v6 = vld [vmem:[%s20149_s25 + $0x8] sm:$0xff] }
0x61fe   :  { %v12486_v59 = vsel %vm277_vm0, %v12482_v44, 0.0  ;;  %v12481_v62 = vmul.f32 %v12479_v23, %v12479_v23 }
0x61ff   :  { %12487 = vadd.xlane.f32.xlu1 %v12486_v59 }
0x6200   :  { %v12483_v2 = vsel %vm277_vm0, %v12481_v62, 0.0 }
0x6201   :  { %12484 = vadd.xlane.f32.xlu0 %v12483_v2 }
0x6288   :  { %v12488_v41 = vpop.xlane.xlu1 %12487 }
0x6289   :  { %v12490_v5 = vmul.f32 0.03125, %v12488_v41 }
0x628a   :  { %v12485_v48 = vpop.xlane.xlu0 %12484 }
0x628b   :  { %v12492_v63 = vadd.f32 1e-12, %v12490_v5  ;;  %v12489_v12 = vmul.f32 0.03125, %v12485_v48 }
0x628d   :  { %17758 = vrsqrt.f32 %v12492_v63  ;;  %v12491_v22 = vadd.f32 1e-12, %v12489_v12 }
0x628f   :  { %17760 = vrsqrt.f32 %v12491_v22 }
0x629a   :  { %v17759_v45 = vpop.eup %17758 }
0x629b   :  { %v12496_v61 = vmul.f32 %v17759_v45, %v12480_v18 }
0x629c   :  { %v17761_v60 = vpop.eup %17760 }
0x629d   :  { %v12495_v20 = vmul.f32 %v17761_v60, %v12479_v23  ;;  %v12502_v49 = vmul.f32 %v15230_v24, %v12496_v61 }
0x629f   :  { %v12501_v31 = vmul.f32 %v15230_v24, %v12495_v20  ;;  %v12508_v29 = vadd.f32 %v15231_v19, %v12502_v49 }
0x62a1   :  { %v12507_v1 = vadd.f32 %v15231_v19, %v12501_v31 }
0x62a3   :  { %17199 = vmatprep.mubr.msk.f32.mxu1 %vm277_vm0, %v12507_v1 }
0x62a4   :  { %17200 = vmatmul.mubr.msk.f32.vlgmr.msra.gmra.mxu1 %vm277_vm0, %v12508_v29 }
0x62a5   :  { %17203 = vmatpush3.msra.mxu1 %v15239_v15  ;;  %17210 = vmatprep.mubr.msk.f32.mxu1 %vm277_vm0, %v12507_v1 }
0x62a6   :  { %17204 = vmatprep.subr.mxu1 %v15238_v51 }
0x62a7   :  { %17205 = vmatpush3.msra.mxu1 %v15238_v51 }
0x62a8   :  { %17206 = vmatprep.subr.mxu1 %v15237_v58 }
0x62a9   :  { %17207 = vmatpush3.msra.mxu1 %v15237_v58 }
0x62aa   :  { %17208 = vmatprep.subr.mxu1 %v15236_v8 }
0x62ab   :  { %17209 = vmatpush3.msra.mxu1 %v15236_v8 }
0x62ac   :  { %17211 = vmatmul.mubr.msk.f32.vlgmr.msra.gmra.mxu1 %vm277_vm0, %v12508_v29  ;;  %17213 = vmatprep.subr.mxu1 %v15243_v32 }
0x62ad   :  { %17214 = vmatpush3.msra.mxu1 %v15243_v32  ;;  %17221 = vmatprep.mubr.msk.f32.mxu1 %vm277_vm0, %v12507_v1 }
0x62ae   :  { %17215 = vmatprep.subr.mxu1 %v15242_v9 }
0x62af   :  { %17216 = vmatpush3.msra.mxu1 %v15242_v9 }
0x62b0   :  { %17217 = vmatprep.subr.mxu1 %v15241_v26 }
0x62b1   :  { %17218 = vmatpush3.msra.mxu1 %v15241_v26 }
0x62b2   :  { %17219 = vmatprep.subr.mxu1 %v15240_v39 }
0x62b3   :  { %17220 = vmatpush3.msra.mxu1 %v15240_v39 }
0x62b4   :  { %17222 = vmatmul.mubr.msk.f32.vlgmr.msra.gmra.mxu1 %vm277_vm0, %v12508_v29 }
0x6364   :  { %v17201_v10 = vpop.f32.mrf.mxu1 }
0x6365   :  { %v19884_v25 = vadd.f32 %v17201_v10, %v15248_v11 }
0x6366   :  { %v12609_v43 = vpop.f32.mrf.mxu1 }
0x6367   :  { %v19862_v17 = vadd.f32 %v15248_v11, %v12609_v43 }
0x6369   :  { %12970 = vrot.lane.b32.xlu1 %v19862_v17, %s18029_s24  ;;  %17228 = vmatprep.mubr.msk.f32.mxu1 %vm580_vm1, %v19862_v17 }
0x636c   :  { %v17212_v27 = vpop.f32.mrf.mxu1 }
0x636d   :  { %v19869_v14 = vadd.f32 %v17212_v27, %v15251_v36 }
0x636e   :  { %v12688_v0 = vpop.f32.mrf.mxu1 }
0x636f   :  { %v19871_v33 = vadd.f32 %v15251_v36, %v12688_v0  ;;  %12976 = vrot.lane.b32.xlu0 %v19869_v14, %s18029_s24  ;;  %17224 = vmatprep.subr.msk.mxu1 %vm580_vm1, %v19869_v14 }
0x6370   :  { %17225 = vmatpush3.xpose.msk.msra.mxu1 %vm580_vm1, %v19869_v14 }
0x6371   :  { %17226 = vmatprep.subr.msk.mxu1 %vm580_vm1, %v19871_v33  ;;  %12974 = vrot.lane.b32.xlu1 %v19871_v33, %s18029_s24 }
0x6374   :  { %v17223_v53 = vpop.f32.mrf.mxu1  ;;  %17227 = vmatpush3.xpose.msk.msra.mxu1 %vm580_vm1, %v19871_v33 }
0x6375   :  { %v19888_v30 = vadd.f32 %v17223_v53, %v15254_v7  ;;  %12972 = vrot.lane.b32.xlu1 %v19884_v25, %s18029_s24  ;;  %v15245_v53 = vld [vmem:[%s20166_s15 + $0x68] sm:$0xff] }
0x6376   :  { %v12767_v54 = vpop.f32.mrf.mxu1 }
0x6377   :  { %v19892_v28 = vadd.f32 %v15254_v7, %v12767_v54  ;;  %17229 = vmatmul.mubr.msk.f32.vlgmr.msra.gmra.mxu1 %vm580_vm1, %v19884_v25  ;;  %17231 = vmatprep.subr.mxu0 %v19888_v30 }
0x6378   :  { %17232 = vmatpush3.msra.mxu0 %v19888_v30 }
0x6379   :  { %17233 = vmatprep.subr.mxu0 %v19892_v28 }
0x637a   :  { %17234 = vmatpush3.msra.mxu0 %v19892_v28 }
0x63db   :  { %v12971_v50 = vpop.permute.xlu1 %12970 }
0x63dc   :  { %17242 = vmatprep.mubr.msk.f32.mxu1 %vm580_vm1, %v12971_v50 }
0x63e1   :  { %v12977_v55 = vpop.permute.xlu0 %12976 }
0x63e2   :  { %17238 = vmatprep.subr.msk.mxu1 %vm580_vm1, %v12977_v55 }
0x63e3   :  { %v12975_v38 = vpop.permute.xlu1 %12974  ;;  %17239 = vmatpush3.xpose.msk.msra.mxu1 %vm580_vm1, %v12977_v55 }
0x63e4   :  { %17240 = vmatprep.subr.msk.mxu1 %vm580_vm1, %v12975_v38 }
0x63e7   :  { %17241 = vmatpush3.xpose.msk.msra.mxu1 %vm580_vm1, %v12975_v38  ;;  %v12973_v57 = vpop.permute.xlu1 %12972 }
0x63ea   :  { %17243 = vmatmul.mubr.msk.f32.vlgmr.msra.gmra.mxu1 %vm580_vm1, %v12973_v57 }
0x6437   :  { %v17230_v21 = vpop.f32.mrf.mxu1 }
0x6438   :  { %v12864_v42 = vmul.f32 0.35355338, %v17230_v21 }
0x6439   :  { %v12854_v18 = vpop.f32.mrf.mxu1 }
0x643a   :  { %v12866_v23 = vadd.f32 %v19907_v6, %v12864_v42  ;;  %v12863_v44 = vmul.f32 0.35355338, %v12854_v18 }
0x643c   :  { %v12865_v59 = vadd.f32 %v19735_v34, %v12863_v44  ;;  %v12870_v62 = vsel %vm672_vm2, %v12866_v23, -inf }
0x643d   :  { %12871 = vmax.xlane.f32.xlu1 %v12870_v62 }
0x643e   :  { %v12867_v2 = vsel %vm672_vm2, %v12865_v59, -inf }
0x643f   :  { %12868 = vmax.xlane.f32.xlu0 %v12867_v2 }
0x64aa   :  { %v17244_v3 = vpop.f32.mrf.mxu1 }
0x64ab   :  { %v13062_v37 = vmul.f32 0.35355338, %v17244_v3 }
0x64ac   :  { %v13052_v35 = vpop.f32.mrf.mxu1 }
0x64ad   :  { %v13061_v4 = vmul.f32 0.35355338, %v13052_v35  ;;  %v13064_v41 = vadd.f32 %v19907_v6, %v13062_v37 }
0x64af   :  { %v13063_v15 = vadd.f32 %v19735_v34, %v13061_v4  ;;  %v13068_v48 = vsel %vm672_vm2, %v13064_v41, -inf }
0x64b1   :  { %v13065_v5 = vsel %vm672_vm2, %v13063_v15, -inf }
0x64b2   :  { %13066 = vmax.xlane.f32.xlu0 %v13065_v5 }
0x64b6   :  { %13069 = vmax.xlane.f32.xlu0 %v13068_v48 }
0x64c6   :  { %v12872_v63 = vpop.xlane.xlu1 %12871 }
0x64c7   :  { %v12874_v12 = vsub.f32 %v12866_v23, %v12872_v63 }
0x64c8   :  { %v12869_v22 = vpop.xlane.xlu0 %12868 }
0x64c9   :  { %v12877_v45 = vmul.f32 1.442695, %v12874_v12  ;;  %v12873_v24 = vsub.f32 %v12865_v59, %v12869_v22  ;;  %v17825_v12 = vld [vmem:[%s20149_s25] sm:$0xff] }
0x64cb   :  { %17762 = vpow2.f32 %v12877_v45  ;;  %v12875_v61 = vmul.f32 1.442695, %v12873_v24 }
0x64cd   :  { %17764 = vpow2.f32 %v12875_v61 }
0x64d8   :  { %v17763_v60 = vpop.eup %17762 }
0x64d9   :  { %v12882_v20 = vsel %vm672_vm2, %v17763_v60, 0.0 }
0x64da   :  { %v17765_v34 = vpop.eup %17764  ;;  %12883 = vadd.xlane.f32.xlu1 %v12882_v20 }
0x64db   :  { %v12879_v49 = vsel %vm672_vm2, %v17765_v34, 0.0 }
0x64dc   :  { %12880 = vadd.xlane.f32.xlu0 %v12879_v49 }
0x653b   :  { %v13067_v19 = vpop.xlane.xlu0 %13066 }
0x653c   :  { %v13071_v31 = vsub.f32 %v13063_v15, %v13067_v19 }
0x653e   :  { %v13073_v1 = vmul.f32 1.442695, %v13071_v31 }
0x653f   :  { %v13070_v29 = vpop.xlane.xlu0 %13069 }
0x6540   :  { %17766 = vpow2.f32 %v13073_v1  ;;  %v13072_v51 = vsub.f32 %v13064_v41, %v13070_v29 }
0x6542   :  { %v13075_v58 = vmul.f32 1.442695, %v13072_v51 }
0x6544   :  { %17768 = vpow2.f32 %v13075_v58 }
0x654d   :  { %v17767_v8 = vpop.eup %17766 }
0x654e   :  { %v13077_v32 = vsel %vm672_vm2, %v17767_v8, 0.0 }
0x654f   :  { %13078 = vadd.xlane.f32.xlu0 %v13077_v32 }
0x6551   :  { %v17769_v9 = vpop.eup %17768 }
0x6552   :  { %v13080_v26 = vsel %vm672_vm2, %v17769_v9, 0.0 }
0x6553   :  { %13081 = vadd.xlane.f32.xlu1 %v13080_v26 }
0x6563   :  { %v12884_v39 = vpop.xlane.xlu1 %12883 }
0x6564   :  { %13089 = vrot.lane.b32.xlu1 %v19892_v28, %s18029_s24  ;;  %17770 = vrcp.f32 %v12884_v39 }
0x6565   :  { %13091 = vrot.lane.b32.xlu0 %v19888_v30, %s18029_s24  ;;  %v12881_v10 = vpop.xlane.xlu0 %12880 }
0x6566   :  { %17772 = vrcp.f32 %v12881_v10 }
0x6568   :  { %13344 = vrot.lane.b32.xlu1 %v19869_v14, %s18030_s0 }
0x6569   :  { %13338 = vrot.lane.b32.xlu0 %v19862_v17, %s18030_s0 }
0x656c   :  { %13342 = vrot.lane.b32.xlu1 %v19871_v33, %s18030_s0 }
0x656d   :  { %13631 = vrot.lane.b32.xlu0 %v19869_v14, %s18031_s26  ;;  %v15244_v14 = vld [vmem:[%s20166_s15 + $0x60] sm:$0xff] }
0x656e   :  { %17257 = vmatprep.subr.mxu1 %v15244_v14 }
0x656f   :  { %17258 = vmatpush3.msra.mxu1 %v15244_v14 }
0x6570   :  { %13340 = vrot.lane.b32.xlu1 %v19884_v25, %s18030_s0 }
0x6571   :  { %13625 = vrot.lane.b32.xlu0 %v19862_v17, %s18031_s26  ;;  %v17771_v11 = vpop.eup %17770 }
0x6572   :  { %v12888_v27 = vmul.f32 %v17771_v11, %v17763_v60 }
0x6573   :  { %v17773_v43 = vpop.eup %17772 }
0x6574   :  { %13629 = vrot.lane.b32.xlu1 %v19871_v33, %s18031_s26  ;;  %v12887_v36 = vmul.f32 %v17773_v43, %v17765_v34 }
0x6576   :  { %17235 = vmatprep.mubr.msk.f32.mxu0 %vm672_vm2, %v12887_v36 }
0x6577   :  { %17236 = vmatmul.mubr.msk.f32.vlgmr.msra.gmra.mxu0 %vm672_vm2, %v12888_v27 }
0x6578   :  { %13627 = vrot.lane.b32.xlu1 %v19884_v25, %s18031_s26 }
0x65d8   :  { %v13079_v0 = vpop.xlane.xlu0 %13078 }
0x65d9   :  { %17774 = vrcp.f32 %v13079_v0 }
0x65dc   :  { %v13082_v17 = vpop.xlane.xlu1 %13081  ;;  %v13092_v7 = vpop.permute.xlu0 %13091 }
0x65dd   :  { %17776 = vrcp.f32 %v13082_v17  ;;  %17245 = vmatprep.subr.mxu0 %v13092_v7 }
0x65de   :  { %17246 = vmatpush3.msra.mxu0 %v13092_v7  ;;  %v14996_v7 = vld [vmem:[#allocation10 + $0x3] ss:$0 sm:$0xff] }
0x65e0   :  { %v13090_v33 = vpop.permute.xlu1 %13089  ;;  %v13339_v42 = vpop.permute.xlu0 %13338 }
0x65e1   :  { %17247 = vmatprep.subr.mxu0 %v13090_v33 }
0x65e2   :  { %17248 = vmatpush3.msra.mxu0 %v13090_v33  ;;  %v7064_v33 = vadd.f32 %v19243_v46, %v14996_v7 }
0x65e3   :  { %17252 = vmatprep.subr.mxu0 %v15245_v53 }
0x65e4   :  { %v13345_v38 = vpop.permute.xlu1 %13344  ;;  %v13632_v59 = vpop.permute.xlu0 %13631 }
0x65e6   :  { %v17775_v54 = vpop.eup %17774 }
0x65e7   :  { %v13085_v50 = vmul.f32 %v17775_v54, %v17767_v8 }
0x65e8   :  { %v13343_v23 = vpop.permute.xlu1 %13342  ;;  %v13626_v2 = vpop.permute.xlu0 %13625 }
0x65e9   :  { %17249 = vmatprep.mubr.msk.f32.mxu0 %vm672_vm2, %v13085_v50 }
0x65ea   :  { %v17777_v25 = vpop.eup %17776 }
0x65eb   :  { %v13086_v55 = vmul.f32 %v17777_v25, %v17769_v9 }
0x65ec   :  { %v13341_v62 = vpop.permute.xlu1 %13340 }
0x65ed   :  { %17250 = vmatmul.mubr.msk.f32.vlgmr.msra.gmra.mxu0 %vm672_vm2, %v13086_v55  ;;  %v15246_v55 = vld [vmem:[%s20166_s15 + $0x70] sm:$0xff] }
0x65ee   :  { %17253 = vmatpush3.msra.mxu0 %v15245_v53  ;;  %v7068_v53 = vadd.f32 %v7064_v33, %v19104_v13 }
0x65ef   :  { %17262 = vmatprep.subr.msk.mxu0 %vm580_vm1, %v13345_v38 }
0x65f0   :  { %v13630_v3 = vpop.permute.xlu1 %13629  ;;  %v13925_v54 = vsel %vm277_vm0, %v7068_v53, 0.0 }
0x65f4   :  { %v13628_v35 = vpop.permute.xlu1 %13627 }
0x6637   :  { %v17237_v57 = vpop.f32.mrf.mxu0 }
0x6639   :  { %v12961_v21 = vpop.f32.mrf.mxu0 }
0x663a   :  { %17259 = vmatprep.mubr.msk.f32.mxu1 %vm580_vm1, %v12961_v21 }
0x663b   :  { %17260 = vmatmul.mubr.msk.f32.vlgmr.msra.gmra.mxu1 %vm580_vm1, %v17237_v57 }
0x66ad   :  { %v17251_v18 = vpop.f32.mrf.mxu0 }
0x66af   :  { %v13167_v44 = vpop.f32.mrf.mxu0 }
0x66b0   :  { %17254 = vmatprep.mubr.msk.f32.mxu0 %vm580_vm1, %v13167_v44 }
0x66b1   :  { %17255 = vmatmul.mubr.msk.f32.vlgmr.msra.gmra.mxu0 %vm580_vm1, %v17251_v18 }
0x66b2   :  { %17263 = vmatpush3.xpose.msk.msra.mxu0 %vm580_vm1, %v13345_v38  ;;  %17266 = vmatprep.mubr.msk.f32.mxu0 %vm580_vm1, %v13339_v42 }
0x66b3   :  { %17264 = vmatprep.subr.msk.mxu0 %vm580_vm1, %v13343_v23 }
0x66b6   :  { %17265 = vmatpush3.xpose.msk.msra.mxu0 %vm580_vm1, %v13343_v23 }
0x66b7   :  { %17281 = vmatprep.subr.msk.mxu0 %vm580_vm1, %v13632_v59 }
0x66b9   :  { %17267 = vmatmul.mubr.msk.f32.vlgmr.msra.gmra.mxu0 %vm580_vm1, %v13341_v62 }
0x66ba   :  { %17282 = vmatpush3.xpose.msk.msra.mxu0 %vm580_vm1, %v13632_v59  ;;  %17285 = vmatprep.mubr.msk.f32.mxu0 %vm580_vm1, %v13626_v2  ;;  %v7059_v2 = vadd.f32 %v14996_v7, %v19245_v56 }
0x66bb   :  { %17283 = vmatprep.subr.msk.mxu0 %vm580_vm1, %v13630_v3 }
0x66be   :  { %17284 = vmatpush3.xpose.msk.msra.mxu0 %vm580_vm1, %v13630_v3 }
0x66c1   :  { %17286 = vmatmul.mubr.msk.f32.vlgmr.msra.gmra.mxu0 %vm580_vm1, %v13628_v35  ;;  %v7067_v35 = vadd.f32 %v7059_v2, %v19110_v16  ;;  %v14051_v2 = vld [vmem:[#allocation7 + $0x1] sm:$0x1] }
0x6771   :  { %v19963_v37 = vpop.f32.mrf.mxu0 }
0x6773   :  { %v19965_v4 = vpop.f32.mrf.mxu0 }
0x6779   :  { %v17268_v15 = vpop.f32.mrf.mxu0 }
0x677a   :  { %v13430_v41 = vmul.f32 0.35355338, %v17268_v15 }
0x677b   :  { %v13420_v5 = vpop.f32.mrf.mxu0 }
0x677c   :  { %v13432_v48 = vadd.f32 %v19907_v6, %v13430_v41  ;;  %v13429_v63 = vmul.f32 0.35355338, %v13420_v5  ;;  %v13922_v41 = vsel %vm277_vm0, %v7067_v35, 0.0 }
0x677e   :  { %v13431_v22 = vadd.f32 %v17825_v12, %v13429_v63  ;;  %v13436_v45 = vsel %vm672_vm2, %v13432_v48, -inf  ;;  %v17261_v63 = vpop.f32.mrf.mxu1 }
0x677f   :  { %13437 = vmax.xlane.f32.xlu1 %v13436_v45 }
0x6780   :  { %v13433_v24 = vsel %vm672_vm2, %v13431_v22, -inf }
0x6781   :  { %13434 = vmax.xlane.f32.xlu0 %v13433_v24  ;;  %v17287_v61 = vpop.f32.mrf.mxu0 }
0x6782   :  { %v13717_v36 = vmul.f32 0.35355338, %v17287_v61 }
0x6783   :  { %v13707_v60 = vpop.f32.mrf.mxu0 }
0x6784   :  { %v13716_v20 = vmul.f32 0.35355338, %v13707_v60  ;;  %v13719_v27 = vadd.f32 %v19907_v6, %v13717_v36 }
0x6786   :  { %v13718_v34 = vadd.f32 %v17825_v12, %v13716_v20  ;;  %v13723_v14 = vsel %vm672_vm2, %v13719_v27, -inf }
0x6788   :  { %v13720_v49 = vsel %vm672_vm2, %v13718_v34, -inf }
0x6790   :  { %13455 = vrot.lane.b32.xlu1 %v19892_v28, %s18030_s0 }
0x67b4   :  { %13721 = vmax.xlane.f32.xlu1 %v13720_v49 }
0x6808   :  { %v13438_v19 = vpop.xlane.xlu1 %13437 }
0x6809   :  { %v13440_v31 = vsub.f32 %v13432_v48, %v13438_v19 }
0x680a   :  { %v13435_v1 = vpop.xlane.xlu0 %13434 }
0x680b   :  { %v13443_v29 = vmul.f32 1.442695, %v13440_v31  ;;  %v13439_v51 = vsub.f32 %v13431_v22, %v13435_v1  ;;  %v15247_v1 = vld [vmem:[%s20166_s15 + $0x78] sm:$0xff] }
0x680c   :  { %v13456_v39 = vpop.permute.xlu1 %13455 }
0x680d   :  { %17778 = vpow2.f32 %v13443_v29  ;;  %v13441_v58 = vmul.f32 1.442695, %v13439_v51  ;;  %v15295_v29 = vld [vmem:[%s20174_s12 + $0x38] sm:$0xff]  ;;  %v15294_v51 = vld [vmem:[%s20174_s12 + $0x30] sm:$0xff] }
0x680e   :  { %17300 = vmatprep.subr.mxu0 %v15295_v29 }
0x680f   :  { %17780 = vpow2.f32 %v13441_v58  ;;  %17301 = vmatpush3.msra.mxu0 %v15295_v29  ;;  %v15293_v58 = vld [vmem:[%s20174_s12 + $0x28] sm:$0xff] }
0x6810   :  { %17302 = vmatprep.subr.mxu0 %v15294_v51 }
0x6811   :  { %17303 = vmatpush3.msra.mxu0 %v15294_v51 }
0x6812   :  { %17304 = vmatprep.subr.mxu0 %v15293_v58 }
0x6813   :  { %17305 = vmatpush3.msra.mxu0 %v15293_v58 }
0x681a   :  { %v17779_v8 = vpop.eup %17778 }
0x681b   :  { %v13448_v32 = vsel %vm672_vm2, %v17779_v8, 0.0 }
0x681c   :  { %v17781_v9 = vpop.eup %17780  ;;  %13449 = vadd.xlane.f32.xlu0 %v13448_v32 }
0x681d   :  { %v13445_v26 = vsel %vm672_vm2, %v17781_v9, 0.0 }
0x6820   :  { %13446 = vadd.xlane.f32.xlu0 %v13445_v26 }
0x6836   :  { %13457 = vrot.lane.b32.xlu0 %v19888_v30, %s18030_s0 }
0x683d   :  { %v13722_v10 = vpop.xlane.xlu1 %13721 }
0x683e   :  { %v13726_v11 = vsub.f32 %v13718_v34, %v13722_v10 }
0x6840   :  { %v13728_v43 = vmul.f32 1.442695, %v13726_v11 }
0x6842   :  { %17782 = vpow2.f32 %v13728_v43 }
0x684f   :  { %v17783_v0 = vpop.eup %17782 }
0x6850   :  { %v13732_v17 = vsel %vm672_vm2, %v17783_v0, 0.0 }
0x6855   :  { %13724 = vmax.xlane.f32.xlu0 %v13723_v14 }
0x6859   :  { %13733 = vadd.xlane.f32.xlu0 %v13732_v17 }
0x686f   :  { %13744 = vrot.lane.b32.xlu0 %v19888_v30, %s18031_s26 }
0x688e   :  { %13926 = vadd.xlane.f32.xlu0 %v13925_v54  ;;  %v15290_v54 = vld [vmem:[#allocation2 + $0x1] ss:$0 sm:$0xff] }
0x68a5   :  { %v13450_v6 = vpop.xlane.xlu0 %13449 }
0x68a6   :  { %17784 = vrcp.f32 %v13450_v6 }
0x68a9   :  { %v13447_v50 = vpop.xlane.xlu0 %13446 }
0x68aa   :  { %17786 = vrcp.f32 %v13447_v50 }
0x68ad   :  { %v13458_v25 = vpop.permute.xlu0 %13457 }
0x68ae   :  { %17269 = vmatprep.subr.mxu1 %v13458_v25 }
0x68af   :  { %17270 = vmatpush3.msra.mxu1 %v13458_v25 }
0x68b0   :  { %17271 = vmatprep.subr.mxu1 %v13456_v39 }
0x68b1   :  { %17272 = vmatpush3.msra.mxu1 %v13456_v39  ;;  %v13335_v39 = vadd.f32 %v17261_v63, %v19963_v37 }
0x68b2   :  { %17276 = vmatprep.subr.mxu1 %v15246_v55 }
0x68b3   :  { %v17785_v30 = vpop.eup %17784 }
0x68b4   :  { %v13454_v46 = vmul.f32 %v17785_v30, %v17779_v8  ;;  %v15292_v8 = vld [vmem:[%s20174_s12 + $0x20] sm:$0xff] }
0x68b5   :  { %17306 = vmatprep.subr.mxu0 %v15292_v8 }
0x68b6   :  { %17307 = vmatpush3.msra.mxu0 %v15292_v8 }
0x68b7   :  { %v17787_v38 = vpop.eup %17786 }
0x68b8   :  { %v13453_v57 = vmul.f32 %v17787_v38, %v17781_v9 }
0x68ba   :  { %17273 = vmatprep.mubr.msk.f32.mxu1 %vm672_vm2, %v13453_v57 }
0x68bb   :  { %17274 = vmatmul.mubr.msk.f32.vlgmr.msra.gmra.mxu1 %vm672_vm2, %v13454_v46  ;;  %v15307_v46 = vld [vmem:[%s20175_s28 + $0x38] sm:$0xff] }
0x68bc   :  { %17277 = vmatpush3.msra.mxu1 %v15246_v55  ;;  %v15291_v55 = vld [vmem:[#allocation4 + $0x1] ss:$0 sm:$0xff] }
0x68de   :  { %v13725_v13 = vpop.xlane.xlu0 %13724 }
0x68df   :  { %v13727_v21 = vsub.f32 %v13719_v27, %v13725_v13  ;;  %v15306_v13 = vld [vmem:[%s20175_s28 + $0x30] sm:$0xff] }
0x68e1   :  { %v13730_v42 = vmul.f32 1.442695, %v13727_v21  ;;  %v15303_v21 = vld [vmem:[%s20176_s1 + $0x38] sm:$0xff] }
0x68e2   :  { %v13734_v18 = vpop.xlane.xlu0 %13733  ;;  %17322 = vmatprep.subr.mxu0 %v15303_v21 }
0x68e3   :  { %17788 = vpow2.f32 %v13730_v42  ;;  %v15305_v42 = vld [vmem:[%s20175_s28 + $0x28] sm:$0xff] }
0x68e4   :  { %17790 = vrcp.f32 %v13734_v18  ;;  %v15302_v18 = vld [vmem:[%s20176_s1 + $0x30] sm:$0xff] }
0x68e6   :  { %v13745_v23 = vpop.permute.xlu0 %13744 }
0x68e7   :  { %17288 = vmatprep.subr.mxu1 %v13745_v23 }
0x68f0   :  { %v17789_v44 = vpop.eup %17788 }
0x68f1   :  { %v13735_v59 = vsel %vm672_vm2, %v17789_v44, 0.0  ;;  %v17791_v12 = vpop.eup %17790 }
0x68f2   :  { %13736 = vadd.xlane.f32.xlu1 %v13735_v59  ;;  %v13740_v16 = vmul.f32 %v17791_v12, %v17783_v0  ;;  %v15300_v59 = vld [vmem:[%s20176_s1 + $0x20] sm:$0xff] }
0x68f3   :  { %v15289_v12 = vld [vmem:[%s20167_s16 + $0x3] ss:$0 sm:$0xff] }
0x6903   :  { %13742 = vrot.lane.b32.xlu1 %v19892_v28, %s18031_s26  ;;  %v13329_v28 = vpop.f32.mrf.mxu1 }
0x6904   :  { %v13330_v11 = vadd.f32 %v13329_v28, %v19965_v4  ;;  %v17826_v4 = vld [vmem:[%s20157_s29] sm:$0xff] }
0x6917   :  { %v13927_v62 = vpop.xlane.xlu0 %13926 }
0x6918   :  { %v13929_v3 = vmul.f32 0.03125, %v13927_v62  ;;  %v17827_v62 = vld [vmem:[%s20157_s29 + $0x8] sm:$0xff] }
0x691a   :  { %v19994_v15 = vsub.f32 %v7068_v53, %v13929_v3  ;;  %v15299_v3 = vmul.f32 -1.442695, %v14051_v2  ;;  %v15313_v2 = vld [vmem:[%s20169_s6 + $0x3] ss:$0 sm:$0xff] }
0x691c   :  { %v13933_v5 = vmul.f32 %v19994_v15, %v19994_v15 }
0x691e   :  { %v13937_v48 = vsel %vm277_vm0, %v13933_v5, 0.0 }
0x6927   :  { %13923 = vadd.xlane.f32.xlu1 %v13922_v41 }
0x692b   :  { %13938 = vadd.xlane.f32.xlu1 %v13937_v48 }
0x697b   :  { %v17275_v22 = vpop.f32.mrf.mxu1  ;;  %v13737_v56 = vpop.xlane.xlu1 %13736 }
0x697c   :  { %17792 = vrcp.f32 %v13737_v56 }
0x697d   :  { %v13533_v45 = vpop.f32.mrf.mxu1 }
0x697e   :  { %17278 = vmatprep.mubr.msk.f32.mxu1 %vm580_vm1, %v13533_v45  ;;  %v15296_v45 = vld [vmem:[#allocation6 + $0x1] ss:$0 sm:$0xff] }
0x697f   :  { %17279 = vmatmul.mubr.msk.f32.vlgmr.msra.gmra.mxu1 %vm580_vm1, %v17275_v22  ;;  %v13743_v24 = vpop.permute.xlu1 %13742 }
0x6980   :  { %17289 = vmatpush3.msra.mxu1 %v13745_v23  ;;  %17292 = vmatprep.mubr.msk.f32.mxu1 %vm672_vm2, %v13740_v16  ;;  %v15304_v23 = vld [vmem:[%s20175_s28 + $0x20] sm:$0xff] }
0x6981   :  { %17290 = vmatprep.subr.mxu1 %v13743_v24 }
0x6982   :  { %17291 = vmatpush3.msra.mxu1 %v13743_v24 }
0x6983   :  { %17295 = vmatprep.subr.mxu1 %v15247_v1 }
0x6989   :  { %v17793_v61 = vpop.eup %17792 }
0x698a   :  { %v13741_v60 = vmul.f32 %v17793_v61, %v17789_v44  ;;  %v15301_v44 = vld [vmem:[%s20176_s1 + $0x28] sm:$0xff] }
0x698c   :  { %17293 = vmatmul.mubr.msk.f32.vlgmr.msra.gmra.mxu1 %vm672_vm2, %v13741_v60 }
0x698d   :  { %17296 = vmatpush3.msra.mxu1 %v15247_v1 }
0x698e   :  { %17311 = vmatprep.subr.mxu1 %v15307_v46 }
0x69b0   :  { %v13924_v20 = vpop.xlane.xlu1 %13923 }
0x69b1   :  { %v13928_v34 = vmul.f32 0.03125, %v13924_v20 }
0x69b3   :  { %v13930_v49 = vsub.f32 %v7067_v35, %v13928_v34 }
0x69b4   :  { %v13939_v32 = vpop.xlane.xlu1 %13938 }
0x69b5   :  { %v13932_v19 = vmul.f32 %v13930_v49, %v13930_v49  ;;  %v13941_v9 = vmul.f32 0.03125, %v13939_v32 }
0x69b7   :  { %v13934_v31 = vsel %vm277_vm0, %v13932_v19, 0.0  ;;  %v13943_v26 = vadd.f32 1e-12, %v13941_v9 }
0x69b8   :  { %13935 = vadd.xlane.f32.xlu0 %v13934_v31 }
0x69b9   :  { %17794 = vrsqrt.f32 %v13943_v26 }
0x69c6   :  { %v17795_v33 = vpop.eup %17794 }
0x69c7   :  { %v13947_v37 = vmul.f32 %v17795_v33, %v19994_v15 }
0x69c9   :  { %v13953_v25 = vmul.f32 %v15290_v54, %v13947_v37 }
0x69cb   :  { %v13959_v57 = vadd.f32 %v15291_v55, %v13953_v25 }
0x6a3f   :  { %v17280_v10 = vpop.f32.mrf.mxu1 }
0x6a40   :  { %v13624_v43 = vadd.f32 %v17280_v10, %v13335_v39 }
0x6a41   :  { %v13614_v36 = vpop.f32.mrf.mxu1  ;;  %v13936_v27 = vpop.xlane.xlu0 %13935 }
0x6a42   :  { %v13623_v14 = vadd.f32 %v13614_v36, %v13330_v11  ;;  %v13940_v0 = vmul.f32 0.03125, %v13936_v27 }
0x6a44   :  { %v13942_v17 = vadd.f32 1e-12, %v13940_v0 }
0x6a46   :  { %17796 = vrsqrt.f32 %v13942_v17 }
0x6a47   :  { %17798 = vpow2.f32 %v15299_v3 }
0x6a4c   :  { %v17294_v7 = vpop.f32.mrf.mxu1 }
0x6a4e   :  { %v13820_v53 = vpop.f32.mrf.mxu1 }
0x6a4f   :  { %17297 = vmatprep.mubr.msk.f32.mxu1 %vm580_vm1, %v13820_v53 }
0x6a50   :  { %17298 = vmatmul.mubr.msk.f32.vlgmr.msra.gmra.mxu1 %vm580_vm1, %v17294_v7 }
0x6a51   :  { %17319 = vmatprep.mubr.msk.f32.mxu1 %vm277_vm0, %v17826_v4  ;;  %17312 = vmatpush3.msra.mxu1 %v15307_v46  ;;  %v15316_v46 = vld [vmem:[%s20168_s13 + $0x68] sm:$0xff] }
0x6a52   :  { %17313 = vmatprep.subr.mxu1 %v15306_v13 }
0x6a53   :  { %v17797_v6 = vpop.eup %17796  ;;  %17314 = vmatpush3.msra.mxu1 %v15306_v13  ;;  %v15315_v13 = vld [vmem:[%s20168_s13 + $0x60] sm:$0xff] }
0x6a54   :  { %v13946_v50 = vmul.f32 %v17797_v6, %v13930_v49  ;;  %17315 = vmatprep.subr.mxu1 %v15305_v42  ;;  %v17799_v35 = vpop.eup %17798 }
0x6a55   :  { %17316 = vmatpush3.msra.mxu1 %v15305_v42  ;;  %v14055_v15 = vadd.f32 1.0, %v17799_v35 }
0x6a56   :  { %v13952_v30 = vmul.f32 %v15290_v54, %v13946_v50  ;;  %17317 = vmatprep.subr.mxu1 %v15304_v23 }
0x6a57   :  { %17318 = vmatpush3.msra.mxu1 %v15304_v23  ;;  %17800 = vrcp.f32 %v14055_v15 }
0x6a58   :  { %v13958_v38 = vadd.f32 %v15291_v55, %v13952_v30  ;;  %17320 = vmatmul.mubr.msk.f32.vlgmr.msra.gmra.mxu1 %vm277_vm0, %v17827_v62 }
0x6a5a   :  { %17308 = vmatprep.mubr.msk.f32.mxu0 %vm277_vm0, %v13958_v38  ;;  %v15318_v38 = vld [vmem:[%s20168_s13 + $0x78] sm:$0xff] }
0x6a5b   :  { %17309 = vmatmul.mubr.msk.f32.vlgmr.msra.gmra.mxu0 %vm277_vm0, %v13959_v57  ;;  %v15317_v57 = vld [vmem:[%s20168_s13 + $0x70] sm:$0xff]  ;;  %17333 = vmatprep.subr.mxu1 %v15318_v38 }
0x6a5c   :  { %17323 = vmatpush3.msra.mxu0 %v15303_v21  ;;  %17334 = vmatpush3.msra.mxu1 %v15318_v38 }
0x6a5d   :  { %17324 = vmatprep.subr.mxu0 %v15302_v18  ;;  %17335 = vmatprep.subr.mxu1 %v15317_v57 }
0x6a5e   :  { %17325 = vmatpush3.msra.mxu0 %v15302_v18  ;;  %17336 = vmatpush3.msra.mxu1 %v15317_v57 }
0x6a5f   :  { %17326 = vmatprep.subr.mxu0 %v15301_v44  ;;  %17337 = vmatprep.subr.mxu1 %v15316_v46 }
0x6a60   :  { %17327 = vmatpush3.msra.mxu0 %v15301_v44  ;;  %17338 = vmatpush3.msra.mxu1 %v15316_v46 }
0x6a61   :  { %17328 = vmatprep.subr.mxu0 %v15300_v59  ;;  %17339 = vmatprep.subr.mxu1 %v15315_v13 }
0x6a62   :  { %17329 = vmatpush3.msra.mxu0 %v15300_v59  ;;  %17340 = vmatpush3.msra.mxu1 %v15315_v13 }
0x6a64   :  { %v17801_v28 = vpop.eup %17800 }
0x6a65   :  { %v14058_v16 = vsub.f32 1.0, %v17801_v28  ;;  %v14068_v61 = vrot.slane %v17801_v28, %v19781_v47 }
0x6a67   :  { %v14062_v49 = vrot.slane %v14058_v16, %v19781_v47  ;;  %v15333_v16 = vld [vmem:[%s20171_s22 + $0x1d8] sm:$0xff] }
0x6b10   :  { %v17299_v41 = vpop.f32.mrf.mxu1 }
0x6b11   :  { %v13911_v63 = vadd.f32 %v17299_v41, %v13624_v43 }
0x6b12   :  { %v13901_v5 = vpop.f32.mrf.mxu1 }
0x6b13   :  { %v13910_v48 = vadd.f32 %v13901_v5, %v13623_v14  ;;  %v13917_v56 = vadd.f32 %v15289_v12, %v13911_v63  ;;  %v15314_v5 = vld [vmem:[%s20170_s18 + $0x3] ss:$0 sm:$0xff] }
0x6b15   :  { %v13916_v22 = vadd.f32 %v15289_v12, %v13910_v48  ;;  %v13919_v34 = vadd.f32 %v13917_v56, %v19828_v40  ;;  %v15337_v12 = vld [vmem:[%s20171_s22 + $0x1f8] sm:$0xff]  ;;  %v15335_v56 = vld [vmem:[%s20171_s22 + $0x1e8] sm:$0xff] }
0x6b16   :  { %17344 = vmatprep.subr.mxu0 %v15337_v12 }
0x6b17   :  { %v13918_v60 = vadd.f32 %v13916_v22, %v19831_v52  ;;  %v14064_v58 = vmul.f32 %v14062_v49, %v13919_v34  ;;  %v15312_v52 = vld [vmem:[#allocation9 + $0x1] ss:$0 sm:$0xff]  ;;  %v15336_v22 = vld [vmem:[%s20171_s22 + $0x1f0] sm:$0xff] }
0x6b18   :  { %v17321_v9 = vpop.f32.mrf.mxu1  ;;  %v15328_v34 = vld [vmem:[%s20171_s22 + $0x1b0] sm:$0xff] }
0x6b19   :  { %v14063_v29 = vmul.f32 %v14062_v49, %v13918_v60  ;;  %v15330_v60 = vld [vmem:[%s20171_s22 + $0x1c0] sm:$0xff]  ;;  %v15327_v49 = vld [vmem:[%s20171_s22 + $0x1a8] sm:$0xff] }
0x6b1a   :  { %v14155_v10 = vpop.f32.mrf.mxu1 }
0x6b1b   :  { %v17310_v24 = vpop.f32.mrf.mxu0 }
0x6b1c   :  { %v14048_v20 = vadd.f32 %v17310_v24, %v15296_v45  ;;  %v15332_v24 = vld [vmem:[%s20171_s22 + $0x1d0] sm:$0xff] }
0x6b1d   :  { %v14042_v19 = vpop.f32.mrf.mxu0 }
0x6b1e   :  { %v14043_v31 = vadd.f32 %v15296_v45, %v14042_v19  ;;  %v14070_v1 = vmul.f32 %v14068_v61, %v14048_v20  ;;  %v15334_v45 = vld [vmem:[%s20171_s22 + $0x1e0] sm:$0xff]  ;;  %v15329_v20 = vld [vmem:[%s20171_s22 + $0x1b8] sm:$0xff] }
0x6b1f   :  { %v15326_v19 = vld [vmem:[%s20171_s22 + $0x1a0] sm:$0xff] }
0x6b20   :  { %v14069_v51 = vmul.f32 %v14068_v61, %v14043_v31  ;;  %v14072_v32 = vadd.f32 %v14070_v1, %v14064_v58  ;;  %v15331_v61 = vld [vmem:[%s20171_s22 + $0x1c8] sm:$0xff]  ;;  %v15325_v31 = vld [vmem:[%s20171_s22 + $0x198] sm:$0xff]  ;;  %v15324_v1 = vld [vmem:[%s20171_s22 + $0x190] sm:$0xff] }
0x6b21   :  { %v15319_v58 = vld [vmem:[%s20172_s23 + $0x3] ss:$0 sm:$0xff] }
0x6b22   :  { %v14071_v8 = vadd.f32 %v14069_v51, %v14063_v29  ;;  %v15323_v29 = vld [vmem:[%s20171_s22 + $0x188] sm:$0xff]  ;;  %v15322_v51 = vld [vmem:[%s20171_s22 + $0x180] sm:$0xff] }
0x6b24   :  { %17330 = vmatprep.mubr.msk.f32.mxu0 %vm277_vm0, %v14071_v8 }
0x6b25   :  { %17331 = vmatmul.mubr.msk.f32.vlgmr.msra.gmra.mxu0 %vm277_vm0, %v14072_v32 }
0x6b26   :  { %17345 = vmatpush3.msra.mxu0 %v15337_v12 }
0x6b27   :  { %17346 = vmatprep.subr.mxu0 %v15336_v22 }
0x6b28   :  { %17347 = vmatpush3.msra.mxu0 %v15336_v22 }
0x6b29   :  { %17348 = vmatprep.subr.mxu0 %v15335_v56 }
0x6b2a   :  { %17349 = vmatpush3.msra.mxu0 %v15335_v56 }
0x6b2b   :  { %17350 = vmatprep.subr.mxu0 %v15334_v45 }
0x6b2c   :  { %17351 = vmatpush3.msra.mxu0 %v15334_v45 }
0x6b2d   :  { %17352 = vmatprep.subr.mxu0 %v15333_v16 }
0x6b2e   :  { %17353 = vmatpush3.msra.mxu0 %v15333_v16 }
0x6b2f   :  { %17354 = vmatprep.subr.mxu0 %v15332_v24 }
0x6b30   :  { %17355 = vmatpush3.msra.mxu0 %v15332_v24  ;;  %v15339_v24 = vld [vmem:[%s18255_s17] ss:$0 sm:$0xff] }
0x6b31   :  { %17356 = vmatprep.subr.mxu0 %v15331_v61 }
0x6b32   :  { %17357 = vmatpush3.msra.mxu0 %v15331_v61 }
0x6b33   :  { %17358 = vmatprep.subr.mxu0 %v15330_v60 }
0x6b34   :  { %17359 = vmatpush3.msra.mxu0 %v15330_v60 }
0x6b35   :  { %17360 = vmatprep.subr.mxu0 %v15329_v20 }
0x6b36   :  { %17361 = vmatpush3.msra.mxu0 %v15329_v20 }
0x6b37   :  { %17362 = vmatprep.subr.mxu0 %v15328_v34 }
0x6b38   :  { %17363 = vmatpush3.msra.mxu0 %v15328_v34 }
0x6b39   :  { %17364 = vmatprep.subr.mxu0 %v15327_v49 }
0x6b3a   :  { %17365 = vmatpush3.msra.mxu0 %v15327_v49  ;;  %v15340_v49 = vld [vmem:[#allocation12] ss:$0 sm:$0xff] }
0x6b3b   :  { %17366 = vmatprep.subr.mxu0 %v15326_v19 }
0x6b3c   :  { %17367 = vmatpush3.msra.mxu0 %v15326_v19 }
0x6b3d   :  { %17368 = vmatprep.subr.mxu0 %v15325_v31 }
0x6b3e   :  { %17369 = vmatpush3.msra.mxu0 %v15325_v31 }
0x6b3f   :  { %17370 = vmatprep.subr.mxu0 %v15324_v1 }
0x6b40   :  { %17371 = vmatpush3.msra.mxu0 %v15324_v1 }
0x6b41   :  { %17372 = vmatprep.subr.mxu0 %v15323_v29 }
0x6b42   :  { %17373 = vmatpush3.msra.mxu0 %v15323_v29 }
0x6b43   :  { %17374 = vmatprep.subr.mxu0 %v15322_v51 }
0x6b44   :  { %17375 = vmatpush3.msra.mxu0 %v15322_v51 }
0x6be5   :  { %v17332_v26 = vpop.f32.mrf.mxu0 }
0x6be6   :  { %v14242_v39 = vadd.f32 %v17332_v26, %v17321_v9 }
0x6be7   :  { %v14236_v40 = vpop.f32.mrf.mxu0 }
0x6be8   :  { %v14251_v11 = vadd.f32 %v15312_v52, %v14242_v39  ;;  %v14237_v47 = vadd.f32 %v14236_v40, %v14155_v10 }
0x6bea   :  { %v14253_v43 = vmul.f32 0.15, %v14251_v11  ;;  %v14250_v36 = vadd.f32 %v15312_v52, %v14237_v47 }
0x6bec   :  { %v20036_v27 = vadd.f32 %v14253_v43, %v14072_v32  ;;  %v14252_v14 = vmul.f32 0.15, %v14250_v36 }
0x6bee   :  { %v20038_v0 = vadd.f32 %v14252_v14, %v14071_v8  ;;  %v14261_v17 = vsel %vm277_vm0, %v20036_v27, 0.0 }
0x6bef   :  { %14262 = vadd.xlane.f32.xlu1 %v14261_v17 }
0x6bf0   :  { %v14258_v7 = vsel %vm277_vm0, %v20038_v0, 0.0 }
0x6bf1   :  { %14259 = vadd.xlane.f32.xlu0 %v14258_v7 }
0x6c78   :  { %v14263_v33 = vpop.xlane.xlu1 %14262 }
0x6c79   :  { %v14265_v53 = vmul.f32 0.03125, %v14263_v33 }
0x6c7a   :  { %v14260_v37 = vpop.xlane.xlu0 %14259 }
0x6c7b   :  { %v14267_v4 = vsub.f32 %v20036_v27, %v14265_v53  ;;  %v14264_v54 = vmul.f32 0.03125, %v14260_v37 }
0x6c7d   :  { %v14266_v6 = vsub.f32 %v20038_v0, %v14264_v54  ;;  %v14269_v50 = vmul.f32 %v14267_v4, %v14267_v4 }
0x6c7f   :  { %v14273_v25 = vsel %vm277_vm0, %v14269_v50, 0.0  ;;  %v14268_v55 = vmul.f32 %v14266_v6, %v14266_v6 }
0x6c80   :  { %14274 = vadd.xlane.f32.xlu1 %v14273_v25  ;;  %v15338_v25 = vld [vmem:[%s20173_s9 + $0x3] ss:$0 sm:$0xff] }
0x6c81   :  { %v14270_v30 = vsel %vm277_vm0, %v14268_v55, 0.0 }
0x6c82   :  { %14271 = vadd.xlane.f32.xlu0 %v14270_v30 }
0x6d09   :  { %v14275_v21 = vpop.xlane.xlu1 %14274 }
0x6d0a   :  { %v14277_v42 = vmul.f32 0.03125, %v14275_v21 }
0x6d0b   :  { %v14272_v18 = vpop.xlane.xlu0 %14271 }
0x6d0c   :  { %v14279_v23 = vadd.f32 1e-12, %v14277_v42  ;;  %v14276_v44 = vmul.f32 0.03125, %v14272_v18 }
0x6d0e   :  { %17802 = vrsqrt.f32 %v14279_v23  ;;  %v14278_v59 = vadd.f32 1e-12, %v14276_v44 }
0x6d10   :  { %17804 = vrsqrt.f32 %v14278_v59 }
0x6d1b   :  { %v17803_v62 = vpop.eup %17802 }
0x6d1c   :  { %v14283_v3 = vmul.f32 %v17803_v62, %v14267_v4 }
0x6d1d   :  { %v17805_v35 = vpop.eup %17804 }
0x6d1e   :  { %v14282_v15 = vmul.f32 %v17805_v35, %v14266_v6  ;;  %v14289_v41 = vmul.f32 %v15313_v2, %v14283_v3 }
0x6d20   :  { %v14288_v48 = vmul.f32 %v15313_v2, %v14282_v15  ;;  %v14295_v28 = vadd.f32 %v15314_v5, %v14289_v41  ;;  %v14551_v15 = vld [vmem:[%s18265_s5 + $0x18] sm:$0xff]  ;;  %v14550_v41 = vld [vmem:[%s18265_s5 + $0x10] sm:$0xff] }
0x6d21   :  { %17379 = vmatprep.subr.mxu1 %v14551_v15 }
0x6d22   :  { %v14294_v63 = vadd.f32 %v15314_v5, %v14288_v48  ;;  %v14549_v5 = vld [vmem:[%s18265_s5 + $0x8] sm:$0xff]  ;;  %v14548_v48 = vld [vmem:[%s18265_s5] sm:$0xff] }
0x6d24   :  { %17341 = vmatprep.mubr.msk.f32.mxu1 %vm277_vm0, %v14294_v63 }
0x6d25   :  { %17342 = vmatmul.mubr.msk.f32.vlgmr.msra.gmra.mxu1 %vm277_vm0, %v14295_v28 }
0x6d26   :  { %17380 = vmatpush3.msra.mxu1 %v14551_v15 }
0x6d27   :  { %17381 = vmatprep.subr.mxu1 %v14550_v41 }
0x6d28   :  { %17382 = vmatpush3.msra.mxu1 %v14550_v41 }
0x6d29   :  { %17383 = vmatprep.subr.mxu1 %v14549_v5 }
0x6d2a   :  { %17384 = vmatpush3.msra.mxu1 %v14549_v5 }
0x6d2b   :  { %17385 = vmatprep.subr.mxu1 %v14548_v48 }
0x6d2c   :  { %17386 = vmatpush3.msra.mxu1 %v14548_v48 }
0x6de5   :  { %v17343_v8 = vpop.f32.mrf.mxu1 }
0x6de6   :  { %v14384_v32 = vadd.f32 %v17343_v8, %v15319_v58 }
0x6de7   :  { %v14378_v9 = vpop.f32.mrf.mxu1 }
0x6de8   :  { %v14388_v26 = vmul.f32 %v14384_v32, %v14384_v32  ;;  %v14379_v52 = vadd.f32 %v15319_v58, %v14378_v9 }
0x6dea   :  { %v14390_v39 = vmul.f32 %v14388_v26, %v14384_v32  ;;  %v14387_v10 = vmul.f32 %v14379_v52, %v14379_v52 }
0x6dec   :  { %v14392_v40 = vmul.f32 0.044715, %v14390_v39  ;;  %v14389_v11 = vmul.f32 %v14387_v10, %v14379_v52 }
0x6dee   :  { %v14394_v47 = vadd.f32 %v14392_v40, %v14384_v32  ;;  %v14391_v43 = vmul.f32 0.044715, %v14389_v11 }
0x6df0   :  { %v14396_v36 = vmul.f32 0.7978846, %v14394_v47  ;;  %v14393_v14 = vadd.f32 %v14391_v43, %v14379_v52 }
0x6df2   :  { %17806 = vtanh.f32 %v14396_v36  ;;  %v14395_v17 = vmul.f32 0.7978846, %v14393_v14 }
0x6df4   :  { %17808 = vtanh.f32 %v14395_v17 }
0x6dff   :  { %v17807_v7 = vpop.eup %17806 }
0x6e00   :  { %v14400_v33 = vadd.f32 1.0, %v17807_v7 }
0x6e01   :  { %v17809_v53 = vpop.eup %17808 }
0x6e02   :  { %v14399_v37 = vadd.f32 1.0, %v17809_v53  ;;  %v14402_v4 = vmul.f32 0.5, %v14400_v33 }
0x6e04   :  { %v14401_v54 = vmul.f32 0.5, %v14399_v37  ;;  %v14404_v50 = vmul.f32 %v14402_v4, %v14384_v32 }
0x6e06   :  { %v14403_v6 = vmul.f32 %v14401_v54, %v14379_v52 }
0x6e08   :  { %17376 = vmatprep.mubr.f32.mxu0 %v14403_v6 }
0x6e09   :  { %17377 = vmatmul.mubr.f32.vlgmr.msra.gmra.mxu0 %v14404_v50 }
0x6ec9   :  { %v17378_v55 = vpop.f32.mrf.mxu0 }
0x6eca   :  { %v14499_v30 = vadd.f32 %v17378_v55, %v15338_v25 }
0x6ecb   :  { %v14493_v38 = vpop.f32.mrf.mxu0 }
0x6ecc   :  { %v14503_v57 = vadd.f32 %v14499_v30, %v20036_v27  ;;  %v14494_v46 = vadd.f32 %v15338_v25, %v14493_v38 }
0x6ece   :  { %v14502_v13 = vadd.f32 %v14494_v46, %v20038_v0  ;;  %v14509_v21 = vsel %vm277_vm0, %v14503_v57, 0.0 }
0x6ecf   :  { %14510 = vadd.xlane.f32.xlu1 %v14509_v21 }
0x6ed0   :  { %v14506_v42 = vsel %vm277_vm0, %v14502_v13, 0.0 }
0x6ed1   :  { %14507 = vadd.xlane.f32.xlu0 %v14506_v42 }
0x6f58   :  { %v14511_v18 = vpop.xlane.xlu1 %14510 }
0x6f59   :  { %v14513_v23 = vmul.f32 0.03125, %v14511_v18 }
0x6f5a   :  { %v14508_v44 = vpop.xlane.xlu0 %14507 }
0x6f5b   :  { %v14515_v59 = vsub.f32 %v14503_v57, %v14513_v23  ;;  %v14512_v62 = vmul.f32 0.03125, %v14508_v44 }
0x6f5d   :  { %v14514_v2 = vsub.f32 %v14502_v13, %v14512_v62  ;;  %v14517_v27 = vmul.f32 %v14515_v59, %v14515_v59 }
0x6f5f   :  { %v14521_v3 = vsel %vm277_vm0, %v14517_v27, 0.0  ;;  %v14516_v0 = vmul.f32 %v14514_v2, %v14514_v2 }
0x6f60   :  { %14522 = vadd.xlane.f32.xlu1 %v14521_v3 }
0x6f61   :  { %v14518_v35 = vsel %vm277_vm0, %v14516_v0, 0.0 }
0x6f62   :  { %14519 = vadd.xlane.f32.xlu0 %v14518_v35 }
0x6fe9   :  { %v14523_v63 = vpop.xlane.xlu1 %14522 }
0x6fea   :  { %v14525_v28 = vmul.f32 0.03125, %v14523_v63 }
0x6feb   :  { %v14520_v12 = vpop.xlane.xlu0 %14519 }
0x6fec   :  { %v14527_v22 = vadd.f32 1e-05, %v14525_v28  ;;  %v14524_v56 = vmul.f32 0.03125, %v14520_v12 }
0x6fee   :  { %17810 = vrsqrt.f32 %v14527_v22  ;;  %v14526_v45 = vadd.f32 1e-05, %v14524_v56 }
0x6ff0   :  { %17812 = vrsqrt.f32 %v14526_v45 }
0x6ffb   :  { %v17811_v16 = vpop.eup %17810 }
0x6ffc   :  { %v14531_v61 = vmul.f32 %v17811_v16, %v14515_v59 }
0x6ffd   :  { %v17813_v60 = vpop.eup %17812 }
0x6ffe   :  { %v14530_v20 = vmul.f32 %v17813_v60, %v14514_v2  ;;  %v14539_v34 = vmul.f32 %v15339_v24, %v14531_v61 }
0x7000   :  { %v14538_v19 = vmul.f32 %v15339_v24, %v14530_v20  ;;  %v14547_v1 = vadd.f32 %v15340_v49, %v14539_v34 }
0x7002   :  { %v14546_v31 = vadd.f32 %v15340_v49, %v14538_v19 }
0x7004   :  { %17387 = vmatprep.mubr.msk.f32.mxu1 %vm277_vm0, %v14546_v31 }
0x7005   :  { %17388 = vmatmul.mubr.msk.f32.vlgmr.msra.gmra.mxu1 %vm277_vm0, %v14547_v1 }
0x70c5   :  { %v17389_v29 = vpop.f32.mrf.mxu1 }
0x70c6   :  { %14634 = vst [vmem:[%s18270_s21 + $0x8] sm:$0xff] %v17389_v29 }
0x70c7   :  { %v14624_v51 = vpop.f32.mrf.mxu1 }
0x70c8   :  { %14633 = vst [vmem:[%s18270_s21] sm:$0xff] %v14624_v51 }
0x70c9   :  { %14639 = vsyncpa [#allocation3], 1 }
0x70ca   :  { %14640 = vsyncpa [#allocation5], 1 }
0x70cb   :  { %14641 = vsyncpa [#allocation8], 1 }
0x70cc   :  { %14642 = vsyncpa [#allocation11], 1 }

</bundles_post_ra>
